<compile_context>
chip_gen: v5e
topology: v5e:2x2
jax: 0.10.0
libtpu: 0.0.40
codegen_flags: <defaults>
</compile_context>

<pallas_src>
import functools

import jax
import jax.numpy as jnp
from jax.experimental import pallas as pl
from jax.experimental.pallas import tpu as pltpu


def _vmem_capacity_bytes():
    try:
        info = pltpu.get_tpu_info()
        cap = getattr(info, "vmem_capacity_bytes", None)
        if cap:
            return int(cap)
    except Exception:
        pass
    return 64 * 1024 * 1024  # conservative default (v7x per-TC VMEM)


def _largest_divisor_leq(n, cap):
    d = max(1, min(n, cap))
    while n % d != 0:
        d -= 1
    return d


# -----------------------------------------------------------------------------
# Fused Conv3x3(pad=1) + folded-BN + ReLU (+ fused 2x2 MaxPool) kernel
# -----------------------------------------------------------------------------
def _conv_bn_relu_kernel(x_ref, halo_ref, w_ref, scale_ref, bias_ref, o_ref,
                         col_ref, *, pool):
    # x_ref:     (B, TH, W, Cin)    bf16 row strip (no halo rows)
    # halo_ref:  (B, 2,  W, Cin)    bf16: [0]=row above strip, [1]=row below
    #                               (already zero at the image border)
    # w_ref:     (9*Cin, TCO)       bf16 flattened conv weights (dy, dx, cin)
    # scale_ref: (1, TCO)           f32 folded BN scale = gamma/sqrt(var+eps)
    # bias_ref:  (1, TCO)           f32 folded BN bias  = (b-mean)*scale+beta
    # o_ref:     (B, THo, Wo, TCO)  bf16 output strip (2x2-pooled if `pool`)
    # col_ref:   (B, TH, W, 9*Cin)  bf16 VMEM im2col scratch
    B, TH, W, Cin = x_ref.shape
    TCO = o_ref.shape[3]
    ct = pl.program_id(2)

    # Build the im2col scratch once per (image-block, strip); reuse it for
    # every Cout tile (the ct grid axis is innermost and "arbitrary").
    @pl.when(ct == 0)
    def _build_im2col():
        for b in range(B):
            x = x_ref[b]                                      # (TH, W, Cin)
            for dy in range(3):
                for dx in range(3):
                    k = dy * 3 + dx
                    c0, c1 = k * Cin, (k + 1) * Cin
                    w0, w1 = max(0, 1 - dx), min(W, W + 1 - dx)
                    sw0 = w0 + dx - 1
                    wlen = w1 - w0
                    # Halo-only zeroing: just the shifted-out edge column.
                    if dx == 0:
                        col_ref[b, :, 0:1, c0:c1] = jnp.zeros(
                            (TH, 1, Cin), col_ref.dtype)
                    elif dx == 2:
                        col_ref[b, :, W - 1:W, c0:c1] = jnp.zeros(
                            (TH, 1, Cin), col_ref.dtype)
                    # Strip-interior rows of this tap.
                    r0, r1 = max(0, 1 - dy), min(TH, TH + 1 - dy)
                    if r1 > r0:
                        col_ref[b, r0:r1, w0:w1, c0:c1] = (
                            x[r0 + dy - 1:r1 + dy - 1, sw0:sw0 + wlen, :])
                    # Halo rows (row above / below the strip).
                    if dy == 0:
                        col_ref[b, 0:1, w0:w1, c0:c1] = (
                            halo_ref[b, 0:1, sw0:sw0 + wlen, :])
                    elif dy == 2:
                        col_ref[b, TH - 1:TH, w0:w1, c0:c1] = (
                            halo_ref[b, 1:2, sw0:sw0 + wlen, :])

    # One fat MXU matmul per Cout tile: (B*TH*W, 9*Cin) @ (9*Cin, TCO), f32 acc.
    col = col_ref[...].reshape(B * TH * W, 9 * Cin)
    acc = jnp.dot(col, w_ref[...], preferred_element_type=jnp.float32)
    y = jnp.maximum(acc * scale_ref[...] + bias_ref[...], 0.0)  # BN + ReLU

    for b in range(B):
        yb = y[b * TH * W:(b + 1) * TH * W]
        if pool:
            # Fused MaxPool2d(2, 2): reshape + max (no strided ref loads).
            yb = yb.reshape(TH // 2, 2, W // 2, 2, TCO).max(axis=3).max(axis=1)
        else:
            yb = yb.reshape(TH, W, TCO)
        o_ref[b] = yb.astype(o_ref.dtype)


def _choose_tiling(N, H, W, Cin, Cout, pool, vmem_cap):
    # 256-wide Cout tiles match the v6e/v7x 256x256 MXU (fine on v5e too).
    TCO = Cout if Cout <= 256 else 256
    budget = vmem_cap // 6  # im2col-scratch budget
    if H * W <= 1024:
        # Tiny spatial extent: batch-block images into the matmul M dimension.
        bb = _largest_divisor_leq(N, 8)
        while bb > 1 and bb * H * W * 9 * Cin * 2 > budget:
            bb = _largest_divisor_leq(N, bb - 1)
        return bb, H, TCO
    # Large spatial extent: largest row strip whose im2col scratch fits budget.
    th = H
    for d in range(H, 0, -1):
        if H % d or (pool and d % 2):
            continue
        th = d
        if d * W * 9 * Cin * 2 <= budget:
            break
    return 1, th, TCO


def conv_bn_relu(x, w_flat, scale, bias, *, pool, b_blk=None, th=None):
    """x: (N, H, W, Cin) bf16 -> (N, Ho, Wo, Cout) bf16 (Ho = H//2 if pool)."""
    N, H, W, Cin = x.shape
    Cout = w_flat.shape[1]
    vmem_cap = _vmem_capacity_bytes()
    auto_b, auto_th, TCO = _choose_tiling(N, H, W, Cin, Cout, pool, vmem_cap)
    B_blk = auto_b if b_blk is None else b_blk
    TH = auto_th if th is None else th
    assert N % B_blk == 0 and H % TH == 0 and Cout % TCO == 0
    if pool:
        assert TH % 2 == 0 and W % 2 == 0
    n_nb, n_h, n_ct = N // B_blk, H // TH, Cout // TCO
    Ho, Wo = (H // 2, W // 2) if pool else (H, W)
    THo = TH // 2 if pool else TH

    # Per-strip halo rows (row above / below each strip; zeros at the image
    # border), built with cheap XLA slices so the kernel never needs
    # overlapping input blocks.  Layout: halo[:, 2h] = top, halo[:, 2h+1] = bot.
    zrow = jnp.zeros((N, 1, W, Cin), x.dtype)
    xp = jnp.concatenate([zrow, x, zrow], axis=1)          # (N, H+2, W, Cin)
    tops = xp[:, 0:H:TH]                                   # (N, n_h, W, Cin)
    bots = xp[:, TH + 1::TH]                               # (N, n_h, W, Cin)
    halo = jnp.stack([tops, bots], axis=2).reshape(N, 2 * n_h, W, Cin)

    # Explicit scoped-VMEM limit (estimate of per-step usage, 2x-buffered I/O).
    m_rows = B_blk * TH * W
    est = (2 * (B_blk * TH * W * Cin * 2          # x block
                + B_blk * 2 * W * Cin * 2         # halo block
                + 9 * Cin * TCO * 2               # weight tile
                + 2 * TCO * 4                     # scale + bias
                + B_blk * THo * Wo * TCO * 2)     # out block
           + B_blk * TH * W * 9 * Cin * 2         # im2col scratch
           + m_rows * 9 * Cin * 2                 # col operand
           + m_rows * TCO * 4)                    # f32 accumulator
    vmem_limit = int(min(int(0.9 * vmem_cap),
                         max(2 * est, 32 * 1024 * 1024)))

    kernel = functools.partial(_conv_bn_relu_kernel, pool=pool)
    return pl.pallas_call(
        kernel,
        out_shape=jax.ShapeDtypeStruct((N, Ho, Wo, Cout), jnp.bfloat16),
        grid=(n_nb, n_h, n_ct),
        in_specs=[
            pl.BlockSpec((B_blk, TH, W, Cin), lambda nb, h, ct: (nb, h, 0, 0)),
            pl.BlockSpec((B_blk, 2, W, Cin), lambda nb, h, ct: (nb, h, 0, 0)),
            pl.BlockSpec((9 * Cin, TCO), lambda nb, h, ct: (0, ct)),
            pl.BlockSpec((1, TCO), lambda nb, h, ct: (0, ct)),
            pl.BlockSpec((1, TCO), lambda nb, h, ct: (0, ct)),
        ],
        out_specs=pl.BlockSpec((B_blk, THo, Wo, TCO),
                               lambda nb, h, ct: (nb, h, 0, ct)),
        scratch_shapes=[pltpu.VMEM((B_blk, TH, W, 9 * Cin), jnp.bfloat16)],
        compiler_params=pltpu.CompilerParams(
            # Batch and row-strip axes are independent (v7x megacore-shardable);
            # the Cout axis shares the im2col scratch so it stays sequential.
            dimension_semantics=("parallel", "parallel", "arbitrary"),
            vmem_limit_bytes=vmem_limit,
        ),
    )(x, halo, w_flat, scale, bias)


# -----------------------------------------------------------------------------
# Network definition: torchvision vgg16_bn features with layer 33 (pool after
# block 4) and layer 43 (final pool) removed: model = features[:33]+features[34:43]
# (Cin, Cout, maxpool-after) per Conv-BN-ReLU triple.
# -----------------------------------------------------------------------------
LAYERS = [
    (3, 64, False), (64, 64, True),
    (64, 128, False), (128, 128, True),
    (128, 256, False), (256, 256, False), (256, 256, True),
    (256, 512, False), (512, 512, False), (512, 512, False),   # pool removed
    (512, 512, False), (512, 512, False), (512, 512, False),   # pool removed
]

BN_EPS = 1e-5


def init_params(key):
    """Deterministic synthetic params; eval-mode BN folded into scale/bias."""
    params = []
    for cin, cout, _ in LAYERS:
        key, k1, k2, k3, k4, k5, k6 = jax.random.split(key, 7)
        w = 0.05 * jax.random.normal(k1, (3, 3, cin, cout), jnp.float32)  # HWIO
        conv_b = 0.05 * jax.random.normal(k2, (cout,), jnp.float32)
        gamma = 1.0 + 0.1 * jax.random.normal(k3, (cout,), jnp.float32)
        beta = 0.1 * jax.random.normal(k4, (cout,), jnp.float32)
        run_mean = 0.1 * jax.random.normal(k5, (cout,), jnp.float32)
        run_var = jnp.abs(jax.random.normal(k6, (cout,), jnp.float32)) + 0.5
        scale = gamma / jnp.sqrt(run_var + BN_EPS)
        bias = (conv_b - run_mean) * scale + beta
        w_flat = w.reshape(9 * cin, cout).astype(jnp.bfloat16)  # tap-major
        params.append((w_flat, scale.reshape(1, cout), bias.reshape(1, cout)))
    return params


def vgg16bn_forward(x_nchw, params):
    """Input NCHW f32 -> output NCHW f32 (512 channels, H/8 x W/8)."""
    x = jnp.transpose(x_nchw, (0, 2, 3, 1)).astype(jnp.bfloat16)  # NCHW -> NHWC
    for (_, _, pool), (w_flat, scale, bias) in zip(LAYERS, params):
        x = conv_bn_relu(x, w_flat, scale, bias, pool=pool)
    return jnp.transpose(x, (0, 3, 1, 2)).astype(jnp.float32)     # NHWC -> NCHW


# -----------------------------------------------------------------------------
# Pure-JAX reference (for correctness checks only)
# -----------------------------------------------------------------------------
def _conv_bn_relu_reference(x, w_flat, scale, bias, *, pool):
    N, H, W, Cin = x.shape
    Cout = w_flat.shape[1]
    w = w_flat.reshape(3, 3, Cin, Cout)
    y = jax.lax.conv_general_dilated(
        x.astype(jnp.bfloat16), w.astype(jnp.bfloat16),
        window_strides=(1, 1), padding=((1, 1), (1, 1)),
        dimension_numbers=("NHWC", "HWIO", "NHWC"),
        preferred_element_type=jnp.float32)
    y = jnp.maximum(y * scale.reshape(1, 1, 1, Cout)
                    + bias.reshape(1, 1, 1, Cout), 0.0)
    if pool:
        y = y.reshape(N, H // 2, 2, W // 2, 2, Cout).max(axis=(2, 4))
    return y.astype(jnp.bfloat16)


def vgg16bn_reference(x_nchw, params):
    x = jnp.transpose(x_nchw, (0, 2, 3, 1)).astype(jnp.bfloat16)
    for (_, _, pool), (w_flat, scale, bias) in zip(LAYERS, params):
        x = _conv_bn_relu_reference(x, w_flat, scale, bias, pool=pool)
    return jnp.transpose(x, (0, 3, 1, 2)).astype(jnp.float32)


# TODO(synk): BatchNorm is eval-mode only (running stats folded into scale /
# bias); PyTorch train-mode batch statistics are not reproduced.

if __name__ == "__main__":
    key = jax.random.PRNGKey(0)
    pkey, xkey, skey = jax.random.split(key, 3)
    params = init_params(pkey)

    # Small input consistent with the module: NCHW, 3 input channels.
    x = jax.random.normal(xkey, (2, 3, 16, 16), jnp.float32)
    out = jax.block_until_ready(vgg16bn_forward(x, params))
    assert out.shape == (2, 512, 2, 2), out.shape            # (N, 512, H/8, W/8)
    assert bool(jnp.all(jnp.isfinite(out)))
    ref = jax.block_until_ready(vgg16bn_reference(x, params))
    tol = 0.1 + 0.05 * float(jnp.max(jnp.abs(ref)))
    err = float(jnp.max(jnp.abs(out - ref)))
    assert err < tol, (err, tol)

    # Explicitly exercise the row-strip + halo + multi-Cout-tile path (the
    # 16x16 network shapes otherwise pick whole-image / batch-blocked tiles).
    k1, k2 = jax.random.split(skey)
    xs = jax.random.normal(k1, (2, 16, 16, 32), jnp.float32).astype(jnp.bfloat16)
    ws = (0.05 * jax.random.normal(k2, (9 * 32, 512), jnp.float32)
          ).astype(jnp.bfloat16)
    sc = jnp.ones((1, 512), jnp.float32)
    bi = jnp.zeros((1, 512), jnp.float32)
    ys = jax.block_until_ready(
        conv_bn_relu(xs, ws, sc, bi, pool=True, b_blk=1, th=4))
    yr = _conv_bn_relu_reference(xs, ws, sc, bi, pool=True)
    serr = float(jnp.max(jnp.abs(ys.astype(jnp.float32) - yr.astype(jnp.float32))))
    assert serr < 0.1, serr

    print("KERNEL_OK")
</pallas_src>

<mosaic_0001>
module attributes {stable_mosaic.version = 11 : i64} {
  func.func @_conv_bn_relu_kernel(%arg0: i32, %arg1: i32, %arg2: i32, %arg3: memref<2x16x16x3xbf16, #tpu.memory_space<vmem>>, %arg4: memref<2x2x16x3xbf16, #tpu.memory_space<vmem>>, %arg5: memref<27x64xbf16, #tpu.memory_space<vmem>>, %arg6: memref<1x64xf32, #tpu.memory_space<vmem>>, %arg7: memref<1x64xf32, #tpu.memory_space<vmem>>, %arg8: memref<2x16x16x64xbf16, #tpu.memory_space<vmem>>, %arg9: memref<2x16x16x27xbf16, #tpu.memory_space<vmem>>) attributes {dimension_semantics = [#tpu.dimension_semantics<parallel>, #tpu.dimension_semantics<parallel>, #tpu.dimension_semantics<arbitrary>], iteration_bounds = array<i64: 1, 1, 1>, scalar_prefetch = 0 : i64, scratch_operands = 1 : i64, tpu.core_type = #tpu.core_type<tc>, window_params = [{transform_indices = @transform_0, window_bounds = array<i64: 2, 16, 16, 3>}, {transform_indices = @transform_1, window_bounds = array<i64: 2, 2, 16, 3>}, {transform_indices = @transform_2, window_bounds = array<i64: 27, 64>}, {transform_indices = @transform_3, window_bounds = array<i64: 1, 64>}, {transform_indices = @transform_4, window_bounds = array<i64: 1, 64>}, {transform_indices = @transform_5, window_bounds = array<i64: 2, 16, 16, 64>}]} {
    %c0_i32 = arith.constant 0 : i32
    %0 = arith.cmpi eq, %arg2, %c0_i32 : i32
    %1 = arith.extui %0 : i1 to i32
    %c0_i32_0 = arith.constant 0 : i32
    %2 = arith.cmpi ne, %1, %c0_i32_0 : i32
    scf.if %2 {
      %c0_18 = arith.constant 0 : index
      %c0_19 = arith.constant 0 : index
      %c0_20 = arith.constant 0 : index
      %c0_21 = arith.constant 0 : index
      %27 = vector.load %arg3[%c0_18, %c0_19, %c0_20, %c0_21] : memref<2x16x16x3xbf16, #tpu.memory_space<vmem>>, vector<1x16x16x3xbf16>
      %28 = vector.shape_cast %27 : vector<1x16x16x3xbf16> to vector<16x16x3xbf16>
      %cst_22 = arith.constant 0.000000e+00 : bf16
      %29 = vector.broadcast %cst_22 : bf16 to vector<16x1x3xbf16>
      %c0_23 = arith.constant 0 : index
      %c0_24 = arith.constant 0 : index
      %c0_25 = arith.constant 0 : index
      %c0_26 = arith.constant 0 : index
      %30 = vector.load %arg9[%c0_23, %c0_24, %c0_25, %c0_26] : memref<2x16x16x27xbf16, #tpu.memory_space<vmem>>, vector<1x16x1x3xbf16>
      %31 = vector.shape_cast %30 : vector<1x16x1x3xbf16> to vector<16x1x3xbf16>
      %32 = vector.shape_cast %29 : vector<16x1x3xbf16> to vector<1x16x1x3xbf16>
      tpu.vector_store %arg9[%c0_23, %c0_24, %c0_25, %c0_26], %32 {strides = array<i32>} : memref<2x16x16x27xbf16, #tpu.memory_space<vmem>>, vector<1x16x1x3xbf16>,
      %33 = vector.extract_strided_slice %28 {offsets = [0, 0, 0], sizes = [15, 15, 3], strides = [1, 1, 1]} : vector<16x16x3xbf16> to vector<15x15x3xbf16>
      %c0_27 = arith.constant 0 : index
      %c1_28 = arith.constant 1 : index
      %c1_29 = arith.constant 1 : index
      %c0_30 = arith.constant 0 : index
      %34 = vector.load %arg9[%c0_27, %c1_28, %c1_29, %c0_30] : memref<2x16x16x27xbf16, #tpu.memory_space<vmem>>, vector<1x15x15x3xbf16>
      %35 = vector.shape_cast %34 : vector<1x15x15x3xbf16> to vector<15x15x3xbf16>
      %36 = vector.shape_cast %33 : vector<15x15x3xbf16> to vector<1x15x15x3xbf16>
      tpu.vector_store %arg9[%c0_27, %c1_28, %c1_29, %c0_30], %36 {strides = array<i32>} : memref<2x16x16x27xbf16, #tpu.memory_space<vmem>>, vector<1x15x15x3xbf16>,
      %c0_31 = arith.constant 0 : index
      %c0_32 = arith.constant 0 : index
      %c0_33 = arith.constant 0 : index
      %c0_34 = arith.constant 0 : index
      %37 = vector.load %arg4[%c0_31, %c0_32, %c0_33, %c0_34] : memref<2x2x16x3xbf16, #tpu.memory_space<vmem>>, vector<1x1x15x3xbf16>
      %38 = vector.shape_cast %37 : vector<1x1x15x3xbf16> to vector<1x15x3xbf16>
      %c0_35 = arith.constant 0 : index
      %c0_36 = arith.constant 0 : index
      %c1_37 = arith.constant 1 : index
      %c0_38 = arith.constant 0 : index
      %39 = vector.load %arg9[%c0_35, %c0_36, %c1_37, %c0_38] : memref<2x16x16x27xbf16, #tpu.memory_space<vmem>>, vector<1x1x15x3xbf16>
      %40 = vector.shape_cast %39 : vector<1x1x15x3xbf16> to vector<1x15x3xbf16>
      %41 = vector.shape_cast %38 : vector<1x15x3xbf16> to vector<1x1x15x3xbf16>
      tpu.vector_store %arg9[%c0_35, %c0_36, %c1_37, %c0_38], %41 {strides = array<i32>} : memref<2x16x16x27xbf16, #tpu.memory_space<vmem>>, vector<1x1x15x3xbf16>,
      %42 = vector.extract_strided_slice %28 {offsets = [0, 0, 0], sizes = [15, 16, 3], strides = [1, 1, 1]} : vector<16x16x3xbf16> to vector<15x16x3xbf16>
      %c0_39 = arith.constant 0 : index
      %c1_40 = arith.constant 1 : index
      %c0_41 = arith.constant 0 : index
      %c3 = arith.constant 3 : index
      %43 = vector.load %arg9[%c0_39, %c1_40, %c0_41, %c3] : memref<2x16x16x27xbf16, #tpu.memory_space<vmem>>, vector<1x15x16x3xbf16>
      %44 = vector.shape_cast %43 : vector<1x15x16x3xbf16> to vector<15x16x3xbf16>
      %45 = vector.shape_cast %42 : vector<15x16x3xbf16> to vector<1x15x16x3xbf16>
      tpu.vector_store %arg9[%c0_39, %c1_40, %c0_41, %c3], %45 {strides = array<i32>} : memref<2x16x16x27xbf16, #tpu.memory_space<vmem>>, vector<1x15x16x3xbf16>,
      %c0_42 = arith.constant 0 : index
      %c0_43 = arith.constant 0 : index
      %c0_44 = arith.constant 0 : index
      %c0_45 = arith.constant 0 : index
      %46 = vector.load %arg4[%c0_42, %c0_43, %c0_44, %c0_45] : memref<2x2x16x3xbf16, #tpu.memory_space<vmem>>, vector<1x1x16x3xbf16>
      %47 = vector.shape_cast %46 : vector<1x1x16x3xbf16> to vector<1x16x3xbf16>
      %c0_46 = arith.constant 0 : index
      %c0_47 = arith.constant 0 : index
      %c0_48 = arith.constant 0 : index
      %c3_49 = arith.constant 3 : index
      %48 = vector.load %arg9[%c0_46, %c0_47, %c0_48, %c3_49] : memref<2x16x16x27xbf16, #tpu.memory_space<vmem>>, vector<1x1x16x3xbf16>
      %49 = vector.shape_cast %48 : vector<1x1x16x3xbf16> to vector<1x16x3xbf16>
      %50 = vector.shape_cast %47 : vector<1x16x3xbf16> to vector<1x1x16x3xbf16>
      tpu.vector_store %arg9[%c0_46, %c0_47, %c0_48, %c3_49], %50 {strides = array<i32>} : memref<2x16x16x27xbf16, #tpu.memory_space<vmem>>, vector<1x1x16x3xbf16>,
      %cst_50 = arith.constant 0.000000e+00 : bf16
      %51 = vector.broadcast %cst_50 : bf16 to vector<16x1x3xbf16>
      %c0_51 = arith.constant 0 : index
      %c0_52 = arith.constant 0 : index
      %c15 = arith.constant 15 : index
      %c6 = arith.constant 6 : index
      %52 = vector.load %arg9[%c0_51, %c0_52, %c15, %c6] : memref<2x16x16x27xbf16, #tpu.memory_space<vmem>>, vector<1x16x1x3xbf16>
      %53 = vector.shape_cast %52 : vector<1x16x1x3xbf16> to vector<16x1x3xbf16>
      %54 = vector.shape_cast %51 : vector<16x1x3xbf16> to vector<1x16x1x3xbf16>
      tpu.vector_store %arg9[%c0_51, %c0_52, %c15, %c6], %54 {strides = array<i32>} : memref<2x16x16x27xbf16, #tpu.memory_space<vmem>>, vector<1x16x1x3xbf16>,
      %55 = vector.extract_strided_slice %28 {offsets = [0, 1, 0], sizes = [15, 15, 3], strides = [1, 1, 1]} : vector<16x16x3xbf16> to vector<15x15x3xbf16>
      %c0_53 = arith.constant 0 : index
      %c1_54 = arith.constant 1 : index
      %c0_55 = arith.constant 0 : index
      %c6_56 = arith.constant 6 : index
      %56 = vector.load %arg9[%c0_53, %c1_54, %c0_55, %c6_56] : memref<2x16x16x27xbf16, #tpu.memory_space<vmem>>, vector<1x15x15x3xbf16>
      %57 = vector.shape_cast %56 : vector<1x15x15x3xbf16> to vector<15x15x3xbf16>
      %58 = vector.shape_cast %55 : vector<15x15x3xbf16> to vector<1x15x15x3xbf16>
      tpu.vector_store %arg9[%c0_53, %c1_54, %c0_55, %c6_56], %58 {strides = array<i32>} : memref<2x16x16x27xbf16, #tpu.memory_space<vmem>>, vector<1x15x15x3xbf16>,
      %c0_57 = arith.constant 0 : index
      %c0_58 = arith.constant 0 : index
      %c1_59 = arith.constant 1 : index
      %c0_60 = arith.constant 0 : index
      %59 = vector.load %arg4[%c0_57, %c0_58, %c1_59, %c0_60] : memref<2x2x16x3xbf16, #tpu.memory_space<vmem>>, vector<1x1x15x3xbf16>
      %60 = vector.shape_cast %59 : vector<1x1x15x3xbf16> to vector<1x15x3xbf16>
      %c0_61 = arith.constant 0 : index
      %c0_62 = arith.constant 0 : index
      %c0_63 = arith.constant 0 : index
      %c6_64 = arith.constant 6 : index
      %61 = vector.load %arg9[%c0_61, %c0_62, %c0_63, %c6_64] : memref<2x16x16x27xbf16, #tpu.memory_space<vmem>>, vector<1x1x15x3xbf16>
      %62 = vector.shape_cast %61 : vector<1x1x15x3xbf16> to vector<1x15x3xbf16>
      %63 = vector.shape_cast %60 : vector<1x15x3xbf16> to vector<1x1x15x3xbf16>
      tpu.vector_store %arg9[%c0_61, %c0_62, %c0_63, %c6_64], %63 {strides = array<i32>} : memref<2x16x16x27xbf16, #tpu.memory_space<vmem>>, vector<1x1x15x3xbf16>,
      %cst_65 = arith.constant 0.000000e+00 : bf16
      %64 = vector.broadcast %cst_65 : bf16 to vector<16x1x3xbf16>
      %c0_66 = arith.constant 0 : index
      %c0_67 = arith.constant 0 : index
      %c0_68 = arith.constant 0 : index
      %c9 = arith.constant 9 : index
      %65 = vector.load %arg9[%c0_66, %c0_67, %c0_68, %c9] : memref<2x16x16x27xbf16, #tpu.memory_space<vmem>>, vector<1x16x1x3xbf16>
      %66 = vector.shape_cast %65 : vector<1x16x1x3xbf16> to vector<16x1x3xbf16>
      %67 = vector.shape_cast %64 : vector<16x1x3xbf16> to vector<1x16x1x3xbf16>
      tpu.vector_store %arg9[%c0_66, %c0_67, %c0_68, %c9], %67 {strides = array<i32>} : memref<2x16x16x27xbf16, #tpu.memory_space<vmem>>, vector<1x16x1x3xbf16>,
      %68 = vector.extract_strided_slice %28 {offsets = [0, 0, 0], sizes = [16, 15, 3], strides = [1, 1, 1]} : vector<16x16x3xbf16> to vector<16x15x3xbf16>
      %c0_69 = arith.constant 0 : index
      %c0_70 = arith.constant 0 : index
      %c1_71 = arith.constant 1 : index
      %c9_72 = arith.constant 9 : index
      %69 = vector.load %arg9[%c0_69, %c0_70, %c1_71, %c9_72] : memref<2x16x16x27xbf16, #tpu.memory_space<vmem>>, vector<1x16x15x3xbf16>
      %70 = vector.shape_cast %69 : vector<1x16x15x3xbf16> to vector<16x15x3xbf16>
      %71 = vector.shape_cast %68 : vector<16x15x3xbf16> to vector<1x16x15x3xbf16>
      tpu.vector_store %arg9[%c0_69, %c0_70, %c1_71, %c9_72], %71 {strides = array<i32>} : memref<2x16x16x27xbf16, #tpu.memory_space<vmem>>, vector<1x16x15x3xbf16>,
      %c0_73 = arith.constant 0 : index
      %c0_74 = arith.constant 0 : index
      %c0_75 = arith.constant 0 : index
      %c12 = arith.constant 12 : index
      %72 = vector.load %arg9[%c0_73, %c0_74, %c0_75, %c12] : memref<2x16x16x27xbf16, #tpu.memory_space<vmem>>, vector<1x16x16x3xbf16>
      %73 = vector.shape_cast %72 : vector<1x16x16x3xbf16> to vector<16x16x3xbf16>
      %74 = vector.shape_cast %28 : vector<16x16x3xbf16> to vector<1x16x16x3xbf16>
      tpu.vector_store %arg9[%c0_73, %c0_74, %c0_75, %c12], %74 {strides = array<i32>} : memref<2x16x16x27xbf16, #tpu.memory_space<vmem>>, vector<1x16x16x3xbf16>,
      %cst_76 = arith.constant 0.000000e+00 : bf16
      %75 = vector.broadcast %cst_76 : bf16 to vector<16x1x3xbf16>
      %c0_77 = arith.constant 0 : index
      %c0_78 = arith.constant 0 : index
      %c15_79 = arith.constant 15 : index
      %c15_80 = arith.constant 15 : index
      %76 = vector.load %arg9[%c0_77, %c0_78, %c15_79, %c15_80] : memref<2x16x16x27xbf16, #tpu.memory_space<vmem>>, vector<1x16x1x3xbf16>
      %77 = vector.shape_cast %76 : vector<1x16x1x3xbf16> to vector<16x1x3xbf16>
      %78 = vector.shape_cast %75 : vector<16x1x3xbf16> to vector<1x16x1x3xbf16>
      tpu.vector_store %arg9[%c0_77, %c0_78, %c15_79, %c15_80], %78 {strides = array<i32>} : memref<2x16x16x27xbf16, #tpu.memory_space<vmem>>, vector<1x16x1x3xbf16>,
      %79 = vector.extract_strided_slice %28 {offsets = [0, 1, 0], sizes = [16, 15, 3], strides = [1, 1, 1]} : vector<16x16x3xbf16> to vector<16x15x3xbf16>
      %c0_81 = arith.constant 0 : index
      %c0_82 = arith.constant 0 : index
      %c0_83 = arith.constant 0 : index
      %c15_84 = arith.constant 15 : index
      %80 = vector.load %arg9[%c0_81, %c0_82, %c0_83, %c15_84] : memref<2x16x16x27xbf16, #tpu.memory_space<vmem>>, vector<1x16x15x3xbf16>
      %81 = vector.shape_cast %80 : vector<1x16x15x3xbf16> to vector<16x15x3xbf16>
      %82 = vector.shape_cast %79 : vector<16x15x3xbf16> to vector<1x16x15x3xbf16>
      tpu.vector_store %arg9[%c0_81, %c0_82, %c0_83, %c15_84], %82 {strides = array<i32>} : memref<2x16x16x27xbf16, #tpu.memory_space<vmem>>, vector<1x16x15x3xbf16>,
      %cst_85 = arith.constant 0.000000e+00 : bf16
      %83 = vector.broadcast %cst_85 : bf16 to vector<16x1x3xbf16>
      %c0_86 = arith.constant 0 : index
      %c0_87 = arith.constant 0 : index
      %c0_88 = arith.constant 0 : index
      %c18 = arith.constant 18 : index
      %84 = vector.load %arg9[%c0_86, %c0_87, %c0_88, %c18] : memref<2x16x16x27xbf16, #tpu.memory_space<vmem>>, vector<1x16x1x3xbf16>
      %85 = vector.shape_cast %84 : vector<1x16x1x3xbf16> to vector<16x1x3xbf16>
      %86 = vector.shape_cast %83 : vector<16x1x3xbf16> to vector<1x16x1x3xbf16>
      tpu.vector_store %arg9[%c0_86, %c0_87, %c0_88, %c18], %86 {strides = array<i32>} : memref<2x16x16x27xbf16, #tpu.memory_space<vmem>>, vector<1x16x1x3xbf16>,
      %87 = vector.extract_strided_slice %28 {offsets = [1, 0, 0], sizes = [15, 15, 3], strides = [1, 1, 1]} : vector<16x16x3xbf16> to vector<15x15x3xbf16>
      %c0_89 = arith.constant 0 : index
      %c0_90 = arith.constant 0 : index
      %c1_91 = arith.constant 1 : index
      %c18_92 = arith.constant 18 : index
      %88 = vector.load %arg9[%c0_89, %c0_90, %c1_91, %c18_92] : memref<2x16x16x27xbf16, #tpu.memory_space<vmem>>, vector<1x15x15x3xbf16>
      %89 = vector.shape_cast %88 : vector<1x15x15x3xbf16> to vector<15x15x3xbf16>
      %90 = vector.shape_cast %87 : vector<15x15x3xbf16> to vector<1x15x15x3xbf16>
      tpu.vector_store %arg9[%c0_89, %c0_90, %c1_91, %c18_92], %90 {strides = array<i32>} : memref<2x16x16x27xbf16, #tpu.memory_space<vmem>>, vector<1x15x15x3xbf16>,
      %c0_93 = arith.constant 0 : index
      %c1_94 = arith.constant 1 : index
      %c0_95 = arith.constant 0 : index
      %c0_96 = arith.constant 0 : index
      %91 = vector.load %arg4[%c0_93, %c1_94, %c0_95, %c0_96] : memref<2x2x16x3xbf16, #tpu.memory_space<vmem>>, vector<1x1x15x3xbf16>
      %92 = vector.shape_cast %91 : vector<1x1x15x3xbf16> to vector<1x15x3xbf16>
      %c0_97 = arith.constant 0 : index
      %c15_98 = arith.constant 15 : index
      %c1_99 = arith.constant 1 : index
      %c18_100 = arith.constant 18 : index
      %93 = vector.load %arg9[%c0_97, %c15_98, %c1_99, %c18_100] : memref<2x16x16x27xbf16, #tpu.memory_space<vmem>>, vector<1x1x15x3xbf16>
      %94 = vector.shape_cast %93 : vector<1x1x15x3xbf16> to vector<1x15x3xbf16>
      %95 = vector.shape_cast %92 : vector<1x15x3xbf16> to vector<1x1x15x3xbf16>
      tpu.vector_store %arg9[%c0_97, %c15_98, %c1_99, %c18_100], %95 {strides = array<i32>} : memref<2x16x16x27xbf16, #tpu.memory_space<vmem>>, vector<1x1x15x3xbf16>,
      %96 = vector.extract_strided_slice %28 {offsets = [1, 0, 0], sizes = [15, 16, 3], strides = [1, 1, 1]} : vector<16x16x3xbf16> to vector<15x16x3xbf16>
      %c0_101 = arith.constant 0 : index
      %c0_102 = arith.constant 0 : index
      %c0_103 = arith.constant 0 : index
      %c21 = arith.constant 21 : index
      %97 = vector.load %arg9[%c0_101, %c0_102, %c0_103, %c21] : memref<2x16x16x27xbf16, #tpu.memory_space<vmem>>, vector<1x15x16x3xbf16>
      %98 = vector.shape_cast %97 : vector<1x15x16x3xbf16> to vector<15x16x3xbf16>
      %99 = vector.shape_cast %96 : vector<15x16x3xbf16> to vector<1x15x16x3xbf16>
      tpu.vector_store %arg9[%c0_101, %c0_102, %c0_103, %c21], %99 {strides = array<i32>} : memref<2x16x16x27xbf16, #tpu.memory_space<vmem>>, vector<1x15x16x3xbf16>,
      %c0_104 = arith.constant 0 : index
      %c1_105 = arith.constant 1 : index
      %c0_106 = arith.constant 0 : index
      %c0_107 = arith.constant 0 : index
      %100 = vector.load %arg4[%c0_104, %c1_105, %c0_106, %c0_107] : memref<2x2x16x3xbf16, #tpu.memory_space<vmem>>, vector<1x1x16x3xbf16>
      %101 = vector.shape_cast %100 : vector<1x1x16x3xbf16> to vector<1x16x3xbf16>
      %c0_108 = arith.constant 0 : index
      %c15_109 = arith.constant 15 : index
      %c0_110 = arith.constant 0 : index
      %c21_111 = arith.constant 21 : index
      %102 = vector.load %arg9[%c0_108, %c15_109, %c0_110, %c21_111] : memref<2x16x16x27xbf16, #tpu.memory_space<vmem>>, vector<1x1x16x3xbf16>
      %103 = vector.shape_cast %102 : vector<1x1x16x3xbf16> to vector<1x16x3xbf16>
      %104 = vector.shape_cast %101 : vector<1x16x3xbf16> to vector<1x1x16x3xbf16>
      tpu.vector_store %arg9[%c0_108, %c15_109, %c0_110, %c21_111], %104 {strides = array<i32>} : memref<2x16x16x27xbf16, #tpu.memory_space<vmem>>, vector<1x1x16x3xbf16>,
      %cst_112 = arith.constant 0.000000e+00 : bf16
      %105 = vector.broadcast %cst_112 : bf16 to vector<16x1x3xbf16>
      %c0_113 = arith.constant 0 : index
      %c0_114 = arith.constant 0 : index
      %c15_115 = arith.constant 15 : index
      %c24 = arith.constant 24 : index
      %106 = vector.load %arg9[%c0_113, %c0_114, %c15_115, %c24] : memref<2x16x16x27xbf16, #tpu.memory_space<vmem>>, vector<1x16x1x3xbf16>
      %107 = vector.shape_cast %106 : vector<1x16x1x3xbf16> to vector<16x1x3xbf16>
      %108 = vector.shape_cast %105 : vector<16x1x3xbf16> to vector<1x16x1x3xbf16>
      tpu.vector_store %arg9[%c0_113, %c0_114, %c15_115, %c24], %108 {strides = array<i32>} : memref<2x16x16x27xbf16, #tpu.memory_space<vmem>>, vector<1x16x1x3xbf16>,
      %109 = vector.extract_strided_slice %28 {offsets = [1, 1, 0], sizes = [15, 15, 3], strides = [1, 1, 1]} : vector<16x16x3xbf16> to vector<15x15x3xbf16>
      %c0_116 = arith.constant 0 : index
      %c0_117 = arith.constant 0 : index
      %c0_118 = arith.constant 0 : index
      %c24_119 = arith.constant 24 : index
      %110 = vector.load %arg9[%c0_116, %c0_117, %c0_118, %c24_119] : memref<2x16x16x27xbf16, #tpu.memory_space<vmem>>, vector<1x15x15x3xbf16>
      %111 = vector.shape_cast %110 : vector<1x15x15x3xbf16> to vector<15x15x3xbf16>
      %112 = vector.shape_cast %109 : vector<15x15x3xbf16> to vector<1x15x15x3xbf16>
      tpu.vector_store %arg9[%c0_116, %c0_117, %c0_118, %c24_119], %112 {strides = array<i32>} : memref<2x16x16x27xbf16, #tpu.memory_space<vmem>>, vector<1x15x15x3xbf16>,
      %c0_120 = arith.constant 0 : index
      %c1_121 = arith.constant 1 : index
      %c1_122 = arith.constant 1 : index
      %c0_123 = arith.constant 0 : index
      %113 = vector.load %arg4[%c0_120, %c1_121, %c1_122, %c0_123] : memref<2x2x16x3xbf16, #tpu.memory_space<vmem>>, vector<1x1x15x3xbf16>
      %114 = vector.shape_cast %113 : vector<1x1x15x3xbf16> to vector<1x15x3xbf16>
      %c0_124 = arith.constant 0 : index
      %c15_125 = arith.constant 15 : index
      %c0_126 = arith.constant 0 : index
      %c24_127 = arith.constant 24 : index
      %115 = vector.load %arg9[%c0_124, %c15_125, %c0_126, %c24_127] : memref<2x16x16x27xbf16, #tpu.memory_space<vmem>>, vector<1x1x15x3xbf16>
      %116 = vector.shape_cast %115 : vector<1x1x15x3xbf16> to vector<1x15x3xbf16>
      %117 = vector.shape_cast %114 : vector<1x15x3xbf16> to vector<1x1x15x3xbf16>
      tpu.vector_store %arg9[%c0_124, %c15_125, %c0_126, %c24_127], %117 {strides = array<i32>} : memref<2x16x16x27xbf16, #tpu.memory_space<vmem>>, vector<1x1x15x3xbf16>,
      %c1_128 = arith.constant 1 : index
      %c0_129 = arith.constant 0 : index
      %c0_130 = arith.constant 0 : index
      %c0_131 = arith.constant 0 : index
      %118 = vector.load %arg3[%c1_128, %c0_129, %c0_130, %c0_131] : memref<2x16x16x3xbf16, #tpu.memory_space<vmem>>, vector<1x16x16x3xbf16>
      %119 = vector.shape_cast %118 : vector<1x16x16x3xbf16> to vector<16x16x3xbf16>
      %cst_132 = arith.constant 0.000000e+00 : bf16
      %120 = vector.broadcast %cst_132 : bf16 to vector<16x1x3xbf16>
      %c1_133 = arith.constant 1 : index
      %c0_134 = arith.constant 0 : index
      %c0_135 = arith.constant 0 : index
      %c0_136 = arith.constant 0 : index
      %121 = vector.load %arg9[%c1_133, %c0_134, %c0_135, %c0_136] : memref<2x16x16x27xbf16, #tpu.memory_space<vmem>>, vector<1x16x1x3xbf16>
      %122 = vector.shape_cast %121 : vector<1x16x1x3xbf16> to vector<16x1x3xbf16>
      %123 = vector.shape_cast %120 : vector<16x1x3xbf16> to vector<1x16x1x3xbf16>
      tpu.vector_store %arg9[%c1_133, %c0_134, %c0_135, %c0_136], %123 {strides = array<i32>} : memref<2x16x16x27xbf16, #tpu.memory_space<vmem>>, vector<1x16x1x3xbf16>,
      %124 = vector.extract_strided_slice %119 {offsets = [0, 0, 0], sizes = [15, 15, 3], strides = [1, 1, 1]} : vector<16x16x3xbf16> to vector<15x15x3xbf16>
      %c1_137 = arith.constant 1 : index
      %c1_138 = arith.constant 1 : index
      %c1_139 = arith.constant 1 : index
      %c0_140 = arith.constant 0 : index
      %125 = vector.load %arg9[%c1_137, %c1_138, %c1_139, %c0_140] : memref<2x16x16x27xbf16, #tpu.memory_space<vmem>>, vector<1x15x15x3xbf16>
      %126 = vector.shape_cast %125 : vector<1x15x15x3xbf16> to vector<15x15x3xbf16>
      %127 = vector.shape_cast %124 : vector<15x15x3xbf16> to vector<1x15x15x3xbf16>
      tpu.vector_store %arg9[%c1_137, %c1_138, %c1_139, %c0_140], %127 {strides = array<i32>} : memref<2x16x16x27xbf16, #tpu.memory_space<vmem>>, vector<1x15x15x3xbf16>,
      %c1_141 = arith.constant 1 : index
      %c0_142 = arith.constant 0 : index
      %c0_143 = arith.constant 0 : index
      %c0_144 = arith.constant 0 : index
      %128 = vector.load %arg4[%c1_141, %c0_142, %c0_143, %c0_144] : memref<2x2x16x3xbf16, #tpu.memory_space<vmem>>, vector<1x1x15x3xbf16>
      %129 = vector.shape_cast %128 : vector<1x1x15x3xbf16> to vector<1x15x3xbf16>
      %c1_145 = arith.constant 1 : index
      %c0_146 = arith.constant 0 : index
      %c1_147 = arith.constant 1 : index
      %c0_148 = arith.constant 0 : index
      %130 = vector.load %arg9[%c1_145, %c0_146, %c1_147, %c0_148] : memref<2x16x16x27xbf16, #tpu.memory_space<vmem>>, vector<1x1x15x3xbf16>
      %131 = vector.shape_cast %130 : vector<1x1x15x3xbf16> to vector<1x15x3xbf16>
      %132 = vector.shape_cast %129 : vector<1x15x3xbf16> to vector<1x1x15x3xbf16>
      tpu.vector_store %arg9[%c1_145, %c0_146, %c1_147, %c0_148], %132 {strides = array<i32>} : memref<2x16x16x27xbf16, #tpu.memory_space<vmem>>, vector<1x1x15x3xbf16>,
      %133 = vector.extract_strided_slice %119 {offsets = [0, 0, 0], sizes = [15, 16, 3], strides = [1, 1, 1]} : vector<16x16x3xbf16> to vector<15x16x3xbf16>
      %c1_149 = arith.constant 1 : index
      %c1_150 = arith.constant 1 : index
      %c0_151 = arith.constant 0 : index
      %c3_152 = arith.constant 3 : index
      %134 = vector.load %arg9[%c1_149, %c1_150, %c0_151, %c3_152] : memref<2x16x16x27xbf16, #tpu.memory_space<vmem>>, vector<1x15x16x3xbf16>
      %135 = vector.shape_cast %134 : vector<1x15x16x3xbf16> to vector<15x16x3xbf16>
      %136 = vector.shape_cast %133 : vector<15x16x3xbf16> to vector<1x15x16x3xbf16>
      tpu.vector_store %arg9[%c1_149, %c1_150, %c0_151, %c3_152], %136 {strides = array<i32>} : memref<2x16x16x27xbf16, #tpu.memory_space<vmem>>, vector<1x15x16x3xbf16>,
      %c1_153 = arith.constant 1 : index
      %c0_154 = arith.constant 0 : index
      %c0_155 = arith.constant 0 : index
      %c0_156 = arith.constant 0 : index
      %137 = vector.load %arg4[%c1_153, %c0_154, %c0_155, %c0_156] : memref<2x2x16x3xbf16, #tpu.memory_space<vmem>>, vector<1x1x16x3xbf16>
      %138 = vector.shape_cast %137 : vector<1x1x16x3xbf16> to vector<1x16x3xbf16>
      %c1_157 = arith.constant 1 : index
      %c0_158 = arith.constant 0 : index
      %c0_159 = arith.constant 0 : index
      %c3_160 = arith.constant 3 : index
      %139 = vector.load %arg9[%c1_157, %c0_158, %c0_159, %c3_160] : memref<2x16x16x27xbf16, #tpu.memory_space<vmem>>, vector<1x1x16x3xbf16>
      %140 = vector.shape_cast %139 : vector<1x1x16x3xbf16> to vector<1x16x3xbf16>
      %141 = vector.shape_cast %138 : vector<1x16x3xbf16> to vector<1x1x16x3xbf16>
      tpu.vector_store %arg9[%c1_157, %c0_158, %c0_159, %c3_160], %141 {strides = array<i32>} : memref<2x16x16x27xbf16, #tpu.memory_space<vmem>>, vector<1x1x16x3xbf16>,
      %cst_161 = arith.constant 0.000000e+00 : bf16
      %142 = vector.broadcast %cst_161 : bf16 to vector<16x1x3xbf16>
      %c1_162 = arith.constant 1 : index
      %c0_163 = arith.constant 0 : index
      %c15_164 = arith.constant 15 : index
      %c6_165 = arith.constant 6 : index
      %143 = vector.load %arg9[%c1_162, %c0_163, %c15_164, %c6_165] : memref<2x16x16x27xbf16, #tpu.memory_space<vmem>>, vector<1x16x1x3xbf16>
      %144 = vector.shape_cast %143 : vector<1x16x1x3xbf16> to vector<16x1x3xbf16>
      %145 = vector.shape_cast %142 : vector<16x1x3xbf16> to vector<1x16x1x3xbf16>
      tpu.vector_store %arg9[%c1_162, %c0_163, %c15_164, %c6_165], %145 {strides = array<i32>} : memref<2x16x16x27xbf16, #tpu.memory_space<vmem>>, vector<1x16x1x3xbf16>,
      %146 = vector.extract_strided_slice %119 {offsets = [0, 1, 0], sizes = [15, 15, 3], strides = [1, 1, 1]} : vector<16x16x3xbf16> to vector<15x15x3xbf16>
      %c1_166 = arith.constant 1 : index
      %c1_167 = arith.constant 1 : index
      %c0_168 = arith.constant 0 : index
      %c6_169 = arith.constant 6 : index
      %147 = vector.load %arg9[%c1_166, %c1_167, %c0_168, %c6_169] : memref<2x16x16x27xbf16, #tpu.memory_space<vmem>>, vector<1x15x15x3xbf16>
      %148 = vector.shape_cast %147 : vector<1x15x15x3xbf16> to vector<15x15x3xbf16>
      %149 = vector.shape_cast %146 : vector<15x15x3xbf16> to vector<1x15x15x3xbf16>
      tpu.vector_store %arg9[%c1_166, %c1_167, %c0_168, %c6_169], %149 {strides = array<i32>} : memref<2x16x16x27xbf16, #tpu.memory_space<vmem>>, vector<1x15x15x3xbf16>,
      %c1_170 = arith.constant 1 : index
      %c0_171 = arith.constant 0 : index
      %c1_172 = arith.constant 1 : index
      %c0_173 = arith.constant 0 : index
      %150 = vector.load %arg4[%c1_170, %c0_171, %c1_172, %c0_173] : memref<2x2x16x3xbf16, #tpu.memory_space<vmem>>, vector<1x1x15x3xbf16>
      %151 = vector.shape_cast %150 : vector<1x1x15x3xbf16> to vector<1x15x3xbf16>
      %c1_174 = arith.constant 1 : index
      %c0_175 = arith.constant 0 : index
      %c0_176 = arith.constant 0 : index
      %c6_177 = arith.constant 6 : index
      %152 = vector.load %arg9[%c1_174, %c0_175, %c0_176, %c6_177] : memref<2x16x16x27xbf16, #tpu.memory_space<vmem>>, vector<1x1x15x3xbf16>
      %153 = vector.shape_cast %152 : vector<1x1x15x3xbf16> to vector<1x15x3xbf16>
      %154 = vector.shape_cast %151 : vector<1x15x3xbf16> to vector<1x1x15x3xbf16>
      tpu.vector_store %arg9[%c1_174, %c0_175, %c0_176, %c6_177], %154 {strides = array<i32>} : memref<2x16x16x27xbf16, #tpu.memory_space<vmem>>, vector<1x1x15x3xbf16>,
      %cst_178 = arith.constant 0.000000e+00 : bf16
      %155 = vector.broadcast %cst_178 : bf16 to vector<16x1x3xbf16>
      %c1_179 = arith.constant 1 : index
      %c0_180 = arith.constant 0 : index
      %c0_181 = arith.constant 0 : index
      %c9_182 = arith.constant 9 : index
      %156 = vector.load %arg9[%c1_179, %c0_180, %c0_181, %c9_182] : memref<2x16x16x27xbf16, #tpu.memory_space<vmem>>, vector<1x16x1x3xbf16>
      %157 = vector.shape_cast %156 : vector<1x16x1x3xbf16> to vector<16x1x3xbf16>
      %158 = vector.shape_cast %155 : vector<16x1x3xbf16> to vector<1x16x1x3xbf16>
      tpu.vector_store %arg9[%c1_179, %c0_180, %c0_181, %c9_182], %158 {strides = array<i32>} : memref<2x16x16x27xbf16, #tpu.memory_space<vmem>>, vector<1x16x1x3xbf16>,
      %159 = vector.extract_strided_slice %119 {offsets = [0, 0, 0], sizes = [16, 15, 3], strides = [1, 1, 1]} : vector<16x16x3xbf16> to vector<16x15x3xbf16>
      %c1_183 = arith.constant 1 : index
      %c0_184 = arith.constant 0 : index
      %c1_185 = arith.constant 1 : index
      %c9_186 = arith.constant 9 : index
      %160 = vector.load %arg9[%c1_183, %c0_184, %c1_185, %c9_186] : memref<2x16x16x27xbf16, #tpu.memory_space<vmem>>, vector<1x16x15x3xbf16>
      %161 = vector.shape_cast %160 : vector<1x16x15x3xbf16> to vector<16x15x3xbf16>
      %162 = vector.shape_cast %159 : vector<16x15x3xbf16> to vector<1x16x15x3xbf16>
      tpu.vector_store %arg9[%c1_183, %c0_184, %c1_185, %c9_186], %162 {strides = array<i32>} : memref<2x16x16x27xbf16, #tpu.memory_space<vmem>>, vector<1x16x15x3xbf16>,
      %c1_187 = arith.constant 1 : index
      %c0_188 = arith.constant 0 : index
      %c0_189 = arith.constant 0 : index
      %c12_190 = arith.constant 12 : index
      %163 = vector.load %arg9[%c1_187, %c0_188, %c0_189, %c12_190] : memref<2x16x16x27xbf16, #tpu.memory_space<vmem>>, vector<1x16x16x3xbf16>
      %164 = vector.shape_cast %163 : vector<1x16x16x3xbf16> to vector<16x16x3xbf16>
      %165 = vector.shape_cast %119 : vector<16x16x3xbf16> to vector<1x16x16x3xbf16>
      tpu.vector_store %arg9[%c1_187, %c0_188, %c0_189, %c12_190], %165 {strides = array<i32>} : memref<2x16x16x27xbf16, #tpu.memory_space<vmem>>, vector<1x16x16x3xbf16>,
      %cst_191 = arith.constant 0.000000e+00 : bf16
      %166 = vector.broadcast %cst_191 : bf16 to vector<16x1x3xbf16>
      %c1_192 = arith.constant 1 : index
      %c0_193 = arith.constant 0 : index
      %c15_194 = arith.constant 15 : index
      %c15_195 = arith.constant 15 : index
      %167 = vector.load %arg9[%c1_192, %c0_193, %c15_194, %c15_195] : memref<2x16x16x27xbf16, #tpu.memory_space<vmem>>, vector<1x16x1x3xbf16>
      %168 = vector.shape_cast %167 : vector<1x16x1x3xbf16> to vector<16x1x3xbf16>
      %169 = vector.shape_cast %166 : vector<16x1x3xbf16> to vector<1x16x1x3xbf16>
      tpu.vector_store %arg9[%c1_192, %c0_193, %c15_194, %c15_195], %169 {strides = array<i32>} : memref<2x16x16x27xbf16, #tpu.memory_space<vmem>>, vector<1x16x1x3xbf16>,
      %170 = vector.extract_strided_slice %119 {offsets = [0, 1, 0], sizes = [16, 15, 3], strides = [1, 1, 1]} : vector<16x16x3xbf16> to vector<16x15x3xbf16>
      %c1_196 = arith.constant 1 : index
      %c0_197 = arith.constant 0 : index
      %c0_198 = arith.constant 0 : index
      %c15_199 = arith.constant 15 : index
      %171 = vector.load %arg9[%c1_196, %c0_197, %c0_198, %c15_199] : memref<2x16x16x27xbf16, #tpu.memory_space<vmem>>, vector<1x16x15x3xbf16>
      %172 = vector.shape_cast %171 : vector<1x16x15x3xbf16> to vector<16x15x3xbf16>
      %173 = vector.shape_cast %170 : vector<16x15x3xbf16> to vector<1x16x15x3xbf16>
      tpu.vector_store %arg9[%c1_196, %c0_197, %c0_198, %c15_199], %173 {strides = array<i32>} : memref<2x16x16x27xbf16, #tpu.memory_space<vmem>>, vector<1x16x15x3xbf16>,
      %cst_200 = arith.constant 0.000000e+00 : bf16
      %174 = vector.broadcast %cst_200 : bf16 to vector<16x1x3xbf16>
      %c1_201 = arith.constant 1 : index
      %c0_202 = arith.constant 0 : index
      %c0_203 = arith.constant 0 : index
      %c18_204 = arith.constant 18 : index
      %175 = vector.load %arg9[%c1_201, %c0_202, %c0_203, %c18_204] : memref<2x16x16x27xbf16, #tpu.memory_space<vmem>>, vector<1x16x1x3xbf16>
      %176 = vector.shape_cast %175 : vector<1x16x1x3xbf16> to vector<16x1x3xbf16>
      %177 = vector.shape_cast %174 : vector<16x1x3xbf16> to vector<1x16x1x3xbf16>
      tpu.vector_store %arg9[%c1_201, %c0_202, %c0_203, %c18_204], %177 {strides = array<i32>} : memref<2x16x16x27xbf16, #tpu.memory_space<vmem>>, vector<1x16x1x3xbf16>,
      %178 = vector.extract_strided_slice %119 {offsets = [1, 0, 0], sizes = [15, 15, 3], strides = [1, 1, 1]} : vector<16x16x3xbf16> to vector<15x15x3xbf16>
      %c1_205 = arith.constant 1 : index
      %c0_206 = arith.constant 0 : index
      %c1_207 = arith.constant 1 : index
      %c18_208 = arith.constant 18 : index
      %179 = vector.load %arg9[%c1_205, %c0_206, %c1_207, %c18_208] : memref<2x16x16x27xbf16, #tpu.memory_space<vmem>>, vector<1x15x15x3xbf16>
      %180 = vector.shape_cast %179 : vector<1x15x15x3xbf16> to vector<15x15x3xbf16>
      %181 = vector.shape_cast %178 : vector<15x15x3xbf16> to vector<1x15x15x3xbf16>
      tpu.vector_store %arg9[%c1_205, %c0_206, %c1_207, %c18_208], %181 {strides = array<i32>} : memref<2x16x16x27xbf16, #tpu.memory_space<vmem>>, vector<1x15x15x3xbf16>,
      %c1_209 = arith.constant 1 : index
      %c1_210 = arith.constant 1 : index
      %c0_211 = arith.constant 0 : index
      %c0_212 = arith.constant 0 : index
      %182 = vector.load %arg4[%c1_209, %c1_210, %c0_211, %c0_212] : memref<2x2x16x3xbf16, #tpu.memory_space<vmem>>, vector<1x1x15x3xbf16>
      %183 = vector.shape_cast %182 : vector<1x1x15x3xbf16> to vector<1x15x3xbf16>
      %c1_213 = arith.constant 1 : index
      %c15_214 = arith.constant 15 : index
      %c1_215 = arith.constant 1 : index
      %c18_216 = arith.constant 18 : index
      %184 = vector.load %arg9[%c1_213, %c15_214, %c1_215, %c18_216] : memref<2x16x16x27xbf16, #tpu.memory_space<vmem>>, vector<1x1x15x3xbf16>
      %185 = vector.shape_cast %184 : vector<1x1x15x3xbf16> to vector<1x15x3xbf16>
      %186 = vector.shape_cast %183 : vector<1x15x3xbf16> to vector<1x1x15x3xbf16>
      tpu.vector_store %arg9[%c1_213, %c15_214, %c1_215, %c18_216], %186 {strides = array<i32>} : memref<2x16x16x27xbf16, #tpu.memory_space<vmem>>, vector<1x1x15x3xbf16>,
      %187 = vector.extract_strided_slice %119 {offsets = [1, 0, 0], sizes = [15, 16, 3], strides = [1, 1, 1]} : vector<16x16x3xbf16> to vector<15x16x3xbf16>
      %c1_217 = arith.constant 1 : index
      %c0_218 = arith.constant 0 : index
      %c0_219 = arith.constant 0 : index
      %c21_220 = arith.constant 21 : index
      %188 = vector.load %arg9[%c1_217, %c0_218, %c0_219, %c21_220] : memref<2x16x16x27xbf16, #tpu.memory_space<vmem>>, vector<1x15x16x3xbf16>
      %189 = vector.shape_cast %188 : vector<1x15x16x3xbf16> to vector<15x16x3xbf16>
      %190 = vector.shape_cast %187 : vector<15x16x3xbf16> to vector<1x15x16x3xbf16>
      tpu.vector_store %arg9[%c1_217, %c0_218, %c0_219, %c21_220], %190 {strides = array<i32>} : memref<2x16x16x27xbf16, #tpu.memory_space<vmem>>, vector<1x15x16x3xbf16>,
      %c1_221 = arith.constant 1 : index
      %c1_222 = arith.constant 1 : index
      %c0_223 = arith.constant 0 : index
      %c0_224 = arith.constant 0 : index
      %191 = vector.load %arg4[%c1_221, %c1_222, %c0_223, %c0_224] : memref<2x2x16x3xbf16, #tpu.memory_space<vmem>>, vector<1x1x16x3xbf16>
      %192 = vector.shape_cast %191 : vector<1x1x16x3xbf16> to vector<1x16x3xbf16>
      %c1_225 = arith.constant 1 : index
      %c15_226 = arith.constant 15 : index
      %c0_227 = arith.constant 0 : index
      %c21_228 = arith.constant 21 : index
      %193 = vector.load %arg9[%c1_225, %c15_226, %c0_227, %c21_228] : memref<2x16x16x27xbf16, #tpu.memory_space<vmem>>, vector<1x1x16x3xbf16>
      %194 = vector.shape_cast %193 : vector<1x1x16x3xbf16> to vector<1x16x3xbf16>
      %195 = vector.shape_cast %192 : vector<1x16x3xbf16> to vector<1x1x16x3xbf16>
      tpu.vector_store %arg9[%c1_225, %c15_226, %c0_227, %c21_228], %195 {strides = array<i32>} : memref<2x16x16x27xbf16, #tpu.memory_space<vmem>>, vector<1x1x16x3xbf16>,
      %cst_229 = arith.constant 0.000000e+00 : bf16
      %196 = vector.broadcast %cst_229 : bf16 to vector<16x1x3xbf16>
      %c1_230 = arith.constant 1 : index
      %c0_231 = arith.constant 0 : index
      %c15_232 = arith.constant 15 : index
      %c24_233 = arith.constant 24 : index
      %197 = vector.load %arg9[%c1_230, %c0_231, %c15_232, %c24_233] : memref<2x16x16x27xbf16, #tpu.memory_space<vmem>>, vector<1x16x1x3xbf16>
      %198 = vector.shape_cast %197 : vector<1x16x1x3xbf16> to vector<16x1x3xbf16>
      %199 = vector.shape_cast %196 : vector<16x1x3xbf16> to vector<1x16x1x3xbf16>
      tpu.vector_store %arg9[%c1_230, %c0_231, %c15_232, %c24_233], %199 {strides = array<i32>} : memref<2x16x16x27xbf16, #tpu.memory_space<vmem>>, vector<1x16x1x3xbf16>,
      %200 = vector.extract_strided_slice %119 {offsets = [1, 1, 0], sizes = [15, 15, 3], strides = [1, 1, 1]} : vector<16x16x3xbf16> to vector<15x15x3xbf16>
      %c1_234 = arith.constant 1 : index
      %c0_235 = arith.constant 0 : index
      %c0_236 = arith.constant 0 : index
      %c24_237 = arith.constant 24 : index
      %201 = vector.load %arg9[%c1_234, %c0_235, %c0_236, %c24_237] : memref<2x16x16x27xbf16, #tpu.memory_space<vmem>>, vector<1x15x15x3xbf16>
      %202 = vector.shape_cast %201 : vector<1x15x15x3xbf16> to vector<15x15x3xbf16>
      %203 = vector.shape_cast %200 : vector<15x15x3xbf16> to vector<1x15x15x3xbf16>
      tpu.vector_store %arg9[%c1_234, %c0_235, %c0_236, %c24_237], %203 {strides = array<i32>} : memref<2x16x16x27xbf16, #tpu.memory_space<vmem>>, vector<1x15x15x3xbf16>,
      %c1_238 = arith.constant 1 : index
      %c1_239 = arith.constant 1 : index
      %c1_240 = arith.constant 1 : index
      %c0_241 = arith.constant 0 : index
      %204 = vector.load %arg4[%c1_238, %c1_239, %c1_240, %c0_241] : memref<2x2x16x3xbf16, #tpu.memory_space<vmem>>, vector<1x1x15x3xbf16>
      %205 = vector.shape_cast %204 : vector<1x1x15x3xbf16> to vector<1x15x3xbf16>
      %c1_242 = arith.constant 1 : index
      %c15_243 = arith.constant 15 : index
      %c0_244 = arith.constant 0 : index
      %c24_245 = arith.constant 24 : index
      %206 = vector.load %arg9[%c1_242, %c15_243, %c0_244, %c24_245] : memref<2x16x16x27xbf16, #tpu.memory_space<vmem>>, vector<1x1x15x3xbf16>
      %207 = vector.shape_cast %206 : vector<1x1x15x3xbf16> to vector<1x15x3xbf16>
      %208 = vector.shape_cast %205 : vector<1x15x3xbf16> to vector<1x1x15x3xbf16>
      tpu.vector_store %arg9[%c1_242, %c15_243, %c0_244, %c24_245], %208 {strides = array<i32>} : memref<2x16x16x27xbf16, #tpu.memory_space<vmem>>, vector<1x1x15x3xbf16>,
    } else {
    }
    %c0 = arith.constant 0 : index
    %c0_1 = arith.constant 0 : index
    %c0_2 = arith.constant 0 : index
    %c0_3 = arith.constant 0 : index
    %3 = vector.load %arg9[%c0, %c0_1, %c0_2, %c0_3] : memref<2x16x16x27xbf16, #tpu.memory_space<vmem>>, vector<2x16x16x27xbf16>
    %4 = vector.shape_cast %3 : vector<2x16x16x27xbf16> to vector<512x27xbf16>
    %c0_4 = arith.constant 0 : index
    %c0_5 = arith.constant 0 : index
    %5 = vector.load %arg5[%c0_4, %c0_5] : memref<27x64xbf16, #tpu.memory_space<vmem>>, vector<27x64xbf16>
    %cst = arith.constant dense<0.000000e+00> : vector<512x64xf32>
    %6 = tpu.matmul %4, %5, %cst {dimension_numbers = #tpu.dot_dimension_numbers<[1], [0], [0], [1], [0, 0, 1, 1], [], []>} : vector<512x27xbf16>, vector<27x64xbf16>, vector<512x64xf32> -> vector<512x64xf32>
    %c0_6 = arith.constant 0 : index
    %c0_7 = arith.constant 0 : index
    %7 = vector.load %arg6[%c0_6, %c0_7] : memref<1x64xf32, #tpu.memory_space<vmem>>, vector<1x64xf32>
    %8 = vector.broadcast %7 : vector<1x64xf32> to vector<512x64xf32>
    %9 = arith.mulf %6, %8 : vector<512x64xf32>
    %c0_8 = arith.constant 0 : index
    %c0_9 = arith.constant 0 : index
    %10 = vector.load %arg7[%c0_8, %c0_9] : memref<1x64xf32, #tpu.memory_space<vmem>>, vector<1x64xf32>
    %11 = vector.broadcast %10 : vector<1x64xf32> to vector<512x64xf32>
    %12 = arith.addf %9, %11 : vector<512x64xf32>
    %cst_10 = arith.constant 0.000000e+00 : f32
    %13 = vector.broadcast %cst_10 : f32 to vector<512x64xf32>
    %14 = arith.maximumf %12, %13 : vector<512x64xf32>
    %15 = vector.extract_strided_slice %14 {offsets = [0, 0], sizes = [256, 64], strides = [1, 1]} : vector<512x64xf32> to vector<256x64xf32>
    %16 = vector.shape_cast %15 : vector<256x64xf32> to vector<16x16x64xf32>
    %17 = arith.truncf %16 : vector<16x16x64xf32> to vector<16x16x64xbf16>
    %c0_11 = arith.constant 0 : index
    %c0_12 = arith.constant 0 : index
    %c0_13 = arith.constant 0 : index
    %c0_14 = arith.constant 0 : index
    %18 = vector.load %arg8[%c0_11, %c0_12, %c0_13, %c0_14] : memref<2x16x16x64xbf16, #tpu.memory_space<vmem>>, vector<1x16x16x64xbf16>
    %19 = vector.shape_cast %18 : vector<1x16x16x64xbf16> to vector<16x16x64xbf16>
    %20 = vector.shape_cast %17 : vector<16x16x64xbf16> to vector<1x16x16x64xbf16>
    tpu.vector_store %arg8[%c0_11, %c0_12, %c0_13, %c0_14], %20 {strides = array<i32>} : memref<2x16x16x64xbf16, #tpu.memory_space<vmem>>, vector<1x16x16x64xbf16>,
    %21 = vector.extract_strided_slice %14 {offsets = [256, 0], sizes = [256, 64], strides = [1, 1]} : vector<512x64xf32> to vector<256x64xf32>
    %22 = vector.shape_cast %21 : vector<256x64xf32> to vector<16x16x64xf32>
    %23 = arith.truncf %22 : vector<16x16x64xf32> to vector<16x16x64xbf16>
    %c1 = arith.constant 1 : index
    %c0_15 = arith.constant 0 : index
    %c0_16 = arith.constant 0 : index
    %c0_17 = arith.constant 0 : index
    %24 = vector.load %arg8[%c1, %c0_15, %c0_16, %c0_17] : memref<2x16x16x64xbf16, #tpu.memory_space<vmem>>, vector<1x16x16x64xbf16>
    %25 = vector.shape_cast %24 : vector<1x16x16x64xbf16> to vector<16x16x64xbf16>
    %26 = vector.shape_cast %23 : vector<16x16x64xbf16> to vector<1x16x16x64xbf16>
    tpu.vector_store %arg8[%c1, %c0_15, %c0_16, %c0_17], %26 {strides = array<i32>} : memref<2x16x16x64xbf16, #tpu.memory_space<vmem>>, vector<1x16x16x64xbf16>,
    return
  }
  func.func @transform_0(%arg0: i32, %arg1: i32, %arg2: i32) -> (i32, i32, i32, i32) {
    %c0_i32 = arith.constant 0 : i32
    %c0_i32_0 = arith.constant 0 : i32
    %c0_i32_1 = arith.constant 0 : i32
    return %arg0, %arg1, %c0_i32, %c0_i32_0 : i32, i32, i32, i32
  }
  func.func @transform_1(%arg0: i32, %arg1: i32, %arg2: i32) -> (i32, i32, i32, i32) {
    %c0_i32 = arith.constant 0 : i32
    %c0_i32_0 = arith.constant 0 : i32
    %c0_i32_1 = arith.constant 0 : i32
    return %arg0, %arg1, %c0_i32, %c0_i32_0 : i32, i32, i32, i32
  }
  func.func @transform_2(%arg0: i32, %arg1: i32, %arg2: i32) -> (i32, i32) {
    %c0_i32 = arith.constant 0 : i32
    %c0_i32_0 = arith.constant 0 : i32
    return %c0_i32, %arg2 : i32, i32
  }
  func.func @transform_3(%arg0: i32, %arg1: i32, %arg2: i32) -> (i32, i32) {
    %c0_i32 = arith.constant 0 : i32
    %c0_i32_0 = arith.constant 0 : i32
    return %c0_i32, %arg2 : i32, i32
  }
  func.func @transform_4(%arg0: i32, %arg1: i32, %arg2: i32) -> (i32, i32) {
    %c0_i32 = arith.constant 0 : i32
    %c0_i32_0 = arith.constant 0 : i32
    return %c0_i32, %arg2 : i32, i32
  }
  func.func @transform_5(%arg0: i32, %arg1: i32, %arg2: i32) -> (i32, i32, i32, i32) {
    %c0_i32 = arith.constant 0 : i32
    %c0_i32_0 = arith.constant 0 : i32
    return %arg0, %arg1, %c0_i32, %arg2 : i32, i32, i32, i32
  }
}

</mosaic_0001>

<bundles_post_ra>
// kernel: tpu_custom_call.1
= control target key start
LH: loop header
LB: loop body
LE: loop exit
PB: predicated region body
PF: predicated region fallthrough
CT: control target
= control target key end

     0   :  { %s5545_s22 = smov 3   ;;  %s10069_s0 = inlined_call_operand.vmem [shape: bf16[2,16,16,3], index: 0, kind: input, shape index: {}]   ;;  %s10070_s1 = inlined_call_operand.vmem [shape: bf16[2,2,16,3], index: 1, kind: input, shape index: {}]   ;;  %s10071_s2 = inlined_call_operand.vmem [shape: bf16[27,64], index: 2, kind: input, shape index: {}]   ;;  %s10072_s3 = inlined_call_operand.vmem [shape: f32[1,64], index: 3, kind: input, shape index: {}]   ;;  %s10073_s4 = inlined_call_operand.vmem [shape: f32[1,64], index: 4, kind: input, shape index: {}]   ;;  %s10074_s5 = inlined_call_operand.hbm [shape: bf16[2,16,16,64], index: 5, kind: output, shape index: {}]  }
   0x1   :  { %v5590_v0 = vld [vmem:[%s10069_s0 + $0x10] sm:$0xf]  ;;  %v5595_v1 = vld [vmem:[%s10069_s0 + $0x8] sm:$0xf]  ;;  %v5604_v2 = vld [vmem:[%s10069_s0] sm:$0xf] }
   0x2   :  { %508 = vrot.lane.b32.xlu2 %v5590_v0, %s5545_s22  ;;  %504 = vrot.lane.b32.xlu1 %v5595_v1, %s5545_s22  ;;  %v5611_v3 = vld [vmem:[%s10069_s0 + $0x14] sm:$0xf]  ;;  %v5616_v4 = vld [vmem:[%s10069_s0 + $0xc] sm:$0xf] }
   0x3   :  { %500 = vrot.lane.b32.xlu0 %v5604_v2, %s5545_s22  ;;  %v5621_v5 = vld [vmem:[%s10069_s0 + $0x4] sm:$0xf] }
   0x4   :  { %10 = vsyncpa [#allocation4], 0  ;;  %v5632_v6 = vld [vmem:[%s10069_s0 + $0x20] sm:$0xf]  ;;  %v5637_v7 = vld [vmem:[%s10069_s0 + $0x1c] sm:$0xf] }
   0x5   :  { %v5642_v8 = vld [vmem:[%s10069_s0 + $0x18] sm:$0xf]  ;;  %v5653_v9 = vld [vmem:[%s10069_s0 + $0x2c] sm:$0xf]  ;;  %v5658_v10 = vld [vmem:[%s10069_s0 + $0x28] sm:$0xf] }
   0x6   :  { %v5663_v11 = vld [vmem:[%s10069_s0 + $0x24] sm:$0xf]  ;;  %v5674_v12 = vld [vmem:[%s10069_s0 + $0x38] sm:$0xf]  ;;  %v5679_v13 = vld [vmem:[%s10069_s0 + $0x34] sm:$0xf] }
   0x7   :  { %v5684_v14 = vld [vmem:[%s10069_s0 + $0x30] sm:$0xf]  ;;  %v5695_v15 = vld [vmem:[%s10069_s0 + $0x44] sm:$0xf]  ;;  %v5700_v16 = vld [vmem:[%s10069_s0 + $0x40] sm:$0xf] }
   0x8   :  { %v5705_v17 = vld [vmem:[%s10069_s0 + $0x3c] sm:$0xf]  ;;  %v5716_v18 = vld [vmem:[%s10069_s0 + $0x50] sm:$0xf]  ;;  %v5721_v19 = vld [vmem:[%s10069_s0 + $0x4c] sm:$0xf] }
   0x9   :  { %v5726_v20 = vld [vmem:[%s10069_s0 + $0x48] sm:$0xf]  ;;  %v5737_v21 = vld [vmem:[%s10069_s0 + $0x5c] sm:$0xf]  ;;  %v5742_v22 = vld [vmem:[%s10069_s0 + $0x58] sm:$0xf] }
   0xa   :  { %510 = vrot.lane.b32.xlu2 %v5611_v3, %s5545_s22  ;;  %506 = vrot.lane.b32.xlu1 %v5616_v4, %s5545_s22  ;;  %v5747_v23 = vld [vmem:[%s10069_s0 + $0x54] sm:$0xf]  ;;  %v112_v24 = vshrl.u32 %v5604_v2, 16  ;;  %v115_v25 = vshll.u32 %v5604_v2, 16  ;;  %v5760_v26 = vld [vmem:[%s10069_s0 + $0x68] sm:$0xf] }
   0xb   :  { %502 = vrot.lane.b32.xlu0 %v5621_v5, %s5545_s22  ;;  %v5765_v27 = vld [vmem:[%s10069_s0 + $0x64] sm:$0xf]  ;;  %v5770_v28 = vld [vmem:[%s10069_s0 + $0x60] sm:$0xf]  ;;  %v152_v29 = vshrl.u32 %v5611_v3, 16  ;;  %v128_v32 = vshrl.u32 %v5595_v1, 16 }
   0xc   :  { %v687_v30 = vrot.slane %v112_v24, 4  ;;  %v688_v31 = vrot.slane %v115_v25, 5  ;;  %v10079_v33 = vshll.u32 %v5595_v1, 16  ;;  %v155_v34 = vshll.u32 %v5611_v3, 16  ;;  %v5798_v43 = vld [vmem:[%s10069_s0 + $0x74] sm:$0xf] }
   0xd   :  { %v144_v35 = vshrl.u32 %v5590_v0, 16  ;;  %vm109_vm0 = vsmask.f32 4368  ;;  %v154_v36 = vrot.slane %v152_v29, 7  ;;  %v120_v37 = vshrl.u32 %v5621_v5, 16  ;;  %s5546_s10 = smov 6  }
   0xe   :  { %v10077_v38 = vshll.u32 %v5621_v5, 16  ;;  %v10080_v39 = vshll.u32 %v5616_v4, 16  ;;  %v136_v40 = vshrl.u32 %v5616_v4, 16  ;;  %vm59_vm1 = vsmask.f32 256  ;;  %s5547_s19 = smov 9  }
   0xf   :  { %v157_v41 = vor.u32 %v155_v34, %v154_v36  ;;  %v5793_v42 = vrot.slane %v144_v35, 7  ;;  %v5803_v44 = vld [vmem:[%s10069_s0 + $0x70] sm:$0xf]  ;;  %v696_v45 = vrot.slane %v128_v32, 4  ;;  %v697_v46 = vrot.slane %v10079_v33, 5  ;;  %vm5810_vm2 = vmor %vm59_vm1, %vm109_vm0  ;;  %s5548_s27 = smov 12  }
  0x10   :  { %v10338_v47 = vmov 0  ;;  %v5817_v48 = vld [vmem:[%s10069_s0 + $0x6c] sm:$0xf]  ;;  %vm10205_vm3 = vsmask.f32 3328  ;;  %v689_v49 = vor.u32 %v688_v31, %v687_v30  ;;  %v10075_v50 = vshll.u32 %v5590_v0, 16 }
  0x11   :  { %v10339_v47 = vsel %vm5810_vm2, 4294967295, %v10338_v47  ;;  %v150_v51 = vrot.slane %v5793_v42, 4  ;;  %vm685_vm4 = vsmask.f32 7440  ;;  %v700_v52 = vrot.slane %v10080_v39, 5  ;;  %s5549_s21 = smov 15  }
  0x12   :  { %516 = vrot.lane.b32.xlu2 %v5632_v6, %s5545_s22  ;;  %514 = vrot.lane.b32.xlu1 %v5637_v7, %s5545_s22  ;;  %10340 = vst [vmem:[#allocation6_spill] sm:$0xff] %v10339_v47  ;;  %v10076_v53 = vshrl.u32 %v5642_v8, 16  ;;  %v10078_v54 = vshll.u32 %v5642_v8, 16  ;;  %v693_v55 = vrot.slane %v120_v37, 4  ;;  %v702_v56 = vrot.slane %v136_v40, 4  ;;  %vm5845_vm6 = vmor %vm10205_vm3, %vm685_vm4  ;;  %s5550_s23 = smov 18  }
  0x13   :  { %512 = vrot.lane.b32.xlu0 %v5642_v8, %s5545_s22  ;;  %vm10194_vm5 = vcmask 19456   ;;  %v5829_v57 = vsel %vm5810_vm2, %v150_v51, %v157_v41  ;;  %v698_v58 = vor.u32 %v697_v46, %v696_v45  ;;  %v690_v59 = vrot.slane %v689_v49, 4  ;;  %v64_v45 = vld [vmem:[#allocation2 + $0x8] sm:$0x1]  ;;  %v67_v46 = vld [vmem:[#allocation2 + $0x10] sm:$0x1] }
  0x14   :  { %10341 = vst [vmem:[#allocation7_spill] sm:$0xff] %v5829_v57  ;;  %v691_v60 = vrot.slane %v10077_v38, 5  ;;  %v705_v61 = vrot.slane %v144_v35, 4  ;;  %v706_v62 = vrot.slane %v10075_v50, 5  ;;  %v10342_v63 = vmov 0  ;;  %s5551_s29 = smov 21  }
  0x15   :  { %397 = vst.msk [vmem:[#allocation2 + $0x1c] sm:$0xf] %vm10194_vm5, %v5829_v57  ;;  %v10343_v63 = vsel %vm5845_vm6, 4294967295, %v10342_v63  ;;  %v714_v30 = vrot.slane %v10076_v53, 4  ;;  %v715_v31 = vrot.slane %v10078_v54, 5  ;;  %v703_v41 = vor.u32 %v702_v56, %v700_v52  ;;  %s5552_s14 = smov 24  }
  0x16   :  { %10344 = vst [vmem:[#allocation8_spill] sm:$0xff] %v10343_v63  ;;  %v694_v36 = vor.u32 %v693_v55, %v691_v60  ;;  %v5853_v35 = vrot.slane %v112_v24, 7  ;;  %v699_v49 = vrot.slane %v698_v58, 4  ;;  %vm58_vm7 = vcmask 16384   ;;  %v622_v50 = vld [vmem:[%s10070_s1 + $0x4] sm:$0xf] }
  0x17   :  { %v5855_v51 = vrot.slane %v120_v37, 7  ;;  %v5862_v53 = vsel %vm5845_vm6, %v690_v59, %v691_v60  ;;  %v707_v38 = vor.u32 %v706_v62, %v705_v61  ;;  %v10081_v55 = vshll.u32 %v5637_v7, 16  ;;  %vm5866_vm8 = vmand %vm58_vm7, %vm59_vm1  ;;  %v621_v24 = vld [vmem:[%s10070_s1] sm:$0xf]  ;;  %s5160_s24 = sshll.u32 %s10074_s5, 4  ;;  %s5555_s25 = smov 64   ;;  %s5161_s24 = int_to_ptr.hbm [resolvable:$true] %s5160_s24 }
  0x18   :  { %10345 = vst [vmem:[#allocation9_spill] sm:$0xff] %v5862_v53  ;;  %v10346_v56 = vmov 0  ;;  %v716_v37 = vor.u32 %v715_v31, %v714_v30  ;;  %v10082_v58 = vshrl.u32 %v5632_v6, 16  ;;  %v65_v54 = vsel %vm5866_vm8, 0, %v64_v45  ;;  %s5556_s26 = smov 4  }
  0x19   :  { %v10347_v56 = vsel %vm5866_vm8, 4294967295, %v10346_v56  ;;  %v68_v59 = vsel %vm5866_vm8, 0, %v67_v46  ;;  %v5878_v60 = vrot.slane %v694_v36, 4  ;;  %v5880_v61 = vrot.slane %v703_v41, 4  ;;  %66 = vst [vmem:[#allocation2 + $0x8] sm:$0x1] %v65_v54 }
  0x1a   :  { %522 = vrot.lane.b32.xlu2 %v5653_v9, %s5545_s22  ;;  %520 = vrot.lane.b32.xlu1 %v5658_v10, %s5545_s22  ;;  %10348 = vst [vmem:[#allocation10_spill] sm:$0xff] %v10347_v56  ;;  %v10083_v62 = vshrl.u32 %v5653_v9, 16  ;;  %v192_v33 = vshrl.u32 %v5658_v10, 16  ;;  %v5889_v30 = vsel %vm5845_vm6, %v699_v49, %v700_v52  ;;  %v709_v31 = vrot.slane %v155_v34, 5 }
  0x1b   :  { %518 = vrot.lane.b32.xlu0 %v5663_v11, %s5545_s22  ;;  %10349 = vst [vmem:[#allocation11_spill] sm:$0xff] %v5878_v60  ;;  %v10084_v36 = vshll.u32 %v5632_v6, 16  ;;  %v10085_v41 = vshll.u32 %v5663_v11, 16  ;;  %v10086_v54 = vshll.u32 %v5653_v9, 16  ;;  %v708_v46 = vrot.slane %v707_v38, 4 }
  0x1c   :  { %10350 = vst [vmem:[#allocation12_spill] sm:$0xff] %v5880_v61  ;;  %v5899_v45 = vrot.slane %v192_v33, 7  ;;  %v202_v52 = vrot.slane %v10083_v62, 7  ;;  %v717_v49 = vrot.slane %v716_v37, 4  ;;  %v5905_v34 = vrot.slane %v10081_v55, 5 }
  0x1d   :  { %10351 = vst [vmem:[#allocation13_spill] sm:$0xff] %v5889_v30  ;;  %v724_v38 = vrot.slane %v10084_v36, 5  ;;  %v5918_v37 = vrot.slane %v10085_v41, 5  ;;  %v130_v55 = vrot.slane %v128_v32, 7  ;;  %v70_v62 = vld [vmem:[#allocation2 + $0x18] sm:$0x1] }
  0x1e   :  { %69 = vst [vmem:[#allocation2 + $0x10] sm:$0x1] %v68_v59  ;;  %v723_v59 = vrot.slane %v10082_v58, 4  ;;  %v205_v39 = vor.u32 %v10086_v54, %v202_v52  ;;  %v5925_v58 = vor.u32 %v115_v25, %v5853_v35  ;;  %vm10202_vm9 = vsmask.f32 7938 }
  0x1f   :  { %v138_v2 = vrot.slane %v136_v40, 7  ;;  %vm5940_vm10 = vmand %vm10194_vm5, %vm10202_vm9  ;;  %v10353_v25 = vmov 0  ;;  %v71_v40 = vsel %vm5866_vm8, 0, %v70_v62  ;;  %v732_v52 = vrot.slane %v192_v33, 4 }
  0x20   :  { %v10354_v25 = vsel %vm5940_vm10, 4294967295, %v10353_v25  ;;  %v385_v32 = vld [vmem:[#allocation2 + $0x8] sm:$0xf]  ;;  %v10357_v3 = vshll.u32 %v5616_v4, 16  ;;  %v10359_v62 = vshll.u32 %v5658_v10, 16  ;;  %v118_v33 = vrot.slane %v5853_v35, 4 }
  0x21   :  { %10355 = vst [vmem:[#allocation15_spill] sm:$0xff] %v10354_v25  ;;  %v386_v54 = vsel %vm5940_vm10, %v5925_v58, %v385_v32  ;;  %v725_v35 = vor.u32 %v724_v38, %v723_v59  ;;  %vm10193_vm11 = vcmask 44056   ;;  %vm633_vm12 = vcmask 68659  }
  0x22   :  { %528 = vrot.lane.b32.xlu2 %v5674_v12, %s5545_s22  ;;  %526 = vrot.lane.b32.xlu1 %v5679_v13, %s5545_s22  ;;  %387 = vst [vmem:[#allocation2 + $0x8] sm:$0xf] %v386_v54  ;;  %v733_v32 = vrot.slane %v10359_v62, 5  ;;  %vm10201_vm13 = vsmask.f32 7950  ;;  %v10097_v59 = vshll.u32 %v5679_v13, 16 }
  0x23   :  { %524 = vrot.lane.b32.xlu0 %v5684_v14, %s5545_s22  ;;  %72 = vst [vmem:[#allocation2 + $0x18] sm:$0x1] %v71_v40  ;;  %v10367_v40 = vshrl.u32 %v5642_v8, 16  ;;  %vm6097_vm14 = vmand %vm633_vm12, %vm10201_vm13  ;;  %v10384_v57 = vshll.u32 %v5726_v20, 16  ;;  %vm10190_vm15 = vcmask 68656   ;;  %vm1006_vm0 = vcmask 90184  }
  0x24   :  { %vm6627_vm4 = vmand %vm10190_vm15, %vm10205_vm3  ;;  %vm10200_vm12 = vcmask 93256  }
  0x25   :  { %v390_v4 = vld [vmem:[#allocation2 + $0x10] sm:$0xf]  ;;  %vm6635_vm7 = vmand %vm1006_vm0, %vm59_vm1 }
  0x26   :  { %vm6857_vm0 = vmand %vm10200_vm12, %vm10202_vm9 }
  0x2a   :  { %534 = vrot.lane.b32.xlu2 %v5695_v15, %s5545_s22  ;;  %532 = vrot.lane.b32.xlu1 %v5700_v16, %s5545_s22 }
  0x2b   :  { %530 = vrot.lane.b32.xlu0 %v5705_v17, %s5545_s22 }
  0x32   :  { %540 = vrot.lane.b32.xlu2 %v5716_v18, %s5545_s22  ;;  %538 = vrot.lane.b32.xlu1 %v5721_v19, %s5545_s22 }
  0x33   :  { %536 = vrot.lane.b32.xlu0 %v5726_v20, %s5545_s22 }
  0x3a   :  { %546 = vrot.lane.b32.xlu2 %v5737_v21, %s5545_s22  ;;  %544 = vrot.lane.b32.xlu1 %v5742_v22, %s5545_s22 }
  0x3b   :  { %542 = vrot.lane.b32.xlu0 %v5747_v23, %s5545_s22 }
  0x42   :  { %552 = vrot.lane.b32.xlu2 %v5760_v26, %s5545_s22  ;;  %550 = vrot.lane.b32.xlu1 %v5765_v27, %s5545_s22 }
  0x43   :  { %548 = vrot.lane.b32.xlu0 %v5770_v28, %s5545_s22 }
  0x4a   :  { %558 = vrot.lane.b32.xlu2 %v5798_v43, %s5545_s22  ;;  %556 = vrot.lane.b32.xlu1 %v5803_v44, %s5545_s22 }
  0x4b   :  { %554 = vrot.lane.b32.xlu0 %v5817_v48, %s5545_s22 }
  0x52   :  { %627 = vrot.lane.b32.xlu1 %v622_v50, %s5545_s22  ;;  %822 = vrot.lane.b32.xlu2 %v5862_v53, %s5546_s10  ;;  %v711_v50 = vrot.slane %v152_v29, 4  ;;  %v198_v29 = vrot.slane %v5899_v45, 4  ;;  %v134_v53 = vrot.slane %v130_v55, 4 }
  0x53   :  { %625 = vrot.lane.b32.xlu0 %v621_v24, %s5545_s22  ;;  %v10087_v24 = vshrl.u32 %v5637_v7, 16 }
  0x54   :  { %v5931_v36 = vsel %vm5810_vm2, %v198_v29, %v205_v39  ;;  %v712_v41 = vor.u32 %v711_v50, %v709_v31  ;;  %v10356_v50 = vshrl.u32 %v5663_v11, 16 }
  0x55   :  { %10352 = vst [vmem:[#allocation14_spill] sm:$0xff] %v5931_v36  ;;  %v720_v39 = vrot.slane %v10087_v24, 4  ;;  %v141_v24 = vor.u32 %v10357_v3, %v138_v2  ;;  %v10363_v2 = vshll.u32 %v5684_v14, 16 }
  0x56   :  { %409 = vst.msk [vmem:[#allocation2 + $0x34] sm:$0xf] %vm10194_vm5, %v5931_v36  ;;  %v729_v29 = vrot.slane %v10356_v50, 4  ;;  %v10358_v50 = vshll.u32 %v5595_v1, 16  ;;  %v5973_v54 = vrot.slane %v712_v41, 4  ;;  %v10362_v1 = vshrl.u32 %v5684_v14, 16 }
  0x57   :  { %v5981_v62 = vsel %vm5810_vm2, %v134_v53, %v141_v24  ;;  %v73_v41 = vld [vmem:[#allocation2 + $0x20] sm:$0x1]  ;;  %v5997_v53 = vsel %vm5845_vm6, %v717_v49, %v5905_v34  ;;  %v10096_v49 = vshrl.u32 %v5674_v12, 16 }
  0x58   :  { %v5961_v36 = vor.u32 %v10358_v50, %v130_v55  ;;  %10361 = vst [vmem:[#allocation16_spill] sm:$0xff] %v5973_v54  ;;  %v741_v55 = vrot.slane %v10362_v1, 4  ;;  %v742_v50 = vrot.slane %v10363_v2, 5  ;;  %v74_v38 = vsel %vm5866_vm8, 0, %v73_v41 }
  0x59   :  { %393 = vst.msk [vmem:[#allocation2 + $0x14] sm:$0xf] %vm10194_vm5, %v5981_v62  ;;  %v10370_v1 = vshll.u32 %v5653_v9, 16  ;;  %v10371_v2 = vshrl.u32 %v5653_v9, 16 }
  0x5a   :  { %826 = vrot.lane.b32.xlu1 %v5889_v30, %s5546_s10  ;;  %828 = vrot.lane.b32.xlu2 %v5880_v61, %s5546_s10  ;;  %v10360_v30 = vshll.u32 %v5621_v5, 16  ;;  %v5985_v5 = vsel %vm5845_vm6, %v708_v46, %v709_v31  ;;  %10365 = vst [vmem:[#allocation18_spill] sm:$0xff] %v5997_v53  ;;  %v730_v31 = vor.u32 %v729_v29, %v5918_v37 }
  0x5b   :  { %824 = vrot.lane.b32.xlu0 %v5878_v60, %s5546_s10  ;;  %10364 = vst [vmem:[#allocation17_spill] sm:$0xff] %v5985_v5  ;;  %v391_v46 = vsel %vm5940_vm10, %v5961_v36, %v390_v4  ;;  %v743_v24 = vor.u32 %v742_v50, %v741_v55  ;;  %v10368_v4 = vshrl.u32 %v5637_v7, 16  ;;  %v6024_v55 = vrot.slane %v10370_v1, 5 }
  0x5c   :  { %v125_v61 = vor.u32 %v10360_v30, %v5855_v51  ;;  %v5971_v3 = vpop.permute.xlu2 %508  ;;  %v721_v51 = vor.u32 %v720_v39, %v5905_v34  ;;  %392 = vst [vmem:[#allocation2 + $0x10] sm:$0xf] %v391_v46  ;;  %v10095_v34 = vshll.u32 %v5674_v12, 16  ;;  %v726_v39 = vrot.slane %v725_v35, 4 }
  0x5d   :  { %75 = vst [vmem:[#allocation2 + $0x20] sm:$0x1] %v74_v38  ;;  %v6028_v50 = vrot.slane %v10371_v2, 4  ;;  %v10372_v35 = vshll.u32 %v5590_v0, 16  ;;  %v10373_v38 = vshll.u32 %v5637_v7, 16  ;;  %v744_v1 = vrot.slane %v743_v24, 4 }
  0x5e   :  { %v5992_v30 = vsel %vm5810_vm2, %v118_v33, %v125_v61  ;;  %v734_v61 = vor.u32 %v733_v32, %v732_v52  ;;  %v6010_v29 = vrot.slane %v721_v51, 4  ;;  %v162_v33 = vrot.slane %v10367_v40, 7  ;;  %v394_v40 = vld [vmem:[#allocation2 + $0x18] sm:$0xf] }
  0x5f   :  { %389 = vst.msk [vmem:[#allocation2 + $0xc] sm:$0xf] %vm10194_vm5, %v5992_v30  ;;  %v170_v52 = vrot.slane %v10368_v4, 7  ;;  %v6020_v32 = vrot.slane %v730_v31, 4  ;;  %v6033_v51 = vor.u32 %v10372_v35, %v5793_v42  ;;  %v6041_v31 = vrot.slane %v10097_v59, 5 }
  0x60   :  { %10366 = vst [vmem:[#allocation19_spill] sm:$0xff] %v6010_v29  ;;  %v6037_v41 = vrot.slane %v734_v61, 4  ;;  %v166_v46 = vrot.slane %v162_v33, 4  ;;  %v10108_v0 = vshll.u32 %v5705_v17, 16  ;;  %v750_v42 = vrot.slane %v10096_v49, 4 }
  0x61   :  { %10369 = vst [vmem:[#allocation20_spill] sm:$0xff] %v6020_v32  ;;  %v173_v9 = vor.u32 %v10373_v38, %v170_v52  ;;  %v751_v61 = vrot.slane %v10095_v34, 5  ;;  %v6054_v2 = vsel %vm5845_vm6, %v726_v39, %v5918_v37  ;;  %v10099_v7 = vshrl.u32 %v5679_v13, 16  ;;  %v76_v35 = vld [vmem:[#allocation2 + $0x28] sm:$0x1] }
  0x62   :  { %832 = vrot.lane.b32.xlu1 %v5973_v54, %s5546_s10  ;;  %834 = vrot.lane.b32.xlu2 %v5997_v53, %s5546_s10  ;;  %10374 = vst [vmem:[#allocation21_spill] sm:$0xff] %v6054_v2  ;;  %v248_v38 = vshrl.u32 %v5695_v15, 16  ;;  %v251_v34 = vshll.u32 %v5695_v15, 16  ;;  %v395_v37 = vsel %vm5940_vm10, %v6033_v51, %v394_v40  ;;  %v77_v15 = vsel %vm5866_vm8, 0, %v76_v35 }
  0x63   :  { %830 = vrot.lane.b32.xlu0 %v5985_v5, %s5546_s10  ;;  %v6060_v24 = vsel %vm5810_vm2, %v166_v46, %v173_v9  ;;  %396 = vst [vmem:[#allocation2 + $0x18] sm:$0xf] %v395_v37  ;;  %v10375_v46 = vshll.u32 %v5642_v8, 16  ;;  %v739_v59 = vor.u32 %v6028_v50, %v6024_v55  ;;  %v747_v8 = vrot.slane %v10099_v7, 4 }
  0x64   :  { %v511_v4 = vpop.permute.xlu2 %510  ;;  %401 = vst.msk [vmem:[#allocation2 + $0x24] sm:$0xf] %vm10194_vm5, %v6060_v24  ;;  %v250_v40 = vrot.slane %v248_v38, 7  ;;  %v398_v49 = vld [vmem:[#allocation2 + $0x20] sm:$0xf]  ;;  %v10377_v35 = vshrl.u32 %v5663_v11, 16  ;;  %v752_v53 = vor.u32 %v751_v61, %v750_v42  ;;  %v6148_v61 = vsel %vm5845_vm6, %v744_v1, %v6041_v31 }
  0x65   :  { %596 = vst.msk [vmem:[#allocation2 + $0x1c] sm:$0xf] %vm10193_vm11, %v511_v4  ;;  %v10098_v4 = vshrl.u32 %v5700_v16, 16  ;;  %v6074_v9 = vor.u32 %v10375_v46, %v162_v33  ;;  %v10376_v33 = vshrl.u32 %v5632_v6, 16  ;;  %v6114_v7 = vrot.slane %v251_v34, 5 }
  0x66   :  { %595 = vst.msk [vmem:[#allocation2 + $0x18] sm:$0xf] %vm10193_vm11, %v5971_v3  ;;  %v186_v46 = vrot.slane %v10377_v35, 7  ;;  %v6107_v3 = vrot.slane %v10108_v0, 5  ;;  %v253_v35 = vor.u32 %v251_v34, %v250_v40  ;;  %v765_v39 = vrot.slane %v248_v38, 4 }
  0x67   :  { %v6082_v52 = vrot.slane %v10098_v4, 7  ;;  %v178_v37 = vrot.slane %v10376_v33, 7  ;;  %v399_v50 = vsel %vm5940_vm10, %v6074_v9, %v398_v49  ;;  %78 = vst [vmem:[#allocation2 + $0x28] sm:$0x1] %v77_v15  ;;  %v10378_v4 = vmov 0 }
  0x68   :  { %v10379_v4 = vsel %vm6097_vm14, 4294967295, %v10378_v4  ;;  %v10381_v33 = vshrl.u32 %v5705_v17, 16  ;;  %400 = vst [vmem:[#allocation2 + $0x20] sm:$0xf] %v399_v50  ;;  %v10383_v60 = vshrl.u32 %v5726_v20, 16  ;;  %v769_v40 = vrot.slane %v10384_v57, 5 }
  0x69   :  { %10380 = vst [vmem:[#allocation22_spill] sm:$0xff] %v10379_v4  ;;  %v246_v15 = vrot.slane %v6082_v52, 4  ;;  %v79_v34 = vld [vmem:[#allocation2 + $0x30] sm:$0x1]  ;;  %v10114_v42 = vshll.u32 %v5700_v16, 16 }
  0x6a   :  { %838 = vrot.lane.b32.xlu1 %v6054_v2, %s5546_s10  ;;  %840 = vrot.lane.b32.xlu2 %v6020_v32, %s5546_s10  ;;  %v756_v49 = vrot.slane %v10381_v33, 4  ;;  %v182_v2 = vrot.slane %v178_v37, 4  ;;  %v10382_v32 = vshll.u32 %v5663_v11, 16  ;;  %v768_v33 = vrot.slane %v10383_v60, 4  ;;  %10388 = vst [vmem:[#allocation26_spill] sm:$0xff] %v6148_v61 }
  0x6b   :  { %836 = vrot.lane.b32.xlu0 %v6010_v29, %s5546_s10  ;;  %v6124_v50 = vsel %vm5810_vm2, %v246_v15, %v253_v35  ;;  %v748_v11 = vor.u32 %v747_v8, %v6041_v31  ;;  %v6135_v60 = vrot.slane %v739_v59, 4  ;;  %v753_v8 = vrot.slane %v752_v53, 4  ;;  %v85_v1 = vld [vmem:[#allocation2 + $0x40] sm:$0x1] }
  0x6c   :  { %v189_v5 = vor.u32 %v10382_v32, %v186_v46  ;;  %v645_v54 = vld [vmem:[#allocation2 + $0x1c] sm:$0x8]  ;;  %v517_v0 = vpop.permute.xlu2 %516  ;;  %10385 = vst [vmem:[#allocation23_spill] sm:$0xff] %v6124_v50  ;;  %v757_v57 = vor.u32 %v756_v49, %v6107_v3  ;;  %v766_v46 = vor.u32 %v765_v39, %v6114_v7  ;;  %v10391_v15 = vshrl.u32 %v5684_v14, 16 }
  0x6d   :  { %v646_v38 = vsel %vm6097_vm14, 0, %v645_v54  ;;  %421 = vst.msk [vmem:[#allocation2 + $0x4c] sm:$0xf] %vm10194_vm5, %v6124_v50  ;;  %v6143_v54 = vsel %vm5845_vm6, %v6037_v41, %v6024_v55  ;;  %v10115_v55 = vshll.u32 %v5721_v19, 16  ;;  %v770_v41 = vor.u32 %v769_v40, %v768_v33 }
  0x6e   :  { %v6133_v32 = vsel %vm5810_vm2, %v182_v2, %v189_v5  ;;  %647 = vst [vmem:[#allocation2 + $0x1c] sm:$0x8] %v646_v38  ;;  %v10389_v5 = vshll.u32 %v5632_v6, 16  ;;  %v80_v2 = vsel %vm5866_vm8, 0, %v79_v34  ;;  %v402_v49 = vld [vmem:[#allocation2 + $0x28] sm:$0xf] }
  0x6f   :  { %10386 = vst [vmem:[#allocation24_spill] sm:$0xff] %v6135_v60  ;;  %v6160_v31 = vrot.slane %v748_v11, 4  ;;  %v6165_v6 = vrot.slane %v10391_v15, 7  ;;  %v6173_v53 = vrot.slane %v757_v57, 4  ;;  %v10394_v39 = vshrl.u32 %v5700_v16, 16 }
  0x70   :  { %10387 = vst [vmem:[#allocation25_spill] sm:$0xff] %v6143_v54  ;;  %v6154_v59 = vor.u32 %v10389_v5, %v178_v37  ;;  %v10392_v37 = vshrl.u32 %v5679_v13, 16  ;;  %v760_v40 = vrot.slane %v10114_v42, 5  ;;  %v10395_v57 = vshll.u32 %v5679_v13, 16 }
  0x71   :  { %405 = vst.msk [vmem:[#allocation2 + $0x2c] sm:$0xf] %vm10194_vm5, %v6133_v32  ;;  %v759_v33 = vrot.slane %v10394_v39, 4  ;;  %v214_v11 = vrot.slane %v6165_v6, 4  ;;  %v6188_v39 = vrot.slane %v766_v46, 4  ;;  %v6190_v42 = vrot.slane %v770_v41, 4 }
  0x72   :  { %81 = vst [vmem:[#allocation2 + $0x30] sm:$0x1] %v80_v2  ;;  %v218_v35 = vrot.slane %v10392_v37, 7  ;;  %844 = vrot.lane.b32.xlu1 %v6135_v60, %s5546_s10  ;;  %846 = vrot.lane.b32.xlu2 %v6148_v61, %s5546_s10  ;;  %v403_v34 = vsel %vm5940_vm10, %v6154_v59, %v402_v49  ;;  %v82_v2 = vld [vmem:[#allocation2 + $0x38] sm:$0x1]  ;;  %v6194_v49 = vrot.slane %v10115_v55, 5 }
  0x73   :  { %10390 = vst [vmem:[#allocation27_spill] sm:$0xff] %v6160_v31  ;;  %842 = vrot.lane.b32.xlu0 %v6143_v54, %s5546_s10  ;;  %v288_v38 = vshrl.u32 %v5742_v22, 16  ;;  %v10401_v46 = vshll.u32 %v5747_v23, 16 }
  0x74   :  { %10393 = vst [vmem:[#allocation28_spill] sm:$0xff] %v6173_v53  ;;  %v221_v5 = vor.u32 %v10395_v57, %v218_v35  ;;  %v523_v15 = vpop.permute.xlu2 %522  ;;  %v505_v37 = vpop.permute.xlu1 %504  ;;  %v10397_v35 = vshrl.u32 %v5716_v18, 16  ;;  %v10398_v57 = vshll.u32 %v5658_v10, 16  ;;  %v761_v10 = vor.u32 %v760_v40, %v759_v33 }
  0x75   :  { %404 = vst [vmem:[#allocation2 + $0x28] sm:$0xf] %v403_v34  ;;  %v501_v13 = vpop.permute.xlu0 %500  ;;  %v6231_v54 = vrot.slane %v10401_v46, 5  ;;  %v6233_v60 = vrot.slane %v288_v38, 7 }
  0x76   :  { %10396 = vst [vmem:[#allocation29_spill] sm:$0xff] %v6188_v39  ;;  %v6201_v34 = vrot.slane %v10397_v35, 4  ;;  %v6206_v41 = vsel %vm5810_vm2, %v214_v11, %v221_v5  ;;  %v6211_v55 = vor.u32 %v10398_v57, %v5899_v45  ;;  %v83_v35 = vsel %vm5866_vm8, 0, %v82_v2 }
  0x77   :  { %599 = vst.msk [vmem:[#allocation2 + $0x28] sm:$0xf] %vm10193_vm11, %v517_v0  ;;  %v6223_v11 = vsel %vm5845_vm6, %v753_v8, %v6107_v3  ;;  %v10400_v45 = vshll.u32 %v5716_v18, 16  ;;  %v299_v57 = vshll.u32 %v5737_v21, 16  ;;  %v86_v3 = vsel %vm5866_vm8, 0, %v85_v1 }
  0x78   :  { %602 = vst.msk [vmem:[#allocation2 + $0x34] sm:$0xf] %vm10193_vm11, %v523_v15  ;;  %v296_v15 = vshrl.u32 %v5737_v21, 16  ;;  %v10402_v8 = vshrl.u32 %v5721_v19, 16  ;;  %v10403_v21 = vshrl.u32 %v5674_v12, 16  ;;  %v10405_v1 = vshrl.u32 %v5747_v23, 16 }
  0x79   :  { %413 = vst.msk [vmem:[#allocation2 + $0x3c] sm:$0xf] %vm10194_vm5, %v6206_v41  ;;  %v778_v5 = vrot.slane %v10400_v45, 5  ;;  %v406_v0 = vld [vmem:[#allocation2 + $0x30] sm:$0xf]  ;;  %v762_v50 = vrot.slane %v761_v10, 4 }
  0x7a   :  { %10399 = vst [vmem:[#allocation30_spill] sm:$0xff] %v6223_v11  ;;  %v298_v2 = vrot.slane %v296_v15, 7  ;;  %v774_v33 = vrot.slane %v10402_v8, 4  ;;  %v6242_v40 = vrot.slane %v10403_v21, 7  ;;  %v407_v46 = vsel %vm5940_vm10, %v6211_v55, %v406_v0  ;;  %850 = vrot.lane.b32.xlu1 %v6223_v11, %s5546_s10  ;;  %852 = vrot.lane.b32.xlu2 %v6173_v53, %s5546_s10 }
  0x7b   :  { %591 = vst.msk [vmem:[#allocation2 + $0x8] sm:$0xf] %vm10193_vm11, %v501_v13  ;;  %v10404_v13 = vshrl.u32 %v5705_v17, 16  ;;  %v294_v21 = vrot.slane %v6233_v60, 4  ;;  %848 = vrot.lane.b32.xlu0 %v6160_v31, %s5546_s10  ;;  %v6259_v0 = vrot.slane %v299_v57, 5  ;;  %v10406_v11 = vshll.u32 %v5705_v17, 16 }
  0x7c   :  { %593 = vst.msk [vmem:[#allocation2 + $0x10] sm:$0xf] %vm10193_vm11, %v505_v37  ;;  %v783_v37 = vrot.slane %v10405_v1, 4  ;;  %v301_v61 = vor.u32 %v299_v57, %v298_v2  ;;  %v6264_v1 = vpop.permute.xlu2 %528  ;;  %v507_v8 = vpop.permute.xlu1 %506  ;;  %v779_v2 = vor.u32 %v778_v5, %v6201_v34  ;;  %v10132_v31 = vshll.u32 %v5770_v28, 16 }
  0x7d   :  { %v234_v45 = vrot.slane %v10404_v13, 7  ;;  %84 = vst [vmem:[#allocation2 + $0x38] sm:$0x1] %v83_v35  ;;  %v792_v35 = vrot.slane %v296_v15, 4  ;;  %v230_v13 = vrot.slane %v6242_v40, 4  ;;  %v503_v57 = vpop.permute.xlu0 %502  ;;  %v775_v17 = vor.u32 %v774_v33, %v6194_v49 }
  0x7e   :  { %408 = vst [vmem:[#allocation2 + $0x30] sm:$0xf] %v407_v46  ;;  %v10134_v46 = vshrl.u32 %v5770_v28, 16  ;;  %v784_v34 = vor.u32 %v783_v37, %v6231_v54  ;;  %v10408_v10 = vshll.u32 %v5742_v22, 16  ;;  %v10410_v33 = vshll.u32 %v5684_v14, 16 }
  0x7f   :  { %v237_v53 = vor.u32 %v10406_v11, %v234_v45  ;;  %87 = vst [vmem:[#allocation2 + $0x40] sm:$0x1] %v86_v3  ;;  %v654_v29 = vld [vmem:[#allocation2 + $0x34] sm:$0x8]  ;;  %v786_v11 = vrot.slane %v288_v38, 4  ;;  %v6275_v3 = vsel %vm5810_vm2, %v294_v21, %v301_v61  ;;  %v10133_v45 = vshll.u32 %v5765_v27, 16 }
  0x80   :  { %v655_v15 = vsel %vm6097_vm14, 0, %v654_v29  ;;  %594 = vst.msk [vmem:[#allocation2 + $0x14] sm:$0xf] %vm10193_vm11, %v507_v8  ;;  %v787_v5 = vrot.slane %v10408_v10, 5  ;;  %v88_v8 = vld [vmem:[#allocation2 + $0x48] sm:$0x1]  ;;  %v6290_v61 = vsel %vm5845_vm6, %v6190_v42, %v6194_v49  ;;  %v793_v38 = vor.u32 %v792_v35, %v6259_v0 }
  0x81   :  { %10407 = vst [vmem:[#allocation31_spill] sm:$0xff] %v6275_v3  ;;  %v6283_v29 = vsel %vm5810_vm2, %v230_v13, %v237_v53  ;;  %v6296_v37 = vor.u32 %v10410_v33, %v6165_v6  ;;  %v6301_v53 = vsel %vm5845_vm6, %v762_v50, %v6114_v7  ;;  %v780_v21 = vrot.slane %v779_v2, 4 }
  0x82   :  { %656 = vst [vmem:[#allocation2 + $0x34] sm:$0x8] %v655_v15  ;;  %v795_v13 = vrot.slane %v10134_v46, 4  ;;  %v796_v42 = vrot.slane %v10132_v31, 5  ;;  %v6309_v49 = vrot.slane %v775_v17, 4  ;;  %v89_v7 = vsel %vm5866_vm8, 0, %v88_v8  ;;  %856 = vrot.lane.b32.xlu1 %v6188_v39, %s5546_s10  ;;  %858 = vrot.lane.b32.xlu2 %v6290_v61, %s5546_s10 }
  0x83   :  { %592 = vst.msk [vmem:[#allocation2 + $0xc] sm:$0xf] %vm10193_vm11, %v503_v57  ;;  %v6319_v50 = vrot.slane %v784_v34, 4  ;;  %v788_v6 = vor.u32 %v787_v5, %v786_v11  ;;  %v6323_v35 = vrot.slane %v10133_v45, 5  ;;  %v10414_v2 = vshrl.u32 %v5726_v20, 16  ;;  %854 = vrot.lane.b32.xlu0 %v6301_v53, %s5546_s10 }
  0x84   :  { %10409 = vst [vmem:[#allocation32_spill] sm:$0xff] %v6290_v61  ;;  %v410_v14 = vld [vmem:[#allocation2 + $0x38] sm:$0xf]  ;;  %v6331_v57 = vrot.slane %v793_v38, 4  ;;  %v10416_v10 = vshrl.u32 %v5721_v19, 16  ;;  %v535_v8 = vpop.permute.xlu2 %534  ;;  %v515_v33 = vpop.permute.xlu1 %514  ;;  %v10417_v38 = vshll.u32 %v5674_v12, 16  ;;  %v6355_v12 = vsel %vm5845_vm6, %v780_v21, %v6231_v54 }
  0x85   :  { %10411 = vst [vmem:[#allocation33_spill] sm:$0xff] %v6301_v53  ;;  %v6327_v15 = vrot.slane %v10414_v2, 7  ;;  %v411_v11 = vsel %vm5940_vm10, %v6296_v37, %v410_v14  ;;  %v797_v2 = vor.u32 %v796_v42, %v795_v13  ;;  %v513_v14 = vpop.permute.xlu0 %512  ;;  %v10418_v13 = vshll.u32 %v5721_v19, 16 }
  0x86   :  { %433 = vst.msk [vmem:[#allocation2 + $0x64] sm:$0xf] %vm10194_vm5, %v6275_v3  ;;  %v266_v34 = vrot.slane %v10416_v10, 7  ;;  %v6344_v46 = vor.u32 %v10417_v38, %v6242_v40  ;;  %v414_v31 = vld [vmem:[#allocation2 + $0x40] sm:$0xf]  ;;  %v10148_v40 = vshrl.u32 %v5765_v27, 16 }
  0x87   :  { %10412 = vst [vmem:[#allocation34_spill] sm:$0xff] %v6309_v49  ;;  %v642_v5 = vld [vmem:[#allocation2 + $0x14] sm:$0x8]  ;;  %v262_v45 = vrot.slane %v6327_v15, 4  ;;  %v10135_v19 = vshrl.u32 %v5798_v43, 16  ;;  %v789_v54 = vrot.slane %v788_v6, 4 }
  0x88   :  { %417 = vst.msk [vmem:[#allocation2 + $0x44] sm:$0xf] %vm10194_vm5, %v6283_v29  ;;  %v643_v10 = vsel %vm6097_vm14, 0, %v642_v5  ;;  %v269_v42 = vor.u32 %v10418_v13, %v266_v34  ;;  %v10136_v34 = vshrl.u32 %v5803_v44, 16  ;;  %v798_v21 = vrot.slane %v797_v2, 4 }
  0x89   :  { %10413 = vst [vmem:[#allocation35_spill] sm:$0xff] %v6319_v50  ;;  %v975_v38 = vld [vmem:[%s10070_s1] sm:$0xf]  ;;  %v10421_v6 = vshrl.u32 %v5716_v18, 16  ;;  %v10426_v39 = vshll.u32 %v5747_v23, 16 }
  0x8a   :  { %10415 = vst [vmem:[#allocation36_spill] sm:$0xff] %v6331_v57  ;;  %v639_v17 = vld [vmem:[#allocation2 + $0xc] sm:$0x8]  ;;  %862 = vrot.lane.b32.xlu1 %v6355_v12, %s5546_s10  ;;  %864 = vrot.lane.b32.xlu2 %v6319_v50, %s5546_s10  ;;  %v978_v53 = vshrl.u32 %v975_v38, 16 }
  0x8b   :  { %90 = vst [vmem:[#allocation2 + $0x48] sm:$0x1] %v89_v7  ;;  %v10137_v7 = vshll.u32 %v5817_v48, 16  ;;  %v640_v5 = vsel %vm6097_vm14, 0, %v639_v17  ;;  %v415_v17 = vsel %vm5940_vm10, %v6344_v46, %v414_v31  ;;  %v6385_v2 = vrot.slane %v10421_v6, 7  ;;  %860 = vrot.lane.b32.xlu0 %v6309_v49, %s5546_s10 }
  0x8c   :  { %412 = vst [vmem:[#allocation2 + $0x38] sm:$0xf] %v411_v11  ;;  %v10149_v11 = vshrl.u32 %v5817_v48, 16  ;;  %v10422_v31 = vshrl.u32 %v5760_v26, 16 }
  0x8d   :  { %608 = vst.msk [vmem:[#allocation2 + $0x4c] sm:$0xf] %vm10193_vm11, %v535_v8  ;;  %v6366_v8 = vsel %vm5810_vm2, %v262_v45, %v269_v42  ;;  %v346_v45 = vrot.slane %v10135_v19, 7  ;;  %v10423_v42 = vshll.u32 %v5760_v26, 16  ;;  %v6397_v19 = vrot.slane %v10137_v7, 5 }
  0x8e   :  { %644 = vst [vmem:[#allocation2 + $0x14] sm:$0x8] %v643_v10  ;;  %v6377_v10 = vrot.slane %v10136_v34, 7  ;;  %v804_v13 = vrot.slane %v10422_v31, 4  ;;  %v10424_v34 = vshrl.u32 %v5747_v23, 16  ;;  %v810_v31 = vrot.slane %v10149_v11, 4 }
  0x8f   :  { %10419 = vst [vmem:[#allocation37_spill] sm:$0xff] %v6355_v12  ;;  %v10425_v7 = vshll.u32 %v5798_v43, 16  ;;  %v278_v49 = vrot.slane %v6385_v2, 4  ;;  %v10427_v11 = vshll.u32 %v5700_v16, 16  ;;  %v6431_v23 = vsel %vm5845_vm6, %v798_v21, %v6323_v35 }
  0x90   :  { %598 = vst.msk [vmem:[#allocation2 + $0x24] sm:$0xf] %vm10193_vm11, %v515_v33  ;;  %v282_v6 = vrot.slane %v10424_v34, 7  ;;  %v6406_v33 = vrot.slane %v10148_v40, 4  ;;  %v6413_v34 = vpop.permute.xlu2 %540 }
  0x91   :  { %10420 = vst [vmem:[#allocation38_spill] sm:$0xff] %v6366_v8  ;;  %v349_v12 = vor.u32 %v10425_v7, %v346_v45  ;;  %v6423_v61 = vor.u32 %v10427_v11, %v6082_v52  ;;  %v981_v45 = vshll.u32 %v975_v38, 16  ;;  %v91_v52 = vld [vmem:[#allocation2 + $0x50] sm:$0x1]  ;;  %v10156_v11 = vshll.u32 %v5803_v44, 16 }
  0x92   :  { %641 = vst [vmem:[#allocation2 + $0xc] sm:$0x8] %v640_v5  ;;  %v805_v5 = vrot.slane %v10423_v42, 5  ;;  %v342_v42 = vrot.slane %v6377_v10, 4  ;;  %v285_v40 = vor.u32 %v10426_v39, %v282_v6  ;;  %v418_v3 = vld [vmem:[#allocation2 + $0x48] sm:$0xf]  ;;  %v802_v21 = vor.u32 %v6406_v33, %v6323_v35  ;;  %868 = vrot.lane.b32.xlu1 %v6331_v57, %s5546_s10  ;;  %870 = vrot.lane.b32.xlu2 %v6431_v23, %s5546_s10 }
  0x93   :  { %425 = vst.msk [vmem:[#allocation2 + $0x54] sm:$0xf] %vm10194_vm5, %v6366_v8  ;;  %v10430_v35 = vshrl.u32 %v5770_v28, 16 }
  0x94   :  { %597 = vst.msk [vmem:[#allocation2 + $0x20] sm:$0xf] %vm10193_vm11, %v513_v14  ;;  %v663_v50 = vld [vmem:[#allocation2 + $0x4c] sm:$0x8]  ;;  %v521_v14 = vpop.permute.xlu1 %520  ;;  %v806_v39 = vor.u32 %v805_v5, %v804_v13  ;;  %v6435_v16 = vsel %vm5810_vm2, %v342_v42, %v349_v12  ;;  %v6444_v38 = vsel %vm5810_vm2, %v278_v49, %v285_v40  ;;  %v6449_v12 = vsel %vm5845_vm6, %v789_v54, %v6259_v0  ;;  %v6459_v13 = vld [vmem:[%s10070_s1 + $0x4] sm:$0xf] }
  0x95   :  { %416 = vst [vmem:[#allocation2 + $0x40] sm:$0xf] %v415_v17  ;;  %v664_v7 = vsel %vm6097_vm14, 0, %v663_v50  ;;  %v519_v17 = vpop.permute.xlu0 %518  ;;  %v811_v50 = vor.u32 %v810_v31, %v6397_v19  ;;  %v92_v49 = vsel %vm5866_vm8, 0, %v91_v52  ;;  %v980_v0 = vrot.slane %v978_v53, 4  ;;  %866 = vrot.lane.b32.xlu0 %v6449_v12, %s5546_s10 }
  0x96   :  { %605 = vst.msk [vmem:[#allocation2 + $0x40] sm:$0xf] %vm10193_vm11, %v6264_v1  ;;  %v6473_v40 = vrot.slane %v10430_v35, 7  ;;  %v10431_v54 = vshrl.u32 %v5765_v27, 16  ;;  %v807_v5 = vrot.slane %v806_v39, 4  ;;  %v10433_v31 = vshrl.u32 %v5803_v44, 16 }
  0x97   :  { %601 = vst.msk [vmem:[#allocation2 + $0x30] sm:$0xf] %vm10193_vm11, %v521_v14  ;;  %v648_v8 = vld [vmem:[#allocation2 + $0x24] sm:$0x8]  ;;  %v6479_v6 = vrot.slane %v811_v50, 4  ;;  %v814_v42 = vrot.slane %v10156_v11, 5 }
  0x98   :  { %665 = vst [vmem:[#allocation2 + $0x4c] sm:$0x8] %v664_v7  ;;  %v649_v1 = vsel %vm6097_vm14, 0, %v648_v8  ;;  %v419_v8 = vsel %vm5940_vm10, %v6423_v61, %v418_v3  ;;  %v983_v3 = vrot.slane %v981_v45, 5  ;;  %v314_v33 = vrot.slane %v10431_v54, 7  ;;  %v547_v14 = vpop.permute.xlu2 %546 }
  0x99   :  { %10428 = vst [vmem:[#allocation39_spill] sm:$0xff] %v6431_v23  ;;  %v813_v53 = vrot.slane %v10433_v31, 4  ;;  %v310_v52 = vrot.slane %v6473_v40, 4  ;;  %v94_v39 = vld [vmem:[#allocation2 + $0x58] sm:$0x1]  ;;  %v10436_v54 = vshrl.u32 %v5798_v43, 16 }
  0x9a   :  { %600 = vst.msk [vmem:[#allocation2 + $0x2c] sm:$0xf] %vm10193_vm11, %v519_v17  ;;  %v10434_v17 = vshll.u32 %v5798_v43, 16  ;;  %v97_v11 = vld [vmem:[#allocation2 + $0x60] sm:$0x1]  ;;  %v6504_v43 = vsel %vm5845_vm6, %v807_v5, %v6397_v19  ;;  %876 = vrot.lane.b32.xlu2 %v6479_v6, %s5546_s10  ;;  %v10437_v5 = vshrl.u32 %v5760_v26, 16 }
  0x9b   :  { %650 = vst [vmem:[#allocation2 + $0x24] sm:$0x8] %v649_v1  ;;  %v10435_v1 = vshll.u32 %v5765_v27, 16  ;;  %v819_v31 = vrot.slane %v10436_v54, 4  ;;  %v100_v27 = vld [vmem:[#allocation2 + $0x68] sm:$0x1]  ;;  %874 = vrot.lane.b32.xlu1 %v6504_v43, %s5546_s10 }
  0x9c   :  { %10429 = vst [vmem:[#allocation40_spill] sm:$0xff] %v6449_v12  ;;  %v527_v7 = vpop.permute.xlu1 %526  ;;  %v817_v45 = vrot.slane %v10434_v17, 5  ;;  %v984_v17 = vor.u32 %v983_v3, %v980_v0  ;;  %v95_v0 = vsel %vm5866_vm8, 0, %v94_v39  ;;  %v815_v3 = vor.u32 %v814_v42, %v813_v53 }
  0x9d   :  { %445 = vst.msk [vmem:[#allocation2 + $0x7c] sm:$0xf] %vm10194_vm5, %v6435_v16  ;;  %v317_v35 = vor.u32 %v10435_v1, %v314_v33  ;;  %v525_v50 = vpop.permute.xlu0 %524  ;;  %v6506_v33 = vrot.slane %v802_v21, 4  ;;  %v101_v19 = vsel %vm5866_vm8, 0, %v100_v27  ;;  %v6526_v53 = vrot.slane %v10437_v5, 7 }
  0x9e   :  { %429 = vst.msk [vmem:[#allocation2 + $0x5c] sm:$0xf] %vm10194_vm5, %v6444_v38  ;;  %v816_v39 = vrot.slane %v815_v3, 4 }
  0x9f   :  { %10432 = vst [vmem:[#allocation41_spill] sm:$0xff] %v6479_v6  ;;  %v6497_v57 = vsel %vm5810_vm2, %v310_v52, %v317_v35  ;;  %872 = vrot.lane.b32.xlu0 %v6506_v33, %s5546_s10  ;;  %v326_v3 = vrot.slane %v6526_v53, 4 }
  0xa0   :  { %420 = vst [vmem:[#allocation2 + $0x48] sm:$0xf] %v419_v8  ;;  %v987_v8 = vshll.u32 %v6459_v13, 16  ;;  %v6528_v1 = vpop.permute.xlu2 %552 }
  0xa1   :  { %93 = vst [vmem:[#allocation2 + $0x50] sm:$0x1] %v92_v49  ;;  %v651_v12 = vld [vmem:[#allocation2 + $0x2c] sm:$0x8] }
  0xa2   :  { %614 = vst.msk [vmem:[#allocation2 + $0x64] sm:$0xf] %vm10193_vm11, %v547_v14  ;;  %v652_v49 = vsel %vm6097_vm14, 0, %v651_v12  ;;  %v98_v14 = vsel %vm5866_vm8, 0, %v97_v11  ;;  %v985_v12 = vrot.slane %v984_v17, 4  ;;  %v989_v21 = vrot.slane %v987_v8, 5 }
  0xa3   :  { %604 = vst.msk [vmem:[#allocation2 + $0x3c] sm:$0xf] %vm10193_vm11, %v527_v7  ;;  %v820_v7 = vor.u32 %v819_v31, %v817_v45  ;;  %v991_v11 = vshrl.u32 %v6459_v13, 16  ;;  %v10439_v31 = vshll.u32 %v5726_v20, 16  ;;  %v10440_v20 = vshll.u32 %v5817_v48, 16 }
  0xa4   :  { %437 = vst.msk [vmem:[#allocation2 + $0x6c] sm:$0xf] %vm10194_vm5, %v6497_v57  ;;  %v533_v35 = vpop.permute.xlu1 %532 }
  0xa5   :  { %653 = vst [vmem:[#allocation2 + $0x2c] sm:$0x8] %v652_v49  ;;  %v6535_v8 = vor.u32 %v10439_v31, %v6327_v15  ;;  %v531_v27 = vpop.permute.xlu0 %530  ;;  %v6539_v49 = vrot.slane %v820_v7, 4  ;;  %v993_v5 = vrot.slane %v991_v11, 4 }
  0xa6   :  { %603 = vst.msk [vmem:[#allocation2 + $0x38] sm:$0xf] %vm10193_vm11, %v525_v50  ;;  %v10438_v50 = vshrl.u32 %v5817_v48, 16  ;;  %v6559_v48 = vsel %vm5845_vm6, %v816_v39, %v817_v45 }
  0xa7   :  { %96 = vst [vmem:[#allocation2 + $0x58] sm:$0x1] %v95_v0  ;;  %880 = vrot.lane.b32.xlu1 %v6539_v49, %s5546_s10  ;;  %878 = vrot.lane.b32.xlu0 %v6559_v48, %s5546_s10  ;;  %v994_v39 = vor.u32 %v993_v5, %v989_v21 }
  0xa8   :  { %v422_v42 = vld [vmem:[#allocation2 + $0x50] sm:$0xf]  ;;  %99 = vst [vmem:[#allocation2 + $0x60] sm:$0x1] %v98_v14  ;;  %v330_v54 = vrot.slane %v10438_v50, 7  ;;  %v559_v31 = vpop.permute.xlu2 %558 }
  0xa9   :  { %v672_v52 = vld [vmem:[#allocation2 + $0x64] sm:$0x8]  ;;  %102 = vst [vmem:[#allocation2 + $0x68] sm:$0x1] %v101_v19  ;;  %v61_v14 = vld [vmem:[#allocation2] sm:$0x1]  ;;  %v990_v19 = vsel %vm5845_vm6, %v985_v12, %v989_v21  ;;  %v423_v12 = vsel %vm5940_vm10, %v6535_v8, %v422_v42 }
  0xaa   :  { %v673_v13 = vsel %vm6097_vm14, 0, %v672_v52  ;;  %v657_v17 = vld [vmem:[#allocation2 + $0x3c] sm:$0x8]  ;;  %607 = vst.msk [vmem:[#allocation2 + $0x48] sm:$0xf] %vm10193_vm11, %v533_v35  ;;  %v333_v15 = vor.u32 %v10440_v20, %v330_v54  ;;  %v62_v7 = vsel %vm5866_vm8, 0, %v61_v14  ;;  %996 = vrot.lane.b32.xlu2 %v990_v19, %s5546_s10 }
  0xab   :  { %674 = vst [vmem:[#allocation2 + $0x64] sm:$0x8] %v673_v13  ;;  %v658_v0 = vsel %vm6097_vm14, 0, %v657_v17  ;;  %v10441_v52 = vshll.u32 %v5716_v18, 16  ;;  %v446_v18 = vld [vmem:[%s10070_s1] sm:$0xf] }
  0xac   :  { %659 = vst [vmem:[#allocation2 + $0x3c] sm:$0x8] %v658_v0  ;;  %v6563_v50 = vsel %vm5810_vm2, %v326_v3, %v333_v15  ;;  %v449_v45 = vshrl.u32 %v446_v18, 16  ;;  %v539_v13 = vpop.permute.xlu1 %538  ;;  %v10442_v15 = vshll.u32 %v5742_v22, 16 }
  0xad   :  { %v6554_v35 = vor.u32 %v10441_v52, %v6385_v2  ;;  %606 = vst.msk [vmem:[#allocation2 + $0x44] sm:$0xf] %vm10193_vm11, %v531_v27  ;;  %v447_v2 = vld [vmem:[%s10070_s1 + $0x4] sm:$0xf]  ;;  %v452_v27 = vshll.u32 %v446_v18, 16  ;;  %v537_v20 = vpop.permute.xlu0 %536 }
  0xae   :  { %441 = vst.msk [vmem:[#allocation2 + $0x74] sm:$0xf] %vm10194_vm5, %v6563_v50  ;;  %v457_v11 = vshrl.u32 %v447_v2, 16  ;;  %v426_v42 = vld [vmem:[#allocation2 + $0x58] sm:$0xf]  ;;  %v451_v17 = vrot.slane %v449_v45, 7  ;;  %v6588_v14 = vor.u32 %v10442_v15, %v6233_v60 }
  0xaf   :  { %63 = vst [vmem:[#allocation2] sm:$0x1] %v62_v7  ;;  %v427_v54 = vsel %vm5940_vm10, %v6554_v35, %v426_v42  ;;  %v460_v3 = vshll.u32 %v447_v2, 16  ;;  %v430_v7 = vld [vmem:[#allocation2 + $0x60] sm:$0xf]  ;;  %1072 = vrot.lane.b32.xlu1 %v5925_v58, %s5547_s19  ;;  %v10447_v15 = vmov 0 }
  0xb0   :  { %424 = vst [vmem:[#allocation2 + $0x50] sm:$0xf] %v423_v12  ;;  %v459_v0 = vrot.slane %v457_v11, 7  ;;  %v454_v21 = vor.u32 %v452_v27, %v451_v17  ;;  %v455_v19 = vrot.slane %v451_v17, 4  ;;  %v995_v12 = vrot.slane %v994_v39, 4 }
  0xb1   :  { %428 = vst [vmem:[#allocation2 + $0x58] sm:$0xf] %v427_v54  ;;  %v431_v60 = vsel %vm5940_vm10, %v6588_v14, %v430_v7  ;;  %v103_v42 = vld [vmem:[#allocation2 + $0x70] sm:$0x1]  ;;  %v823_v54 = vpop.permute.xlu2 %822  ;;  %v434_v58 = vld [vmem:[#allocation2 + $0x68] sm:$0xf] }
  0xb2   :  { %620 = vst.msk [vmem:[#allocation2 + $0x7c] sm:$0xf] %vm10193_vm11, %v559_v31  ;;  %v462_v5 = vor.u32 %v460_v3, %v459_v0  ;;  %1074 = vrot.lane.b32.xlu2 %v5992_v30, %s5547_s19  ;;  %998 = vrot.lane.b32.xlu0 %v995_v12, %s5546_s10  ;;  %v104_v0 = vsel %vm5866_vm8, 0, %v103_v42  ;;  %v10444_v3 = vmov 0  ;;  %v10448_v15 = vsel %vm6635_vm7, 4294967295, %v10447_v15 }
  0xb3   :  { %610 = vst.msk [vmem:[#allocation2 + $0x54] sm:$0xf] %vm10193_vm11, %v539_v13  ;;  %v10445_v3 = vsel %vm6627_vm4, 4294967295, %v10444_v3  ;;  %v10451_v42 = vshll.u32 %v5803_v44, 16 }
  0xb4   :  { %v660_v52 = vld [vmem:[#allocation2 + $0x44] sm:$0x8]  ;;  %609 = vst.msk [vmem:[#allocation2 + $0x50] sm:$0xf] %vm10193_vm11, %v537_v20  ;;  %v463_v2 = vsel %vm5810_vm2, %v455_v19, %v462_v5  ;;  %v545_v30 = vpop.permute.xlu1 %544  ;;  %v920_v5 = vld [vmem:[#allocation2 + $0x14] sm:$0xf] }
  0xb5   :  { %v661_v18 = vsel %vm6097_vm14, 0, %v660_v52  ;;  %611 = vst.msk [vmem:[#allocation2 + $0x58] sm:$0xf] %vm10193_vm11, %v6413_v34  ;;  %v10443_v34 = vshll.u32 %v5770_v28, 16  ;;  %v543_v17 = vpop.permute.xlu0 %542  ;;  %v106_v28 = vld [vmem:[#allocation2 + $0x78] sm:$0x1] }
  0xb6   :  { %662 = vst [vmem:[#allocation2 + $0x44] sm:$0x8] %v661_v18  ;;  %v466_v22 = vld [vmem:[#allocation2] sm:$0xf]  ;;  %v107_v20 = vsel %vm5866_vm8, 0, %v106_v28 }
  0xb7   :  { %469 = vst.msk [vmem:[#allocation2 + $0x4] sm:$0xf] %vm10194_vm5, %v463_v2  ;;  %v467_v45 = vsel %vm5940_vm10, %v454_v21, %v466_v22  ;;  %v6612_v11 = vor.u32 %v10443_v34, %v6473_v40  ;;  %1078 = vrot.lane.b32.xlu1 %v5981_v62, %s5547_s19  ;;  %v10450_v22 = vshll.u32 %v5760_v26, 16  ;;  %v10452_v26 = vld [vmem:[#allocation7_spill] sm:$0xff] }
  0xb8   :  { %468 = vst [vmem:[#allocation2] sm:$0xf] %v467_v45 }
  0xb9   :  { %v681_v39 = vld [vmem:[#allocation2 + $0x7c] sm:$0x8]  ;;  %432 = vst [vmem:[#allocation2 + $0x60] sm:$0xf] %v431_v60  ;;  %v435_v40 = vsel %vm5940_vm10, %v6612_v11, %v434_v58  ;;  %v829_v7 = vpop.permute.xlu2 %828  ;;  %v6653_v60 = vor.u32 %v10450_v22, %v6526_v53  ;;  %v916_v22 = vld [vmem:[#allocation2 + $0xc] sm:$0xf] }
  0xba   :  { %v682_v31 = vsel %vm6097_vm14, 0, %v681_v39  ;;  %v666_v13 = vld [vmem:[#allocation2 + $0x54] sm:$0x8]  ;;  %913 = vst.msk [vmem:[#allocation2 + $0x8] sm:$0xf] %vm10190_vm15, %v823_v54  ;;  %1080 = vrot.lane.b32.xlu2 %v6033_v51, %s5547_s19  ;;  %1076 = vrot.lane.b32.xlu0 %v5961_v36, %s5547_s19  ;;  %v921_v18 = vsel %vm6627_vm4, %v829_v7, %v920_v5  ;;  %v6665_v39 = vor.u32 %v10451_v42, %v6377_v10  ;;  %v10453_v5 = vld [vmem:[#allocation14_spill] sm:$0xff] }
  0xbb   :  { %683 = vst [vmem:[#allocation2 + $0x7c] sm:$0x8] %v682_v31  ;;  %v667_v27 = vsel %vm6097_vm14, 0, %v666_v13  ;;  %v924_v42 = vld [vmem:[#allocation2 + $0x1c] sm:$0xf] }
  0xbc   :  { %668 = vst [vmem:[#allocation2 + $0x54] sm:$0x8] %v667_v27  ;;  %v551_v19 = vpop.permute.xlu1 %550 }
  0xbd   :  { %612 = vst.msk [vmem:[#allocation2 + $0x5c] sm:$0xf] %vm10193_vm11, %v543_v17  ;;  %v549_v12 = vpop.permute.xlu0 %548 }
  0xbe   :  { %10446 = vst [vmem:[#allocation42_spill] sm:$0xff] %v10445_v3 }
  0xbf   :  { %613 = vst.msk [vmem:[#allocation2 + $0x60] sm:$0xf] %vm10193_vm11, %v545_v30  ;;  %1084 = vrot.lane.b32.xlu1 %v6074_v9, %s5547_s19 }
  0xc0   :  { %10449 = vst [vmem:[#allocation43_spill] sm:$0xff] %v10448_v15  ;;  %v6987_v15 = vld [vmem:[%s10069_s0 + $0x50] sm:$0xf] }
  0xc1   :  { %436 = vst [vmem:[#allocation2 + $0x68] sm:$0xf] %v435_v40  ;;  %v1011_v21 = vld [vmem:[#allocation2 + $0x8] sm:$0x1]  ;;  %v835_v31 = vpop.permute.xlu2 %834 }
  0xc2   :  { %105 = vst [vmem:[#allocation2 + $0x70] sm:$0x1] %v104_v0  ;;  %v1012_v52 = vsel %vm6635_vm7, 0, %v1011_v21  ;;  %1086 = vrot.lane.b32.xlu2 %v6060_v24, %s5547_s19  ;;  %1082 = vrot.lane.b32.xlu0 %v10452_v26, %s5547_s19  ;;  %v932_v0 = vld [vmem:[#allocation2 + $0x2c] sm:$0xf] }
  0xc3   :  { %108 = vst [vmem:[#allocation2 + $0x78] sm:$0x1] %v107_v20 }
  0xc4   :  { %616 = vst.msk [vmem:[#allocation2 + $0x6c] sm:$0xf] %vm10193_vm11, %v551_v19  ;;  %v669_v2 = vld [vmem:[#allocation2 + $0x5c] sm:$0x8]  ;;  %v557_v58 = vpop.permute.xlu1 %556 }
  0xc5   :  { %1013 = vst [vmem:[#allocation2 + $0x8] sm:$0x1] %v1012_v52  ;;  %v670_v45 = vsel %vm6097_vm14, 0, %v669_v2  ;;  %v555_v17 = vpop.permute.xlu0 %554 }
  0xc6   :  { %922 = vst [vmem:[#allocation2 + $0x14] sm:$0xf] %v921_v18 }
  0xc7   :  { %615 = vst.msk [vmem:[#allocation2 + $0x68] sm:$0xf] %vm10193_vm11, %v549_v12  ;;  %1090 = vrot.lane.b32.xlu1 %v6133_v32, %s5547_s19 }
  0xc8   :  { %671 = vst [vmem:[#allocation2 + $0x5c] sm:$0x8] %v670_v45 }
  0xc9   :  { %v438_v34 = vld [vmem:[#allocation2 + $0x70] sm:$0xf]  ;;  %927 = vst.msk [vmem:[#allocation2 + $0x20] sm:$0xf] %vm10190_vm15, %v835_v31  ;;  %v841_v28 = vpop.permute.xlu2 %840 }
  0xca   :  { %v439_v53 = vsel %vm5940_vm10, %v6653_v60, %v438_v34  ;;  %v442_v30 = vld [vmem:[#allocation2 + $0x78] sm:$0xf]  ;;  %618 = vst.msk [vmem:[#allocation2 + $0x74] sm:$0xf] %vm10193_vm11, %v555_v17  ;;  %1092 = vrot.lane.b32.xlu2 %v6211_v55, %s5547_s19  ;;  %1088 = vrot.lane.b32.xlu0 %v6154_v59, %s5547_s19  ;;  %v933_v21 = vsel %vm6627_vm4, %v841_v28, %v932_v0  ;;  %v10455_v28 = vld [vmem:[#allocation23_spill] sm:$0xff] }
  0xcb   :  { %v675_v54 = vld [vmem:[#allocation2 + $0x6c] sm:$0x8]  ;;  %440 = vst [vmem:[#allocation2 + $0x70] sm:$0xf] %v439_v53  ;;  %v443_v44 = vsel %vm5940_vm10, %v6665_v39, %v442_v30  ;;  %v928_v0 = vld [vmem:[#allocation2 + $0x24] sm:$0xf] }
  0xcc   :  { %v676_v13 = vsel %vm6097_vm14, 0, %v675_v54  ;;  %617 = vst.msk [vmem:[#allocation2 + $0x70] sm:$0xf] %vm10193_vm11, %v6528_v1  ;;  %v628_v27 = vpop.permute.xlu1 %627 }
  0xcd   :  { %677 = vst [vmem:[#allocation2 + $0x6c] sm:$0x8] %v676_v13  ;;  %v626_v1 = vpop.permute.xlu0 %625  ;;  %v944_v13 = vld [vmem:[#allocation2 + $0x44] sm:$0xf] }
  0xce   :  { %444 = vst [vmem:[#allocation2 + $0x78] sm:$0xf] %v443_v44 }
  0xcf   :  { %619 = vst.msk [vmem:[#allocation2 + $0x78] sm:$0xf] %vm10193_vm11, %v557_v58  ;;  %1096 = vrot.lane.b32.xlu1 %v6296_v37, %s5547_s19 }
  0xd0   :  { %v1020_v10 = vld [vmem:[#allocation2 + $0x20] sm:$0x1]  ;;  %632 = vst.msk [vmem:[#allocation2 + $0x4] sm:$0xf] %vm10193_vm11, %v628_v27 }
  0xd1   :  { %v1021_v40 = vsel %vm6635_vm7, 0, %v1020_v10  ;;  %v678_v20 = vld [vmem:[#allocation2 + $0x74] sm:$0x8]  ;;  %631 = vst.msk [vmem:[#allocation2] sm:$0xf] %vm10193_vm11, %v626_v1  ;;  %v847_v12 = vpop.permute.xlu2 %846  ;;  %v10454_v27 = vld [vmem:[#allocation38_spill] sm:$0xff] }
  0xd2   :  { %1022 = vst [vmem:[#allocation2 + $0x20] sm:$0x1] %v1021_v40  ;;  %v679_v19 = vsel %vm6097_vm14, 0, %v678_v20  ;;  %1098 = vrot.lane.b32.xlu2 %v6206_v41, %s5547_s19  ;;  %1094 = vrot.lane.b32.xlu0 %v10453_v5, %s5547_s19  ;;  %vm1366_vm11 = vcmask 142459  }
  0xd3   :  { %680 = vst [vmem:[#allocation2 + $0x74] sm:$0x8] %v679_v19  ;;  %vm7123_vm5 = vmand %vm1366_vm11, %vm10201_vm13  ;;  %vm10204_vm11 = vcmask 142456  }
  0xd4   :  { %934 = vst [vmem:[#allocation2 + $0x2c] sm:$0xf] %v933_v21  ;;  %v827_v52 = vpop.permute.xlu1 %826  ;;  %vm7254_vm9 = vmand %vm10204_vm11, %vm10205_vm3  ;;  %vm10545_vm3 = vsmask.f32 7950 }
  0xd5   :  { %919 = vst.msk [vmem:[#allocation2 + $0x10] sm:$0xf] %vm10190_vm15, %v827_v52  ;;  %v825_v2 = vpop.permute.xlu0 %824 }
  0xd6   :  { %v917_v45 = vsel %vm6627_vm4, %v825_v2, %v916_v22  ;;  %939 = vst.msk [vmem:[#allocation2 + $0x38] sm:$0xf] %vm10190_vm15, %v847_v12  ;;  %v936_v12 = vld [vmem:[#allocation2 + $0x34] sm:$0xf] }
  0xd7   :  { %v636_v7 = vld [vmem:[#allocation2 + $0x4] sm:$0x8]  ;;  %918 = vst [vmem:[#allocation2 + $0xc] sm:$0xf] %v917_v45  ;;  %1102 = vrot.lane.b32.xlu1 %v6283_v29, %s5547_s19 }
  0xd8   :  { %v637_v18 = vsel %vm6097_vm14, 0, %v636_v7  ;;  %10466 = vst [vmem:[#allocation46_spill] sm:$0xff] %v6987_v15 }
  0xd9   :  { %638 = vst [vmem:[#allocation2 + $0x4] sm:$0x8] %v637_v18  ;;  %v853_v30 = vpop.permute.xlu2 %852 }
  0xda   :  { %1104 = vrot.lane.b32.xlu2 %v6423_v61, %s5547_s19  ;;  %1100 = vrot.lane.b32.xlu0 %v6344_v46, %s5547_s19  ;;  %v945_v44 = vsel %vm6627_vm4, %v853_v30, %v944_v13  ;;  %v956_v30 = vld [vmem:[#allocation2 + $0x5c] sm:$0xf]  ;;  %v10456_v13 = vld [vmem:[#allocation31_spill] sm:$0xff] }
  0xdb   :  { %946 = vst [vmem:[#allocation2 + $0x44] sm:$0xf] %v945_v44 }
  0xdc   :  { %v1014_v34 = vld [vmem:[#allocation2 + $0x10] sm:$0x1]  ;;  %v833_v53 = vpop.permute.xlu1 %832 }
  0xdd   :  { %v1015_v54 = vsel %vm6635_vm7, 0, %v1014_v34  ;;  %v925_v58 = vsel %vm6627_vm4, %v833_v53, %v924_v42  ;;  %v831_v31 = vpop.permute.xlu0 %830  ;;  %v1029_v17 = vld [vmem:[#allocation2 + $0x38] sm:$0x1] }
  0xde   :  { %1016 = vst [vmem:[#allocation2 + $0x10] sm:$0x1] %v1015_v54  ;;  %v1030_v10 = vsel %vm6635_vm7, 0, %v1029_v17 }
  0xdf   :  { %926 = vst [vmem:[#allocation2 + $0x1c] sm:$0xf] %v925_v58  ;;  %1108 = vrot.lane.b32.xlu1 %v6535_v8, %s5547_s19  ;;  %v6752_v58 = vld [vmem:[%s10069_s0 + $0x78] sm:$0xf] }
  0xe0   :  { %923 = vst.msk [vmem:[#allocation2 + $0x18] sm:$0xf] %vm10190_vm15, %v831_v31  ;;  %v6757_v31 = vld [vmem:[%s10069_s0 + $0x7c] sm:$0xf]  ;;  %v10163_v17 = vshrl.u32 %v6752_v58, 16 }
  0xe1   :  { %1031 = vst [vmem:[#allocation2 + $0x38] sm:$0x1] %v1030_v10  ;;  %v859_v1 = vpop.permute.xlu2 %858  ;;  %v10161_v44 = vshrl.u32 %v6757_v31, 16 }
  0xe2   :  { %1110 = vrot.lane.b32.xlu2 %v10454_v27, %s5547_s19  ;;  %1106 = vrot.lane.b32.xlu0 %v10455_v28, %s5547_s19  ;;  %951 = vst.msk [vmem:[#allocation2 + $0x50] sm:$0xf] %vm10190_vm15, %v859_v1  ;;  %v940_v1 = vld [vmem:[#allocation2 + $0x3c] sm:$0xf] }
  0xe4   :  { %v839_v40 = vpop.permute.xlu1 %838 }
  0xe5   :  { %931 = vst.msk [vmem:[#allocation2 + $0x28] sm:$0xf] %vm10190_vm15, %v839_v40  ;;  %v837_v20 = vpop.permute.xlu0 %836 }
  0xe6   :  { %v929_v21 = vsel %vm6627_vm4, %v837_v20, %v928_v0 }
  0xe7   :  { %v1017_v19 = vld [vmem:[#allocation2 + $0x18] sm:$0x1]  ;;  %930 = vst [vmem:[#allocation2 + $0x24] sm:$0xf] %v929_v21  ;;  %1114 = vrot.lane.b32.xlu1 %v6444_v38, %s5547_s19  ;;  %v1059_v21 = vrot.slane %v10163_v17, 7 }
  0xe8   :  { %v1018_v7 = vsel %vm6635_vm7, 0, %v1017_v19  ;;  %v1067_v19 = vrot.slane %v10161_v44, 7  ;;  %v6878_v44 = vld [vmem:[%s10069_s0 + $0x20] sm:$0xf] }
  0xe9   :  { %1019 = vst [vmem:[#allocation2 + $0x18] sm:$0x1] %v1018_v7  ;;  %v865_v2 = vpop.permute.xlu2 %864  ;;  %v1038_v45 = vld [vmem:[#allocation2 + $0x50] sm:$0x1]  ;;  %v10162_v7 = vshll.u32 %v6757_v31, 16 }
  0xea   :  { %1116 = vrot.lane.b32.xlu2 %v6588_v14, %s5547_s19  ;;  %1112 = vrot.lane.b32.xlu0 %v6554_v35, %s5547_s19  ;;  %v1039_v53 = vsel %vm6635_vm7, 0, %v1038_v45  ;;  %v957_v54 = vsel %vm6627_vm4, %v865_v2, %v956_v30  ;;  %v1063_v2 = vrot.slane %v1059_v21, 4 }
  0xeb   :  { %1040 = vst [vmem:[#allocation2 + $0x50] sm:$0x1] %v1039_v53 }
  0xec   :  { %v1023_v52 = vld [vmem:[#allocation2 + $0x28] sm:$0x1]  ;;  %v845_v18 = vpop.permute.xlu1 %844  ;;  %958 = vst [vmem:[#allocation2 + $0x5c] sm:$0xf] %v957_v54 }
  0xed   :  { %v1024_v22 = vsel %vm6635_vm7, 0, %v1023_v52  ;;  %v937_v34 = vsel %vm6627_vm4, %v845_v18, %v936_v12  ;;  %v843_v42 = vpop.permute.xlu0 %842  ;;  %v10164_v18 = vshll.u32 %v6752_v58, 16 }
  0xee   :  { %1025 = vst [vmem:[#allocation2 + $0x28] sm:$0x1] %v1024_v22  ;;  %v1070_v22 = vor.u32 %v10162_v7, %v1067_v19  ;;  %v6905_v7 = vld [vmem:[%s10069_s0 + $0x2c] sm:$0xf] }
  0xef   :  { %938 = vst [vmem:[#allocation2 + $0x34] sm:$0xf] %v937_v34  ;;  %1120 = vrot.lane.b32.xlu1 %v6612_v11, %s5547_s19  ;;  %v948_v34 = vld [vmem:[#allocation2 + $0x4c] sm:$0xf] }
  0xf0   :  { %935 = vst.msk [vmem:[#allocation2 + $0x30] sm:$0xf] %vm10190_vm15, %v843_v42 }
  0xf1   :  { %v871_v40 = vpop.permute.xlu2 %870  ;;  %10460 = vst [vmem:[#allocation14_spill] sm:$0xff] %v6905_v7 }
  0xf2   :  { %1122 = vrot.lane.b32.xlu2 %v6497_v57, %s5547_s19  ;;  %1118 = vrot.lane.b32.xlu0 %v10456_v13, %s5547_s19  ;;  %963 = vst.msk [vmem:[#allocation2 + $0x68] sm:$0xf] %vm10190_vm15, %v871_v40 }
  0xf4   :  { %v851_v10 = vpop.permute.xlu1 %850 }
  0xf5   :  { %943 = vst.msk [vmem:[#allocation2 + $0x40] sm:$0xf] %vm10190_vm15, %v851_v10  ;;  %v849_v0 = vpop.permute.xlu0 %848 }
  0xf6   :  { %v941_v20 = vsel %vm6627_vm4, %v849_v0, %v940_v1  ;;  %v968_v0 = vld [vmem:[#allocation2 + $0x74] sm:$0xf] }
  0xf7   :  { %942 = vst [vmem:[#allocation2 + $0x3c] sm:$0xf] %v941_v20  ;;  %v1026_v52 = vld [vmem:[#allocation2 + $0x30] sm:$0x1]  ;;  %1126 = vrot.lane.b32.xlu1 %v6563_v50, %s5547_s19  ;;  %v6796_v20 = vor.u32 %v10164_v18, %v1059_v21 }
  0xf8   :  { %v1027_v12 = vsel %vm6635_vm7, 0, %v1026_v52  ;;  %v6802_v52 = vsel %vm5810_vm2, %v1063_v2, %v1070_v22 }
  0xf9   :  { %1028 = vst [vmem:[#allocation2 + $0x30] sm:$0x1] %v1027_v12  ;;  %v877_v53 = vpop.permute.xlu2 %876  ;;  %v1047_v54 = vld [vmem:[#allocation2 + $0x68] sm:$0x1] }
  0xfa   :  { %1128 = vrot.lane.b32.xlu2 %v6665_v39, %s5547_s19  ;;  %1124 = vrot.lane.b32.xlu0 %v6653_v60, %s5547_s19  ;;  %v1048_v1 = vsel %vm6635_vm7, 0, %v1047_v54  ;;  %v969_v19 = vsel %vm6627_vm4, %v877_v53, %v968_v0  ;;  %v6820_v53 = vld [vmem:[%s10069_s0 + $0x8] sm:$0xf]  ;;  %v5446_v54 = vld [vmem:[%s10069_s0] sm:$0xf] }
  0xfb   :  { %1049 = vst [vmem:[#allocation2 + $0x68] sm:$0x1] %v1048_v1 }
  0xfc   :  { %v1032_v45 = vld [vmem:[#allocation2 + $0x40] sm:$0x1]  ;;  %v857_v42 = vpop.permute.xlu1 %856  ;;  %970 = vst [vmem:[#allocation2 + $0x74] sm:$0xf] %v969_v19 }
  0xfd   :  { %v1033_v30 = vsel %vm6635_vm7, 0, %v1032_v45  ;;  %v949_v10 = vsel %vm6627_vm4, %v857_v42, %v948_v34  ;;  %v855_v40 = vpop.permute.xlu0 %854  ;;  %v952_v45 = vld [vmem:[#allocation2 + $0x54] sm:$0xf] }
  0xfe   :  { %1034 = vst [vmem:[#allocation2 + $0x40] sm:$0x1] %v1033_v30  ;;  %v5445_v30 = vld [vmem:[%s10069_s0 + $0x4] sm:$0xf] }
  0xff   :  { %950 = vst [vmem:[#allocation2 + $0x4c] sm:$0xf] %v949_v10  ;;  %1132 = vrot.lane.b32.xlu1 %v6796_v20, %s5547_s19 }
 0x100   :  { %947 = vst.msk [vmem:[#allocation2 + $0x48] sm:$0xf] %vm10190_vm15, %v855_v40  ;;  %v960_v40 = vld [vmem:[#allocation2 + $0x64] sm:$0xf] }
 0x102   :  { %1134 = vrot.lane.b32.xlu2 %v6802_v52, %s5547_s19  ;;  %1130 = vrot.lane.b32.xlu0 %v6435_v16, %s5547_s19 }
 0x104   :  { %v863_v21 = vpop.permute.xlu1 %862  ;;  %v997_v12 = vpop.permute.xlu2 %996 }
 0x105   :  { %955 = vst.msk [vmem:[#allocation2 + $0x58] sm:$0xf] %vm10190_vm15, %v863_v21  ;;  %v861_v2 = vpop.permute.xlu0 %860 }
 0x106   :  { %v953_v22 = vsel %vm6627_vm4, %v861_v2, %v952_v45  ;;  %1002 = vst.msk [vmem:[#allocation2] sm:$0xf] %vm10190_vm15, %v997_v12 }
 0x107   :  { %954 = vst [vmem:[#allocation2 + $0x54] sm:$0xf] %v953_v22  ;;  %v1035_v34 = vld [vmem:[#allocation2 + $0x48] sm:$0x1]  ;;  %1239 = vrot.lane.b32.xlu1 %v5445_v30, %s5548_s27  ;;  %v6844_v22 = vld [vmem:[%s10069_s0 + $0x14] sm:$0xf] }
 0x108   :  { %v1036_v42 = vsel %vm6635_vm7, 0, %v1035_v34  ;;  %v6851_v34 = vld [vmem:[%s10069_s0 + $0x10] sm:$0xf]  ;;  %v6864_v30 = vld [vmem:[%s10069_s0 + $0xc] sm:$0xf] }
 0x109   :  { %1037 = vst [vmem:[#allocation2 + $0x48] sm:$0x1] %v1036_v42  ;;  %v10457_v42 = vmov 0 }
 0x10a   :  { %1241 = vrot.lane.b32.xlu2 %v6820_v53, %s5548_s27  ;;  %1237 = vrot.lane.b32.xlu0 %v5446_v54, %s5548_s27  ;;  %v10458_v42 = vsel %vm6857_vm0, 4294967295, %v10457_v42 }
 0x10b   :  { %10459 = vst [vmem:[#allocation7_spill] sm:$0xff] %v10458_v42 }
 0x10c   :  { %v1041_v10 = vld [vmem:[#allocation2 + $0x58] sm:$0x1]  ;;  %v869_v1 = vpop.permute.xlu1 %868  ;;  %v6832_v0 = vpop.permute.xlu2 %1074 }
 0x10d   :  { %v1042_v19 = vsel %vm6635_vm7, 0, %v1041_v10  ;;  %v1008_v21 = vld [vmem:[#allocation2] sm:$0x1]  ;;  %v961_v12 = vsel %vm6627_vm4, %v869_v1, %v960_v40  ;;  %v867_v45 = vpop.permute.xlu0 %866  ;;  %v1179_v10 = vld [vmem:[#allocation2 + $0x10] sm:$0xf] }
 0x10e   :  { %1043 = vst [vmem:[#allocation2 + $0x58] sm:$0x1] %v1042_v19  ;;  %v1009_v2 = vsel %vm6635_vm7, 0, %v1008_v21  ;;  %v964_v1 = vld [vmem:[#allocation2 + $0x6c] sm:$0xf] }
 0x10f   :  { %1010 = vst [vmem:[#allocation2] sm:$0x1] %v1009_v2  ;;  %1245 = vrot.lane.b32.xlu1 %v6851_v34, %s5548_s27 }
 0x110   :  { %962 = vst [vmem:[#allocation2 + $0x64] sm:$0xf] %v961_v12 }
 0x111   :  { %959 = vst.msk [vmem:[#allocation2 + $0x60] sm:$0xf] %vm10190_vm15, %v867_v45 }
 0x112   :  { %1247 = vrot.lane.b32.xlu2 %v6844_v22, %s5548_s27  ;;  %1243 = vrot.lane.b32.xlu0 %v6864_v30, %s5548_s27 }
 0x114   :  { %v875_v54 = vpop.permute.xlu1 %874  ;;  %v1081_v40 = vpop.permute.xlu2 %1080 }
 0x115   :  { %967 = vst.msk [vmem:[#allocation2 + $0x70] sm:$0xf] %vm10190_vm15, %v875_v54  ;;  %v873_v19 = vpop.permute.xlu0 %872  ;;  %v1180_v21 = vsel %vm6857_vm0, %v1081_v40, %v1179_v10  ;;  %v6885_v54 = vld [vmem:[%s10069_s0 + $0x1c] sm:$0xf]  ;;  %v6892_v10 = vld [vmem:[%s10069_s0 + $0x18] sm:$0xf] }
 0x116   :  { %v965_v12 = vsel %vm6627_vm4, %v873_v19, %v964_v1  ;;  %1181 = vst [vmem:[#allocation2 + $0x10] sm:$0xf] %v1180_v21  ;;  %v972_v1 = vld [vmem:[#allocation2 + $0x7c] sm:$0xf] }
 0x117   :  { %966 = vst [vmem:[#allocation2 + $0x6c] sm:$0xf] %v965_v12  ;;  %1251 = vrot.lane.b32.xlu1 %v6885_v54, %s5548_s27 }
 0x118   :  { %v1044_v45 = vld [vmem:[#allocation2 + $0x60] sm:$0x1] }
 0x119   :  { %v1045_v2 = vsel %vm6635_vm7, 0, %v1044_v45 }
 0x11a   :  { %1046 = vst [vmem:[#allocation2 + $0x60] sm:$0x1] %v1045_v2  ;;  %1253 = vrot.lane.b32.xlu2 %v6878_v44, %s5548_s27  ;;  %1249 = vrot.lane.b32.xlu0 %v6892_v10, %s5548_s27 }
 0x11c   :  { %v1050_v40 = vld [vmem:[#allocation2 + $0x70] sm:$0x1]  ;;  %v881_v19 = vpop.permute.xlu1 %880  ;;  %v1087_v21 = vpop.permute.xlu2 %1086 }
 0x11d   :  { %v1051_v12 = vsel %vm6635_vm7, 0, %v1050_v40  ;;  %v973_v45 = vsel %vm6627_vm4, %v881_v19, %v972_v1  ;;  %v879_v2 = vpop.permute.xlu0 %878  ;;  %1186 = vst.msk [vmem:[#allocation2 + $0x1c] sm:$0xf] %vm10200_vm12, %v1087_v21  ;;  %v6912_v40 = vld [vmem:[%s10069_s0 + $0x28] sm:$0xf] }
 0x11e   :  { %1052 = vst [vmem:[#allocation2 + $0x70] sm:$0x1] %v1051_v12  ;;  %v6919_v1 = vld [vmem:[%s10069_s0 + $0x24] sm:$0xf]  ;;  %v1191_v19 = vld [vmem:[#allocation2 + $0x28] sm:$0xf] }
 0x11f   :  { %974 = vst [vmem:[#allocation2 + $0x7c] sm:$0xf] %v973_v45  ;;  %1257 = vrot.lane.b32.xlu1 %v6912_v40, %s5548_s27  ;;  %v1170_v12 = vld [vmem:[#allocation2] sm:$0xf] }
 0x120   :  { %971 = vst.msk [vmem:[#allocation2 + $0x78] sm:$0xf] %vm10190_vm15, %v879_v2  ;;  %v1003_v2 = vld [vmem:[#allocation2 + $0x4] sm:$0xf]  ;;  %vm10203_vm15 = vcmask 117856  }
 0x122   :  { %1259 = vrot.lane.b32.xlu2 %v6905_v7, %s5548_s27  ;;  %1255 = vrot.lane.b32.xlu0 %v6919_v1, %s5548_s27 }
 0x124   :  { %v1093_v21 = vpop.permute.xlu2 %1092  ;;  %v1073_v45 = vpop.permute.xlu1 %1072 }
 0x125   :  { %v999_v17 = vpop.permute.xlu0 %998  ;;  %v1192_v18 = vsel %vm6857_vm0, %v1093_v21, %v1191_v19  ;;  %v1171_v56 = vsel %vm6857_vm0, %v1073_v45, %v1170_v12  ;;  %v6936_v19 = vld [vmem:[%s10069_s0 + $0x38] sm:$0xf]  ;;  %v6961_v21 = vld [vmem:[%s10069_s0 + $0x44] sm:$0xf]  ;;  %v6968_v12 = vld [vmem:[%s10069_s0 + $0x40] sm:$0xf] }
 0x126   :  { %v1004_v4 = vsel %vm6627_vm4, %v999_v17, %v1003_v2  ;;  %1193 = vst [vmem:[#allocation2 + $0x28] sm:$0xf] %v1192_v18  ;;  %v1175_v18 = vld [vmem:[#allocation2 + $0x8] sm:$0xf]  ;;  %v6975_v45 = vld [vmem:[%s10069_s0 + $0x3c] sm:$0xf] }
 0x127   :  { %v1053_v25 = vld [vmem:[#allocation2 + $0x78] sm:$0x1]  ;;  %1005 = vst [vmem:[#allocation2 + $0x4] sm:$0xf] %v1004_v4  ;;  %v6943_v4 = vld [vmem:[%s10069_s0 + $0x34] sm:$0xf] }
 0x128   :  { %v1054_v7 = vsel %vm6635_vm7, 0, %v1053_v25  ;;  %1174 = vst.msk [vmem:[#allocation2 + $0x4] sm:$0xf] %vm10200_vm12, %v6832_v0  ;;  %1263 = vrot.lane.b32.xlu1 %v6943_v4, %s5548_s27  ;;  %v1203_v2 = vld [vmem:[#allocation2 + $0x40] sm:$0xf] }
 0x129   :  { %1055 = vst [vmem:[#allocation2 + $0x78] sm:$0x1] %v1054_v7 }
 0x12a   :  { %1172 = vst [vmem:[#allocation2] sm:$0xf] %v1171_v56  ;;  %1265 = vrot.lane.b32.xlu2 %v6936_v19, %s5548_s27  ;;  %v6950_v56 = vld [vmem:[%s10069_s0 + $0x30] sm:$0xf] }
 0x12b   :  { %10461 = vst [vmem:[#allocation38_spill] sm:$0xff] %v6936_v19  ;;  %1261 = vrot.lane.b32.xlu0 %v6950_v56, %s5548_s27 }
 0x12c   :  { %10462 = vst [vmem:[#allocation23_spill] sm:$0xff] %v6950_v56  ;;  %v1099_v25 = vpop.permute.xlu2 %1098  ;;  %v1079_v17 = vpop.permute.xlu1 %1078 }
 0x12d   :  { %v1077_v7 = vpop.permute.xlu0 %1076  ;;  %1198 = vst.msk [vmem:[#allocation2 + $0x34] sm:$0xf] %vm10200_vm12, %v1099_v25 }
 0x12e   :  { %v1176_v0 = vsel %vm6857_vm0, %v1077_v7, %v1175_v18  ;;  %1178 = vst.msk [vmem:[#allocation2 + $0xc] sm:$0xf] %vm10200_vm12, %v1079_v17  ;;  %v1183_v17 = vld [vmem:[#allocation2 + $0x18] sm:$0xf] }
 0x12f   :  { %1177 = vst [vmem:[#allocation2 + $0x8] sm:$0xf] %v1176_v0 }
 0x130   :  { %10463 = vst [vmem:[#allocation31_spill] sm:$0xff] %v6961_v21  ;;  %1269 = vrot.lane.b32.xlu1 %v6968_v12, %s5548_s27 }
 0x131   :  { %10464 = vst [vmem:[#allocation44_spill] sm:$0xff] %v6968_v12  ;;  %v1223_v12 = vld [vmem:[#allocation2 + $0x68] sm:$0xf] }
 0x132   :  { %1271 = vrot.lane.b32.xlu2 %v6961_v21, %s5548_s27  ;;  %10465 = vst [vmem:[#allocation45_spill] sm:$0xff] %v6975_v45  ;;  %v6994_v21 = vld [vmem:[%s10069_s0 + $0x4c] sm:$0xf] }
 0x133   :  { %1267 = vrot.lane.b32.xlu0 %v6975_v45, %s5548_s27  ;;  %10467 = vst [vmem:[#allocation47_spill] sm:$0xff] %v6994_v21 }
 0x134   :  { %v1105_v25 = vpop.permute.xlu2 %1104  ;;  %v1085_v7 = vpop.permute.xlu1 %1084 }
 0x135   :  { %v1083_v18 = vpop.permute.xlu0 %1082  ;;  %v1204_v0 = vsel %vm6857_vm0, %v1105_v25, %v1203_v2  ;;  %v1184_v3 = vsel %vm6857_vm0, %v1085_v7, %v1183_v17  ;;  %v1187_v7 = vld [vmem:[#allocation2 + $0x20] sm:$0xf] }
 0x136   :  { %1182 = vst.msk [vmem:[#allocation2 + $0x14] sm:$0xf] %vm10200_vm12, %v1083_v18 }
 0x137   :  { %1205 = vst [vmem:[#allocation2 + $0x40] sm:$0xf] %v1204_v0  ;;  %v7012_v0 = vld [vmem:[%s10069_s0 + $0x5c] sm:$0xf] }
 0x138   :  { %1185 = vst [vmem:[#allocation2 + $0x18] sm:$0xf] %v1184_v3  ;;  %1275 = vrot.lane.b32.xlu1 %v6994_v21, %s5548_s27  ;;  %v7001_v3 = vld [vmem:[%s10069_s0 + $0x48] sm:$0xf] }
 0x139   :  { %10468 = vst [vmem:[#allocation48_spill] sm:$0xff] %v7001_v3 }
 0x13a   :  { %1277 = vrot.lane.b32.xlu2 %v6987_v15, %s5548_s27  ;;  %10469 = vst [vmem:[#allocation49_spill] sm:$0xff] %v7012_v0  ;;  %v7019_v15 = vld [vmem:[%s10069_s0 + $0x58] sm:$0xf] }
 0x13b   :  { %1273 = vrot.lane.b32.xlu0 %v7001_v3, %s5548_s27  ;;  %10470 = vst [vmem:[#allocation50_spill] sm:$0xff] %v7019_v15 }
 0x13c   :  { %v1111_v2 = vpop.permute.xlu2 %1110  ;;  %v1091_v25 = vpop.permute.xlu1 %1090 }
 0x13d   :  { %v1089_v17 = vpop.permute.xlu0 %1088  ;;  %1210 = vst.msk [vmem:[#allocation2 + $0x4c] sm:$0xf] %vm10200_vm12, %v1111_v2  ;;  %v7026_v2 = vld [vmem:[%s10069_s0 + $0x54] sm:$0xf] }
 0x13e   :  { %v1188_v18 = vsel %vm6857_vm0, %v1089_v17, %v1187_v7  ;;  %1190 = vst.msk [vmem:[#allocation2 + $0x24] sm:$0xf] %vm10200_vm12, %v1091_v25  ;;  %v1215_v25 = vld [vmem:[#allocation2 + $0x58] sm:$0xf]  ;;  %v1195_v7 = vld [vmem:[#allocation2 + $0x30] sm:$0xf] }
 0x13f   :  { %1189 = vst [vmem:[#allocation2 + $0x20] sm:$0xf] %v1188_v18 }
 0x140   :  { %1281 = vrot.lane.b32.xlu1 %v7019_v15, %s5548_s27  ;;  %10471 = vst [vmem:[#allocation51_spill] sm:$0xff] %v7026_v2  ;;  %v7038_v15 = vld [vmem:[%s10069_s0 + $0x68] sm:$0xf] }
 0x141   :  { %10472 = vst [vmem:[#allocation52_spill] sm:$0xff] %v7038_v15 }
 0x142   :  { %1283 = vrot.lane.b32.xlu2 %v7012_v0, %s5548_s27 }
 0x143   :  { %1279 = vrot.lane.b32.xlu0 %v7026_v2, %s5548_s27  ;;  %v7045_v2 = vld [vmem:[%s10069_s0 + $0x64] sm:$0xf] }
 0x144   :  { %v1117_v17 = vpop.permute.xlu2 %1116  ;;  %v1097_v18 = vpop.permute.xlu1 %1096  ;;  %10473 = vst [vmem:[#allocation53_spill] sm:$0xff] %v7045_v2 }
 0x145   :  { %v1095_v0 = vpop.permute.xlu0 %1094  ;;  %v1216_v3 = vsel %vm6857_vm0, %v1117_v17, %v1215_v25  ;;  %v1196_v21 = vsel %vm6857_vm0, %v1097_v18, %v1195_v7  ;;  %v1199_v17 = vld [vmem:[#allocation2 + $0x38] sm:$0xf]  ;;  %v7063_v18 = vld [vmem:[%s10069_s0 + $0x74] sm:$0xf] }
 0x146   :  { %1194 = vst.msk [vmem:[#allocation2 + $0x2c] sm:$0xf] %vm10200_vm12, %v1095_v0 }
 0x147   :  { %1217 = vst [vmem:[#allocation2 + $0x58] sm:$0xf] %v1216_v3 }
 0x148   :  { %1197 = vst [vmem:[#allocation2 + $0x30] sm:$0xf] %v1196_v21  ;;  %1287 = vrot.lane.b32.xlu1 %v7045_v2, %s5548_s27  ;;  %v7052_v21 = vld [vmem:[%s10069_s0 + $0x60] sm:$0xf] }
 0x149   :  { %10474 = vst [vmem:[#allocation54_spill] sm:$0xff] %v7052_v21 }
 0x14a   :  { %1289 = vrot.lane.b32.xlu2 %v7038_v15, %s5548_s27  ;;  %10475 = vst [vmem:[#allocation55_spill] sm:$0xff] %v7063_v18  ;;  %v7070_v15 = vld [vmem:[%s10069_s0 + $0x70] sm:$0xf] }
 0x14b   :  { %1285 = vrot.lane.b32.xlu0 %v7052_v21, %s5548_s27  ;;  %10476 = vst [vmem:[#allocation56_spill] sm:$0xff] %v7070_v15 }
 0x14c   :  { %v1123_v3 = vpop.permute.xlu2 %1122  ;;  %v1103_v0 = vpop.permute.xlu1 %1102 }
 0x14d   :  { %v1101_v25 = vpop.permute.xlu0 %1100  ;;  %1222 = vst.msk [vmem:[#allocation2 + $0x64] sm:$0xf] %vm10200_vm12, %v1123_v3  ;;  %v7077_v3 = vld [vmem:[%s10069_s0 + $0x6c] sm:$0xf] }
 0x14e   :  { %v1200_v7 = vsel %vm6857_vm0, %v1101_v25, %v1199_v17  ;;  %1202 = vst.msk [vmem:[#allocation2 + $0x3c] sm:$0xf] %vm10200_vm12, %v1103_v0  ;;  %v1227_v0 = vld [vmem:[#allocation2 + $0x70] sm:$0xf]  ;;  %v1207_v17 = vld [vmem:[#allocation2 + $0x48] sm:$0xf] }
 0x14f   :  { %1201 = vst [vmem:[#allocation2 + $0x38] sm:$0xf] %v1200_v7 }
 0x150   :  { %1293 = vrot.lane.b32.xlu1 %v7070_v15, %s5548_s27  ;;  %10477 = vst [vmem:[#allocation57_spill] sm:$0xff] %v7077_v3  ;;  %v10478_v15 = vld [vmem:[#allocation9_spill] sm:$0xff] }
 0x152   :  { %1295 = vrot.lane.b32.xlu2 %v7063_v18, %s5548_s27 }
 0x153   :  { %1291 = vrot.lane.b32.xlu0 %v7077_v3, %s5548_s27 }
 0x154   :  { %v1129_v25 = vpop.permute.xlu2 %1128  ;;  %v1109_v7 = vpop.permute.xlu1 %1108 }
 0x155   :  { %v1107_v18 = vpop.permute.xlu0 %1106  ;;  %v1228_v21 = vsel %vm6857_vm0, %v1129_v25, %v1227_v0  ;;  %v1208_v2 = vsel %vm6857_vm0, %v1109_v7, %v1207_v17  ;;  %v1211_v25 = vld [vmem:[#allocation2 + $0x50] sm:$0xf]  ;;  %v1219_v7 = vld [vmem:[#allocation2 + $0x60] sm:$0xf] }
 0x156   :  { %1206 = vst.msk [vmem:[#allocation2 + $0x44] sm:$0xf] %vm10200_vm12, %v1107_v18  ;;  %v10481_v18 = vld [vmem:[#allocation11_spill] sm:$0xff] }
 0x157   :  { %1229 = vst [vmem:[#allocation2 + $0x70] sm:$0xf] %v1228_v21 }
 0x158   :  { %1209 = vst [vmem:[#allocation2 + $0x48] sm:$0xf] %v1208_v2  ;;  %1299 = vrot.lane.b32.xlu1 %v6757_v31, %s5548_s27  ;;  %v10480_v2 = vld [vmem:[#allocation13_spill] sm:$0xff] }
 0x15a   :  { %1425 = vrot.lane.b32.xlu2 %v10478_v15, %s5549_s21  ;;  %v10479_v15 = vld [vmem:[#allocation12_spill] sm:$0xff] }
 0x15b   :  { %1297 = vrot.lane.b32.xlu0 %v6752_v58, %s5548_s27 }
 0x15c   :  { %v1135_v3 = vpop.permute.xlu2 %1134  ;;  %v1115_v19 = vpop.permute.xlu1 %1114 }
 0x15d   :  { %v1113_v0 = vpop.permute.xlu0 %1112  ;;  %1234 = vst.msk [vmem:[#allocation2 + $0x7c] sm:$0xf] %vm10200_vm12, %v1135_v3 }
 0x15e   :  { %v1212_v21 = vsel %vm6857_vm0, %v1113_v0, %v1211_v25  ;;  %1214 = vst.msk [vmem:[#allocation2 + $0x54] sm:$0xf] %vm10200_vm12, %v1115_v19  ;;  %v10482_v0 = vld [vmem:[#allocation18_spill] sm:$0xff]  ;;  %v10483_v25 = vld [vmem:[#allocation16_spill] sm:$0xff] }
 0x15f   :  { %1213 = vst [vmem:[#allocation2 + $0x50] sm:$0xf] %v1212_v21  ;;  %v10484_v21 = vld [vmem:[#allocation17_spill] sm:$0xff] }
 0x160   :  { %1429 = vrot.lane.b32.xlu1 %v10480_v2, %s5549_s21 }
 0x162   :  { %1431 = vrot.lane.b32.xlu2 %v10479_v15, %s5549_s21 }
 0x163   :  { %1427 = vrot.lane.b32.xlu0 %v10481_v18, %s5549_s21 }
 0x164   :  { %v1242_v17 = vpop.permute.xlu2 %1241  ;;  %v1121_v45 = vpop.permute.xlu1 %1120 }
 0x165   :  { %v1119_v3 = vpop.permute.xlu0 %1118  ;;  %1336 = vst.msk [vmem:[#allocation2 + $0x8] sm:$0xf] %vm10203_vm15, %v1242_v17  ;;  %v1220_v19 = vsel %vm6857_vm0, %v1121_v45, %v1219_v7  ;;  %v10485_v17 = vld [vmem:[#allocation20_spill] sm:$0xff]  ;;  %v10486_v7 = vld [vmem:[#allocation21_spill] sm:$0xff] }
 0x166   :  { %1218 = vst.msk [vmem:[#allocation2 + $0x5c] sm:$0xf] %vm10200_vm12, %v1119_v3  ;;  %v10487_v3 = vld [vmem:[#allocation19_spill] sm:$0xff] }
 0x167   :  { %1221 = vst [vmem:[#allocation2 + $0x60] sm:$0xf] %v1220_v19  ;;  %v10488_v19 = vmov 0 }
 0x168   :  { %1435 = vrot.lane.b32.xlu1 %v10483_v25, %s5549_s21  ;;  %v10489_v19 = vsel %vm7123_vm5, 4294967295, %v10488_v19 }
 0x169   :  { %10490 = vst [vmem:[#allocation9_spill] sm:$0xff] %v10489_v19 }
 0x16a   :  { %1437 = vrot.lane.b32.xlu2 %v10482_v0, %s5549_s21 }
 0x16b   :  { %1433 = vrot.lane.b32.xlu0 %v10484_v21, %s5549_s21  ;;  %v10493_v21 = vld [vmem:[#allocation25_spill] sm:$0xff] }
 0x16c   :  { %v1248_v18 = vpop.permute.xlu2 %1247  ;;  %v1127_v15 = vpop.permute.xlu1 %1126 }
 0x16d   :  { %v1125_v2 = vpop.permute.xlu0 %1124  ;;  %1339 = vst.msk [vmem:[#allocation2 + $0x14] sm:$0xf] %vm10203_vm15, %v1248_v18 }
 0x16e   :  { %v1224_v45 = vsel %vm6857_vm0, %v1125_v2, %v1223_v12  ;;  %1226 = vst.msk [vmem:[#allocation2 + $0x6c] sm:$0xf] %vm10200_vm12, %v1127_v15  ;;  %v1231_v2 = vld [vmem:[#allocation2 + $0x78] sm:$0xf] }
 0x16f   :  { %1225 = vst [vmem:[#allocation2 + $0x68] sm:$0xf] %v1224_v45 }
 0x170   :  { %1441 = vrot.lane.b32.xlu1 %v10486_v7, %s5549_s21  ;;  %v10492_v7 = vld [vmem:[#allocation24_spill] sm:$0xff] }
 0x172   :  { %1443 = vrot.lane.b32.xlu2 %v10485_v17, %s5549_s21 }
 0x173   :  { %1439 = vrot.lane.b32.xlu0 %v10487_v3, %s5549_s21  ;;  %v10491_v3 = vld [vmem:[#allocation26_spill] sm:$0xff] }
 0x174   :  { %v1374_v18 = vld [vmem:[#allocation2 + $0x14] sm:$0x8]  ;;  %v1254_v12 = vpop.permute.xlu2 %1253  ;;  %v1133_v15 = vpop.permute.xlu1 %1132 }
 0x175   :  { %v1375_v45 = vsel %vm7123_vm5, 0, %v1374_v18  ;;  %v1131_v0 = vpop.permute.xlu0 %1130  ;;  %1342 = vst.msk [vmem:[#allocation2 + $0x20] sm:$0xf] %vm10203_vm15, %v1254_v12  ;;  %v1232_v17 = vsel %vm6857_vm0, %v1133_v15, %v1231_v2  ;;  %v10496_v12 = vld [vmem:[#allocation27_spill] sm:$0xff] }
 0x176   :  { %1376 = vst [vmem:[#allocation2 + $0x14] sm:$0x8] %v1375_v45 }
 0x177   :  { %1230 = vst.msk [vmem:[#allocation2 + $0x74] sm:$0xf] %vm10200_vm12, %v1131_v0  ;;  %v10494_v0 = vld [vmem:[#allocation28_spill] sm:$0xff]  ;;  %vm1588_vm12 = vcmask 163984  }
 0x178   :  { %1233 = vst [vmem:[#allocation2 + $0x78] sm:$0xf] %v1232_v17  ;;  %1447 = vrot.lane.b32.xlu1 %v10492_v7, %s5549_s21  ;;  %v10495_v17 = vld [vmem:[#allocation30_spill] sm:$0xff]  ;;  %vm7242_vm13 = vmand %vm1588_vm12, %vm59_vm1  ;;  %vm10208_vm1 = vcmask 167056   ;;  %vm10515_vm12 = vsmask.f32 7938 }
 0x17a   :  { %1449 = vrot.lane.b32.xlu2 %v10491_v3, %s5549_s21  ;;  %v10498_v3 = vld [vmem:[#allocation29_spill] sm:$0xff] }
 0x17b   :  { %1445 = vrot.lane.b32.xlu0 %v10493_v21, %s5549_s21 }
 0x17c   :  { %v1260_v18 = vpop.permute.xlu2 %1259  ;;  %v1240_v25 = vpop.permute.xlu1 %1239 }
 0x17d   :  { %v1238_v56 = vpop.permute.xlu0 %1237  ;;  %1345 = vst.msk [vmem:[#allocation2 + $0x2c] sm:$0xf] %vm10203_vm15, %v1260_v18 }
 0x17e   :  { %1334 = vst.msk [vmem:[#allocation2] sm:$0xf] %vm10203_vm15, %v1238_v56 }
 0x17f   :  { %1335 = vst.msk [vmem:[#allocation2 + $0x4] sm:$0xf] %vm10203_vm15, %v1240_v25 }
 0x180   :  { %1453 = vrot.lane.b32.xlu1 %v10495_v17, %s5549_s21 }
 0x182   :  { %1455 = vrot.lane.b32.xlu2 %v10494_v0, %s5549_s21  ;;  %v10497_v0 = vld [vmem:[#allocation32_spill] sm:$0xff] }
 0x183   :  { %1451 = vrot.lane.b32.xlu0 %v10496_v12, %s5549_s21 }
 0x184   :  { %v1383_v2 = vld [vmem:[#allocation2 + $0x2c] sm:$0x8]  ;;  %v1266_v15 = vpop.permute.xlu2 %1265  ;;  %v1246_v45 = vpop.permute.xlu1 %1245 }
 0x185   :  { %v1384_v42 = vsel %vm7123_vm5, 0, %v1383_v2  ;;  %v1244_v18 = vpop.permute.xlu0 %1243  ;;  %1348 = vst.msk [vmem:[#allocation2 + $0x38] sm:$0xf] %vm10203_vm15, %v1266_v15  ;;  %v10499_v2 = vld [vmem:[#allocation33_spill] sm:$0xff] }
 0x186   :  { %1385 = vst [vmem:[#allocation2 + $0x2c] sm:$0x8] %v1384_v42  ;;  %v1368_v56 = vld [vmem:[#allocation2 + $0x4] sm:$0x8] }
 0x187   :  { %v1369_v25 = vsel %vm7123_vm5, 0, %v1368_v56  ;;  %1337 = vst.msk [vmem:[#allocation2 + $0xc] sm:$0xf] %vm10203_vm15, %v1244_v18  ;;  %v10500_v18 = vld [vmem:[#allocation35_spill] sm:$0xff] }
 0x188   :  { %1370 = vst [vmem:[#allocation2 + $0x4] sm:$0x8] %v1369_v25  ;;  %1459 = vrot.lane.b32.xlu1 %v10498_v3, %s5549_s21  ;;  %v10501_v25 = vld [vmem:[#allocation37_spill] sm:$0xff] }
 0x189   :  { %1338 = vst.msk [vmem:[#allocation2 + $0x10] sm:$0xf] %vm10203_vm15, %v1246_v45 }
 0x18a   :  { %1461 = vrot.lane.b32.xlu2 %v10497_v0, %s5549_s21  ;;  %v10502_v0 = vld [vmem:[#allocation34_spill] sm:$0xff] }
 0x18b   :  { %1457 = vrot.lane.b32.xlu0 %v10499_v2, %s5549_s21 }
 0x18c   :  { %v1272_v15 = vpop.permute.xlu2 %1271  ;;  %v1252_v42 = vpop.permute.xlu1 %1251 }
 0x18d   :  { %v1250_v12 = vpop.permute.xlu0 %1249  ;;  %1351 = vst.msk [vmem:[#allocation2 + $0x44] sm:$0xf] %vm10203_vm15, %v1272_v15 }
 0x18e   :  { %v1371_v56 = vld [vmem:[#allocation2 + $0xc] sm:$0x8]  ;;  %1340 = vst.msk [vmem:[#allocation2 + $0x18] sm:$0xf] %vm10203_vm15, %v1250_v12 }
 0x18f   :  { %v1372_v45 = vsel %vm7123_vm5, 0, %v1371_v56  ;;  %1341 = vst.msk [vmem:[#allocation2 + $0x1c] sm:$0xf] %vm10203_vm15, %v1252_v42 }
 0x190   :  { %1373 = vst [vmem:[#allocation2 + $0xc] sm:$0x8] %v1372_v45  ;;  %1465 = vrot.lane.b32.xlu1 %v10501_v25, %s5549_s21  ;;  %v10503_v45 = vld [vmem:[#allocation36_spill] sm:$0xff] }
 0x192   :  { %1467 = vrot.lane.b32.xlu2 %v10500_v18, %s5549_s21 }
 0x193   :  { %1463 = vrot.lane.b32.xlu0 %v10502_v0, %s5549_s21 }
 0x194   :  { %v1392_v2 = vld [vmem:[#allocation2 + $0x44] sm:$0x8]  ;;  %v1278_v15 = vpop.permute.xlu2 %1277  ;;  %v1258_v3 = vpop.permute.xlu1 %1257 }
 0x195   :  { %v1393_v12 = vsel %vm7123_vm5, 0, %v1392_v2  ;;  %v1256_v17 = vpop.permute.xlu0 %1255  ;;  %1354 = vst.msk [vmem:[#allocation2 + $0x50] sm:$0xf] %vm10203_vm15, %v1278_v15  ;;  %v10504_v2 = vshll.u32 %v6752_v58, 16  ;;  %v10505_v15 = vld [vmem:[#allocation40_spill] sm:$0xff] }
 0x196   :  { %1394 = vst [vmem:[#allocation2 + $0x44] sm:$0x8] %v1393_v12  ;;  %v1377_v42 = vld [vmem:[#allocation2 + $0x1c] sm:$0x8]  ;;  %v10506_v12 = vshrl.u32 %v6752_v58, 16 }
 0x197   :  { %v1378_v56 = vsel %vm7123_vm5, 0, %v1377_v42  ;;  %1343 = vst.msk [vmem:[#allocation2 + $0x24] sm:$0xf] %vm10203_vm15, %v1256_v17  ;;  %v1417_v18 = vrot.slane %v10504_v2, 5 }
 0x198   :  { %1379 = vst [vmem:[#allocation2 + $0x1c] sm:$0x8] %v1378_v56  ;;  %1471 = vrot.lane.b32.xlu1 %v10503_v45, %s5549_s21  ;;  %v1416_v42 = vrot.slane %v10506_v12, 4 }
 0x199   :  { %1344 = vst.msk [vmem:[#allocation2 + $0x28] sm:$0xf] %vm10203_vm15, %v1258_v3 }
 0x19a   :  { %1473 = vrot.lane.b32.xlu2 %v6431_v23, %s5549_s21  ;;  %v1418_v2 = vor.u32 %v1417_v18, %v1416_v42 }
 0x19b   :  { %1469 = vrot.lane.b32.xlu0 %v10505_v15, %s5549_s21 }
 0x19c   :  { %v1284_v0 = vpop.permute.xlu2 %1283  ;;  %v1264_v17 = vpop.permute.xlu1 %1263  ;;  %v1419_v58 = vrot.slane %v1418_v2, 4 }
 0x19d   :  { %v1262_v56 = vpop.permute.xlu0 %1261  ;;  %1357 = vst.msk [vmem:[#allocation2 + $0x5c] sm:$0xf] %vm10203_vm15, %v1284_v0  ;;  %v10507_v0 = vshll.u32 %v6757_v31, 16 }
 0x19e   :  { %v1380_v3 = vld [vmem:[#allocation2 + $0x24] sm:$0x8]  ;;  %1346 = vst.msk [vmem:[#allocation2 + $0x30] sm:$0xf] %vm10203_vm15, %v1262_v56 }
 0x19f   :  { %v1381_v23 = vsel %vm7123_vm5, 0, %v1380_v3  ;;  %1347 = vst.msk [vmem:[#allocation2 + $0x34] sm:$0xf] %vm10203_vm15, %v1264_v17  ;;  %v1420_v12 = vrot.slane %v10507_v0, 5  ;;  %v10508_v0 = vshrl.u32 %v6757_v31, 16 }
 0x1a0   :  { %1382 = vst [vmem:[#allocation2 + $0x24] sm:$0x8] %v1381_v23  ;;  %1477 = vrot.lane.b32.xlu1 %v6504_v43, %s5549_s21 }
 0x1a1   :  { %v7210_v2 = vsel %vm5845_vm6, %v1419_v58, %v1420_v12 }
 0x1a2   :  { %1479 = vrot.lane.b32.xlu2 %v6479_v6, %s5549_s21  ;;  %v1422_v6 = vrot.slane %v10508_v0, 4 }
 0x1a3   :  { %1475 = vrot.lane.b32.xlu0 %v6506_v33, %s5549_s21 }
 0x1a4   :  { %v1401_v56 = vld [vmem:[#allocation2 + $0x5c] sm:$0x8]  ;;  %v1290_v15 = vpop.permute.xlu2 %1289  ;;  %v1270_v3 = vpop.permute.xlu1 %1269 }
 0x1a5   :  { %v1402_v18 = vsel %vm7123_vm5, 0, %v1401_v56  ;;  %v1268_v23 = vpop.permute.xlu0 %1267  ;;  %1360 = vst.msk [vmem:[#allocation2 + $0x68] sm:$0xf] %vm10203_vm15, %v1290_v15  ;;  %v1423_v15 = vor.u32 %v1422_v6, %v1420_v12 }
 0x1a6   :  { %1403 = vst [vmem:[#allocation2 + $0x5c] sm:$0x8] %v1402_v18  ;;  %v1386_v42 = vld [vmem:[#allocation2 + $0x34] sm:$0x8] }
 0x1a7   :  { %v1387_v17 = vsel %vm7123_vm5, 0, %v1386_v42  ;;  %1349 = vst.msk [vmem:[#allocation2 + $0x3c] sm:$0xf] %vm10203_vm15, %v1268_v23  ;;  %v7226_v23 = vrot.slane %v1423_v15, 4 }
 0x1a8   :  { %1388 = vst [vmem:[#allocation2 + $0x34] sm:$0x8] %v1387_v17  ;;  %1483 = vrot.lane.b32.xlu1 %v6539_v49, %s5549_s21 }
 0x1a9   :  { %1350 = vst.msk [vmem:[#allocation2 + $0x40] sm:$0xf] %vm10203_vm15, %v1270_v3 }
 0x1aa   :  { %1485 = vrot.lane.b32.xlu2 %v7210_v2, %s5549_s21 }
 0x1ab   :  { %1481 = vrot.lane.b32.xlu0 %v6559_v48, %s5549_s21 }
 0x1ac   :  { %v1296_v56 = vpop.permute.xlu2 %1295  ;;  %v1276_v18 = vpop.permute.xlu1 %1275 }
 0x1ad   :  { %v1274_v58 = vpop.permute.xlu0 %1273  ;;  %1363 = vst.msk [vmem:[#allocation2 + $0x74] sm:$0xf] %vm10203_vm15, %v1296_v56  ;;  %v10512_v56 = vmov 0 }
 0x1ae   :  { %v1389_v31 = vld [vmem:[#allocation2 + $0x3c] sm:$0x8]  ;;  %1352 = vst.msk [vmem:[#allocation2 + $0x48] sm:$0xf] %vm10203_vm15, %v1274_v58  ;;  %v10513_v56 = vsel %vm7254_vm9, 4294967295, %v10512_v56 }
 0x1af   :  { %v1390_v3 = vsel %vm7123_vm5, 0, %v1389_v31  ;;  %1353 = vst.msk [vmem:[#allocation2 + $0x4c] sm:$0xf] %vm10203_vm15, %v1276_v18 }
 0x1b0   :  { %1391 = vst [vmem:[#allocation2 + $0x3c] sm:$0x8] %v1390_v3  ;;  %1638 = vrot.lane.b32.xlu1 %v5961_v36, %s5550_s23  ;;  %v10509_v36 = vmov 0 }
 0x1b1   :  { %v10510_v36 = vsel %vm7242_vm13, 4294967295, %v10509_v36  ;;  %10514 = vst [vmem:[#allocation24_spill] sm:$0xff] %v10513_v56 }
 0x1b2   :  { %1640 = vrot.lane.b32.xlu2 %v5981_v62, %s5550_s23  ;;  %10511 = vst [vmem:[#allocation11_spill] sm:$0xff] %v10510_v36 }
 0x1b3   :  { %1487 = vrot.lane.b32.xlu0 %v7226_v23, %s5549_s21 }
 0x1b4   :  { %v1410_v6 = vld [vmem:[#allocation2 + $0x74] sm:$0x8]  ;;  %v1426_v12 = vpop.permute.xlu2 %1425  ;;  %v1282_v42 = vpop.permute.xlu1 %1281 }
 0x1b5   :  { %v1411_v17 = vsel %vm7123_vm5, 0, %v1410_v6  ;;  %v1280_v0 = vpop.permute.xlu0 %1279  ;;  %1522 = vst.msk [vmem:[#allocation2] sm:$0xf] %vm10204_vm11, %v1426_v12 }
 0x1b6   :  { %1412 = vst [vmem:[#allocation2 + $0x74] sm:$0x8] %v1411_v17  ;;  %v1395_v15 = vld [vmem:[#allocation2 + $0x4c] sm:$0x8] }
 0x1b7   :  { %v1396_v62 = vsel %vm7123_vm5, 0, %v1395_v15  ;;  %1355 = vst.msk [vmem:[#allocation2 + $0x54] sm:$0xf] %vm10203_vm15, %v1280_v0 }
 0x1b8   :  { %1397 = vst [vmem:[#allocation2 + $0x4c] sm:$0x8] %v1396_v62  ;;  %1644 = vrot.lane.b32.xlu1 %v10452_v26, %s5550_s23 }
 0x1b9   :  { %1356 = vst.msk [vmem:[#allocation2 + $0x58] sm:$0xf] %vm10203_vm15, %v1282_v42 }
 0x1ba   :  { %1646 = vrot.lane.b32.xlu2 %v6074_v9, %s5550_s23  ;;  %v1529_v9 = vld [vmem:[#allocation2 + $0xc] sm:$0xf] }
 0x1bb   :  { %1642 = vrot.lane.b32.xlu0 %v6033_v51, %s5550_s23 }
 0x1bc   :  { %v1590_v18 = vld [vmem:[#allocation2] sm:$0x1]  ;;  %v1432_v58 = vpop.permute.xlu2 %1431  ;;  %v1288_v31 = vpop.permute.xlu1 %1287 }
 0x1bd   :  { %v1591_v3 = vsel %vm7242_vm13, 0, %v1590_v18  ;;  %v1286_v6 = vpop.permute.xlu0 %1285  ;;  %1359 = vst.msk [vmem:[#allocation2 + $0x64] sm:$0xf] %vm10203_vm15, %v1288_v31  ;;  %v1530_v51 = vsel %vm7254_vm9, %v1432_v58, %v1529_v9  ;;  %v1541_v31 = vld [vmem:[#allocation2 + $0x24] sm:$0xf] }
 0x1be   :  { %v1398_v26 = vld [vmem:[#allocation2 + $0x54] sm:$0x8]  ;;  %1592 = vst [vmem:[#allocation2] sm:$0x1] %v1591_v3 }
 0x1bf   :  { %v1399_v12 = vsel %vm7123_vm5, 0, %v1398_v26  ;;  %1358 = vst.msk [vmem:[#allocation2 + $0x60] sm:$0xf] %vm10203_vm15, %v1286_v6 }
 0x1c0   :  { %1400 = vst [vmem:[#allocation2 + $0x54] sm:$0x8] %v1399_v12  ;;  %1650 = vrot.lane.b32.xlu1 %v6154_v59, %s5550_s23  ;;  %v1525_v12 = vld [vmem:[#allocation2 + $0x4] sm:$0xf] }
 0x1c1   :  { %1531 = vst [vmem:[#allocation2 + $0xc] sm:$0xf] %v1530_v51 }
 0x1c2   :  { %1652 = vrot.lane.b32.xlu2 %v6133_v32, %s5550_s23 }
 0x1c3   :  { %1648 = vrot.lane.b32.xlu0 %v6060_v24, %s5550_s23 }
 0x1c4   :  { %v1404_v42 = vld [vmem:[#allocation2 + $0x64] sm:$0x8]  ;;  %v1438_v17 = vpop.permute.xlu2 %1437  ;;  %v1294_v0 = vpop.permute.xlu1 %1293 }
 0x1c5   :  { %v1405_v15 = vsel %vm7123_vm5, 0, %v1404_v42  ;;  %v1292_v62 = vpop.permute.xlu0 %1291  ;;  %1536 = vst.msk [vmem:[#allocation2 + $0x18] sm:$0xf] %vm10204_vm11, %v1438_v17  ;;  %v1553_v42 = vld [vmem:[#allocation2 + $0x3c] sm:$0xf] }
 0x1c6   :  { %1406 = vst [vmem:[#allocation2 + $0x64] sm:$0x8] %v1405_v15 }
 0x1c7   :  { %1361 = vst.msk [vmem:[#allocation2 + $0x6c] sm:$0xf] %vm10203_vm15, %v1292_v62 }
 0x1c8   :  { %1362 = vst.msk [vmem:[#allocation2 + $0x70] sm:$0xf] %vm10203_vm15, %v1294_v0  ;;  %1656 = vrot.lane.b32.xlu1 %v10453_v5, %s5550_s23 }
 0x1ca   :  { %1658 = vrot.lane.b32.xlu2 %v6296_v37, %s5550_s23 }
 0x1cb   :  { %1654 = vrot.lane.b32.xlu0 %v6211_v55, %s5550_s23 }
 0x1cc   :  { %v1599_v24 = vld [vmem:[#allocation2 + $0x18] sm:$0x1]  ;;  %v1444_v32 = vpop.permute.xlu2 %1443  ;;  %v1300_v59 = vpop.permute.xlu1 %1299 }
 0x1cd   :  { %v1600_v18 = vsel %vm7242_vm13, 0, %v1599_v24  ;;  %v1298_v58 = vpop.permute.xlu0 %1297  ;;  %1365 = vst.msk [vmem:[#allocation2 + $0x7c] sm:$0xf] %vm10203_vm15, %v1300_v59  ;;  %v1542_v37 = vsel %vm7254_vm9, %v1444_v32, %v1541_v31  ;;  %v1533_v24 = vld [vmem:[#allocation2 + $0x14] sm:$0xf] }
 0x1ce   :  { %v1407_v3 = vld [vmem:[#allocation2 + $0x6c] sm:$0x8]  ;;  %1601 = vst [vmem:[#allocation2 + $0x18] sm:$0x1] %v1600_v18 }
 0x1cf   :  { %v1408_v5 = vsel %vm7123_vm5, 0, %v1407_v3  ;;  %1364 = vst.msk [vmem:[#allocation2 + $0x78] sm:$0xf] %vm10203_vm15, %v1298_v58  ;;  %v1537_v58 = vld [vmem:[#allocation2 + $0x1c] sm:$0xf]  ;;  %vm7410_vm15 = vmand %vm10208_vm1, %vm10515_vm12  ;;  %vm1911_vm12 = vcmask 191656  }
 0x1d0   :  { %1409 = vst [vmem:[#allocation2 + $0x6c] sm:$0x8] %v1408_v5  ;;  %1662 = vrot.lane.b32.xlu1 %v6344_v46, %s5550_s23 }
 0x1d1   :  { %1543 = vst [vmem:[#allocation2 + $0x24] sm:$0xf] %v1542_v37 }
 0x1d2   :  { %1664 = vrot.lane.b32.xlu2 %v6283_v29, %s5550_s23 }
 0x1d3   :  { %1660 = vrot.lane.b32.xlu0 %v6206_v41, %s5550_s23 }
 0x1d4   :  { %v1413_v55 = vld [vmem:[#allocation2 + $0x7c] sm:$0x8]  ;;  %v1450_v6 = vpop.permute.xlu2 %1449  ;;  %v1430_v9 = vpop.permute.xlu1 %1429 }
 0x1d5   :  { %v1414_v26 = vsel %vm7123_vm5, 0, %v1413_v55  ;;  %v1428_v51 = vpop.permute.xlu0 %1427  ;;  %1548 = vst.msk [vmem:[#allocation2 + $0x30] sm:$0xf] %vm10204_vm11, %v1450_v6 }
 0x1d6   :  { %1415 = vst [vmem:[#allocation2 + $0x7c] sm:$0x8] %v1414_v26  ;;  %v1526_v29 = vsel %vm7254_vm9, %v1428_v51, %v1525_v12  ;;  %v5172_v51 = vld [vmem:[%s10070_s1 + $0x8] sm:$0xf]  ;;  %v5173_v12 = vld [vmem:[%s10070_s1 + $0xc] sm:$0xf] }
 0x1d7   :  { %1527 = vst [vmem:[#allocation2 + $0x4] sm:$0xf] %v1526_v29  ;;  %v1795_v29 = vshrl.u32 %v5172_v51, 16 }
 0x1d8   :  { %1528 = vst.msk [vmem:[#allocation2 + $0x8] sm:$0xf] %vm10204_vm11, %v1430_v9  ;;  %1668 = vrot.lane.b32.xlu1 %v10455_v28, %s5550_s23  ;;  %v1565_v9 = vld [vmem:[#allocation2 + $0x54] sm:$0xf] }
 0x1da   :  { %1670 = vrot.lane.b32.xlu2 %v6535_v8, %s5550_s23 }
 0x1db   :  { %1666 = vrot.lane.b32.xlu0 %v6423_v61, %s5550_s23 }
 0x1dc   :  { %v1608_v41 = vld [vmem:[#allocation2 + $0x30] sm:$0x1]  ;;  %v1456_v46 = vpop.permute.xlu2 %1455  ;;  %v1436_v17 = vpop.permute.xlu1 %1435 }
 0x1dd   :  { %v1609_v0 = vsel %vm7242_vm13, 0, %v1608_v41  ;;  %v1434_v15 = vpop.permute.xlu0 %1433  ;;  %v1554_v62 = vsel %vm7254_vm9, %v1456_v46, %v1553_v42  ;;  %v1534_v28 = vsel %vm7254_vm9, %v1436_v17, %v1533_v24  ;;  %v1803_v41 = vshrl.u32 %v5173_v12, 16 }
 0x1de   :  { %1610 = vst [vmem:[#allocation2 + $0x30] sm:$0x1] %v1609_v0  ;;  %v1549_v0 = vld [vmem:[#allocation2 + $0x34] sm:$0xf]  ;;  %v1806_v24 = vshll.u32 %v5173_v12, 16 }
 0x1df   :  { %v1593_v8 = vld [vmem:[#allocation2 + $0x8] sm:$0x1]  ;;  %1532 = vst.msk [vmem:[#allocation2 + $0x10] sm:$0xf] %vm10204_vm11, %v1434_v15 }
 0x1e0   :  { %v1594_v61 = vsel %vm7242_vm13, 0, %v1593_v8  ;;  %1555 = vst [vmem:[#allocation2 + $0x3c] sm:$0xf] %v1554_v62  ;;  %1674 = vrot.lane.b32.xlu1 %v6554_v35, %s5550_s23  ;;  %v1798_v8 = vshll.u32 %v5172_v51, 16  ;;  %v1569_v51 = vld [vmem:[#allocation2 + $0x5c] sm:$0xf] }
 0x1e1   :  { %1595 = vst [vmem:[#allocation2 + $0x8] sm:$0x1] %v1594_v61 }
 0x1e2   :  { %1535 = vst [vmem:[#allocation2 + $0x14] sm:$0xf] %v1534_v28  ;;  %1676 = vrot.lane.b32.xlu2 %v6444_v38, %s5550_s23 }
 0x1e3   :  { %1672 = vrot.lane.b32.xlu0 %v10454_v27, %s5550_s23 }
 0x1e4   :  { %v1462_v32 = vpop.permute.xlu2 %1461  ;;  %v1442_v59 = vpop.permute.xlu1 %1441 }
 0x1e5   :  { %v1440_v18 = vpop.permute.xlu0 %1439  ;;  %1560 = vst.msk [vmem:[#allocation2 + $0x48] sm:$0xf] %vm10204_vm11, %v1462_v32 }
 0x1e6   :  { %v1596_v31 = vld [vmem:[#allocation2 + $0x10] sm:$0x1]  ;;  %v1538_v3 = vsel %vm7254_vm9, %v1440_v18, %v1537_v58  ;;  %1540 = vst.msk [vmem:[#allocation2 + $0x20] sm:$0xf] %vm10204_vm11, %v1442_v59 }
 0x1e7   :  { %v1597_v38 = vsel %vm7242_vm13, 0, %v1596_v31  ;;  %1539 = vst [vmem:[#allocation2 + $0x1c] sm:$0xf] %v1538_v3 }
 0x1e8   :  { %1598 = vst [vmem:[#allocation2 + $0x10] sm:$0x1] %v1597_v38  ;;  %1680 = vrot.lane.b32.xlu1 %v10456_v13, %s5550_s23  ;;  %v1545_v13 = vld [vmem:[#allocation2 + $0x2c] sm:$0xf] }
 0x1e9   :  { %v1577_v38 = vld [vmem:[#allocation2 + $0x6c] sm:$0xf] }
 0x1ea   :  { %1682 = vrot.lane.b32.xlu2 %v6612_v11, %s5550_s23 }
 0x1eb   :  { %1678 = vrot.lane.b32.xlu0 %v6588_v14, %s5550_s23 }
 0x1ec   :  { %v1617_v35 = vld [vmem:[#allocation2 + $0x48] sm:$0x1]  ;;  %v1468_v27 = vpop.permute.xlu2 %1467  ;;  %v1448_v37 = vpop.permute.xlu1 %1447 }
 0x1ed   :  { %v1618_v5 = vsel %vm7242_vm13, 0, %v1617_v35  ;;  %v1602_v55 = vld [vmem:[#allocation2 + $0x20] sm:$0x1]  ;;  %v1446_v6 = vpop.permute.xlu0 %1445  ;;  %v1566_v11 = vsel %vm7254_vm9, %v1468_v27, %v1565_v9  ;;  %v1546_v14 = vsel %vm7254_vm9, %v1448_v37, %v1545_v13  ;;  %v1557_v35 = vld [vmem:[#allocation2 + $0x44] sm:$0xf] }
 0x1ee   :  { %1619 = vst [vmem:[#allocation2 + $0x48] sm:$0x1] %v1618_v5  ;;  %v1603_v26 = vsel %vm7242_vm13, 0, %v1602_v55  ;;  %v1561_v9 = vld [vmem:[#allocation2 + $0x4c] sm:$0xf] }
 0x1ef   :  { %1604 = vst [vmem:[#allocation2 + $0x20] sm:$0x1] %v1603_v26 }
 0x1f0   :  { %1544 = vst.msk [vmem:[#allocation2 + $0x28] sm:$0xf] %vm10204_vm11, %v1446_v6  ;;  %1686 = vrot.lane.b32.xlu1 %v6653_v60, %s5550_s23  ;;  %v1805_v60 = vrot.slane %v1803_v41, 7 }
 0x1f1   :  { %1567 = vst [vmem:[#allocation2 + $0x54] sm:$0xf] %v1566_v11 }
 0x1f2   :  { %1547 = vst [vmem:[#allocation2 + $0x2c] sm:$0xf] %v1546_v14  ;;  %1688 = vrot.lane.b32.xlu2 %v6563_v50, %s5550_s23  ;;  %v1797_v50 = vrot.slane %v1795_v29, 7  ;;  %v1808_v61 = vor.u32 %v1806_v24, %v1805_v60 }
 0x1f3   :  { %1684 = vrot.lane.b32.xlu0 %v6497_v57, %s5550_s23 }
 0x1f4   :  { %v1474_v46 = vpop.permute.xlu2 %1473  ;;  %v1454_v42 = vpop.permute.xlu1 %1453  ;;  %v1801_v28 = vrot.slane %v1797_v50, 4 }
 0x1f5   :  { %v1452_v17 = vpop.permute.xlu0 %1451  ;;  %1572 = vst.msk [vmem:[#allocation2 + $0x60] sm:$0xf] %vm10204_vm11, %v1474_v46 }
 0x1f6   :  { %v1550_v15 = vsel %vm7254_vm9, %v1452_v17, %v1549_v0  ;;  %1552 = vst.msk [vmem:[#allocation2 + $0x38] sm:$0xf] %vm10204_vm11, %v1454_v42  ;;  %v1809_v37 = vsel %vm5810_vm2, %v1801_v28, %v1808_v61  ;;  %v1739_v17 = vld [vmem:[#allocation2 + $0x10] sm:$0xf] }
 0x1f7   :  { %v1605_v62 = vld [vmem:[#allocation2 + $0x28] sm:$0x1]  ;;  %1551 = vst [vmem:[#allocation2 + $0x34] sm:$0xf] %v1550_v15 }
 0x1f8   :  { %v1606_v57 = vsel %vm7242_vm13, 0, %v1605_v62  ;;  %1692 = vrot.lane.b32.xlu1 %v6435_v16, %s5550_s23 }
 0x1f9   :  { %1607 = vst [vmem:[#allocation2 + $0x28] sm:$0x1] %v1606_v57  ;;  %v1581_v57 = vld [vmem:[#allocation2 + $0x74] sm:$0xf] }
 0x1fa   :  { %1694 = vrot.lane.b32.xlu2 %v6796_v20, %s5550_s23 }
 0x1fb   :  { %1690 = vrot.lane.b32.xlu0 %v6665_v39, %s5550_s23  ;;  %v1800_v39 = vor.u32 %v1798_v8, %v1797_v50  ;;  %v1573_v50 = vld [vmem:[#allocation2 + $0x64] sm:$0xf] }
 0x1fc   :  { %v1626_v32 = vld [vmem:[#allocation2 + $0x60] sm:$0x1]  ;;  %v1480_v59 = vpop.permute.xlu2 %1479  ;;  %v1460_v18 = vpop.permute.xlu1 %1459 }
 0x1fd   :  { %v1627_v58 = vsel %vm7242_vm13, 0, %v1626_v32  ;;  %v1611_v31 = vld [vmem:[#allocation2 + $0x38] sm:$0x1]  ;;  %v1458_v3 = vpop.permute.xlu0 %1457  ;;  %v1578_v16 = vsel %vm7254_vm9, %v1480_v59, %v1577_v38  ;;  %v1558_v27 = vsel %vm7254_vm9, %v1460_v18, %v1557_v35  ;;  %v1730_v38 = vld [vmem:[#allocation2] sm:$0xf] }
 0x1fe   :  { %1628 = vst [vmem:[#allocation2 + $0x60] sm:$0x1] %v1627_v58  ;;  %v1612_v20 = vsel %vm7242_vm13, 0, %v1611_v31  ;;  %v1585_v31 = vld [vmem:[#allocation2 + $0x7c] sm:$0xf] }
 0x1ff   :  { %1613 = vst [vmem:[#allocation2 + $0x38] sm:$0x1] %v1612_v20 }
 0x200   :  { %1556 = vst.msk [vmem:[#allocation2 + $0x40] sm:$0xf] %vm10204_vm11, %v1458_v3  ;;  %1810 = vrot.lane.b32.xlu1 %v1800_v39, %s5550_s23  ;;  %v1751_v59 = vld [vmem:[#allocation2 + $0x28] sm:$0xf]  ;;  %v10521_v39 = vld [vmem:[#allocation44_spill] sm:$0xff] }
 0x201   :  { %1579 = vst [vmem:[#allocation2 + $0x6c] sm:$0xf] %v1578_v16 }
 0x202   :  { %1559 = vst [vmem:[#allocation2 + $0x44] sm:$0xf] %v1558_v27  ;;  %1812 = vrot.lane.b32.xlu2 %v1809_v37, %s5550_s23  ;;  %v10522_v27 = vld [vmem:[#allocation45_spill] sm:$0xff]  ;;  %v10523_v37 = vld [vmem:[#allocation38_spill] sm:$0xff] }
 0x203   :  { %1696 = vrot.lane.b32.xlu0 %v6802_v52, %s5550_s23 }
 0x204   :  { %v1486_v5 = vpop.permute.xlu2 %1485  ;;  %v1466_v55 = vpop.permute.xlu1 %1465 }
 0x205   :  { %v1464_v6 = vpop.permute.xlu0 %1463  ;;  %1584 = vst.msk [vmem:[#allocation2 + $0x78] sm:$0xf] %vm10204_vm11, %v1486_v5 }
 0x206   :  { %v1562_v26 = vsel %vm7254_vm9, %v1464_v6, %v1561_v9  ;;  %1564 = vst.msk [vmem:[#allocation2 + $0x50] sm:$0xf] %vm10204_vm11, %v1466_v55  ;;  %v1735_v9 = vld [vmem:[#allocation2 + $0x8] sm:$0xf] }
 0x207   :  { %v1614_v11 = vld [vmem:[#allocation2 + $0x40] sm:$0x1]  ;;  %1563 = vst [vmem:[#allocation2 + $0x4c] sm:$0xf] %v1562_v26 }
 0x208   :  { %v1615_v13 = vsel %vm7242_vm13, 0, %v1614_v11  ;;  %1823 = vrot.lane.b32.xlu1 %v6864_v30, %s5551_s29  ;;  %v10524_v11 = vld [vmem:[#allocation47_spill] sm:$0xff] }
 0x209   :  { %1616 = vst [vmem:[#allocation2 + $0x40] sm:$0x1] %v1615_v13  ;;  %v10525_v13 = vld [vmem:[#allocation48_spill] sm:$0xff] }
 0x20a   :  { %1825 = vrot.lane.b32.xlu2 %v6851_v34, %s5551_s29 }
 0x20b   :  { %1821 = vrot.lane.b32.xlu0 %v6820_v53, %s5551_s29  ;;  %v10516_v53 = vmov 0 }
 0x20c   :  { %v1635_v52 = vld [vmem:[#allocation2 + $0x78] sm:$0x1]  ;;  %v1641_v14 = vpop.permute.xlu2 %1640  ;;  %v1472_v12 = vpop.permute.xlu1 %1471  ;;  %v10517_v53 = vsel %vm7410_vm15, 4294967295, %v10516_v53 }
 0x20d   :  { %v1636_v29 = vsel %vm7242_vm13, 0, %v1635_v52  ;;  %v1620_v41 = vld [vmem:[#allocation2 + $0x50] sm:$0x1]  ;;  %v1470_v46 = vpop.permute.xlu0 %1469  ;;  %1734 = vst.msk [vmem:[#allocation2 + $0x4] sm:$0xf] %vm10208_vm1, %v1641_v14  ;;  %v1570_v30 = vsel %vm7254_vm9, %v1472_v12, %v1569_v51  ;;  %v10526_v52 = vld [vmem:[#allocation31_spill] sm:$0xff] }
 0x20e   :  { %1637 = vst [vmem:[#allocation2 + $0x78] sm:$0x1] %v1636_v29  ;;  %v1621_v34 = vsel %vm7242_vm13, 0, %v1620_v41  ;;  %v1743_v12 = vld [vmem:[#allocation2 + $0x18] sm:$0xf] }
 0x20f   :  { %1622 = vst [vmem:[#allocation2 + $0x50] sm:$0x1] %v1621_v34 }
 0x210   :  { %1568 = vst.msk [vmem:[#allocation2 + $0x58] sm:$0xf] %vm10204_vm11, %v1470_v46  ;;  %1829 = vrot.lane.b32.xlu1 %v6892_v10, %s5551_s29  ;;  %v1763_v51 = vld [vmem:[#allocation2 + $0x40] sm:$0xf] }
 0x211   :  { %1571 = vst [vmem:[#allocation2 + $0x5c] sm:$0xf] %v1570_v30  ;;  %v10527_v30 = vld [vmem:[#allocation50_spill] sm:$0xff] }
 0x212   :  { %1831 = vrot.lane.b32.xlu2 %v6885_v54, %s5551_s29  ;;  %10518 = vst [vmem:[#allocation25_spill] sm:$0xff] %v10517_v53 }
 0x213   :  { %1827 = vrot.lane.b32.xlu0 %v6844_v22, %s5551_s29 }
 0x214   :  { %v1647_v42 = vpop.permute.xlu2 %1646  ;;  %v1478_v0 = vpop.permute.xlu1 %1477 }
 0x215   :  { %v1476_v15 = vpop.permute.xlu0 %1475  ;;  %v1740_v54 = vsel %vm7410_vm15, %v1647_v42, %v1739_v17  ;;  %1576 = vst.msk [vmem:[#allocation2 + $0x68] sm:$0xf] %vm10204_vm11, %v1478_v0  ;;  %v10528_v42 = vld [vmem:[#allocation51_spill] sm:$0xff]  ;;  %v10529_v17 = vld [vmem:[#allocation46_spill] sm:$0xff] }
 0x216   :  { %v1574_v10 = vsel %vm7254_vm9, %v1476_v15, %v1573_v50  ;;  %1741 = vst [vmem:[#allocation2 + $0x10] sm:$0xf] %v1740_v54  ;;  %v1747_v54 = vld [vmem:[#allocation2 + $0x20] sm:$0xf] }
 0x217   :  { %v1623_v62 = vld [vmem:[#allocation2 + $0x58] sm:$0x1]  ;;  %1575 = vst [vmem:[#allocation2 + $0x64] sm:$0xf] %v1574_v10 }
 0x218   :  { %v1624_v60 = vsel %vm7242_vm13, 0, %v1623_v62  ;;  %1835 = vrot.lane.b32.xlu1 %v6919_v1, %s5551_s29  ;;  %v10530_v62 = vld [vmem:[#allocation53_spill] sm:$0xff] }
 0x219   :  { %1625 = vst [vmem:[#allocation2 + $0x58] sm:$0x1] %v1624_v60  ;;  %v10531_v60 = vld [vmem:[#allocation54_spill] sm:$0xff] }
 0x21a   :  { %1837 = vrot.lane.b32.xlu2 %v6912_v40, %s5551_s29  ;;  %v10520_v40 = vld [vmem:[#allocation14_spill] sm:$0xff] }
 0x21b   :  { %1833 = vrot.lane.b32.xlu0 %v6878_v44, %s5551_s29  ;;  %v10519_v44 = vld [vmem:[#allocation23_spill] sm:$0xff] }
 0x21c   :  { %v1629_v22 = vld [vmem:[#allocation2 + $0x68] sm:$0x1]  ;;  %v1653_v24 = vpop.permute.xlu2 %1652  ;;  %v1484_v8 = vpop.permute.xlu1 %1483 }
 0x21d   :  { %v1630_v28 = vsel %vm7242_vm13, 0, %v1629_v22  ;;  %v1482_v61 = vpop.permute.xlu0 %1481  ;;  %1746 = vst.msk [vmem:[#allocation2 + $0x1c] sm:$0xf] %vm10208_vm1, %v1653_v24  ;;  %v1582_v32 = vsel %vm7254_vm9, %v1484_v8, %v1581_v57  ;;  %v10532_v22 = vld [vmem:[#allocation49_spill] sm:$0xff]  ;;  %v1755_v8 = vld [vmem:[#allocation2 + $0x30] sm:$0xf] }
 0x21e   :  { %1631 = vst [vmem:[#allocation2 + $0x68] sm:$0x1] %v1630_v28 }
 0x21f   :  { %1580 = vst.msk [vmem:[#allocation2 + $0x70] sm:$0xf] %vm10204_vm11, %v1482_v61  ;;  %vm1954_vm11 = vcmask 216259  }
 0x220   :  { %1583 = vst [vmem:[#allocation2 + $0x74] sm:$0xf] %v1582_v32  ;;  %1841 = vrot.lane.b32.xlu1 %v10519_v44, %s5551_s29  ;;  %v1775_v57 = vld [vmem:[#allocation2 + $0x58] sm:$0xf] }
 0x222   :  { %1843 = vrot.lane.b32.xlu2 %v6943_v4, %s5551_s29 }
 0x223   :  { %1839 = vrot.lane.b32.xlu0 %v10520_v40, %s5551_s29  ;;  %v10533_v40 = vld [vmem:[#allocation56_spill] sm:$0xff] }
 0x224   :  { %v1659_v1 = vpop.permute.xlu2 %1658  ;;  %v1639_v18 = vpop.permute.xlu1 %1638 }
 0x225   :  { %v1488_v58 = vpop.permute.xlu0 %1487  ;;  %v1752_v3 = vsel %vm7410_vm15, %v1659_v1, %v1751_v59  ;;  %v1731_v4 = vsel %vm7410_vm15, %v1639_v18, %v1730_v38  ;;  %v10534_v1 = vld [vmem:[#allocation57_spill] sm:$0xff]  ;;  %v10535_v59 = vld [vmem:[#allocation52_spill] sm:$0xff] }
 0x226   :  { %v1632_v20 = vld [vmem:[#allocation2 + $0x70] sm:$0x1]  ;;  %v1586_v16 = vsel %vm7254_vm9, %v1488_v58, %v1585_v31  ;;  %1753 = vst [vmem:[#allocation2 + $0x28] sm:$0xf] %v1752_v3  ;;  %v1759_v3 = vld [vmem:[#allocation2 + $0x38] sm:$0xf]  ;;  %vm7557_vm9 = vmand %vm1954_vm11, %vm10545_vm3 }
 0x227   :  { %v1633_v35 = vsel %vm7242_vm13, 0, %v1632_v20  ;;  %1587 = vst [vmem:[#allocation2 + $0x7c] sm:$0xf] %v1586_v16  ;;  %v5474_v20 = vld [vmem:[%s10069_s0 + $0x7c] sm:$0xf]  ;;  %vm10267_vm3 = vcmask 216256  }
 0x228   :  { %1634 = vst [vmem:[#allocation2 + $0x70] sm:$0x1] %v1633_v35  ;;  %1847 = vrot.lane.b32.xlu1 %v10522_v27, %s5551_s29  ;;  %v5475_v16 = vld [vmem:[%s10069_s0 + $0x78] sm:$0xf]  ;;  %v1767_v27 = vld [vmem:[#allocation2 + $0x48] sm:$0xf] }
 0x229   :  { %1732 = vst [vmem:[#allocation2] sm:$0xf] %v1731_v4  ;;  %v10536_v4 = vld [vmem:[#allocation55_spill] sm:$0xff]  ;;  %vm10563_vm11 = vsmask.f32 3328  ;;  %vm4649_vm13 = vcmask 1045504  }
 0x22a   :  { %1849 = vrot.lane.b32.xlu2 %v10521_v39, %s5551_s29 }
 0x22b   :  { %1845 = vrot.lane.b32.xlu0 %v10523_v37, %s5551_s29 }
 0x22c   :  { %v1665_v5 = vpop.permute.xlu2 %1664  ;;  %v1645_v55 = vpop.permute.xlu1 %1644 }
 0x22d   :  { %v1643_v6 = vpop.permute.xlu0 %1642  ;;  %1758 = vst.msk [vmem:[#allocation2 + $0x34] sm:$0xf] %vm10208_vm1, %v1665_v5 }
 0x22e   :  { %v1736_v26 = vsel %vm7410_vm15, %v1643_v6, %v1735_v9  ;;  %1738 = vst.msk [vmem:[#allocation2 + $0xc] sm:$0xf] %vm10208_vm1, %v1645_v55  ;;  %v5175_v9 = vld [vmem:[%s10070_s1 + $0xc] sm:$0xf] }
 0x22f   :  { %1737 = vst [vmem:[#allocation2 + $0x8] sm:$0xf] %v1736_v26  ;;  %v1787_v39 = vld [vmem:[#allocation2 + $0x70] sm:$0xf]  ;;  %v5174_v26 = vld [vmem:[%s10070_s1 + $0x8] sm:$0xf] }
 0x230   :  { %1853 = vrot.lane.b32.xlu1 %v10525_v13, %s5551_s29 }
 0x232   :  { %1855 = vrot.lane.b32.xlu2 %v10524_v11, %s5551_s29  ;;  %v10537_v11 = vld [vmem:[#allocation13_spill] sm:$0xff] }
 0x233   :  { %1851 = vrot.lane.b32.xlu0 %v10526_v52, %s5551_s29 }
 0x234   :  { %v1671_v14 = vpop.permute.xlu2 %1670  ;;  %v1651_v29 = vpop.permute.xlu1 %1650 }
 0x235   :  { %v1649_v41 = vpop.permute.xlu0 %1648  ;;  %v1764_v46 = vsel %vm7410_vm15, %v1671_v14, %v1763_v51  ;;  %v1744_v34 = vsel %vm7410_vm15, %v1651_v29, %v1743_v12  ;;  %v1771_v51 = vld [vmem:[#allocation2 + $0x50] sm:$0xf] }
 0x236   :  { %1742 = vst.msk [vmem:[#allocation2 + $0x14] sm:$0xf] %vm10208_vm1, %v1649_v41  ;;  %v10538_v29 = vld [vmem:[#allocation16_spill] sm:$0xff]  ;;  %v10539_v41 = vld [vmem:[#allocation17_spill] sm:$0xff] }
 0x237   :  { %1765 = vst [vmem:[#allocation2 + $0x40] sm:$0xf] %v1764_v46  ;;  %v10540_v46 = vld [vmem:[#allocation12_spill] sm:$0xff] }
 0x238   :  { %1745 = vst [vmem:[#allocation2 + $0x18] sm:$0xf] %v1744_v34  ;;  %1859 = vrot.lane.b32.xlu1 %v10528_v42, %s5551_s29 }
 0x23a   :  { %1861 = vrot.lane.b32.xlu2 %v10527_v30, %s5551_s29  ;;  %v1779_v30 = vld [vmem:[#allocation2 + $0x60] sm:$0xf] }
 0x23b   :  { %1857 = vrot.lane.b32.xlu0 %v10529_v17, %s5551_s29 }
 0x23c   :  { %v1677_v0 = vpop.permute.xlu2 %1676  ;;  %v1657_v15 = vpop.permute.xlu1 %1656 }
 0x23d   :  { %v1655_v50 = vpop.permute.xlu0 %1654  ;;  %1770 = vst.msk [vmem:[#allocation2 + $0x4c] sm:$0xf] %vm10208_vm1, %v1677_v0 }
 0x23e   :  { %v1748_v10 = vsel %vm7410_vm15, %v1655_v50, %v1747_v54  ;;  %1750 = vst.msk [vmem:[#allocation2 + $0x24] sm:$0xf] %vm10208_vm1, %v1657_v15  ;;  %v10541_v15 = vld [vmem:[#allocation21_spill] sm:$0xff]  ;;  %v10542_v50 = vld [vmem:[#allocation19_spill] sm:$0xff]  ;;  %v10543_v54 = vld [vmem:[#allocation18_spill] sm:$0xff] }
 0x23f   :  { %1749 = vst [vmem:[#allocation2 + $0x20] sm:$0xf] %v1748_v10 }
 0x240   :  { %1865 = vrot.lane.b32.xlu1 %v10531_v60, %s5551_s29 }
 0x242   :  { %1867 = vrot.lane.b32.xlu2 %v10530_v62, %s5551_s29 }
 0x243   :  { %1863 = vrot.lane.b32.xlu0 %v10532_v22, %s5551_s29  ;;  %v1783_v22 = vld [vmem:[#allocation2 + $0x68] sm:$0xf] }
 0x244   :  { %v1683_v24 = vpop.permute.xlu2 %1682  ;;  %v1663_v28 = vpop.permute.xlu1 %1662 }
 0x245   :  { %v1661_v61 = vpop.permute.xlu0 %1660  ;;  %v1776_v32 = vsel %vm7410_vm15, %v1683_v24, %v1775_v57  ;;  %v1756_v44 = vsel %vm7410_vm15, %v1663_v28, %v1755_v8  ;;  %v10544_v57 = vld [vmem:[#allocation20_spill] sm:$0xff]  ;;  %v10546_v8 = vmov 0 }
 0x246   :  { %1754 = vst.msk [vmem:[#allocation2 + $0x2c] sm:$0xf] %vm10208_vm1, %v1661_v61  ;;  %v10547_v8 = vsel %vm7557_vm9, 4294967295, %v10546_v8 }
 0x247   :  { %1777 = vst [vmem:[#allocation2 + $0x58] sm:$0xf] %v1776_v32  ;;  %v1817_v32 = vld [vmem:[#allocation2 + $0x78] sm:$0xf] }
 0x248   :  { %1757 = vst [vmem:[#allocation2 + $0x30] sm:$0xf] %v1756_v44  ;;  %1871 = vrot.lane.b32.xlu1 %v10534_v1, %s5551_s29 }
 0x249   :  { %10548 = vst [vmem:[#allocation37_spill] sm:$0xff] %v10547_v8 }
 0x24a   :  { %1873 = vrot.lane.b32.xlu2 %v10533_v40, %s5551_s29 }
 0x24b   :  { %1869 = vrot.lane.b32.xlu0 %v10535_v59, %s5551_s29  ;;  %v10550_v59 = vld [vmem:[#allocation27_spill] sm:$0xff] }
 0x24c   :  { %v1689_v18 = vpop.permute.xlu2 %1688  ;;  %v1669_v58 = vpop.permute.xlu1 %1668 }
 0x24d   :  { %v1667_v31 = vpop.permute.xlu0 %1666  ;;  %1782 = vst.msk [vmem:[#allocation2 + $0x64] sm:$0xf] %vm10208_vm1, %v1689_v18  ;;  %v10551_v18 = vld [vmem:[#allocation26_spill] sm:$0xff] }
 0x24e   :  { %v1760_v38 = vsel %vm7410_vm15, %v1667_v31, %v1759_v3  ;;  %1762 = vst.msk [vmem:[#allocation2 + $0x3c] sm:$0xf] %vm10208_vm1, %v1669_v58 }
 0x24f   :  { %1761 = vst [vmem:[#allocation2 + $0x38] sm:$0xf] %v1760_v38  ;;  %v10552_v38 = vld [vmem:[#allocation29_spill] sm:$0xff] }
 0x250   :  { %1877 = vrot.lane.b32.xlu1 %v5475_v16, %s5551_s29  ;;  %v10554_v16 = vld [vmem:[#allocation28_spill] sm:$0xff] }
 0x252   :  { %1879 = vrot.lane.b32.xlu2 %v5474_v20, %s5551_s29  ;;  %v10553_v20 = vld [vmem:[#allocation33_spill] sm:$0xff] }
 0x253   :  { %1875 = vrot.lane.b32.xlu0 %v10536_v4, %s5551_s29 }
 0x254   :  { %v1695_v35 = vpop.permute.xlu2 %1694  ;;  %v1675_v37 = vpop.permute.xlu1 %1674 }
 0x255   :  { %v1673_v5 = vpop.permute.xlu0 %1672  ;;  %v1788_v55 = vsel %vm7410_vm15, %v1695_v35, %v1787_v39  ;;  %v1768_v6 = vsel %vm7410_vm15, %v1675_v37, %v1767_v27 }
 0x256   :  { %1766 = vst.msk [vmem:[#allocation2 + $0x44] sm:$0xf] %vm10208_vm1, %v1673_v5 }
 0x257   :  { %1789 = vst [vmem:[#allocation2 + $0x70] sm:$0xf] %v1788_v55 }
 0x258   :  { %1769 = vst [vmem:[#allocation2 + $0x48] sm:$0xf] %v1768_v6  ;;  %1948 = vrot.lane.b32.xlu1 %v5175_v9, %s5551_s29  ;;  %v10555_v6 = vld [vmem:[#allocation34_spill] sm:$0xff]  ;;  %v10556_v9 = vld [vmem:[#allocation32_spill] sm:$0xff] }
 0x25a   :  { %2004 = vrot.lane.b32.xlu2 %v10537_v11, %s5552_s14 }
 0x25b   :  { %1946 = vrot.lane.b32.xlu0 %v5174_v26, %s5551_s29 }
 0x25c   :  { %v1813_v13 = vpop.permute.xlu2 %1812  ;;  %v1681_v52 = vpop.permute.xlu1 %1680 }
 0x25d   :  { %v1679_v14 = vpop.permute.xlu0 %1678  ;;  %1820 = vst.msk [vmem:[#allocation2 + $0x7c] sm:$0xf] %vm10208_vm1, %v1813_v13 }
 0x25e   :  { %v1772_v12 = vsel %vm7410_vm15, %v1679_v14, %v1771_v51  ;;  %1774 = vst.msk [vmem:[#allocation2 + $0x54] sm:$0xf] %vm10208_vm1, %v1681_v52  ;;  %v10558_v51 = vld [vmem:[#allocation35_spill] sm:$0xff] }
 0x25f   :  { %1773 = vst [vmem:[#allocation2 + $0x50] sm:$0xf] %v1772_v12 }
 0x260   :  { %2008 = vrot.lane.b32.xlu1 %v10539_v41, %s5552_s14 }
 0x262   :  { %2010 = vrot.lane.b32.xlu2 %v10538_v29, %s5552_s14 }
 0x263   :  { %2006 = vrot.lane.b32.xlu0 %v10540_v46, %s5552_s14  ;;  %v5176_v46 = vld [vmem:[%s10070_s1 + $0x8] sm:$0xf] }
 0x264   :  { %v1826_v34 = vpop.permute.xlu2 %1825  ;;  %v1687_v42 = vpop.permute.xlu1 %1686 }
 0x265   :  { %v1685_v17 = vpop.permute.xlu0 %1684  ;;  %1914 = vst.msk [vmem:[#allocation2 + $0x8] sm:$0xf] %vm1911_vm12, %v1826_v34  ;;  %v1780_v0 = vsel %vm7410_vm15, %v1687_v42, %v1779_v30 }
 0x266   :  { %1778 = vst.msk [vmem:[#allocation2 + $0x5c] sm:$0xf] %vm10208_vm1, %v1685_v17  ;;  %v2160_v17 = vshrl.u32 %v5176_v46, 16 }
 0x267   :  { %1781 = vst [vmem:[#allocation2 + $0x60] sm:$0xf] %v1780_v0  ;;  %v2163_v0 = vshll.u32 %v5176_v46, 16 }
 0x268   :  { %2014 = vrot.lane.b32.xlu1 %v10542_v50, %s5552_s14  ;;  %v7619_v50 = vld [vmem:[%s10069_s0 + $0x80] sm:$0xf] }
 0x26a   :  { %2016 = vrot.lane.b32.xlu2 %v10541_v15, %s5552_s14  ;;  %v2225_v15 = vld [vmem:[#allocation2 + $0x88] sm:$0x1] }
 0x26b   :  { %2012 = vrot.lane.b32.xlu0 %v10543_v54, %s5552_s14 }
 0x26c   :  { %v1832_v10 = vpop.permute.xlu2 %1831  ;;  %v1693_v62 = vpop.permute.xlu1 %1692 }
 0x26d   :  { %v1691_v60 = vpop.permute.xlu0 %1690  ;;  %1917 = vst.msk [vmem:[#allocation2 + $0x14] sm:$0xf] %vm1911_vm12, %v1832_v10  ;;  %v2226_v10 = vsel %vm5866_vm8, 0, %v2225_v15  ;;  %v5553_v15 = vmov 65535  }
 0x26e   :  { %v1784_v24 = vsel %vm7410_vm15, %v1691_v60, %v1783_v22  ;;  %1786 = vst.msk [vmem:[#allocation2 + $0x6c] sm:$0xf] %vm10208_vm1, %v1693_v62  ;;  %v2271_v62 = vshrl.u32 %v7619_v50, 16  ;;  %v10560_v60 = vld [vmem:[#allocation39_spill] sm:$0xff]  ;;  %v2162_v22 = vrot.slane %v2160_v17, 4  ;;  %v10564_v17 = vmov 0 }
 0x26f   :  { %1785 = vst [vmem:[#allocation2 + $0x68] sm:$0xf] %v1784_v24  ;;  %v2165_v24 = vrot.slane %v2163_v0, 5 }
 0x270   :  { %2020 = vrot.lane.b32.xlu1 %v10493_v21, %s5552_s14  ;;  %2227 = vst [vmem:[#allocation2 + $0x88] sm:$0x1] %v2226_v10 }
 0x272   :  { %2022 = vrot.lane.b32.xlu2 %v10492_v7, %s5552_s14  ;;  %v10549_v7 = vld [vmem:[#allocation30_spill] sm:$0xff] }
 0x273   :  { %2018 = vrot.lane.b32.xlu0 %v10544_v57, %s5552_s14 }
 0x274   :  { %v1962_v28 = vld [vmem:[#allocation2 + $0x14] sm:$0x8]  ;;  %v1838_v61 = vpop.permute.xlu2 %1837  ;;  %v1811_v44 = vpop.permute.xlu1 %1810 }
 0x275   :  { %v1963_v40 = vsel %vm7557_vm9, 0, %v1962_v28  ;;  %v1697_v1 = vpop.permute.xlu0 %1696  ;;  %1920 = vst.msk [vmem:[#allocation2 + $0x20] sm:$0xf] %vm1911_vm12, %v1838_v61  ;;  %v1818_v21 = vsel %vm7410_vm15, %v1811_v44, %v1817_v32  ;;  %v5177_v61 = vld [vmem:[%s10070_s1 + $0xc] sm:$0xf]  ;;  %vm4648_vm15 = vcmask 1044480  }
 0x276   :  { %1964 = vst [vmem:[#allocation2 + $0x14] sm:$0x8] %v1963_v40  ;;  %v4650_v10 = vsel %vm4648_vm15, 4294967295, %v5553_v15  ;;  %vm10567_vm15 = vcmask 19456  }
 0x277   :  { %1790 = vst.msk [vmem:[#allocation2 + $0x74] sm:$0xf] %vm10208_vm1, %v1697_v1  ;;  %vm7720_vm1 = vmand %vm10267_vm3, %vm10563_vm11 }
 0x278   :  { %1819 = vst [vmem:[#allocation2 + $0x78] sm:$0xf] %v1818_v21  ;;  %2026 = vrot.lane.b32.xlu1 %v10550_v59, %s5552_s14  ;;  %v2166_v21 = vor.u32 %v2165_v24, %v2162_v22  ;;  %v2541_v59 = vld [vmem:[#allocation2 + $0x88] sm:$0xf]  ;;  %v10565_v17 = vsel %vm7720_vm1, 4294967295, %v10564_v17  ;;  %vm10571_vm11 = vmmov %vm10567_vm15 }
 0x279   :  { %10566 = vst [vmem:[#allocation36_spill] sm:$0xff] %v10565_v17 }
 0x27a   :  { %2028 = vrot.lane.b32.xlu2 %v10549_v7, %s5552_s14  ;;  %v2169_v7 = vshll.u32 %v5177_v61, 16 }
 0x27b   :  { %2024 = vrot.lane.b32.xlu0 %v10551_v18, %s5552_s14 }
 0x27c   :  { %v1844_v58 = vpop.permute.xlu2 %1843  ;;  %v1824_v31 = vpop.permute.xlu1 %1823 }
 0x27d   :  { %v1822_v3 = vpop.permute.xlu0 %1821  ;;  %1923 = vst.msk [vmem:[#allocation2 + $0x2c] sm:$0xf] %vm1911_vm12, %v1844_v58  ;;  %v2106_v15 = vld [vmem:[#allocation2 + $0x14] sm:$0xf] }
 0x27e   :  { %1912 = vst.msk [vmem:[#allocation2] sm:$0xf] %vm1911_vm12, %v1822_v3  ;;  %v2167_v3 = vrot.slane %v2166_v21, 4 }
 0x27f   :  { %1913 = vst.msk [vmem:[#allocation2 + $0x4] sm:$0xf] %vm1911_vm12, %v1824_v31  ;;  %v10562_v31 = vld [vmem:[#allocation41_spill] sm:$0xff] }
 0x280   :  { %2032 = vrot.lane.b32.xlu1 %v10553_v20, %s5552_s14  ;;  %v2173_v20 = vshrl.u32 %v5177_v61, 16 }
 0x282   :  { %2034 = vrot.lane.b32.xlu2 %v10552_v38, %s5552_s14  ;;  %v2171_v38 = vrot.slane %v2169_v7, 5  ;;  %v7740_v7 = vld [vmem:[%s10069_s0 + $0x98] sm:$0xf] }
 0x283   :  { %2030 = vrot.lane.b32.xlu0 %v10554_v16, %s5552_s14 }
 0x284   :  { %v1971_v4 = vld [vmem:[#allocation2 + $0x2c] sm:$0x8]  ;;  %v1850_v35 = vpop.permute.xlu2 %1849  ;;  %v1830_v39 = vpop.permute.xlu1 %1829 }
 0x285   :  { %v1972_v27 = vsel %vm7557_vm9, 0, %v1971_v4  ;;  %v1828_v37 = vpop.permute.xlu0 %1827  ;;  %1926 = vst.msk [vmem:[#allocation2 + $0x38] sm:$0xf] %vm1911_vm12, %v1850_v35 }
 0x286   :  { %1973 = vst [vmem:[#allocation2 + $0x2c] sm:$0x8] %v1972_v27  ;;  %v1956_v5 = vld [vmem:[#allocation2 + $0x4] sm:$0x8] }
 0x287   :  { %v1957_v55 = vsel %vm7557_vm9, 0, %v1956_v5  ;;  %1915 = vst.msk [vmem:[#allocation2 + $0xc] sm:$0xf] %vm1911_vm12, %v1828_v37  ;;  %v2172_v37 = vsel %vm5845_vm6, %v2167_v3, %v2171_v38  ;;  %v2175_v5 = vrot.slane %v2173_v20, 4 }
 0x288   :  { %1958 = vst [vmem:[#allocation2 + $0x4] sm:$0x8] %v1957_v55  ;;  %2038 = vrot.lane.b32.xlu1 %v10555_v6, %s5552_s14 }
 0x289   :  { %1916 = vst.msk [vmem:[#allocation2 + $0x10] sm:$0xf] %vm1911_vm12, %v1830_v39  ;;  %v2176_v55 = vor.u32 %v2175_v5, %v2171_v38 }
 0x28a   :  { %2040 = vrot.lane.b32.xlu2 %v10501_v25, %s5552_s14  ;;  %v10557_v25 = vld [vmem:[#allocation40_spill] sm:$0xff] }
 0x28b   :  { %2036 = vrot.lane.b32.xlu0 %v10556_v9, %s5552_s14 }
 0x28c   :  { %v1856_v26 = vpop.permute.xlu2 %1855  ;;  %v1836_v11 = vpop.permute.xlu1 %1835 }
 0x28d   :  { %v1834_v13 = vpop.permute.xlu0 %1833  ;;  %1929 = vst.msk [vmem:[#allocation2 + $0x44] sm:$0xf] %vm1911_vm12, %v1856_v26 }
 0x28e   :  { %v1959_v52 = vld [vmem:[#allocation2 + $0xc] sm:$0x8]  ;;  %1918 = vst.msk [vmem:[#allocation2 + $0x18] sm:$0xf] %vm1911_vm12, %v1834_v13 }
 0x28f   :  { %v1960_v14 = vsel %vm7557_vm9, 0, %v1959_v52  ;;  %1919 = vst.msk [vmem:[#allocation2 + $0x1c] sm:$0xf] %vm1911_vm12, %v1836_v11  ;;  %v2177_v52 = vrot.slane %v2176_v55, 4 }
 0x290   :  { %1961 = vst [vmem:[#allocation2 + $0xc] sm:$0x8] %v1960_v14  ;;  %2044 = vrot.lane.b32.xlu1 %v10557_v25, %s5552_s14 }
 0x292   :  { %2046 = vrot.lane.b32.xlu2 %v10503_v45, %s5552_s14 }
 0x293   :  { %2042 = vrot.lane.b32.xlu0 %v10558_v51, %s5552_s14 }
 0x294   :  { %v1980_v12 = vld [vmem:[#allocation2 + $0x44] sm:$0x8]  ;;  %v1862_v29 = vpop.permute.xlu2 %1861  ;;  %v1842_v41 = vpop.permute.xlu1 %1841 }
 0x295   :  { %v1981_v34 = vsel %vm7557_vm9, 0, %v1980_v12  ;;  %v1840_v30 = vpop.permute.xlu0 %1839  ;;  %1932 = vst.msk [vmem:[#allocation2 + $0x50] sm:$0xf] %vm1911_vm12, %v1862_v29 }
 0x296   :  { %1982 = vst [vmem:[#allocation2 + $0x44] sm:$0x8] %v1981_v34  ;;  %v1965_v45 = vld [vmem:[#allocation2 + $0x1c] sm:$0x8]  ;;  %v7700_v34 = vld [vmem:[%s10069_s0 + $0x8c] sm:$0xf] }
 0x297   :  { %v1966_v42 = vsel %vm7557_vm9, 0, %v1965_v45  ;;  %1921 = vst.msk [vmem:[#allocation2 + $0x24] sm:$0xf] %vm1911_vm12, %v1840_v30  ;;  %v7705_v30 = vld [vmem:[%s10069_s0 + $0x88] sm:$0xf] }
 0x298   :  { %1967 = vst [vmem:[#allocation2 + $0x1c] sm:$0x8] %v1966_v42  ;;  %2050 = vrot.lane.b32.xlu1 %v6506_v33, %s5552_s14  ;;  %v2274_v33 = vshll.u32 %v7619_v50, 16  ;;  %v5356_v45 = vld [vmem:[%s10071_s2 + $0x8] sm:$0xf] }
 0x299   :  { %1922 = vst.msk [vmem:[#allocation2 + $0x28] sm:$0xf] %vm1911_vm12, %v1842_v41  ;;  %v7692_v41 = vld [vmem:[%s10069_s0 + $0x90] sm:$0xf]  ;;  %v5423_v42 = vld [vmem:[%s10071_s2 + $0x8] sm:$0x30] }
 0x29a   :  { %2052 = vrot.lane.b32.xlu2 %v6504_v43, %s5552_s14  ;;  %v7635_v43 = vrot.slane %v2271_v62, 7  ;;  %v5357_v0 = vor.u32 %v5423_v42, %v5356_v45  ;;  %v2102_v22 = vld [vmem:[#allocation2 + $0xc] sm:$0xf]  ;;  %v7828_v45 = vld [vmem:[%s10069_s0 + $0xb8] sm:$0xf] }
 0x29b   :  { %2048 = vrot.lane.b32.xlu0 %v10560_v60, %s5552_s14 }
 0x29c   :  { %v1868_v57 = vpop.permute.xlu2 %1867  ;;  %v1848_v28 = vpop.permute.xlu1 %1847  ;;  %v7643_v40 = vor.u32 %v2274_v33, %v7635_v43 }
 0x29d   :  { %v1846_v32 = vpop.permute.xlu0 %1845  ;;  %1935 = vst.msk [vmem:[#allocation2 + $0x5c] sm:$0xf] %vm1911_vm12, %v1868_v57  ;;  %v4651_v57 = vsel %vm4649_vm13, %v4650_v10, 0  ;;  %vm4551_vm13 = vcmask 220160  }
 0x29e   :  { %v1968_v44 = vld [vmem:[#allocation2 + $0x24] sm:$0x8]  ;;  %1924 = vst.msk [vmem:[#allocation2 + $0x30] sm:$0xf] %vm1911_vm12, %v1846_v32  ;;  %v2542_v58 = vsel %vm5940_vm10, %v7643_v40, %v2541_v59  ;;  %v4653_v32 = vand.u32 %v5357_v0, %v4651_v57  ;;  %v7745_v59 = vld [vmem:[%s10069_s0 + $0x94] sm:$0xf] }
 0x29f   :  { %v1969_v1 = vsel %vm7557_vm9, 0, %v1968_v44  ;;  %1925 = vst.msk [vmem:[#allocation2 + $0x34] sm:$0xf] %vm1911_vm12, %v1848_v28 }
 0x2a0   :  { %1970 = vst [vmem:[#allocation2 + $0x24] sm:$0x8] %v1969_v1  ;;  %2056 = vrot.lane.b32.xlu1 %v6559_v48, %s5552_s14  ;;  %v7733_v1 = vld [vmem:[%s10069_s0 + $0x9c] sm:$0xf]  ;;  %4661 = vmatpush.bf16.msra.mxu0 %v4653_v32 }
 0x2a1   :  { %2543 = vst [vmem:[#allocation2 + $0x88] sm:$0xf] %v2542_v58  ;;  %5424 = vmatpush.bf16.msra.mxu1 %v4653_v32  ;;  %v5422_v58 = vld [vmem:[%s10071_s2] sm:$0xff]  ;;  %5425 = vmatpush.bf16.msra.mxu2 %v4653_v32 }
 0x2a2   :  { %2058 = vrot.lane.b32.xlu2 %v6539_v49, %s5552_s14  ;;  %5426 = vmatpush.bf16.msra.mxu3 %v4653_v32  ;;  %v7855_v32 = vld [vmem:[%s10069_s0 + $0xc4] sm:$0xf] }
 0x2a3   :  { %2054 = vrot.lane.b32.xlu0 %v10562_v31, %s5552_s14 }
 0x2a4   :  { %v1989_v16 = vld [vmem:[#allocation2 + $0x5c] sm:$0x8]  ;;  %v1874_v4 = vpop.permute.xlu2 %1873  ;;  %v1854_v35 = vpop.permute.xlu1 %1853  ;;  %4662 = vmatpush.bf16.msra.mxu0 %v5422_v58 }
 0x2a5   :  { %v1990_v49 = vsel %vm7557_vm9, 0, %v1989_v16  ;;  %v1852_v39 = vpop.permute.xlu0 %1851  ;;  %1938 = vst.msk [vmem:[#allocation2 + $0x68] sm:$0xf] %vm1911_vm12, %v1874_v4  ;;  %5427 = vmatpush.bf16.msra.mxu1 %v5422_v58  ;;  %5428 = vmatpush.bf16.msra.mxu2 %v5422_v58  ;;  %v7763_v4 = vld [vmem:[%s10069_s0 + $0xa8] sm:$0xf] }
 0x2a6   :  { %1991 = vst [vmem:[#allocation2 + $0x5c] sm:$0x8] %v1990_v49  ;;  %v1974_v48 = vld [vmem:[#allocation2 + $0x34] sm:$0x8]  ;;  %5429 = vmatpush.bf16.msra.mxu3 %v5422_v58  ;;  %v7774_v49 = vld [vmem:[%s10069_s0 + $0xa0] sm:$0xf] }
 0x2a7   :  { %v1975_v27 = vsel %vm7557_vm9, 0, %v1974_v48  ;;  %1927 = vst.msk [vmem:[#allocation2 + $0x3c] sm:$0xf] %vm1911_vm12, %v1852_v39  ;;  %v2114_v48 = vld [vmem:[#allocation2 + $0x24] sm:$0xf]  ;;  %v7865_v58 = vrot.slane %v2271_v62, 4 }
 0x2a8   :  { %1976 = vst [vmem:[#allocation2 + $0x34] sm:$0x8] %v1975_v27  ;;  %2062 = vrot.lane.b32.xlu1 %v7226_v23, %s5552_s14  ;;  %v7679_v23 = vld [vmem:[%s10069_s0 + $0x84] sm:$0xf] }
 0x2a9   :  { %1928 = vst.msk [vmem:[#allocation2 + $0x40] sm:$0xf] %vm1911_vm12, %v1854_v35  ;;  %v7768_v35 = vld [vmem:[%s10069_s0 + $0xa4] sm:$0xf]  ;;  %v2279_v62 = vshrl.u32 %v7679_v23, 16 }
 0x2aa   :  { %2178 = vrot.lane.b32.xlu2 %v2172_v37, %s5552_s14 }
 0x2ab   :  { %2060 = vrot.lane.b32.xlu0 %v7210_v2, %s5552_s14 }
 0x2ac   :  { %v1880_v6 = vpop.permute.xlu2 %1879  ;;  %v1860_v9 = vpop.permute.xlu1 %1859 }
 0x2ad   :  { %v1858_v26 = vpop.permute.xlu0 %1857  ;;  %1941 = vst.msk [vmem:[#allocation2 + $0x74] sm:$0xf] %vm1911_vm12, %v1880_v6  ;;  %v7789_v6 = vld [vmem:[%s10069_s0 + $0xb4] sm:$0xf] }
 0x2ae   :  { %v1977_v11 = vld [vmem:[#allocation2 + $0x3c] sm:$0x8]  ;;  %1930 = vst.msk [vmem:[#allocation2 + $0x48] sm:$0xf] %vm1911_vm12, %v1858_v26  ;;  %v7796_v26 = vld [vmem:[%s10069_s0 + $0xb0] sm:$0xf] }
 0x2af   :  { %v1978_v13 = vsel %vm7557_vm9, 0, %v1977_v11  ;;  %1931 = vst.msk [vmem:[#allocation2 + $0x4c] sm:$0xf] %vm1911_vm12, %v1860_v9  ;;  %v7801_v11 = vld [vmem:[%s10069_s0 + $0xac] sm:$0xf] }
 0x2b0   :  { %1979 = vst [vmem:[#allocation2 + $0x3c] sm:$0x8] %v1978_v13  ;;  %2656 = vrot.lane.b32.xlu1 %v7619_v50, %s5545_s22  ;;  %v7883_v50 = vld [vmem:[%s10069_s0 + $0xd4] sm:$0xf] }
 0x2b2   :  { %2658 = vrot.lane.b32.xlu2 %v7679_v23, %s5545_s22 }
 0x2b3   :  { %2180 = vrot.lane.b32.xlu0 %v2177_v52, %s5552_s14 }
 0x2b4   :  { %v1998_v2 = vld [vmem:[#allocation2 + $0x74] sm:$0x8]  ;;  %v2005_v14 = vpop.permute.xlu2 %2004  ;;  %v1866_v25 = vpop.permute.xlu1 %1865 }
 0x2b5   :  { %v1999_v51 = vsel %vm7557_vm9, 0, %v1998_v2  ;;  %v1864_v12 = vpop.permute.xlu0 %1863  ;;  %2095 = vst.msk [vmem:[#allocation2] sm:$0xf] %vm10267_vm3, %v2005_v14 }
 0x2b6   :  { %2000 = vst [vmem:[#allocation2 + $0x74] sm:$0x8] %v1999_v51  ;;  %v1983_v29 = vld [vmem:[#allocation2 + $0x4c] sm:$0x8]  ;;  %v2098_v51 = vld [vmem:[#allocation2 + $0x4] sm:$0xf] }
 0x2b7   :  { %v1984_v46 = vsel %vm7557_vm9, 0, %v1983_v29  ;;  %1933 = vst.msk [vmem:[#allocation2 + $0x54] sm:$0xf] %vm1911_vm12, %v1864_v12  ;;  %v7817_v29 = vld [vmem:[%s10069_s0 + $0xc0] sm:$0xf] }
 0x2b8   :  { %1985 = vst [vmem:[#allocation2 + $0x4c] sm:$0x8] %v1984_v46  ;;  %2662 = vrot.lane.b32.xlu1 %v7700_v34, %s5545_s22  ;;  %v7822_v46 = vld [vmem:[%s10069_s0 + $0xbc] sm:$0xf] }
 0x2b9   :  { %1934 = vst.msk [vmem:[#allocation2 + $0x58] sm:$0xf] %vm1911_vm12, %v1866_v25  ;;  %v2126_v0 = vld [vmem:[#allocation2 + $0x3c] sm:$0xf] }
 0x2ba   :  { %2664 = vrot.lane.b32.xlu2 %v7692_v41, %s5545_s22 }
 0x2bb   :  { %2660 = vrot.lane.b32.xlu0 %v7705_v30, %s5545_s22 }
 0x2bc   :  { %v2011_v60 = vpop.permute.xlu2 %2010  ;;  %v1872_v24 = vpop.permute.xlu1 %1871 }
 0x2bd   :  { %v1870_v28 = vpop.permute.xlu0 %1869  ;;  %v2103_v61 = vsel %vm7720_vm1, %v2011_v60, %v2102_v22  ;;  %1937 = vst.msk [vmem:[#allocation2 + $0x64] sm:$0xf] %vm1911_vm12, %v1872_v24 }
 0x2be   :  { %v1986_v44 = vld [vmem:[#allocation2 + $0x54] sm:$0x8]  ;;  %1936 = vst.msk [vmem:[#allocation2 + $0x60] sm:$0xf] %vm1911_vm12, %v1870_v28  ;;  %v7844_v28 = vld [vmem:[%s10069_s0 + $0xcc] sm:$0xf] }
 0x2bf   :  { %v1987_v21 = vsel %vm7557_vm9, 0, %v1986_v44  ;;  %2104 = vst [vmem:[#allocation2 + $0xc] sm:$0xf] %v2103_v61  ;;  %v7849_v61 = vld [vmem:[%s10069_s0 + $0xc8] sm:$0xf] }
 0x2c0   :  { %1988 = vst [vmem:[#allocation2 + $0x54] sm:$0x8] %v1987_v21  ;;  %2668 = vrot.lane.b32.xlu1 %v7740_v7, %s5545_s22 }
 0x2c2   :  { %2670 = vrot.lane.b32.xlu2 %v7733_v1, %s5545_s22 }
 0x2c3   :  { %2666 = vrot.lane.b32.xlu0 %v7745_v59, %s5545_s22 }
 0x2c4   :  { %v1992_v31 = vld [vmem:[#allocation2 + $0x64] sm:$0x8]  ;;  %v2017_v3 = vpop.permute.xlu2 %2016  ;;  %v1878_v38 = vpop.permute.xlu1 %1877 }
 0x2c5   :  { %v1993_v20 = vsel %vm7557_vm9, 0, %v1992_v31  ;;  %v1876_v16 = vpop.permute.xlu0 %1875  ;;  %2109 = vst.msk [vmem:[#allocation2 + $0x18] sm:$0xf] %vm10267_vm3, %v2017_v3  ;;  %v7869_v31 = vrot.slane %v2274_v33, 5  ;;  %v7889_v33 = vld [vmem:[%s10069_s0 + $0xd0] sm:$0xf] }
 0x2c6   :  { %1994 = vst [vmem:[#allocation2 + $0x64] sm:$0x8] %v1993_v20 }
 0x2c7   :  { %1939 = vst.msk [vmem:[#allocation2 + $0x6c] sm:$0xf] %vm1911_vm12, %v1876_v16  ;;  %v7878_v16 = vld [vmem:[%s10069_s0 + $0xd8] sm:$0xf] }
 0x2c8   :  { %1940 = vst.msk [vmem:[#allocation2 + $0x70] sm:$0xf] %vm1911_vm12, %v1878_v38  ;;  %2674 = vrot.lane.b32.xlu1 %v7768_v35, %s5545_s22  ;;  %v2110_v38 = vld [vmem:[#allocation2 + $0x1c] sm:$0xf] }
 0x2ca   :  { %2676 = vrot.lane.b32.xlu2 %v7763_v4, %s5545_s22 }
 0x2cb   :  { %2672 = vrot.lane.b32.xlu0 %v7774_v49, %s5545_s22 }
 0x2cc   :  { %v2023_v39 = vpop.permute.xlu2 %2022  ;;  %v1949_v27 = vpop.permute.xlu1 %1948 }
 0x2cd   :  { %v1947_v37 = vpop.permute.xlu0 %1946  ;;  %v2115_v5 = vsel %vm7720_vm1, %v2023_v39, %v2114_v48  ;;  %1953 = vst.msk [vmem:[#allocation2 + $0x7c] sm:$0xf] %vm1911_vm12, %v1949_v27  ;;  %v2281_v48 = vrot.slane %v2279_v62, 7  ;;  %v2282_v27 = vshll.u32 %v7679_v23, 16  ;;  %v7909_v23 = vld [vmem:[%s10069_s0 + $0xe4] sm:$0xf] }
 0x2ce   :  { %v1995_v55 = vld [vmem:[#allocation2 + $0x6c] sm:$0x8]  ;;  %1952 = vst.msk [vmem:[#allocation2 + $0x78] sm:$0xf] %vm1911_vm12, %v1947_v37  ;;  %v10222_v39 = vshll.u32 %v7745_v59, 16 }
 0x2cf   :  { %v1996_v9 = vsel %vm7557_vm9, 0, %v1995_v55  ;;  %2116 = vst [vmem:[#allocation2 + $0x24] sm:$0xf] %v2115_v5  ;;  %v2138_v5 = vld [vmem:[#allocation2 + $0x54] sm:$0xf] }
 0x2d0   :  { %1997 = vst [vmem:[#allocation2 + $0x6c] sm:$0x8] %v1996_v9  ;;  %2680 = vrot.lane.b32.xlu1 %v7796_v26, %s5545_s22  ;;  %v2118_v55 = vld [vmem:[#allocation2 + $0x2c] sm:$0xf] }
 0x2d2   :  { %2682 = vrot.lane.b32.xlu2 %v7789_v6, %s5545_s22 }
 0x2d3   :  { %2678 = vrot.lane.b32.xlu0 %v7801_v11, %s5545_s22 }
 0x2d4   :  { %v2001_v13 = vld [vmem:[#allocation2 + $0x7c] sm:$0x8]  ;;  %v2029_v52 = vpop.permute.xlu2 %2028  ;;  %v2009_v2 = vpop.permute.xlu1 %2008 }
 0x2d5   :  { %v2002_v14 = vsel %vm7557_vm9, 0, %v2001_v13  ;;  %v2007_v25 = vpop.permute.xlu0 %2006  ;;  %2121 = vst.msk [vmem:[#allocation2 + $0x30] sm:$0xf] %vm10267_vm3, %v2029_v52 }
 0x2d6   :  { %2003 = vst [vmem:[#allocation2 + $0x7c] sm:$0x8] %v2002_v14  ;;  %v2099_v12 = vsel %vm7720_vm1, %v2007_v25, %v2098_v51  ;;  %v2277_v25 = vrot.slane %v7635_v43, 4  ;;  %v2284_v51 = vor.u32 %v2282_v27, %v2281_v48  ;;  %v7955_v48 = vld [vmem:[%s10069_s0 + $0xe8] sm:$0xf] }
 0x2d7   :  { %2100 = vst [vmem:[#allocation2 + $0x4] sm:$0xf] %v2099_v12  ;;  %v7914_v12 = vld [vmem:[%s10069_s0 + $0xe0] sm:$0xf] }
 0x2d8   :  { %2101 = vst.msk [vmem:[#allocation2 + $0x8] sm:$0xf] %vm10267_vm3, %v2009_v2  ;;  %2686 = vrot.lane.b32.xlu1 %v7822_v46, %s5545_s22  ;;  %v7924_v43 = vsel %vm5810_vm2, %v2277_v25, %v2284_v51  ;;  %v2150_v25 = vld [vmem:[#allocation2 + $0x6c] sm:$0xf]  ;;  %v2130_v51 = vld [vmem:[#allocation2 + $0x44] sm:$0xf] }
 0x2d9   :  { %2544 = vst.msk [vmem:[#allocation2 + $0x8c] sm:$0xf] %vm10567_vm15, %v7924_v43  ;;  %vm10584_vm15 = vcmask 44056   ;;  %v10658_v17 = vshll.u32 %v7914_v12, 16 }
 0x2da   :  { %2688 = vrot.lane.b32.xlu2 %v7817_v29, %s5545_s22 }
 0x2db   :  { %2684 = vrot.lane.b32.xlu0 %v7828_v45, %s5545_s22 }
 0x2dc   :  { %v2035_v42 = vpop.permute.xlu2 %2034  ;;  %v2015_v10 = vpop.permute.xlu1 %2014 }
 0x2dd   :  { %v2013_v60 = vpop.permute.xlu0 %2012  ;;  %v2127_v22 = vsel %vm7720_vm1, %v2035_v42, %v2126_v0  ;;  %v2107_v24 = vsel %vm7720_vm1, %v2015_v10, %v2106_v15  ;;  %v7920_v42 = vld [vmem:[%s10069_s0 + $0xdc] sm:$0xf]  ;;  %v10214_v10 = vshrl.u32 %v7705_v30, 16 }
 0x2de   :  { %2105 = vst.msk [vmem:[#allocation2 + $0x10] sm:$0xf] %vm10267_vm3, %v2013_v60  ;;  %v5390_v57 = vld [vmem:[#allocation2] sm:$0xff] }
 0x2df   :  { %2128 = vst [vmem:[#allocation2 + $0x3c] sm:$0xf] %v2127_v22  ;;  %5358 = vmatmul.msk.bf16.vlgmr.msra.gmra.mxu0 %vm4551_vm13, %v5390_v57  ;;  %v5391_v14 = vld [vmem:[#allocation2 + $0x8] sm:$0xff]  ;;  %v2122_v22 = vld [vmem:[#allocation2 + $0x34] sm:$0xf]  ;;  %v2303_v57 = vshrl.u32 %v7692_v41, 16 }
 0x2e0   :  { %2108 = vst [vmem:[#allocation2 + $0x14] sm:$0xf] %v2107_v24  ;;  %2692 = vrot.lane.b32.xlu1 %v7849_v61, %s5545_s22  ;;  %v10213_v24 = vshll.u32 %v7705_v30, 16 }
 0x2e1   :  { %v2854_v8 = vrot.slane %v2303_v57, 4 }
 0x2e2   :  { %2694 = vrot.lane.b32.xlu2 %v7844_v28, %s5545_s22 }
 0x2e3   :  { %2690 = vrot.lane.b32.xlu0 %v7855_v32, %s5545_s22 }
 0x2e4   :  { %v2041_v44 = vpop.permute.xlu2 %2040  ;;  %v2021_v21 = vpop.permute.xlu1 %2020 }
 0x2e5   :  { %v2019_v3 = vpop.permute.xlu0 %2018  ;;  %2133 = vst.msk [vmem:[#allocation2 + $0x48] sm:$0xf] %vm10267_vm3, %v2041_v44 }
 0x2e6   :  { %v2111_v20 = vsel %vm7720_vm1, %v2019_v3, %v2110_v38  ;;  %2113 = vst.msk [vmem:[#allocation2 + $0x20] sm:$0xf] %vm10267_vm3, %v2021_v21  ;;  %v7944_v21 = vld [vmem:[%s10069_s0 + $0xf0] sm:$0xf]  ;;  %v7949_v3 = vld [vmem:[%s10069_s0 + $0xec] sm:$0xf] }
 0x2e7   :  { %2112 = vst [vmem:[#allocation2 + $0x1c] sm:$0xf] %v2111_v20  ;;  %v2231_v38 = vld [vmem:[#allocation2 + $0x98] sm:$0x1]  ;;  %v10215_v20 = vshrl.u32 %v7740_v7, 16 }
 0x2e8   :  { %2698 = vrot.lane.b32.xlu1 %v7883_v50, %s5545_s22 }
 0x2ea   :  { %2700 = vrot.lane.b32.xlu2 %v7878_v16, %s5545_s22 }
 0x2eb   :  { %2696 = vrot.lane.b32.xlu0 %v7889_v33, %s5545_s22 }
 0x2ec   :  { %v2047_v37 = vpop.permute.xlu2 %2046  ;;  %v2027_v9 = vpop.permute.xlu1 %2026 }
 0x2ed   :  { %v2025_v13 = vpop.permute.xlu0 %2024  ;;  %v2139_v52 = vsel %vm7720_vm1, %v2047_v37, %v2138_v5  ;;  %v2119_v2 = vsel %vm7720_vm1, %v2027_v9, %v2118_v55  ;;  %v2232_v37 = vsel %vm5866_vm8, 0, %v2231_v38  ;;  %v7959_v5 = vrot.slane %v2303_v57, 7  ;;  %v5392_v38 = vld [vmem:[#allocation2 + $0x10] sm:$0xff] }
 0x2ee   :  { %2117 = vst.msk [vmem:[#allocation2 + $0x28] sm:$0xf] %vm10267_vm3, %v2025_v13  ;;  %v7963_v55 = vrot.slane %v10215_v20, 7  ;;  %v2306_v9 = vshll.u32 %v7692_v41, 16  ;;  %v2845_v13 = vrot.slane %v10214_v10, 4 }
 0x2ef   :  { %2140 = vst [vmem:[#allocation2 + $0x54] sm:$0xf] %v2139_v52  ;;  %5359 = vmatmul.msk.bf16.gmra.mxu0 %vm4551_vm13, %v5391_v14  ;;  %v2846_v52 = vrot.slane %v10213_v24, 5  ;;  %v2840_v24 = vrot.slane %v2282_v27, 5  ;;  %v7994_v10 = vld [vmem:[%s10069_s0 + $0xf4] sm:$0xf] }
 0x2f0   :  { %2120 = vst [vmem:[#allocation2 + $0x2c] sm:$0xf] %v2119_v2  ;;  %2704 = vrot.lane.b32.xlu1 %v7914_v12, %s5545_s22  ;;  %v2842_v2 = vrot.slane %v2279_v62, 4  ;;  %v5213_v62 = vld [vmem:[%s10070_s1 + $0x14] sm:$0xf]  ;;  %v10224_v27 = vshrl.u32 %v7700_v34, 16 }
 0x2f1   :  { %2233 = vst [vmem:[#allocation2 + $0x98] sm:$0x1] %v2232_v37  ;;  %v5212_v37 = vld [vmem:[%s10070_s1 + $0x10] sm:$0xf]  ;;  %v2847_v20 = vor.u32 %v2846_v52, %v2845_v13  ;;  %v10568_v13 = vor.u32 %v7869_v31, %v7865_v58  ;;  %v2858_v58 = vrot.slane %v10222_v39, 5 }
 0x2f2   :  { %2706 = vrot.lane.b32.xlu2 %v7909_v23, %s5545_s22  ;;  %v2134_v39 = vld [vmem:[#allocation2 + $0x4c] sm:$0xf] }
 0x2f3   :  { %2702 = vrot.lane.b32.xlu0 %v7920_v42, %s5545_s22  ;;  %v2839_v52 = vrot.slane %v10568_v13, 4 }
 0x2f4   :  { %v2053_v0 = vpop.permute.xlu2 %2052  ;;  %v2033_v15 = vpop.permute.xlu1 %2032 }
 0x2f5   :  { %v2031_v60 = vpop.permute.xlu0 %2030  ;;  %2145 = vst.msk [vmem:[#allocation2 + $0x60] sm:$0xf] %vm10267_vm3, %v2053_v0 }
 0x2f6   :  { %v2123_v44 = vsel %vm7720_vm1, %v2031_v60, %v2122_v22  ;;  %2125 = vst.msk [vmem:[#allocation2 + $0x38] sm:$0xf] %vm10267_vm3, %v2033_v15  ;;  %v10225_v15 = vshrl.u32 %v7733_v1, 16  ;;  %v7978_v60 = vor.u32 %v2306_v9, %v7959_v5 }
 0x2f7   :  { %2124 = vst [vmem:[#allocation2 + $0x34] sm:$0xf] %v2123_v44 }
 0x2f8   :  { %2710 = vrot.lane.b32.xlu1 %v7949_v3, %s5545_s22  ;;  %v2549_v53 = vld [vmem:[#allocation2 + $0x98] sm:$0xf] }
 0x2fa   :  { %2712 = vrot.lane.b32.xlu2 %v7944_v21, %s5545_s22 }
 0x2fb   :  { %2708 = vrot.lane.b32.xlu0 %v7955_v48, %s5545_s22 }
 0x2fc   :  { %v2059_v14 = vpop.permute.xlu2 %2058  ;;  %v2039_v0 = vpop.permute.xlu1 %2038 }
 0x2fd   :  { %v2037_v41 = vpop.permute.xlu0 %2036  ;;  %v2151_v22 = vsel %vm7720_vm1, %v2059_v14, %v2150_v25  ;;  %v2131_v44 = vsel %vm7720_vm1, %v2039_v0, %v2130_v51  ;;  %v10226_v25 = vshll.u32 %v7733_v1, 16  ;;  %v2325_v51 = vrot.slane %v7963_v55, 4 }
 0x2fe   :  { %2129 = vst.msk [vmem:[#allocation2 + $0x40] sm:$0xf] %vm10267_vm3, %v2037_v41  ;;  %v2329_v0 = vrot.slane %v10225_v15, 7  ;;  %v10223_v41 = vshrl.u32 %v7745_v59, 16  ;;  %v2855_v14 = vrot.slane %v2306_v9, 5  ;;  %v2843_v9 = vor.u32 %v2842_v2, %v2840_v24 }
 0x2ff   :  { %2152 = vst [vmem:[#allocation2 + $0x6c] sm:$0xf] %v2151_v22  ;;  %5360 = vmatmul.msk.bf16.gmra.mxu0 %vm4551_vm13, %v5392_v38  ;;  %v2550_v22 = vsel %vm5940_vm10, %v7978_v60, %v2549_v53  ;;  %v2848_v53 = vrot.slane %v2847_v20, 4  ;;  %v10228_v2 = vshll.u32 %v7740_v7, 16 }
 0x300   :  { %2132 = vst [vmem:[#allocation2 + $0x44] sm:$0xf] %v2131_v44  ;;  %v2332_v56 = vor.u32 %v10226_v25, %v2329_v0  ;;  %2780 = vrot.lane.b32.xlu1 %v5212_v37, %s5545_s22  ;;  %v10569_v44 = vshll.u32 %v7700_v34, 16  ;;  %v2860_v31 = vrot.slane %v10223_v41, 4  ;;  %v10227_v37 = vshrl.u32 %v7763_v4, 16 }
 0x301   :  { %2551 = vst [vmem:[#allocation2 + $0x98] sm:$0xf] %v2550_v22  ;;  %v2856_v0 = vor.u32 %v2855_v14, %v2854_v8  ;;  %v8045_v8 = vrot.slane %v2843_v9, 4  ;;  %v8049_v25 = vsel %vm5845_vm6, %v2839_v52, %v2840_v24  ;;  %v2864_v9 = vrot.slane %v10228_v2, 5 }
 0x302   :  { %2782 = vrot.lane.b32.xlu2 %v5213_v62, %s5545_s22  ;;  %v2849_v57 = vrot.slane %v10569_v44, 5  ;;  %v8019_v38 = vsel %vm5810_vm2, %v2325_v51, %v2332_v56  ;;  %v2851_v62 = vrot.slane %v10224_v27, 4  ;;  %v2335_v56 = vshrl.u32 %v7774_v49, 16  ;;  %10573 = vst [vmem:[#allocation44_spill] sm:$0xff] %v8049_v25  ;;  %v2240_v27 = vld [vmem:[#allocation2 + $0xb0] sm:$0x1] }
 0x303   :  { %10570 = vst [vmem:[#allocation23_spill] sm:$0xff] %v8019_v38  ;;  %2714 = vrot.lane.b32.xlu0 %v7994_v10, %s5545_s22  ;;  %v8039_v41 = vrot.slane %v10227_v37, 7  ;;  %v2861_v22 = vor.u32 %v2860_v31, %v2858_v58  ;;  %v2857_v13 = vrot.slane %v2856_v0, 4  ;;  %v10576_v24 = vshrl.u32 %v7705_v30, 16 }
 0x304   :  { %2556 = vst.msk [vmem:[#allocation2 + $0xa4] sm:$0xf] %vm10571_vm11, %v8019_v38  ;;  %v2179_v51 = vpop.permute.xlu2 %2178  ;;  %v2045_v20 = vpop.permute.xlu1 %2044  ;;  %v2852_v37 = vor.u32 %v2851_v62, %v2849_v57  ;;  %v10579_v62 = vshrl.u32 %v7796_v26, 16 }
 0x305   :  { %v2043_v44 = vpop.permute.xlu0 %2042  ;;  %2184 = vst.msk [vmem:[#allocation2 + $0x78] sm:$0xf] %vm10267_vm3, %v2179_v51  ;;  %v8053_v51 = vsel %vm5845_vm6, %v2848_v53, %v2849_v57  ;;  %v8063_v52 = vrot.slane %v10576_v24, 7  ;;  %v10577_v57 = vshll.u32 %v7763_v4, 16  ;;  %v2872_v24 = vrot.slane %v2335_v56, 4 }
 0x306   :  { %v2135_v15 = vsel %vm7720_vm1, %v2043_v44, %v2134_v39  ;;  %2137 = vst.msk [vmem:[#allocation2 + $0x50] sm:$0xf] %vm10267_vm3, %v2045_v20  ;;  %v10575_v39 = vshrl.u32 %v7740_v7, 16  ;;  %v8065_v20 = vrot.slane %v2335_v56, 7  ;;  %v8075_v31 = vrot.slane %v10579_v62, 7 }
 0x307   :  { %10572 = vst [vmem:[#allocation14_spill] sm:$0xff] %v8045_v8  ;;  %v5398_v14 = vld [vmem:[#allocation2 + $0x40] sm:$0xff]  ;;  %v8071_v53 = vor.u32 %v10577_v57, %v8039_v41  ;;  %v10581_v57 = vshll.u32 %v7774_v49, 16  ;;  %v8090_v36 = vrot.slane %v2861_v22, 4  ;;  %v8094_v19 = vsel %vm5845_vm6, %v2857_v13, %v2858_v58 }
 0x308   :  { %2136 = vst [vmem:[#allocation2 + $0x4c] sm:$0xf] %v2135_v15  ;;  %v2863_v44 = vrot.slane %v10575_v39, 4  ;;  %v2241_v15 = vsel %vm5866_vm8, 0, %v2240_v27  ;;  %5366 = vmatmul.msk.bf16.vlgmr.msra.gmra.mxu1 %vm4551_vm13, %v5398_v14  ;;  %2973 = vrot.lane.b32.xlu1 %v8045_v8, %s5546_s10  ;;  %v2228_v14 = vld [vmem:[#allocation2 + $0x90] sm:$0x1] }
 0x309   :  { %10574 = vst [vmem:[#allocation45_spill] sm:$0xff] %v8053_v51  ;;  %v2873_v62 = vrot.slane %v10581_v57, 5  ;;  %v2142_v27 = vld [vmem:[#allocation2 + $0x5c] sm:$0xf]  ;;  %v10239_v39 = vshrl.u32 %v7789_v6, 16  ;;  %v10585_v57 = vshll.u32 %v7733_v1, 16 }
 0x30a   :  { %2242 = vst [vmem:[#allocation2 + $0xb0] sm:$0x1] %v2241_v15  ;;  %2975 = vrot.lane.b32.xlu2 %v8053_v51, %s5546_s10  ;;  %v8086_v15 = vrot.slane %v2852_v37, 4  ;;  %v2865_v8 = vor.u32 %v2864_v9, %v2863_v44  ;;  %v5393_v37 = vld [vmem:[#allocation2 + $0x18] sm:$0xff]  ;;  %v2229_v58 = vsel %vm5866_vm8, 0, %v2228_v14  ;;  %v10586_v13 = vshrl.u32 %v7733_v1, 16 }
 0x30b   :  { %10578 = vst [vmem:[#allocation38_spill] sm:$0xff] %v8071_v53  ;;  %2971 = vrot.lane.b32.xlu0 %v8049_v25, %s5546_s10  ;;  %v8102_v25 = vrot.slane %v10585_v57, 5  ;;  %v2373_v9 = vrot.slane %v8075_v31, 4  ;;  %v10587_v14 = vshrl.u32 %v7700_v34, 16 }
 0x30c   :  { %10580 = vst [vmem:[#allocation47_spill] sm:$0xff] %v8086_v15  ;;  %v2659_v2 = vpop.permute.xlu2 %2658  ;;  %v2051_v0 = vpop.permute.xlu1 %2050  ;;  %v2869_v44 = vrot.slane %v10586_v13, 4 }
 0x30d   :  { %10582 = vst [vmem:[#allocation48_spill] sm:$0xff] %v8090_v36  ;;  %v2049_v51 = vpop.permute.xlu0 %2048  ;;  %v2143_v56 = vsel %vm7720_vm1, %v2051_v0, %v2142_v27  ;;  %v2377_v27 = vrot.slane %v10239_v39, 7  ;;  %v2874_v0 = vor.u32 %v2873_v62, %v2872_v24  ;;  %v2297_v38 = vrot.slane %v10587_v14, 7 }
 0x30e   :  { %10583 = vst [vmem:[#allocation31_spill] sm:$0xff] %v8094_v19  ;;  %v10589_v39 = vshll.u32 %v7789_v6, 16  ;;  %v10590_v24 = vshll.u32 %v7763_v4, 16  ;;  %v2293_v14 = vrot.slane %v8063_v52, 4 }
 0x30f   :  { %2747 = vst.msk [vmem:[#allocation2 + $0x8c] sm:$0xf] %vm10584_vm15, %v2659_v2  ;;  %5361 = vmatmul.msk.bf16.gmra.mxu0 %vm4551_vm13, %v5393_v37  ;;  %v10591_v37 = vshll.u32 %v7700_v34, 16  ;;  %v2146_v34 = vld [vmem:[#allocation2 + $0x64] sm:$0xf]  ;;  %vm10596_vm15 = vmmov %vm10571_vm11 }
 0x310   :  { %2141 = vst.msk [vmem:[#allocation2 + $0x58] sm:$0xf] %vm10267_vm3, %v2049_v51  ;;  %v10588_v51 = vshrl.u32 %v7763_v4, 16  ;;  %v2882_v62 = vrot.slane %v10590_v24, 5  ;;  %2979 = vrot.lane.b32.xlu1 %v8094_v19, %s5546_s10  ;;  %v2870_v4 = vor.u32 %v2869_v44, %v8102_v25 }
 0x311   :  { %2144 = vst [vmem:[#allocation2 + $0x5c] sm:$0xf] %v2143_v56  ;;  %v2561_v2 = vld [vmem:[#allocation2 + $0xb0] sm:$0xf]  ;;  %v2380_v56 = vor.u32 %v10589_v39, %v2377_v27  ;;  %v2300_v1 = vor.u32 %v10591_v37, %v2297_v38  ;;  %v2866_v39 = vrot.slane %v2865_v8, 4  ;;  %v2875_v38 = vrot.slane %v2874_v0, 4 }
 0x312   :  { %v2881_v13 = vrot.slane %v10588_v51, 4  ;;  %2230 = vst [vmem:[#allocation2 + $0x90] sm:$0x1] %v2229_v58  ;;  %v2562_v22 = vsel %vm5940_vm10, %v8071_v53, %v2561_v2  ;;  %2981 = vrot.lane.b32.xlu2 %v8090_v36, %s5546_s10  ;;  %v10593_v2 = vshll.u32 %v7768_v35, 16  ;;  %v10594_v51 = vshrl.u32 %v7768_v35, 16 }
 0x313   :  { %2563 = vst [vmem:[#allocation2 + $0xb0] sm:$0xf] %v2562_v22  ;;  %v8140_v58 = vsel %vm5810_vm2, %v2373_v9, %v2380_v56  ;;  %2977 = vrot.lane.b32.xlu0 %v8086_v15, %s5546_s10  ;;  %v8156_v8 = vsel %vm5810_vm2, %v2293_v14, %v2300_v1  ;;  %v10595_v22 = vshll.u32 %v7705_v30, 16  ;;  %v2234_v37 = vld [vmem:[#allocation2 + $0xa0] sm:$0x1]  ;;  %v10599_v1 = vshll.u32 %v7801_v11, 16 }
 0x314   :  { %10592 = vst [vmem:[#allocation50_spill] sm:$0xff] %v8140_v58  ;;  %v8146_v27 = vrot.slane %v10593_v2, 5  ;;  %v8150_v24 = vrot.slane %v10594_v51, 4  ;;  %v2665_v0 = vpop.permute.xlu2 %2664  ;;  %v2057_v56 = vpop.permute.xlu1 %2056  ;;  %v10600_v30 = vshrl.u32 %v7801_v11, 16  ;;  %v10601_v15 = vshrl.u32 %v7828_v45, 16 }
 0x315   :  { %2568 = vst.msk [vmem:[#allocation2 + $0xbc] sm:$0xf] %vm10571_vm11, %v8140_v58  ;;  %v8161_v44 = vor.u32 %v10595_v22, %v8063_v52  ;;  %v2055_v57 = vpop.permute.xlu0 %2054  ;;  %vm10598_vm11 = vcmask 44056   ;;  %v2885_v14 = vrot.slane %v10599_v1, 5  ;;  %v2883_v22 = vor.u32 %v2882_v62, %v2881_v13  ;;  %v5399_v58 = vld [vmem:[#allocation2 + $0x48] sm:$0xff] }
 0x316   :  { %v2791_v9 = vld [vmem:[#allocation2 + $0x8c] sm:$0x8]  ;;  %2548 = vst.msk [vmem:[#allocation2 + $0x94] sm:$0xf] %vm10596_vm15, %v8156_v8  ;;  %v2887_v52 = vrot.slane %v10600_v30, 4  ;;  %v8174_v19 = vrot.slane %v10601_v15, 7 }
 0x317   :  { %v2792_v51 = vsel %vm6097_vm14, 0, %v2791_v9  ;;  %2750 = vst.msk [vmem:[#allocation2 + $0x98] sm:$0xf] %vm10598_vm11, %v2665_v0  ;;  %v10252_v36 = vshll.u32 %v7817_v29, 16  ;;  %v2147_v9 = vsel %vm7720_vm1, %v2055_v57, %v2146_v34  ;;  %v8179_v53 = vrot.slane %v2870_v4, 4 }
 0x318   :  { %2793 = vst [vmem:[#allocation2 + $0x8c] sm:$0x8] %v2792_v51  ;;  %v8184_v0 = vsel %vm5845_vm6, %v2875_v38, %v8146_v27  ;;  %v10604_v62 = vshrl.u32 %v7745_v59, 16  ;;  %v2235_v1 = vsel %vm5866_vm8, 0, %v2234_v37  ;;  %v10250_v51 = vshrl.u32 %v7849_v61, 16  ;;  %5367 = vmatmul.msk.bf16.gmra.mxu1 %vm4551_vm13, %v5399_v58 }
 0x319   :  { %10602 = vst [vmem:[#allocation51_spill] sm:$0xff] %v8179_v53  ;;  %v2545_v13 = vld [vmem:[#allocation2 + $0x90] sm:$0xf]  ;;  %v8195_v57 = vsel %vm5845_vm6, %v2866_v39, %v8102_v25  ;;  %v2309_v34 = vrot.slane %v7959_v5, 4  ;;  %v2879_v38 = vor.u32 %v8150_v24, %v8146_v27  ;;  %v2888_v37 = vor.u32 %v2887_v52, %v2885_v14  ;;  %2985 = vrot.lane.b32.xlu1 %v8179_v53, %s5546_s10 }
 0x31a   :  { %2148 = vst [vmem:[#allocation2 + $0x64] sm:$0xf] %v2147_v9  ;;  %v2313_v15 = vrot.slane %v10604_v62, 7  ;;  %v2546_v4 = vsel %vm5940_vm10, %v8161_v44, %v2545_v13  ;;  %v2884_v30 = vrot.slane %v2883_v22, 4  ;;  %v2237_v62 = vld [vmem:[#allocation2 + $0xa8] sm:$0x1]  ;;  %2987 = vrot.lane.b32.xlu2 %v8184_v0, %s5546_s10 }
 0x31b   :  { %10603 = vst [vmem:[#allocation46_spill] sm:$0xff] %v8184_v0  ;;  %v10607_v5 = vshrl.u32 %v7796_v26, 16  ;;  %v10608_v39 = vshll.u32 %v7796_v26, 16  ;;  %v10609_v27 = vshll.u32 %v7789_v6, 16  ;;  %2983 = vrot.lane.b32.xlu0 %v8195_v57, %s5546_s10  ;;  %v10610_v52 = vshrl.u32 %v7828_v45, 16  ;;  %v10733_v2 = vld [vmem:[#allocation50_spill] sm:$0xff] }
 0x31c   :  { %2149 = vst.msk [vmem:[#allocation2 + $0x68] sm:$0xf] %vm10267_vm3, %v2057_v56  ;;  %v10606_v56 = vshll.u32 %v7745_v59, 16  ;;  %v2238_v59 = vsel %vm5866_vm8, 0, %v2237_v62  ;;  %v10611_v13 = vshll.u32 %v7828_v45, 16  ;;  %v10266_v0 = vshll.u32 %v7889_v33, 16 }
 0x31d   :  { %10605 = vst [vmem:[#allocation53_spill] sm:$0xff] %v8195_v57  ;;  %v8212_v25 = vrot.slane %v10607_v5, 4  ;;  %v8216_v58 = vrot.slane %v10608_v39, 5  ;;  %v8220_v24 = vrot.slane %v10609_v27, 5  ;;  %v2899_v22 = vrot.slane %v10610_v52, 4 }
 0x31e   :  { %2547 = vst [vmem:[#allocation2 + $0x90] sm:$0xf] %v2546_v4  ;;  %v2316_v9 = vor.u32 %v10606_v56, %v2313_v15  ;;  %v2900_v15 = vrot.slane %v10611_v13, 5  ;;  %v10612_v4 = vshrl.u32 %v7789_v6, 16  ;;  %v10614_v39 = vshll.u32 %v7774_v49, 16 }
 0x31f   :  { %2236 = vst [vmem:[#allocation2 + $0xa0] sm:$0x1] %v2235_v1  ;;  %v10613_v1 = vshll.u32 %v7740_v7, 16  ;;  %v10616_v52 = vshrl.u32 %v7817_v29, 16  ;;  %v8257_v7 = vrot.slane %v10250_v51, 7  ;;  %v8270_v13 = vsel %vm5845_vm6, %v2884_v30, %v2885_v14 }
 0x320   :  { %v8232_v56 = vrot.slane %v10612_v4, 4  ;;  %v8236_v5 = vsel %vm5810_vm2, %v2309_v34, %v2316_v9  ;;  %2239 = vst [vmem:[#allocation2 + $0xa8] sm:$0x1] %v2238_v59  ;;  %v8246_v27 = vor.u32 %v10614_v39, %v8065_v20  ;;  %v2671_v4 = vpop.permute.xlu2 %2670  ;;  %v2154_v34 = vld [vmem:[#allocation2 + $0x74] sm:$0xf]  ;;  %v2063_v9 = vpop.permute.xlu1 %2062  ;;  %v5394_v39 = vld [vmem:[#allocation2 + $0x20] sm:$0xff] }
 0x321   :  { %v8241_v62 = vor.u32 %v10613_v1, %v7963_v55  ;;  %v8250_v6 = vrot.slane %v10616_v52, 7  ;;  %2552 = vst.msk [vmem:[#allocation2 + $0x9c] sm:$0xf] %vm10596_vm15, %v8236_v5  ;;  %v2061_v55 = vpop.permute.xlu0 %2060  ;;  %v2155_v59 = vsel %vm7720_vm1, %v2063_v9, %v2154_v34  ;;  %v8263_v1 = vrot.slane %v2879_v38, 4  ;;  %5362 = vmatmul.msk.bf16.gmra.mxu0 %vm4551_vm13, %v5394_v39  ;;  %2991 = vrot.lane.b32.xlu1 %v8270_v13, %s5546_s10  ;;  %v2185_v14 = vld [vmem:[#allocation2 + $0x7c] sm:$0xf]  ;;  %vm10627_vm15 = vmmov %vm10598_vm11 }
 0x322   :  { %10615 = vst [vmem:[#allocation54_spill] sm:$0xff] %v8246_v27  ;;  %v8266_v52 = vrot.slane %v2888_v37, 4  ;;  %v10251_v49 = vshrl.u32 %v7844_v28, 16  ;;  %v2901_v34 = vor.u32 %v2900_v15, %v2899_v22  ;;  %v2897_v38 = vor.u32 %v8232_v56, %v8220_v24 }
 0x323   :  { %2753 = vst.msk [vmem:[#allocation2 + $0xa4] sm:$0xf] %vm10598_vm11, %v2671_v4  ;;  %v2892_v4 = vor.u32 %v8216_v58, %v8212_v25  ;;  %v10620_v9 = vshrl.u32 %v7768_v35, 16  ;;  %v10259_v51 = vshll.u32 %v7844_v28, 16  ;;  %v10621_v58 = vshrl.u32 %v7817_v29, 16  ;;  %2989 = vrot.lane.b32.xlu0 %v8263_v1, %s5546_s10 }
 0x324   :  { %10617 = vst [vmem:[#allocation49_spill] sm:$0xff] %v8263_v1  ;;  %v2909_v15 = vrot.slane %v10252_v36, 5  ;;  %2993 = vrot.lane.b32.xlu2 %v8266_v52, %s5546_s10  ;;  %v2421_v25 = vrot.slane %v8257_v7, 4  ;;  %v2902_v36 = vrot.slane %v2901_v34, 4  ;;  %v10626_v34 = vshrl.u32 %v7822_v46, 16 }
 0x325   :  { %2153 = vst.msk [vmem:[#allocation2 + $0x70] sm:$0xf] %vm10267_vm3, %v2061_v55  ;;  %v2345_v37 = vrot.slane %v10620_v9, 7  ;;  %v2249_v55 = vld [vmem:[#allocation2 + $0xc8] sm:$0x1]  ;;  %v2908_v22 = vrot.slane %v10621_v58, 4 }
 0x326   :  { %10618 = vst [vmem:[#allocation56_spill] sm:$0xff] %v8266_v52  ;;  %v2250_v56 = vsel %vm5866_vm8, 0, %v2249_v55  ;;  %v2553_v39 = vld [vmem:[#allocation2 + $0xa0] sm:$0xf]  ;;  %v10622_v9 = vshll.u32 %v7822_v46, 16  ;;  %v10624_v52 = vshll.u32 %v7817_v29, 16 }
 0x327   :  { %10619 = vst [vmem:[#allocation57_spill] sm:$0xff] %v8270_v13  ;;  %v2554_v58 = vsel %vm5940_vm10, %v8241_v62, %v2553_v39  ;;  %v2557_v30 = vld [vmem:[#allocation2 + $0xa8] sm:$0xf]  ;;  %v10623_v39 = vshll.u32 %v7768_v35, 16  ;;  %v2893_v53 = vrot.slane %v2892_v4, 4  ;;  %v10628_v35 = vshll.u32 %v7855_v32, 16 }
 0x328   :  { %2156 = vst [vmem:[#allocation2 + $0x74] sm:$0xf] %v2155_v59  ;;  %v2425_v59 = vrot.slane %v10251_v49, 7  ;;  %v8299_v49 = vrot.slane %v10622_v9, 5  ;;  %v2341_v9 = vrot.slane %v8065_v20, 4  ;;  %v8318_v57 = vor.u32 %v10624_v52, %v8250_v6  ;;  %v2657_v1 = vpop.permute.xlu1 %2656 }
 0x329   :  { %2251 = vst [vmem:[#allocation2 + $0xc8] sm:$0x1] %v2250_v56  ;;  %v2558_v56 = vsel %vm5940_vm10, %v8246_v27, %v2557_v30  ;;  %v2348_v13 = vor.u32 %v10623_v39, %v2345_v37  ;;  %v2181_v20 = vpop.permute.xlu0 %2180  ;;  %v2912_v37 = vrot.slane %v10628_v35, 5  ;;  %v10629_v29 = vshrl.u32 %v7855_v32, 16 }
 0x32a   :  { %v2428_v55 = vor.u32 %v10259_v51, %v2425_v59  ;;  %2555 = vst [vmem:[#allocation2 + $0xa0] sm:$0xf] %v2554_v58  ;;  %v2800_v59 = vld [vmem:[#allocation2 + $0xa4] sm:$0x8]  ;;  %v2677_v51 = vpop.permute.xlu2 %2676  ;;  %v2905_v58 = vrot.slane %v10626_v34, 4  ;;  %v2910_v39 = vor.u32 %v2909_v15, %v2908_v22  ;;  %v2186_v4 = vsel %vm7720_vm1, %v2181_v20, %v2185_v14  ;;  %v5400_v34 = vld [vmem:[#allocation2 + $0x50] sm:$0xff] }
 0x32b   :  { %10625 = vst [vmem:[#allocation52_spill] sm:$0xff] %v8318_v57  ;;  %v2801_v30 = vsel %vm6097_vm14, 0, %v2800_v59  ;;  %v2914_v52 = vrot.slane %v10629_v29, 4  ;;  %v8342_v22 = vsel %vm5845_vm6, %v2902_v36, %v8299_v49  ;;  %v8346_v15 = vsel %vm5810_vm2, %v2341_v9, %v2348_v13  ;;  %5368 = vmatmul.msk.bf16.gmra.mxu1 %vm4551_vm13, %v5400_v34 }
 0x32c   :  { %2559 = vst [vmem:[#allocation2 + $0xa8] sm:$0xf] %v2558_v56  ;;  %v8332_v56 = vrot.slane %v2897_v38, 4  ;;  %v8336_v59 = vsel %vm5810_vm2, %v2421_v25, %v2428_v55  ;;  %v10633_v38 = vshrl.u32 %v7801_v11, 16  ;;  %v10268_v25 = vshrl.u32 %v7914_v12, 16  ;;  %2999 = vrot.lane.b32.xlu2 %v8342_v22, %s5546_s10 }
 0x32d   :  { %2756 = vst.msk [vmem:[#allocation2 + $0xb0] sm:$0xf] %vm10627_vm15, %v2677_v51  ;;  %v10269_v51 = vshrl.u32 %v7878_v16, 16  ;;  %v8356_v55 = vsel %vm5845_vm6, %v2893_v53, %v8220_v24  ;;  %v2357_v36 = vrot.slane %v8039_v41, 4  ;;  %v2906_v13 = vor.u32 %v2905_v58, %v8299_v49 }
 0x32e   :  { %2802 = vst [vmem:[#allocation2 + $0xa4] sm:$0x8] %v2801_v30  ;;  %v2361_v14 = vrot.slane %v10633_v38, 7  ;;  %v2450_v30 = vshll.u32 %v7878_v16, 16  ;;  %v2915_v9 = vor.u32 %v2914_v52, %v2912_v37  ;;  %v2911_v20 = vrot.slane %v2910_v39, 4  ;;  %2997 = vrot.lane.b32.xlu1 %v8332_v56, %s5546_s10  ;;  %2995 = vrot.lane.b32.xlu0 %v8356_v55, %s5546_s10 }
 0x32f   :  { %10630 = vst [vmem:[#allocation55_spill] sm:$0xff] %v8332_v56  ;;  %vm10635_vm15 = vcmask 19456   ;;  %v10636_v29 = vshll.u32 %v7801_v11, 16  ;;  %v10637_v53 = vshrl.u32 %v7849_v61, 16  ;;  %v10638_v49 = vshll.u32 %v7849_v61, 16 }
 0x330   :  { %10631 = vst [vmem:[#allocation13_spill] sm:$0xff] %v8336_v59  ;;  %v2573_v35 = vld [vmem:[#allocation2 + $0xc8] sm:$0xf]  ;;  %v2243_v11 = vld [vmem:[#allocation2 + $0xb8] sm:$0x1]  ;;  %v10640_v52 = vshll.u32 %v7796_v26, 16 }
 0x331   :  { %2187 = vst [vmem:[#allocation2 + $0x7c] sm:$0xf] %v2186_v4  ;;  %v2574_v41 = vsel %vm5940_vm10, %v8318_v57, %v2573_v35  ;;  %v2917_v24 = vrot.slane %v10637_v53, 4  ;;  %v2918_v58 = vrot.slane %v10638_v49, 5  ;;  %v10642_v4 = vshrl.u32 %v7889_v33, 16  ;;  %v2663_v49 = vpop.permute.xlu1 %2662 }
 0x332   :  { %10632 = vst [vmem:[#allocation16_spill] sm:$0xff] %v8342_v22  ;;  %v8381_v39 = vor.u32 %v10640_v52, %v8075_v31  ;;  %v2927_v38 = vrot.slane %v10266_v0, 5  ;;  %v2246_v35 = vld [vmem:[#allocation2 + $0xc0] sm:$0x1]  ;;  %v8395_v26 = vrot.slane %v10269_v51, 7  ;;  %v8399_v31 = vrot.slane %v10268_v25, 7  ;;  %v2683_v53 = vpop.permute.xlu2 %2682 }
 0x333   :  { %2746 = vst.msk [vmem:[#allocation2 + $0x88] sm:$0xf] %vm10598_vm11, %v2657_v1  ;;  %v2364_v1 = vor.u32 %v10636_v29, %v2361_v14  ;;  %vm10639_vm11 = vmmov %vm10635_vm15  ;;  %v2926_v34 = vrot.slane %v10642_v4, 4  ;;  %v8408_v52 = vrot.slane %v2915_v9, 4  ;;  %v8412_v4 = vsel %vm5845_vm6, %v2911_v20, %v2912_v37 }
 0x334   :  { %10634 = vst [vmem:[#allocation17_spill] sm:$0xff] %v8356_v55  ;;  %v2244_v0 = vsel %vm5866_vm8, 0, %v2243_v11  ;;  %v2919_v29 = vor.u32 %v2918_v58, %v2917_v24  ;;  %v10650_v25 = vshll.u32 %v7844_v28, 16  ;;  %v2247_v9 = vsel %vm5866_vm8, 0, %v2246_v35  ;;  %v2258_v35 = vld [vmem:[#allocation2 + $0xe0] sm:$0x1] }
 0x335   :  { %2580 = vst.msk [vmem:[#allocation2 + $0xd4] sm:$0xf] %vm10635_vm15, %v8336_v59  ;;  %v8391_v14 = vsel %vm5810_vm2, %v2357_v36, %v2364_v1  ;;  %vm10644_vm15 = vmmov %vm10639_vm11  ;;  %v2661_v36 = vpop.permute.xlu0 %2660  ;;  %v8406_v1 = vrot.slane %v2906_v13, 4  ;;  %v10272_v37 = vshll.u32 %v7883_v50, 16  ;;  %v2928_v20 = vor.u32 %v2927_v38, %v2926_v34  ;;  %3005 = vrot.lane.b32.xlu2 %v8408_v52, %s5546_s10 }
 0x336   :  { %2560 = vst.msk [vmem:[#allocation2 + $0xac] sm:$0xf] %vm10639_vm11, %v8346_v15  ;;  %vm10645_vm11 = vcmask 44056   ;;  %v2921_v51 = vrot.slane %v10650_v25, 5  ;;  %v10275_v11 = vshrl.u32 %v7883_v50, 16  ;;  %v10653_v24 = vshll.u32 %v7828_v45, 16  ;;  %3003 = vrot.lane.b32.xlu1 %v8412_v4, %s5546_s10 }
 0x337   :  { %10641 = vst [vmem:[#allocation12_spill] sm:$0xff] %v8381_v39  ;;  %vm10649_vm3 = vmmov %vm10645_vm11  ;;  %v2259_v45 = vsel %vm5866_vm8, 0, %v2258_v35  ;;  %3001 = vrot.lane.b32.xlu0 %v8406_v1, %s5546_s10  ;;  %v2929_v35 = vrot.slane %v2928_v20, 4  ;;  %v10661_v56 = vshll.u32 %v7955_v48, 16 }
 0x338   :  { %2575 = vst [vmem:[#allocation2 + $0xc8] sm:$0xf] %v2574_v41  ;;  %v5395_v41 = vld [vmem:[#allocation2 + $0x28] sm:$0xff]  ;;  %v8430_v58 = vor.u32 %v10653_v24, %v8174_v19  ;;  %v10655_v24 = vshrl.u32 %v7878_v16, 16  ;;  %v2932_v38 = vrot.slane %v10275_v11, 4  ;;  %v10656_v16 = vshll.u32 %v7920_v42, 16 }
 0x339   :  { %10643 = vst [vmem:[#allocation21_spill] sm:$0xff] %v8391_v14  ;;  %5363 = vmatmul.msk.bf16.gmra.mxu0 %vm4551_vm13, %v5395_v41  ;;  %v2920_v41 = vrot.slane %v2919_v29, 4  ;;  %v2669_v25 = vpop.permute.xlu1 %2668 }
 0x33a   :  { %2564 = vst.msk [vmem:[#allocation2 + $0xb4] sm:$0xf] %vm10644_vm15, %v8391_v14  ;;  %vm10652_vm15 = vmmov %vm10649_vm3  ;;  %v2935_v34 = vrot.slane %v10655_v24, 4  ;;  %v2689_v24 = vpop.permute.xlu2 %2688  ;;  %v10666_v14 = vshrl.u32 %v7822_v46, 16 }
 0x33b   :  { %2759 = vst.msk [vmem:[#allocation2 + $0xbc] sm:$0xf] %vm10645_vm11, %v2683_v53  ;;  %v10651_v53 = vshrl.u32 %v7844_v28, 16  ;;  %v8435_v28 = vor.u32 %v2450_v30, %v8395_v26  ;;  %vm10664_vm11 = vmmov %vm10649_vm3 }
 0x33c   :  { %10646 = vst [vmem:[#allocation19_spill] sm:$0xff] %v8406_v1  ;;  %v10659_v1 = vshll.u32 %v7909_v23, 16  ;;  %v2393_v27 = vrot.slane %v10666_v14, 7  ;;  %v10295_v14 = vshll.u32 %v7949_v3, 16 }
 0x33d   :  { %10647 = vst [vmem:[#allocation18_spill] sm:$0xff] %v8408_v52  ;;  %v2923_v13 = vrot.slane %v10651_v53, 4  ;;  %v2471_v53 = vshrl.u32 %v7909_v23, 16  ;;  %v5401_v52 = vld [vmem:[#allocation2 + $0x58] sm:$0xff] }
 0x33e   :  { %10648 = vst [vmem:[#allocation20_spill] sm:$0xff] %v8412_v4  ;;  %v8473_v11 = vrot.slane %v10659_v1, 5  ;;  %v2667_v4 = vpop.permute.xlu0 %2666  ;;  %v8484_v1 = vsel %vm5845_vm6, %v2920_v41, %v2921_v51  ;;  %5369 = vmatmul.msk.bf16.gmra.mxu1 %vm4551_vm13, %v5401_v52 }
 0x33f   :  { %2748 = vst.msk [vmem:[#allocation2 + $0x90] sm:$0xf] %vm10649_vm3, %v2661_v36  ;;  %v10276_v36 = vshrl.u32 %v7920_v42, 16  ;;  %v2950_v22 = vrot.slane %v2471_v53, 4  ;;  %v2473_v57 = vrot.slane %v2471_v53, 7  ;;  %3007 = vrot.lane.b32.xlu0 %v8484_v1, %s5546_s10 }
 0x340   :  { %2749 = vst.msk [vmem:[#allocation2 + $0x94] sm:$0xf] %vm10652_vm15, %v2663_v49  ;;  %v2936_v49 = vrot.slane %v2450_v30, 5  ;;  %v8465_v30 = vrot.slane %v10656_v16, 5  ;;  %v10660_v16 = vshrl.u32 %v7955_v48, 16  ;;  %vm10668_vm15 = vmmov %vm10649_vm3 }
 0x341   :  { %10654 = vst [vmem:[#allocation30_spill] sm:$0xff] %v8430_v58  ;;  %v8461_v29 = vrot.slane %v10276_v36, 4 }
 0x342   :  { %2245 = vst [vmem:[#allocation2 + $0xb8] sm:$0x1] %v2244_v0  ;;  %v2924_v0 = vor.u32 %v2923_v13, %v2921_v51  ;;  %v2809_v13 = vld [vmem:[#allocation2 + $0xbc] sm:$0x8]  ;;  %v2953_v55 = vrot.slane %v10660_v16, 4 }
 0x343   :  { %2248 = vst [vmem:[#allocation2 + $0xc0] sm:$0x1] %v2247_v9  ;;  %v2930_v9 = vrot.slane %v10272_v37, 5  ;;  %v2945_v37 = vrot.slane %v10658_v17, 5  ;;  %v2810_v36 = vsel %vm6097_vm14, 0, %v2809_v13  ;;  %v2937_v13 = vor.u32 %v2936_v49, %v2935_v34 }
 0x344   :  { %2260 = vst [vmem:[#allocation2 + $0xe0] sm:$0x1] %v2259_v45  ;;  %v10657_v45 = vshrl.u32 %v7914_v12, 16  ;;  %v8486_v59 = vrot.slane %v2924_v0, 4  ;;  %v2942_v51 = vor.u32 %v8461_v29, %v8465_v30  ;;  %v10670_v29 = vshrl.u32 %v7889_v33, 16 }
 0x345   :  { %2762 = vst.msk [vmem:[#allocation2 + $0xc8] sm:$0xf] %vm10649_vm3, %v2689_v24  ;;  %v8493_v16 = vsel %vm5845_vm6, %v2929_v35, %v2930_v9  ;;  %v2951_v35 = vor.u32 %v2950_v22, %v8473_v11  ;;  %v10669_v22 = vshll.u32 %v7909_v23, 16  ;;  %v2695_v23 = vpop.permute.xlu2 %2694 }
 0x346   :  { %v2944_v20 = vrot.slane %v10657_v45, 4  ;;  %v2954_v45 = vrot.slane %v10661_v56, 5  ;;  %2811 = vst [vmem:[#allocation2 + $0xbc] sm:$0x8] %v2810_v36  ;;  %v2933_v56 = vor.u32 %v2932_v38, %v2930_v9  ;;  %3011 = vrot.lane.b32.xlu2 %v8493_v16, %s5546_s10  ;;  %3009 = vrot.lane.b32.xlu1 %v8486_v59, %s5546_s10 }
 0x347   :  { %v2794_v17 = vld [vmem:[#allocation2 + $0x94] sm:$0x8]  ;;  %10662 = vst [vmem:[#allocation27_spill] sm:$0xff] %v8484_v1  ;;  %v10689_v1 = vshrl.u32 %v7883_v50, 16 }
 0x348   :  { %10663 = vst [vmem:[#allocation26_spill] sm:$0xff] %v8486_v59  ;;  %v2795_v24 = vsel %vm6097_vm14, 0, %v2794_v17  ;;  %v2946_v49 = vor.u32 %v2945_v37, %v2944_v20  ;;  %v2955_v0 = vor.u32 %v2954_v45, %v2953_v55  ;;  %v2938_v37 = vrot.slane %v2937_v13, 4 }
 0x349   :  { %2751 = vst.msk [vmem:[#allocation2 + $0x9c] sm:$0xf] %vm10664_vm11, %v2667_v4  ;;  %v2565_v36 = vld [vmem:[#allocation2 + $0xb8] sm:$0xf]  ;;  %v10667_v4 = vshrl.u32 %v7855_v32, 16  ;;  %v2469_v55 = vrot.slane %v8399_v31, 4  ;;  %vm10676_vm11 = vmmov %vm10649_vm3 }
 0x34a   :  { %10665 = vst [vmem:[#allocation29_spill] sm:$0xff] %v8493_v16  ;;  %v2566_v34 = vsel %vm5940_vm10, %v8381_v39, %v2565_v36  ;;  %v2569_v53 = vld [vmem:[#allocation2 + $0xc0] sm:$0xf]  ;;  %v8523_v20 = vrot.slane %v10670_v29, 7  ;;  %v10297_v45 = vshll.u32 %v7944_v21, 16  ;;  %v2389_v17 = vrot.slane %v8174_v19, 4  ;;  %v2673_v29 = vpop.permute.xlu0 %2672 }
 0x34b   :  { %2796 = vst [vmem:[#allocation2 + $0x94] sm:$0x8] %v2795_v24  ;;  %v2409_v41 = vrot.slane %v10667_v4, 7  ;;  %v2585_v38 = vld [vmem:[#allocation2 + $0xe0] sm:$0xf]  ;;  %v2570_v9 = vsel %vm5940_vm10, %v8430_v58, %v2569_v53  ;;  %v10671_v13 = vshll.u32 %v7822_v46, 16 }
 0x34c   :  { %2752 = vst.msk [vmem:[#allocation2 + $0xa0] sm:$0xf] %vm10668_vm15, %v2669_v25  ;;  %v2586_v52 = vsel %vm5940_vm10, %v8435_v28, %v2585_v38  ;;  %v2476_v25 = vor.u32 %v10669_v22, %v2473_v57  ;;  %v10672_v36 = vshrl.u32 %v7944_v21, 16  ;;  %v2675_v57 = vpop.permute.xlu1 %2674  ;;  %v5396_v53 = vld [vmem:[#allocation2 + $0x30] sm:$0xff]  ;;  %v8535_v4 = vrot.slane %v2933_v56, 4  ;;  %vm10679_vm15 = vmmov %vm10649_vm3 }
 0x34d   :  { %2567 = vst [vmem:[#allocation2 + $0xb8] sm:$0xf] %v2566_v34  ;;  %v2396_v24 = vor.u32 %v10671_v13, %v2393_v27  ;;  %v2405_v38 = vrot.slane %v8250_v6, 4  ;;  %v10674_v22 = vshll.u32 %v7855_v32, 16  ;;  %v8541_v19 = vrot.slane %v2942_v51, 4  ;;  %5364 = vmatmul.msk.bf16.gmra.mxu0 %vm4551_vm13, %v5396_v53 }
 0x34e   :  { %2587 = vst [vmem:[#allocation2 + $0xe0] sm:$0xf] %v2586_v52  ;;  %v8533_v34 = vrot.slane %v10672_v36, 7  ;;  %v8543_v46 = vrot.slane %v2946_v49, 4  ;;  %v2956_v27 = vrot.slane %v2955_v0, 4  ;;  %v8547_v13 = vrot.slane %v10295_v14, 5  ;;  %3013 = vrot.lane.b32.xlu0 %v8535_v4, %s5546_s10 }
 0x34f   :  { %10673 = vst [vmem:[#allocation33_spill] sm:$0xff] %v8535_v4  ;;  %v2412_v52 = vor.u32 %v10674_v22, %v2409_v41  ;;  %v8553_v32 = vsel %vm5845_vm6, %v2938_v37, %v8465_v30  ;;  %v8555_v6 = vrot.slane %v2951_v35, 4  ;;  %v8559_v51 = vsel %vm5810_vm2, %v2469_v55, %v2476_v25  ;;  %v2267_v37 = vld [vmem:[#allocation2 + $0xf8] sm:$0x1]  ;;  %v8579_v55 = vld [vmem:[%s10070_s1 + $0x10] sm:$0xf]  ;;  %3017 = vrot.lane.b32.xlu2 %v8541_v19, %s5546_s10 }
 0x350   :  { %2571 = vst [vmem:[#allocation2 + $0xc0] sm:$0xf] %v2570_v9  ;;  %v2797_v56 = vld [vmem:[#allocation2 + $0x9c] sm:$0x8]  ;;  %v10296_v49 = vshrl.u32 %v7949_v3, 16  ;;  %v8567_v0 = vsel %vm5810_vm2, %v2389_v17, %v2396_v24  ;;  %v10298_v35 = vshll.u32 %v7994_v10, 16  ;;  %v10683_v25 = vmov %v10672_v36  ;;  %3015 = vrot.lane.b32.xlu1 %v8553_v32, %s5546_s10 }
 0x351   :  { %2765 = vst.msk [vmem:[#allocation2 + $0xd4] sm:$0xf] %vm10649_vm3, %v2695_v23  ;;  %v2798_v41 = vsel %vm6097_vm14, 0, %v2797_v56  ;;  %v8574_v9 = vsel %vm5810_vm2, %v2405_v38, %v2412_v52  ;;  %vm10682_vm3 = vcmask 19456   ;;  %v2962_v17 = vrot.slane %v10683_v25, 4  ;;  %v5402_v30 = vld [vmem:[#allocation2 + $0x60] sm:$0xff] }
 0x352   :  { %10675 = vst [vmem:[#allocation28_spill] sm:$0xff] %v8541_v19  ;;  %v2268_v24 = vsel %vm5866_vm8, 0, %v2267_v37  ;;  %v5211_v36 = vld [vmem:[%s10070_s1 + $0x14] sm:$0xf]  ;;  %v8598_v23 = vrot.slane %v10296_v49, 4  ;;  %v2605_v38 = vshrl.u32 %v8579_v55, 16  ;;  %v2701_v37 = vpop.permute.xlu2 %2700  ;;  %5370 = vmatmul.msk.bf16.gmra.mxu1 %vm4551_vm13, %v5402_v30 }
 0x353   :  { %2754 = vst.msk [vmem:[#allocation2 + $0xa8] sm:$0xf] %vm10676_vm11, %v2673_v29  ;;  %vm10684_vm11 = vmmov %vm10682_vm3  ;;  %v2252_v53 = vld [vmem:[#allocation2 + $0xd0] sm:$0x1]  ;;  %v2613_v22 = vshrl.u32 %v5211_v36, 16  ;;  %v8607_v52 = vrot.slane %v10298_v35, 5  ;;  %v2679_v35 = vpop.permute.xlu0 %2678 }
 0x354   :  { %10677 = vst [vmem:[#allocation34_spill] sm:$0xff] %v8553_v32  ;;  %v5214_v29 = vld [vmem:[%s10070_s1 + $0x10] sm:$0xf]  ;;  %v2616_v56 = vshll.u32 %v5211_v36, 16  ;;  %v2681_v25 = vpop.permute.xlu1 %2680  ;;  %v8614_v14 = vrot.slane %v2605_v38, 7  ;;  %v8622_v32 = vsel %vm5845_vm6, %v2956_v27, %v8547_v13  ;;  %v10687_v36 = vshrl.u32 %v7994_v10, 16 }
 0x355   :  { %10678 = vst [vmem:[#allocation32_spill] sm:$0xff] %v8559_v51  ;;  %v2615_v49 = vrot.slane %v2613_v22, 7  ;;  %v2255_v38 = vld [vmem:[#allocation2 + $0xd8] sm:$0x1]  ;;  %v3124_v4 = vshrl.u32 %v5214_v29, 16  ;;  %v2253_v27 = vsel %vm5866_vm8, 0, %v2252_v53 }
 0x356   :  { %2755 = vst.msk [vmem:[#allocation2 + $0xac] sm:$0xf] %vm10679_vm15, %v2675_v57  ;;  %v2963_v57 = vrot.slane %v10297_v45, 5  ;;  %vm10685_vm15 = vmmov %vm10682_vm3  ;;  %v2968_v19 = vrot.slane %v10687_v36, 4  ;;  %v3127_v36 = vshll.u32 %v5214_v29, 16 }
 0x357   :  { %10680 = vst [vmem:[#allocation40_spill] sm:$0xff] %v8567_v0  ;;  %v2618_v16 = vor.u32 %v2616_v56, %v2615_v49  ;;  %v8646_v49 = vsel %vm5845_vm6, %v8543_v46, %v8473_v11  ;;  %3023 = vrot.lane.b32.xlu2 %v8622_v32, %s5546_s10  ;;  %v3126_v46 = vrot.slane %v3124_v4, 4  ;;  %v10695_v4 = vshll.u32 %v7849_v61, 16 }
 0x358   :  { %2799 = vst [vmem:[#allocation2 + $0x9c] sm:$0x8] %v2798_v41  ;;  %v2818_v41 = vld [vmem:[#allocation2 + $0xd4] sm:$0x8]  ;;  %3021 = vrot.lane.b32.xlu1 %v8555_v6, %s5546_s10  ;;  %3019 = vrot.lane.b32.xlu0 %v8646_v49, %s5546_s10  ;;  %v3129_v30 = vrot.slane %v3127_v36, 5 }
 0x359   :  { %10681 = vst [vmem:[#allocation35_spill] sm:$0xff] %v8574_v9  ;;  %v2819_v45 = vsel %vm6097_vm14, 0, %v2818_v41  ;;  %v2964_v41 = vor.u32 %v2963_v57, %v2962_v17 }
 0x35a   :  { %2592 = vst.msk [vmem:[#allocation2 + $0xec] sm:$0xf] %vm10682_vm3, %v8559_v51  ;;  %vm10686_vm3 = vcmask 44056   ;;  %v2441_v51 = vrot.slane %v10689_v1, 7  ;;  %v2960_v1 = vor.u32 %v8598_v23, %v8547_v13  ;;  %v2707_v29 = vpop.permute.xlu2 %2706  ;;  %v3130_v36 = vor.u32 %v3129_v30, %v3126_v46 }
 0x35b   :  { %2572 = vst.msk [vmem:[#allocation2 + $0xc4] sm:$0xf] %vm10684_vm11, %v8567_v0  ;;  %vm10688_vm11 = vmmov %vm10686_vm3  ;;  %v2965_v11 = vrot.slane %v2964_v41, 4  ;;  %v5397_v41 = vld [vmem:[#allocation2 + $0x38] sm:$0xff] }
 0x35c   :  { %2576 = vst.msk [vmem:[#allocation2 + $0xcc] sm:$0xf] %vm10685_vm15, %v8574_v9  ;;  %vm10692_vm15 = vmmov %vm10686_vm3  ;;  %v2687_v56 = vpop.permute.xlu1 %2686  ;;  %v3131_v46 = vrot.slane %v3130_v36, 4 }
 0x35d   :  { %2269 = vst [vmem:[#allocation2 + $0xf8] sm:$0x1] %v2268_v24  ;;  %v5215_v24 = vld [vmem:[%s10070_s1 + $0x14] sm:$0xf]  ;;  %v2803_v22 = vld [vmem:[#allocation2 + $0xac] sm:$0x8]  ;;  %v8686_v61 = vsel %vm5845_vm6, %v2965_v11, %v8607_v52  ;;  %5365 = vmatmul.msk.bf16.gmra.mxu0 %vm4551_vm13, %v5397_v41 }
 0x35e   :  { %2768 = vst.msk [vmem:[#allocation2 + $0xe0] sm:$0xf] %vm10686_vm3, %v2701_v37  ;;  %v2611_v37 = vrot.slane %v8614_v14, 4  ;;  %v2804_v59 = vsel %vm6097_vm14, 0, %v2803_v22  ;;  %v3133_v57 = vshll.u32 %v5215_v24, 16  ;;  %v3137_v53 = vshrl.u32 %v5215_v24, 16  ;;  %v2685_v22 = vpop.permute.xlu0 %2684 }
 0x35f   :  { %2820 = vst [vmem:[#allocation2 + $0xd4] sm:$0x8] %v2819_v45  ;;  %v10690_v45 = vshll.u32 %v7944_v21, 16  ;;  %v2969_v21 = vor.u32 %v2968_v19, %v8607_v52  ;;  %v2437_v19 = vrot.slane %v8523_v20, 4  ;;  %vm10694_vm3 = vcmask 19456  }
 0x360   :  { %2757 = vst.msk [vmem:[#allocation2 + $0xb4] sm:$0xf] %vm10688_vm11, %v2679_v35  ;;  %v2256_v35 = vsel %vm5866_vm8, 0, %v2255_v38  ;;  %v10696_v24 = vshll.u32 %v7889_v33, 16  ;;  %3027 = vrot.lane.b32.xlu1 %v8686_v61, %s5546_s10  ;;  %v2264_v41 = vld [vmem:[#allocation2 + $0xf0] sm:$0x1] }
 0x361   :  { %v8640_v17 = vor.u32 %v10690_v45, %v8533_v34  ;;  %2805 = vst [vmem:[#allocation2 + $0xac] sm:$0x8] %v2804_v59  ;;  %v2619_v59 = vsel %vm5810_vm2, %v2611_v37, %v2618_v16  ;;  %v10693_v16 = vshll.u32 %v7883_v50, 16  ;;  %v8678_v50 = vrot.slane %v2960_v1, 4 }
 0x362   :  { %2758 = vst.msk [vmem:[#allocation2 + $0xb8] sm:$0xf] %vm10692_vm15, %v2681_v25  ;;  %v8670_v25 = vor.u32 %v10695_v4, %v8257_v7  ;;  %v8675_v38 = vor.u32 %v10696_v24, %v8523_v20  ;;  %vm10698_vm15 = vmmov %vm10688_vm11  ;;  %v3135_v7 = vrot.slane %v3133_v57, 5  ;;  %v3139_v20 = vrot.slane %v3137_v53, 4 }
 0x363   :  { %10691 = vst [vmem:[#allocation10_spill] sm:$0xff] %v8640_v17  ;;  %v2444_v23 = vor.u32 %v10693_v16, %v2441_v51  ;;  %v8680_v51 = vrot.slane %v2969_v21, 4  ;;  %3025 = vrot.lane.b32.xlu0 %v8678_v50, %s5546_s10  ;;  %v2453_v53 = vrot.slane %v8395_v26, 4  ;;  %v2713_v16 = vpop.permute.xlu2 %2712 }
 0x364   :  { %2254 = vst [vmem:[#allocation2 + $0xd0] sm:$0x1] %v2253_v27  ;;  %v2597_v13 = vld [vmem:[#allocation2 + $0xf8] sm:$0xf] }
 0x365   :  { %2257 = vst [vmem:[#allocation2 + $0xd8] sm:$0x1] %v2256_v35  ;;  %v2598_v33 = vsel %vm5940_vm10, %v8640_v17, %v2597_v13  ;;  %v8696_v45 = vsel %vm5810_vm2, %v2437_v19, %v2444_v23  ;;  %v10701_v35 = vshrl.u32 %v7920_v42, 16  ;;  %3029 = vrot.lane.b32.xlu2 %v8680_v51, %s5546_s10  ;;  %v10703_v13 = vshll.u32 %v7920_v42, 16  ;;  %v2693_v23 = vpop.permute.xlu1 %2692 }
 0x366   :  { %2625 = vst.msk [vmem:[#allocation2 + $0x84] sm:$0xf] %vm10694_vm3, %v2619_v59  ;;  %vm10700_vm3 = vmmov %vm10688_vm11  ;;  %v3140_v59 = vor.u32 %v3139_v20, %v3135_v7  ;;  %v10706_v42 = vshrl.u32 %v7949_v3, 16 }
 0x367   :  { %2771 = vst.msk [vmem:[#allocation2 + $0xec] sm:$0xf] %vm10688_vm11, %v2707_v29  ;;  %v2806_v37 = vld [vmem:[#allocation2 + $0xb4] sm:$0x8]  ;;  %v2457_v52 = vrot.slane %v10701_v35, 7  ;;  %vm10702_vm11 = vcmask 19456  }
 0x368   :  { %10697 = vst [vmem:[#allocation39_spill] sm:$0xff] %v8680_v51  ;;  %v2807_v27 = vsel %vm6097_vm14, 0, %v2806_v37  ;;  %v2261_v29 = vld [vmem:[#allocation2 + $0xe8] sm:$0x1]  ;;  %v3141_v37 = vrot.slane %v3140_v59, 4  ;;  %v10707_v35 = vshrl.u32 %v7994_v10, 16 }
 0x369   :  { %2760 = vst.msk [vmem:[#allocation2 + $0xc0] sm:$0xf] %vm10698_vm15, %v2685_v22  ;;  %v2460_v30 = vor.u32 %v10703_v13, %v2457_v52  ;;  %v2691_v22 = vpop.permute.xlu0 %2690  ;;  %vm10705_vm15 = vmmov %vm10700_vm3  ;;  %v2265_v59 = vsel %vm5866_vm8, 0, %v2264_v41 }
 0x36a   :  { %10699 = vst [vmem:[#allocation15_spill] sm:$0xff] %v8686_v61  ;;  %v2505_v52 = vrot.slane %v10707_v35, 7  ;;  %3144 = vrot.lane.b32.xlu1 %v3141_v37, %s5546_s10 }
 0x36b   :  { %2761 = vst.msk [vmem:[#allocation2 + $0xc4] sm:$0xf] %vm10700_vm3, %v2687_v56  ;;  %v2577_v1 = vld [vmem:[#allocation2 + $0xd0] sm:$0xf]  ;;  %v10704_v56 = vshrl.u32 %v7955_v48, 16  ;;  %v8730_v36 = vsel %vm5810_vm2, %v2453_v53, %v2460_v30  ;;  %v2501_v53 = vrot.slane %v8533_v34, 4  ;;  %v2783_v30 = vpop.permute.xlu2 %2782 }
 0x36c   :  { %2808 = vst [vmem:[#allocation2 + $0xb4] sm:$0x8] %v2807_v27  ;;  %v2578_v21 = vsel %vm5940_vm10, %v8670_v25, %v2577_v1  ;;  %v2581_v11 = vld [vmem:[#allocation2 + $0xd8] sm:$0xf]  ;;  %v5403_v27 = vld [vmem:[#allocation2 + $0x68] sm:$0xff]  ;;  %v3136_v1 = vsel %vm5845_vm6, %v3131_v46, %v3135_v7  ;;  %v10710_v46 = vshll.u32 %v7949_v3, 16  ;;  %v4664_v3 = vpop.f32.mrf.mxu0 }
 0x36d   :  { %2599 = vst [vmem:[#allocation2 + $0xf8] sm:$0xf] %v2598_v33  ;;  %v2582_v57 = vsel %vm5940_vm10, %v8675_v38, %v2581_v11  ;;  %v2481_v4 = vrot.slane %v10704_v56, 7  ;;  %v2489_v33 = vrot.slane %v10706_v42, 7  ;;  %5371 = vmatmul.msk.bf16.gmra.mxu1 %vm4551_vm13, %v5403_v27  ;;  %3216 = vrot.lane.b32.xlu2 %v7643_v40, %s5547_s19  ;;  %v8748_v11 = vld [vmem:[%s10072_s3] ss:$0 sm:$0xff] }
 0x36e   :  { %2584 = vst.msk [vmem:[#allocation2 + $0xdc] sm:$0xf] %vm10702_vm11, %v8696_v45  ;;  %v2827_v19 = vld [vmem:[#allocation2 + $0xec] sm:$0x8]  ;;  %vm10708_vm11 = vmmov %vm10700_vm3  ;;  %3142 = vrot.lane.b32.xlu0 %v3136_v1, %s5546_s10  ;;  %v10711_v40 = vshll.u32 %v7994_v10, 16  ;;  %v4828_v34 = vmul.f32 %v8748_v11, %v4664_v3 }
 0x36f   :  { %2579 = vst [vmem:[#allocation2 + $0xd0] sm:$0xf] %v2578_v21  ;;  %v2828_v24 = vsel %vm6097_vm14, 0, %v2827_v19  ;;  %v2262_v21 = vsel %vm5866_vm8, 0, %v2261_v29  ;;  %v2485_v7 = vrot.slane %v2481_v4, 4  ;;  %v2699_v19 = vpop.permute.xlu1 %2698 }
 0x370   :  { %2583 = vst [vmem:[#allocation2 + $0xd8] sm:$0xf] %v2582_v57  ;;  %v2492_v57 = vor.u32 %v10710_v46, %v2489_v33  ;;  %v2508_v13 = vor.u32 %v10711_v40, %v2505_v52  ;;  %v2222_v29 = vld [vmem:[#allocation2 + $0x80] sm:$0x1]  ;;  %v2608_v33 = vshll.u32 %v8579_v55, 16 }
 0x371   :  { %2774 = vst.msk [vmem:[#allocation2 + $0xf8] sm:$0xf] %vm10705_vm15, %v2713_v16  ;;  %vm10709_vm15 = vcmask 19456   ;;  %v8761_v16 = vld [vmem:[%s10073_s4] ss:$0 sm:$0xff]  ;;  %v2223_v42 = vsel %vm5866_vm8, 0, %v2222_v29 }
 0x372   :  { %2829 = vst [vmem:[#allocation2 + $0xec] sm:$0x8] %v2828_v24  ;;  %v2812_v26 = vld [vmem:[#allocation2 + $0xc4] sm:$0x8]  ;;  %v8768_v10 = vsel %vm5810_vm2, %v2485_v7, %v2492_v57  ;;  %v10713_v24 = vshll.u32 %v7914_v12, 16  ;;  %v4896_v37 = vadd.f32 %v8761_v16, %v4828_v34  ;;  %3220 = vrot.lane.b32.xlu1 %v8161_v44, %s5547_s19  ;;  %vm5056_vm8 = vcmask 519168  }
 0x373   :  { %v2813_v20 = vsel %vm6097_vm14, 0, %v2812_v26  ;;  %2763 = vst.msk [vmem:[#allocation2 + $0xcc] sm:$0xf] %vm10700_vm3, %v2691_v22  ;;  %v8780_v26 = vsel %vm5810_vm2, %v2501_v53, %v2508_v13  ;;  %v2976_v1 = vpop.permute.xlu2 %2975  ;;  %v5404_v53 = vld [vmem:[#allocation2 + $0x70] sm:$0xff] }
 0x374   :  { %2814 = vst [vmem:[#allocation2 + $0xc4] sm:$0x8] %v2813_v20  ;;  %v8773_v22 = vor.u32 %v10713_v24, %v8399_v31  ;;  %v4960_v12 = vmax.f32 %v4896_v37, 0.0  ;;  %v10717_v20 = vshll.u32 %v7955_v48, 16  ;;  %v3070_v37 = vld [vmem:[#allocation2 + $0x9c] sm:$0xf] }
 0x375   :  { %2764 = vst.msk [vmem:[#allocation2 + $0xd0] sm:$0xf] %vm10708_vm11, %v2693_v23  ;;  %v2697_v23 = vpop.permute.xlu0 %2696  ;;  %vm10712_vm11 = vmmov %vm10700_vm3  ;;  %3222 = vrot.lane.b32.xlu2 %v8156_v8, %s5547_s19 }
 0x376   :  { %2588 = vst.msk [vmem:[#allocation2 + $0xe4] sm:$0xf] %vm10709_vm15, %v8730_v36  ;;  %vm10714_vm15 = vmmov %vm10700_vm3  ;;  %3218 = vrot.lane.b32.xlu0 %v7924_v43, %s5547_s19  ;;  %v8801_v27 = vor.u32 %v10717_v20, %v2481_v4  ;;  %v5024_v52 = vpack.c.bf16 %v4960_v12, %v4960_v12  ;;  %v4666_v43 = vpop.f32.mrf.mxu0  ;;  %v2610_v4 = vor.u32 %v2608_v33, %v8614_v14 }
 0x377   :  { %2263 = vst [vmem:[#allocation2 + $0xe8] sm:$0x1] %v2262_v21  ;;  %v2705_v21 = vpop.permute.xlu1 %2704  ;;  %v4829_v48 = vmul.f32 %v8748_v11, %v4666_v43 }
 0x378   :  { %2266 = vst [vmem:[#allocation2 + $0xf0] sm:$0x1] %v2265_v59 }
 0x379   :  { %2787 = vst.msk [vmem:[#allocation2 + $0x84] sm:$0xf] %vm10700_vm3, %v2783_v30  ;;  %vm10715_vm3 = vcmask 19456   ;;  %v4897_v40 = vadd.f32 %v8761_v16, %v4829_v48 }
 0x37a   :  { %v2815_v56 = vld [vmem:[#allocation2 + $0xcc] sm:$0x8]  ;;  %2766 = vst.msk [vmem:[#allocation2 + $0xd8] sm:$0xf] %vm10712_vm11, %v2697_v23  ;;  %vm10716_vm11 = vmmov %vm10715_vm3  ;;  %3226 = vrot.lane.b32.xlu1 %v8236_v5, %s5547_s19 }
 0x37b   :  { %v2816_v41 = vsel %vm6097_vm14, 0, %v2815_v56  ;;  %2767 = vst.msk [vmem:[#allocation2 + $0xdc] sm:$0xf] %vm10714_vm15, %v2699_v19  ;;  %vm10718_vm15 = vcmask 68656   ;;  %v4961_v14 = vmax.f32 %v4897_v40, 0.0  ;;  %v2982_v29 = vpop.permute.xlu2 %2981 }
 0x37c   :  { %2817 = vst [vmem:[#allocation2 + $0xcc] sm:$0x8] %v2816_v41 }
 0x37d   :  { %2596 = vst.msk [vmem:[#allocation2 + $0xf4] sm:$0xf] %vm10715_vm3, %v8768_v10  ;;  %v2703_v59 = vpop.permute.xlu0 %2702  ;;  %vm10719_vm3 = vcmask 44056   ;;  %5372 = vmatmul.msk.bf16.gmra.mxu1 %vm4551_vm13, %v5404_v53  ;;  %3228 = vrot.lane.b32.xlu2 %v8241_v62, %s5547_s19  ;;  %v5025_v3 = vpack.c.bf16 %v4961_v14, %v4961_v14  ;;  %v10731_v14 = vld [vmem:[#allocation38_spill] sm:$0xff] }
 0x37e   :  { %v2589_v31 = vld [vmem:[#allocation2 + $0xe8] sm:$0xf]  ;;  %2600 = vst.msk [vmem:[#allocation2 + $0xfc] sm:$0xf] %vm10716_vm11, %v8780_v26  ;;  %vm10720_vm11 = vmmov %vm10719_vm3  ;;  %3224 = vrot.lane.b32.xlu0 %v7978_v60, %s5547_s19 }
 0x37f   :  { %v2590_v54 = vsel %vm5940_vm10, %v8773_v22, %v2589_v31  ;;  %2224 = vst [vmem:[#allocation2 + $0x80] sm:$0x1] %v2223_v42  ;;  %v2593_v7 = vld [vmem:[#allocation2 + $0xf0] sm:$0xf]  ;;  %v2711_v56 = vpop.permute.xlu1 %2710  ;;  %v4669_v42 = vpop.f32.mrf.mxu0  ;;  %v3071_v31 = vsel %vm6627_vm4, %v2982_v29, %v3070_v37 }
 0x380   :  { %v2788_v35 = vld [vmem:[#allocation2 + $0x84] sm:$0x8]  ;;  %2591 = vst [vmem:[#allocation2 + $0xe8] sm:$0xf] %v2590_v54  ;;  %v2594_v13 = vsel %vm5940_vm10, %v8801_v27, %v2593_v7  ;;  %v4830_v18 = vmul.f32 %v8748_v11, %v4669_v42 }
 0x381   :  { %v2789_v55 = vsel %vm6097_vm14, 0, %v2788_v35  ;;  %3065 = vst.msk [vmem:[#allocation2 + $0x90] sm:$0xf] %vm10718_vm15, %v2976_v1  ;;  %vm10722_vm15 = vmmov %vm10719_vm3  ;;  %v10726_v1 = vld [vmem:[#allocation23_spill] sm:$0xff] }
 0x382   :  { %2790 = vst [vmem:[#allocation2 + $0x84] sm:$0x8] %v2789_v55  ;;  %v2821_v46 = vld [vmem:[#allocation2 + $0xdc] sm:$0x8]  ;;  %v4898_v54 = vadd.f32 %v8761_v16, %v4830_v18  ;;  %v3062_v18 = vld [vmem:[#allocation2 + $0x8c] sm:$0xf] }
 0x383   :  { %v2822_v57 = vsel %vm6097_vm14, 0, %v2821_v46  ;;  %5057 = vst.msk [vmem:[#allocation3] sm:$0xf] %vm5056_vm8, %v5024_v52  ;;  %v10725_v52 = vld [vmem:[#allocation54_spill] sm:$0xff] }
 0x384   :  { %2823 = vst [vmem:[#allocation2 + $0xdc] sm:$0x8] %v2822_v57  ;;  %v4962_v35 = vmax.f32 %v4898_v54, 0.0  ;;  %3232 = vrot.lane.b32.xlu1 %v10725_v52, %s5547_s19  ;;  %v5405_v57 = vld [vmem:[#allocation2 + $0x78] sm:$0xff] }
 0x385   :  { %2769 = vst.msk [vmem:[#allocation2 + $0xe4] sm:$0xf] %vm10719_vm3, %v2703_v59  ;;  %v2709_v41 = vpop.permute.xlu0 %2708  ;;  %3234 = vrot.lane.b32.xlu2 %v8346_v15, %s5547_s19  ;;  %v2988_v59 = vpop.permute.xlu2 %2987 }
 0x386   :  { %2770 = vst.msk [vmem:[#allocation2 + $0xe8] sm:$0xf] %vm10720_vm11, %v2705_v21  ;;  %v2622_v30 = vld [vmem:[#allocation2 + $0x80] sm:$0xf]  ;;  %3230 = vrot.lane.b32.xlu0 %v10726_v1, %s5547_s19  ;;  %v5026_v55 = vpack.c.bf16 %v4962_v35, %v4962_v35 }
 0x387   :  { %2595 = vst [vmem:[#allocation2 + $0xf0] sm:$0xf] %v2594_v13  ;;  %v2623_v19 = vsel %vm5940_vm10, %v2610_v4, %v2622_v30  ;;  %vm10724_vm10 = vmmov %vm10719_vm3  ;;  %v2781_v43 = vpop.permute.xlu1 %2780  ;;  %vm10727_vm3 = vcmask 68656   ;;  %v4671_v48 = vpop.f32.mrf.mxu0  ;;  %v10730_v13 = vld [vmem:[#allocation21_spill] sm:$0xff] }
 0x388   :  { %v3158_v23 = vld [vmem:[#allocation2 + $0x90] sm:$0x1]  ;;  %2624 = vst [vmem:[#allocation2 + $0x80] sm:$0xf] %v2623_v19  ;;  %v4831_v4 = vmul.f32 %v8748_v11, %v4671_v48  ;;  %vm10728_vm11 = vmmov %vm10724_vm10 }
 0x389   :  { %v3159_v24 = vsel %vm6635_vm7, 0, %v3158_v23  ;;  %2773 = vst.msk [vmem:[#allocation2 + $0xf4] sm:$0xf] %vm10722_vm15, %v2711_v56  ;;  %vm10729_vm15 = vmmov %vm10724_vm10 }
 0x38a   :  { %3160 = vst [vmem:[#allocation2 + $0x90] sm:$0x1] %v3159_v24  ;;  %v4899_v53 = vadd.f32 %v8761_v16, %v4831_v4 }
 0x38b   :  { %5058 = vst.msk [vmem:[#allocation3 + $0x4] sm:$0xf] %vm5056_vm8, %v5025_v3 }
 0x38c   :  { %v2824_v33 = vld [vmem:[#allocation2 + $0xe4] sm:$0x8]  ;;  %2772 = vst.msk [vmem:[#allocation2 + $0xf0] sm:$0xf] %vm10724_vm10, %v2709_v41  ;;  %v4963_v40 = vmax.f32 %v4899_v53, 0.0  ;;  %3238 = vrot.lane.b32.xlu1 %v10730_v13, %s5547_s19  ;;  %vm10732_vm10 = vmmov %vm10727_vm3 }
 0x38d   :  { %v2825_v20 = vsel %vm6097_vm14, 0, %v2824_v33  ;;  %3072 = vst [vmem:[#allocation2 + $0x9c] sm:$0xf] %v3071_v31  ;;  %v2715_v46 = vpop.permute.xlu0 %2714  ;;  %5373 = vmatmul.msk.bf16.gmra.mxu1 %vm4551_vm13, %v5405_v57  ;;  %3240 = vrot.lane.b32.xlu2 %v8381_v39, %s5547_s19  ;;  %v2994_v23 = vpop.permute.xlu2 %2993  ;;  %v3082_v41 = vld [vmem:[#allocation2 + $0xb4] sm:$0xf]  ;;  %v10780_v39 = vld [vmem:[#allocation53_spill] sm:$0xff] }
 0x38e   :  { %2826 = vst [vmem:[#allocation2 + $0xe4] sm:$0x8] %v2825_v20  ;;  %3236 = vrot.lane.b32.xlu0 %v10731_v14, %s5547_s19  ;;  %v5027_v19 = vpack.c.bf16 %v4963_v40, %v4963_v40  ;;  %v3083_v31 = vsel %vm6627_vm4, %v2994_v23, %v3082_v41  ;;  %v4704_v57 = vpop.f32.mrf.mxu1 }
 0x38f   :  { %3077 = vst.msk [vmem:[#allocation2 + $0xa8] sm:$0xf] %vm10727_vm3, %v2988_v59  ;;  %v2974_v3 = vpop.permute.xlu1 %2973  ;;  %v4674_v24 = vpop.f32.mrf.mxu0  ;;  %v4844_v40 = vmul.f32 %v8748_v11, %v4704_v57 }
 0x390   :  { %v2830_v21 = vld [vmem:[#allocation2 + $0xf4] sm:$0x8]  ;;  %5059 = vst.msk [vmem:[#allocation3 + $0x8] sm:$0xf] %vm5056_vm8, %v5026_v55  ;;  %v4832_v37 = vmul.f32 %v8748_v11, %v4674_v24  ;;  %v3063_v54 = vsel %vm6627_vm4, %v2974_v3, %v3062_v18 }
 0x391   :  { %v2831_v7 = vsel %vm6097_vm14, 0, %v2830_v21  ;;  %2775 = vst.msk [vmem:[#allocation2 + $0xfc] sm:$0xf] %vm10728_vm11, %v2715_v46  ;;  %v4912_v23 = vadd.f32 %v8761_v16, %v4844_v40  ;;  %vm10736_vm11 = vmmov %vm10727_vm3 }
 0x392   :  { %2832 = vst [vmem:[#allocation2 + $0xf4] sm:$0x8] %v2831_v7  ;;  %v4900_v20 = vadd.f32 %v8761_v16, %v4832_v37  ;;  %v3066_v7 = vld [vmem:[#allocation2 + $0x94] sm:$0xf] }
 0x393   :  { %2786 = vst.msk [vmem:[#allocation2 + $0x80] sm:$0xf] %vm10729_vm15, %v2781_v43  ;;  %vm10738_vm15 = vmmov %vm10727_vm3 }
 0x394   :  { %5060 = vst.msk [vmem:[#allocation3 + $0xc] sm:$0xf] %vm5056_vm8, %v5027_v19  ;;  %v4964_v35 = vmax.f32 %v4900_v20, 0.0  ;;  %3244 = vrot.lane.b32.xlu1 %v8430_v58, %s5547_s19 }
 0x395   :  { %v2972_v56 = vpop.permute.xlu0 %2971  ;;  %3084 = vst [vmem:[#allocation2 + $0xb4] sm:$0xf] %v3083_v31  ;;  %3246 = vrot.lane.b32.xlu2 %v8567_v0, %s5547_s19  ;;  %v3000_v55 = vpop.permute.xlu2 %2999 }
 0x396   :  { %v3167_v30 = vld [vmem:[#allocation2 + $0xa8] sm:$0x1]  ;;  %3061 = vst.msk [vmem:[#allocation2 + $0x88] sm:$0xf] %vm10732_vm10, %v2972_v56  ;;  %3242 = vrot.lane.b32.xlu0 %v10733_v2, %s5547_s19  ;;  %v5028_v21 = vpack.c.bf16 %v4964_v35, %v4964_v35  ;;  %v10735_v56 = vld [vmem:[#allocation52_spill] sm:$0xff]  ;;  %v4706_v35 = vpop.f32.mrf.mxu1  ;;  %vm10739_vm10 = vmmov %vm10727_vm3 }
 0x397   :  { %v3168_v29 = vsel %vm6635_vm7, 0, %v3167_v30  ;;  %3064 = vst [vmem:[#allocation2 + $0x8c] sm:$0xf] %v3063_v54  ;;  %v2980_v59 = vpop.permute.xlu1 %2979  ;;  %v4676_v46 = vpop.f32.mrf.mxu0 }
 0x398   :  { %3169 = vst [vmem:[#allocation2 + $0xa8] sm:$0x1] %v3168_v29  ;;  %v2833_v42 = vld [vmem:[#allocation2 + $0xfc] sm:$0x8]  ;;  %v4833_v4 = vmul.f32 %v8748_v11, %v4676_v46  ;;  %v4976_v29 = vmax.f32 %v4912_v23, 0.0 }
 0x399   :  { %v2834_v33 = vsel %vm6097_vm14, 0, %v2833_v42  ;;  %vm10734_vm14 = vmmov %vm10727_vm3  ;;  %5061 = vst.msk [vmem:[#allocation3 + $0x10] sm:$0xf] %vm5056_vm8, %v5028_v21  ;;  %v3074_v46 = vld [vmem:[#allocation2 + $0xa4] sm:$0xf] }
 0x39a   :  { %2835 = vst [vmem:[#allocation2 + $0xfc] sm:$0x8] %v2834_v33  ;;  %v4901_v19 = vadd.f32 %v8761_v16, %v4833_v4  ;;  %v5040_v18 = vpack.c.bf16 %v4976_v29, %v4976_v29 }
 0x39b   :  { %3089 = vst.msk [vmem:[#allocation2 + $0xc0] sm:$0xf] %vm10734_vm14, %v3000_v55  ;;  %v3094_v55 = vld [vmem:[#allocation2 + $0xcc] sm:$0xf]  ;;  %vm10741_vm14 = vmmov %vm10727_vm3 }
 0x39c   :  { %3069 = vst.msk [vmem:[#allocation2 + $0x98] sm:$0xf] %vm10727_vm3, %v2980_v59  ;;  %v4965_v3 = vmax.f32 %v4901_v19, 0.0  ;;  %3250 = vrot.lane.b32.xlu1 %v8574_v9, %s5547_s19  ;;  %v4845_v59 = vmul.f32 %v8748_v11, %v4706_v35 }
 0x39d   :  { %v2978_v43 = vpop.permute.xlu0 %2977  ;;  %v3155_v53 = vld [vmem:[#allocation2 + $0x88] sm:$0x1]  ;;  %3252 = vrot.lane.b32.xlu2 %v8670_v25, %s5547_s19  ;;  %v3006_v37 = vpop.permute.xlu2 %3005  ;;  %5073 = vst.msk [vmem:[#allocation3 + $0x40] sm:$0xf] %vm5056_vm8, %v5040_v18 }
 0x39e   :  { %v3067_v48 = vsel %vm6627_vm4, %v2978_v43, %v3066_v7  ;;  %v3156_v30 = vsel %vm6635_vm7, 0, %v3155_v53  ;;  %3248 = vrot.lane.b32.xlu0 %v10735_v56, %s5547_s19  ;;  %v5029_v41 = vpack.c.bf16 %v4965_v3, %v4965_v3  ;;  %v3095_v7 = vsel %vm6627_vm4, %v3006_v37, %v3094_v55  ;;  %v4709_v18 = vpop.f32.mrf.mxu1 }
 0x39f   :  { %3068 = vst [vmem:[#allocation2 + $0x94] sm:$0xf] %v3067_v48  ;;  %v2986_v42 = vpop.permute.xlu1 %2985  ;;  %v4679_v54 = vpop.f32.mrf.mxu0  ;;  %v4913_v57 = vadd.f32 %v8761_v16, %v4845_v59 }
 0x3a0   :  { %3157 = vst [vmem:[#allocation2 + $0x88] sm:$0x1] %v3156_v30  ;;  %v4834_v20 = vmul.f32 %v8748_v11, %v4679_v54  ;;  %v3075_v4 = vsel %vm6627_vm4, %v2986_v42, %v3074_v46  ;;  %v10737_v30 = vld [vmem:[#allocation13_spill] sm:$0xff] }
 0x3a1   :  { %5062 = vst.msk [vmem:[#allocation3 + $0x14] sm:$0xf] %vm5056_vm8, %v5029_v41  ;;  %v4977_v40 = vmax.f32 %v4913_v57, 0.0  ;;  %v3078_v41 = vld [vmem:[#allocation2 + $0xac] sm:$0xf] }
 0x3a2   :  { %v3176_v24 = vld [vmem:[#allocation2 + $0xc0] sm:$0x1]  ;;  %v4902_v48 = vadd.f32 %v8761_v16, %v4834_v20  ;;  %3096 = vst [vmem:[#allocation2 + $0xcc] sm:$0xf] %v3095_v7 }
 0x3a3   :  { %v3177_v31 = vsel %vm6635_vm7, 0, %v3176_v24  ;;  %v3161_v21 = vld [vmem:[#allocation2 + $0x98] sm:$0x1]  ;;  %3076 = vst [vmem:[#allocation2 + $0xa4] sm:$0xf] %v3075_v4  ;;  %v5041_v29 = vpack.c.bf16 %v4977_v40, %v4977_v40 }
 0x3a4   :  { %3178 = vst [vmem:[#allocation2 + $0xc0] sm:$0x1] %v3177_v31  ;;  %v3162_v43 = vsel %vm6635_vm7, 0, %v3161_v21  ;;  %v4966_v53 = vmax.f32 %v4902_v48, 0.0  ;;  %3256 = vrot.lane.b32.xlu1 %v8675_v38, %s5547_s19 }
 0x3a5   :  { %v2984_v33 = vpop.permute.xlu0 %2983  ;;  %3163 = vst [vmem:[#allocation2 + $0x98] sm:$0x1] %v3162_v43  ;;  %3258 = vrot.lane.b32.xlu2 %v8696_v45, %s5547_s19  ;;  %v3012_v23 = vpop.permute.xlu2 %3011  ;;  %v8935_v43 = vld [vmem:[%s10069_s0 + $0xf8] sm:$0xf] }
 0x3a6   :  { %3073 = vst.msk [vmem:[#allocation2 + $0xa0] sm:$0xf] %vm10736_vm11, %v2984_v33  ;;  %3254 = vrot.lane.b32.xlu0 %v10737_v30, %s5547_s19  ;;  %v5030_v19 = vpack.c.bf16 %v4966_v53, %v4966_v53  ;;  %v4846_v33 = vmul.f32 %v8748_v11, %v4709_v18  ;;  %vm10745_vm11 = vmmov %vm10727_vm3 }
 0x3a7   :  { %v2992_v3 = vpop.permute.xlu1 %2991  ;;  %3101 = vst.msk [vmem:[#allocation2 + $0xd8] sm:$0xf] %vm10738_vm15, %v3012_v23  ;;  %v4681_v37 = vpop.f32.mrf.mxu0  ;;  %vm10747_vm15 = vmmov %vm10727_vm3 }
 0x3a8   :  { %5063 = vst.msk [vmem:[#allocation3 + $0x18] sm:$0xf] %vm5056_vm8, %v5030_v19  ;;  %v4835_v31 = vmul.f32 %v8748_v11, %v4681_v37  ;;  %v4914_v35 = vadd.f32 %v8761_v16, %v4846_v33 }
 0x3a9   :  { %5074 = vst.msk [vmem:[#allocation3 + $0x44] sm:$0xf] %vm5056_vm8, %v5041_v29  ;;  %v10316_v29 = vshrl.u32 %v8935_v43, 16 }
 0x3aa   :  { %v4903_v54 = vadd.f32 %v8761_v16, %v4835_v31  ;;  %3081 = vst.msk [vmem:[#allocation2 + $0xb0] sm:$0xf] %vm10739_vm10, %v2992_v3  ;;  %v4978_v59 = vmax.f32 %v4914_v35, 0.0  ;;  %v4711_v3 = vpop.f32.mrf.mxu1  ;;  %v3086_v31 = vld [vmem:[#allocation2 + $0xbc] sm:$0xf]  ;;  %vm10748_vm10 = vmmov %vm10727_vm3 }
 0x3ab   :  { %10740 = vst [vmem:[#allocation41_spill] sm:$0xff] %v8935_v43  ;;  %v8956_v35 = vld [vmem:[%s10069_s0 + $0xfc] sm:$0xf] }
 0x3ac   :  { %v4967_v55 = vmax.f32 %v4903_v54, 0.0  ;;  %3262 = vrot.lane.b32.xlu1 %v8730_v36, %s5547_s19  ;;  %v5042_v53 = vpack.c.bf16 %v4978_v59, %v4978_v59  ;;  %10742 = vst [vmem:[#allocation22_spill] sm:$0xff] %v8956_v35  ;;  %v10315_v59 = vshll.u32 %v8935_v43, 16 }
 0x3ad   :  { %v2990_v24 = vpop.permute.xlu0 %2989  ;;  %v3164_v20 = vld [vmem:[#allocation2 + $0xa0] sm:$0x1]  ;;  %3264 = vrot.lane.b32.xlu2 %v8773_v22, %s5547_s19  ;;  %v3018_v48 = vpop.permute.xlu2 %3017 }
 0x3ae   :  { %v3079_v42 = vsel %vm6627_vm4, %v2990_v24, %v3078_v41  ;;  %v3165_v21 = vsel %vm6635_vm7, 0, %v3164_v20  ;;  %3260 = vrot.lane.b32.xlu0 %v8435_v28, %s5547_s19  ;;  %v3185_v7 = vld [vmem:[#allocation2 + $0xd8] sm:$0x1]  ;;  %v5031_v46 = vpack.c.bf16 %v4967_v55, %v4967_v55  ;;  %v3106_v24 = vld [vmem:[#allocation2 + $0xe4] sm:$0xf]  ;;  %v4847_v41 = vmul.f32 %v8748_v11, %v4711_v3 }
 0x3af   :  { %3080 = vst [vmem:[#allocation2 + $0xac] sm:$0xf] %v3079_v42  ;;  %v2998_v4 = vpop.permute.xlu1 %2997  ;;  %v3186_v57 = vsel %vm6635_vm7, 0, %v3185_v7  ;;  %v4684_v19 = vpop.f32.mrf.mxu0  ;;  %v3107_v42 = vsel %vm6627_vm4, %v3018_v48, %v3106_v24  ;;  %v3203_v55 = vrot.slane %v10316_v29, 7 }
 0x3b0   :  { %3166 = vst [vmem:[#allocation2 + $0xa0] sm:$0x1] %v3165_v21  ;;  %v4836_v23 = vmul.f32 %v8748_v11, %v4684_v19  ;;  %v3087_v54 = vsel %vm6627_vm4, %v2998_v4, %v3086_v31  ;;  %v4915_v20 = vadd.f32 %v8761_v16, %v4847_v41 }
 0x3b1   :  { %3187 = vst [vmem:[#allocation2 + $0xd8] sm:$0x1] %v3186_v57  ;;  %v3170_v37 = vld [vmem:[#allocation2 + $0xb0] sm:$0x1] }
 0x3b2   :  { %5064 = vst.msk [vmem:[#allocation3 + $0x1c] sm:$0xf] %vm5056_vm8, %v5031_v46  ;;  %v4904_v18 = vadd.f32 %v8761_v16, %v4836_v23  ;;  %v3171_v33 = vsel %vm6635_vm7, 0, %v3170_v37  ;;  %v4979_v7 = vmax.f32 %v4915_v20, 0.0  ;;  %v10743_v46 = vld [vmem:[#allocation32_spill] sm:$0xff]  ;;  %v4714_v37 = vpop.f32.mrf.mxu1  ;;  %v10314_v20 = vshll.u32 %v8956_v35, 16 }
 0x3b3   :  { %5075 = vst.msk [vmem:[#allocation3 + $0x48] sm:$0xf] %vm5056_vm8, %v5042_v53  ;;  %v10313_v53 = vshrl.u32 %v8956_v35, 16  ;;  %v3090_v23 = vld [vmem:[#allocation2 + $0xc4] sm:$0xf]  ;;  %v4848_v31 = vmul.f32 %v8748_v11, %v4714_v37 }
 0x3b4   :  { %3172 = vst [vmem:[#allocation2 + $0xb0] sm:$0x1] %v3171_v33  ;;  %v4968_v21 = vmax.f32 %v4904_v18, 0.0  ;;  %3268 = vrot.lane.b32.xlu1 %v8801_v27, %s5547_s19 }
 0x3b5   :  { %v2996_v40 = vpop.permute.xlu0 %2995  ;;  %3270 = vrot.lane.b32.xlu2 %v8768_v10, %s5547_s19  ;;  %3108 = vst [vmem:[#allocation2 + $0xe4] sm:$0xf] %v3107_v42  ;;  %v3024_v4 = vpop.permute.xlu2 %3023  ;;  %v8975_v42 = vor.u32 %v10315_v59, %v3203_v55 }
 0x3b6   :  { %3085 = vst.msk [vmem:[#allocation2 + $0xb8] sm:$0xf] %vm10741_vm14, %v2996_v40  ;;  %3266 = vrot.lane.b32.xlu0 %v10743_v46, %s5547_s19  ;;  %v5032_v48 = vpack.c.bf16 %v4968_v21, %v4968_v21  ;;  %v5043_v40 = vpack.c.bf16 %v4979_v7, %v4979_v7  ;;  %v4916_v7 = vadd.f32 %v8761_v16, %v4848_v31  ;;  %vm10749_vm14 = vcmask 93256  }
 0x3b7   :  { %3088 = vst [vmem:[#allocation2 + $0xbc] sm:$0xf] %v3087_v54  ;;  %v3004_v57 = vpop.permute.xlu1 %3003  ;;  %v4686_v3 = vpop.f32.mrf.mxu0  ;;  %v3211_v54 = vrot.slane %v10313_v53, 7 }
 0x3b8   :  { %3113 = vst.msk [vmem:[#allocation2 + $0xf0] sm:$0xf] %vm10727_vm3, %v3024_v4  ;;  %v4837_v41 = vmul.f32 %v8748_v11, %v4686_v3  ;;  %v4980_v4 = vmax.f32 %v4916_v7, 0.0  ;;  %v3118_v7 = vld [vmem:[#allocation2 + $0xfc] sm:$0xf] }
 0x3b9   :  { %5065 = vst.msk [vmem:[#allocation3 + $0x20] sm:$0xf] %vm5056_vm8, %v5032_v48 }
 0x3ba   :  { %10744 = vst [vmem:[#allocation43_spill] sm:$0xff] %v8975_v42  ;;  %v4905_v33 = vadd.f32 %v8761_v16, %v4837_v41  ;;  %v5044_v37 = vpack.c.bf16 %v4980_v4, %v4980_v4 }
 0x3bb   :  { %5076 = vst.msk [vmem:[#allocation3 + $0x4c] sm:$0xf] %vm5056_vm8, %v5043_v40 }
 0x3bc   :  { %3093 = vst.msk [vmem:[#allocation2 + $0xc8] sm:$0xf] %vm10745_vm11, %v3004_v57  ;;  %v4969_v48 = vmax.f32 %v4905_v33, 0.0  ;;  %3274 = vrot.lane.b32.xlu1 %v8780_v26, %s5547_s19  ;;  %v3214_v57 = vor.u32 %v10314_v20, %v3211_v54  ;;  %v3098_v54 = vld [vmem:[#allocation2 + $0xd4] sm:$0xf]  ;;  %vm10750_vm11 = vmmov %vm10727_vm3 }
 0x3bd   :  { %v3002_v19 = vpop.permute.xlu0 %3001  ;;  %v3173_v18 = vld [vmem:[#allocation2 + $0xb8] sm:$0x1]  ;;  %3276 = vrot.lane.b32.xlu2 %v8975_v42, %s5547_s19  ;;  %5077 = vst.msk [vmem:[#allocation3 + $0x50] sm:$0xf] %vm5056_vm8, %v5044_v37 }
 0x3be   :  { %v3091_v24 = vsel %vm6627_vm4, %v3002_v19, %v3090_v23  ;;  %v3174_v21 = vsel %vm6635_vm7, 0, %v3173_v18  ;;  %3272 = vrot.lane.b32.xlu0 %v8640_v17, %s5547_s19  ;;  %v5033_v19 = vpack.c.bf16 %v4969_v48, %v4969_v48 }
 0x3bf   :  { %3092 = vst [vmem:[#allocation2 + $0xc4] sm:$0xf] %v3091_v24  ;;  %v3194_v40 = vld [vmem:[#allocation2 + $0xf0] sm:$0x1]  ;;  %v3030_v23 = vpop.permute.xlu2 %3029  ;;  %v3010_v3 = vpop.permute.xlu1 %3009  ;;  %v3207_v24 = vrot.slane %v3203_v55, 4 }
 0x3c0   :  { %3175 = vst [vmem:[#allocation2 + $0xb8] sm:$0x1] %v3174_v21  ;;  %v3195_v41 = vsel %vm6635_vm7, 0, %v3194_v40  ;;  %v4689_v18 = vpop.f32.mrf.mxu0  ;;  %v4716_v21 = vpop.f32.mrf.mxu1  ;;  %v3119_v55 = vsel %vm6627_vm4, %v3030_v23, %v3118_v7  ;;  %v5476_v23 = vld [vmem:[%s10069_s0 + $0x84] sm:$0xf] }
 0x3c1   :  { %3196 = vst [vmem:[#allocation2 + $0xf0] sm:$0x1] %v3195_v41  ;;  %v4838_v33 = vmul.f32 %v8748_v11, %v4689_v18  ;;  %v4849_v48 = vmul.f32 %v8748_v11, %v4716_v21  ;;  %v9006_v40 = vsel %vm5810_vm2, %v3207_v24, %v3214_v57  ;;  %v5477_v24 = vld [vmem:[%s10069_s0 + $0x80] sm:$0xf]  ;;  %v3102_v7 = vld [vmem:[#allocation2 + $0xdc] sm:$0xf] }
 0x3c2   :  { %5066 = vst.msk [vmem:[#allocation3 + $0x24] sm:$0xf] %vm5056_vm8, %v5033_v19  ;;  %v3099_v19 = vsel %vm6627_vm4, %v3010_v3, %v3098_v54 }
 0x3c3   :  { %v3179_v53 = vld [vmem:[#allocation2 + $0xc8] sm:$0x1]  ;;  %v4906_v4 = vadd.f32 %v8761_v16, %v4838_v33  ;;  %10746 = vst [vmem:[#allocation42_spill] sm:$0xff] %v9006_v40  ;;  %v4917_v37 = vadd.f32 %v8761_v16, %v4849_v48 }
 0x3c4   :  { %v3180_v41 = vsel %vm6635_vm7, 0, %v3179_v53  ;;  %3378 = vrot.lane.b32.xlu1 %v5477_v24, %s5548_s27  ;;  %3120 = vst [vmem:[#allocation2 + $0xfc] sm:$0xf] %v3119_v55 }
 0x3c5   :  { %v3008_v31 = vpop.permute.xlu0 %3007  ;;  %3181 = vst [vmem:[#allocation2 + $0xc8] sm:$0x1] %v3180_v41  ;;  %v4970_v18 = vmax.f32 %v4906_v4, 0.0  ;;  %3380 = vrot.lane.b32.xlu2 %v5476_v23, %s5548_s27  ;;  %v4981_v53 = vmax.f32 %v4917_v37, 0.0 }
 0x3c6   :  { %3097 = vst.msk [vmem:[#allocation2 + $0xd0] sm:$0xf] %vm10747_vm15, %v3008_v31  ;;  %3278 = vrot.lane.b32.xlu0 %v9006_v40, %s5547_s19  ;;  %vm10752_vm15 = vmmov %vm10749_vm14 }
 0x3c7   :  { %3100 = vst [vmem:[#allocation2 + $0xd4] sm:$0xf] %v3099_v19  ;;  %v5034_v3 = vpack.c.bf16 %v4970_v18, %v4970_v18  ;;  %v9024_v57 = vpop.permute.xlu2 %3216  ;;  %v3016_v31 = vpop.permute.xlu1 %3015  ;;  %v5045_v33 = vpack.c.bf16 %v4981_v53, %v4981_v53  ;;  %v9040_v53 = vld [vmem:[%s10069_s0 + $0x90] sm:$0xf] }
 0x3c8   :  { %3105 = vst.msk [vmem:[#allocation2 + $0xe0] sm:$0xf] %vm10748_vm10, %v3016_v31  ;;  %v4691_v48 = vpop.f32.mrf.mxu0  ;;  %v4719_v4 = vpop.f32.mrf.mxu1  ;;  %vm10753_vm10 = vmmov %vm10727_vm3 }
 0x3c9   :  { %5067 = vst.msk [vmem:[#allocation3 + $0x28] sm:$0xf] %vm5056_vm8, %v5034_v3  ;;  %v4839_v54 = vmul.f32 %v8748_v11, %v4691_v48  ;;  %v4850_v41 = vmul.f32 %v8748_v11, %v4719_v4  ;;  %v9047_v3 = vld [vmem:[%s10069_s0 + $0x8c] sm:$0xf] }
 0x3ca   :  { %5078 = vst.msk [vmem:[#allocation3 + $0x54] sm:$0xf] %vm5056_vm8, %v5045_v33  ;;  %v9054_v33 = vld [vmem:[%s10069_s0 + $0x88] sm:$0xf] }
 0x3cb   :  { %v4907_v37 = vadd.f32 %v8761_v16, %v4839_v54  ;;  %v4918_v23 = vadd.f32 %v8761_v16, %v4850_v41 }
 0x3cc   :  { %3384 = vrot.lane.b32.xlu1 %v9047_v3, %s5548_s27 }
 0x3cd   :  { %v3014_v21 = vpop.permute.xlu0 %3013  ;;  %v3182_v19 = vld [vmem:[#allocation2 + $0xd0] sm:$0x1]  ;;  %v4971_v24 = vmax.f32 %v4907_v37, 0.0  ;;  %3386 = vrot.lane.b32.xlu2 %v9040_v53, %s5548_s27  ;;  %v4982_v31 = vmax.f32 %v4918_v23, 0.0  ;;  %v3110_v37 = vld [vmem:[#allocation2 + $0xec] sm:$0xf] }
 0x3ce   :  { %v3103_v55 = vsel %vm6627_vm4, %v3014_v21, %v3102_v7  ;;  %v3183_v18 = vsel %vm6635_vm7, 0, %v3182_v19  ;;  %3382 = vrot.lane.b32.xlu0 %v9054_v33, %s5548_s27 }
 0x3cf   :  { %3104 = vst [vmem:[#allocation2 + $0xdc] sm:$0xf] %v3103_v55  ;;  %v3188_v21 = vld [vmem:[#allocation2 + $0xe0] sm:$0x1]  ;;  %v5035_v7 = vpack.c.bf16 %v4971_v24, %v4971_v24  ;;  %v3223_v48 = vpop.permute.xlu2 %3222  ;;  %v3022_v55 = vpop.permute.xlu1 %3021  ;;  %v5046_v4 = vpack.c.bf16 %v4982_v31, %v4982_v31 }
 0x3d0   :  { %3184 = vst [vmem:[#allocation2 + $0xd0] sm:$0x1] %v3183_v18  ;;  %v3189_v54 = vsel %vm6635_vm7, 0, %v3188_v21  ;;  %v4694_v19 = vpop.f32.mrf.mxu0  ;;  %v4721_v23 = vpop.f32.mrf.mxu1  ;;  %v3111_v24 = vsel %vm6627_vm4, %v3022_v55, %v3110_v37 }
 0x3d1   :  { %3319 = vst.msk [vmem:[#allocation2 + $0x8c] sm:$0xf] %vm10749_vm14, %v3223_v48  ;;  %v4840_v18 = vmul.f32 %v8748_v11, %v4694_v19  ;;  %v4851_v20 = vmul.f32 %v8748_v11, %v4721_v23  ;;  %v3114_v23 = vld [vmem:[#allocation2 + $0xf4] sm:$0xf] }
 0x3d2   :  { %3190 = vst [vmem:[#allocation2 + $0xe0] sm:$0x1] %v3189_v54  ;;  %v9073_v54 = vld [vmem:[%s10069_s0 + $0x9c] sm:$0xf] }
 0x3d3   :  { %5068 = vst.msk [vmem:[#allocation3 + $0x2c] sm:$0xf] %vm5056_vm8, %v5035_v7  ;;  %v4908_v31 = vadd.f32 %v8761_v16, %v4840_v18  ;;  %v4919_v21 = vadd.f32 %v8761_v16, %v4851_v20  ;;  %v9080_v7 = vld [vmem:[%s10069_s0 + $0x98] sm:$0xf]  ;;  %v9087_v20 = vld [vmem:[%s10069_s0 + $0x94] sm:$0xf] }
 0x3d4   :  { %5079 = vst.msk [vmem:[#allocation3 + $0x58] sm:$0xf] %vm5056_vm8, %v5046_v4  ;;  %3390 = vrot.lane.b32.xlu1 %v9080_v7, %s5548_s27 }
 0x3d5   :  { %v3020_v41 = vpop.permute.xlu0 %3019  ;;  %3112 = vst [vmem:[#allocation2 + $0xec] sm:$0xf] %v3111_v24  ;;  %v4972_v48 = vmax.f32 %v4908_v31, 0.0  ;;  %3392 = vrot.lane.b32.xlu2 %v9073_v54, %s5548_s27  ;;  %v4983_v55 = vmax.f32 %v4919_v21, 0.0  ;;  %v3324_v24 = vld [vmem:[#allocation2 + $0x98] sm:$0xf] }
 0x3d6   :  { %3109 = vst.msk [vmem:[#allocation2 + $0xe8] sm:$0xf] %vm10727_vm3, %v3020_v41  ;;  %3388 = vrot.lane.b32.xlu0 %v9087_v20, %s5548_s27 }
 0x3d7   :  { %v5036_v4 = vpack.c.bf16 %v4972_v48, %v4972_v48  ;;  %v3229_v41 = vpop.permute.xlu2 %3228  ;;  %v3028_v19 = vpop.permute.xlu1 %3027  ;;  %v5047_v37 = vpack.c.bf16 %v4983_v55, %v4983_v55 }
 0x3d8   :  { %3117 = vst.msk [vmem:[#allocation2 + $0xf8] sm:$0xf] %vm10750_vm11, %v3028_v19  ;;  %v4696_v31 = vpop.f32.mrf.mxu0  ;;  %v3325_v29 = vsel %vm6857_vm0, %v3229_v41, %v3324_v24  ;;  %v4724_v48 = vpop.f32.mrf.mxu1  ;;  %v5484_v41 = vld [vmem:[%s10069_s0 + $0xa8] sm:$0xf] }
 0x3d9   :  { %5069 = vst.msk [vmem:[#allocation3 + $0x30] sm:$0xf] %vm5056_vm8, %v5036_v4  ;;  %v4841_v56 = vmul.f32 %v8748_v11, %v4696_v31  ;;  %v4852_v55 = vmul.f32 %v8748_v11, %v4724_v48 }
 0x3da   :  { %5080 = vst.msk [vmem:[#allocation3 + $0x5c] sm:$0xf] %vm5056_vm8, %v5047_v37  ;;  %v9111_v37 = vld [vmem:[%s10069_s0 + $0xa4] sm:$0xf] }
 0x3db   :  { %v4909_v19 = vadd.f32 %v8761_v16, %v4841_v56  ;;  %3326 = vst [vmem:[#allocation2 + $0x98] sm:$0xf] %v3325_v29  ;;  %v9118_v56 = vld [vmem:[%s10069_s0 + $0xa0] sm:$0xf] }
 0x3dc   :  { %3396 = vrot.lane.b32.xlu1 %v9111_v37, %s5548_s27 }
 0x3dd   :  { %v3026_v18 = vpop.permute.xlu0 %3025  ;;  %v3191_v47 = vld [vmem:[#allocation2 + $0xe8] sm:$0x1]  ;;  %3398 = vrot.lane.b32.xlu2 %v5484_v41, %s5548_s27 }
 0x3de   :  { %v3115_v21 = vsel %vm6627_vm4, %v3026_v18, %v3114_v23  ;;  %v3192_v4 = vsel %vm6635_vm7, 0, %v3191_v47  ;;  %v4920_v18 = vadd.f32 %v8761_v16, %v4852_v55  ;;  %v4973_v23 = vmax.f32 %v4909_v19, 0.0  ;;  %3394 = vrot.lane.b32.xlu0 %v9118_v56, %s5548_s27 }
 0x3df   :  { %3116 = vst [vmem:[#allocation2 + $0xf4] sm:$0xf] %v3115_v21  ;;  %v3197_v29 = vld [vmem:[#allocation2 + $0xf8] sm:$0x1]  ;;  %v3235_v31 = vpop.permute.xlu2 %3234  ;;  %v3145_v21 = vpop.permute.xlu1 %3144 }
 0x3e0   :  { %3193 = vst [vmem:[#allocation2 + $0xe8] sm:$0x1] %v3192_v4  ;;  %v4984_v47 = vmax.f32 %v4920_v18, 0.0  ;;  %v5037_v24 = vpack.c.bf16 %v4973_v23, %v4973_v23  ;;  %v3198_v48 = vsel %vm6635_vm7, 0, %v3197_v29  ;;  %v4699_v4 = vpop.f32.mrf.mxu0  ;;  %v3149_v18 = vld [vmem:[#allocation2 + $0x84] sm:$0xf]  ;;  %v4726_v58 = vpop.f32.mrf.mxu1 }
 0x3e1   :  { %3331 = vst.msk [vmem:[#allocation2 + $0xa4] sm:$0xf] %vm10752_vm15, %v3235_v31  ;;  %v4842_v41 = vmul.f32 %v8748_v11, %v4699_v4  ;;  %v3150_v23 = vsel %vm6627_vm4, %v3145_v21, %v3149_v18  ;;  %v4853_v9 = vmul.f32 %v8748_v11, %v4726_v58  ;;  %v5488_v58 = vld [vmem:[%s10069_s0 + $0xb0] sm:$0xf]  ;;  %vm10754_vm4 = vmmov %vm10749_vm14 }
 0x3e2   :  { %v5048_v55 = vpack.c.bf16 %v4984_v47, %v4984_v47  ;;  %3199 = vst [vmem:[#allocation2 + $0xf8] sm:$0x1] %v3198_v48  ;;  %v5487_v48 = vld [vmem:[%s10069_s0 + $0xb4] sm:$0xf]  ;;  %v3336_v18 = vld [vmem:[#allocation2 + $0xb0] sm:$0xf]  ;;  %vm10756_vm14 = vmmov %vm10754_vm4 }
 0x3e3   :  { %5070 = vst.msk [vmem:[#allocation3 + $0x34] sm:$0xf] %vm5056_vm8, %v5037_v24  ;;  %v4910_v47 = vadd.f32 %v8761_v16, %v4842_v41  ;;  %v4921_v29 = vadd.f32 %v8761_v16, %v4853_v9  ;;  %v9145_v24 = vld [vmem:[%s10069_s0 + $0xac] sm:$0xf]  ;;  %vm10757_vm3 = vmmov %vm10754_vm4 }
 0x3e4   :  { %5081 = vst.msk [vmem:[#allocation3 + $0x60] sm:$0xf] %vm5056_vm8, %v5048_v55  ;;  %3402 = vrot.lane.b32.xlu1 %v5488_v58, %s5548_s27  ;;  %vm10758_vm11 = vmmov %vm10757_vm3 }
 0x3e5   :  { %v3143_v19 = vpop.permute.xlu0 %3142  ;;  %3151 = vst [vmem:[#allocation2 + $0x84] sm:$0xf] %v3150_v23  ;;  %v4974_v31 = vmax.f32 %v4910_v47, 0.0  ;;  %3404 = vrot.lane.b32.xlu2 %v5487_v48, %s5548_s27  ;;  %v4985_v12 = vmax.f32 %v4921_v29, 0.0  ;;  %v3316_v48 = vld [vmem:[#allocation2 + $0x88] sm:$0xf]  ;;  %vm10759_vm15 = vmmov %vm10757_vm3 }
 0x3e6   :  { %3148 = vst.msk [vmem:[#allocation2 + $0x80] sm:$0xf] %vm10753_vm10, %v3143_v19  ;;  %3400 = vrot.lane.b32.xlu0 %v9145_v24, %s5548_s27  ;;  %vm10760_vm10 = vmmov %vm10757_vm3 }
 0x3e7   :  { %v5038_v9 = vpack.c.bf16 %v4974_v31, %v4974_v31  ;;  %v3241_v21 = vpop.permute.xlu2 %3240  ;;  %v3221_v55 = vpop.permute.xlu1 %3220  ;;  %v5049_v19 = vpack.c.bf16 %v4985_v12, %v4985_v12 }
 0x3e8   :  { %v4701_v41 = vpop.f32.mrf.mxu0  ;;  %v3337_v23 = vsel %vm6857_vm0, %v3241_v21, %v3336_v18  ;;  %v3317_v12 = vsel %vm6857_vm0, %v3221_v55, %v3316_v48  ;;  %v5491_v55 = vld [vmem:[%s10069_s0 + $0xbc] sm:$0xf]  ;;  %v3320_v48 = vld [vmem:[#allocation2 + $0x90] sm:$0xf] }
 0x3e9   :  { %5071 = vst.msk [vmem:[#allocation3 + $0x38] sm:$0xf] %vm5056_vm8, %v5038_v9  ;;  %v4843_v47 = vmul.f32 %v8748_v11, %v4701_v41 }
 0x3ea   :  { %v4729_v29 = vpop.f32.mrf.mxu1  ;;  %5082 = vst.msk [vmem:[#allocation3 + $0x64] sm:$0xf] %vm5056_vm8, %v5049_v19  ;;  %v5490_v19 = vld [vmem:[%s10069_s0 + $0xc0] sm:$0xf] }
 0x3eb   :  { %v4854_v58 = vmul.f32 %v8748_v11, %v4729_v29  ;;  %v4911_v42 = vadd.f32 %v8761_v16, %v4843_v47  ;;  %3338 = vst [vmem:[#allocation2 + $0xb0] sm:$0xf] %v3337_v23 }
 0x3ec   :  { %3408 = vrot.lane.b32.xlu1 %v5491_v55, %s5548_s27  ;;  %3318 = vst [vmem:[#allocation2 + $0x88] sm:$0xf] %v3317_v12  ;;  %v9195_v55 = vld [vmem:[%s10069_s0 + $0xc8] sm:$0xf] }
 0x3ed   :  { %v3219_v4 = vpop.permute.xlu0 %3218  ;;  %v3152_v31 = vld [vmem:[#allocation2 + $0x80] sm:$0x1]  ;;  %v4922_v21 = vadd.f32 %v8761_v16, %v4854_v58  ;;  %v4975_v18 = vmax.f32 %v4911_v42, 0.0  ;;  %3410 = vrot.lane.b32.xlu2 %v5490_v19, %s5548_s27  ;;  %v9188_v19 = vld [vmem:[%s10069_s0 + $0xcc] sm:$0xf] }
 0x3ee   :  { %3315 = vst.msk [vmem:[#allocation2 + $0x84] sm:$0xf] %vm10754_vm4, %v3219_v4  ;;  %v3153_v9 = vsel %vm6635_vm7, 0, %v3152_v31  ;;  %v5492_v4 = vld [vmem:[%s10069_s0 + $0xb8] sm:$0xf]  ;;  %vm10755_vm7 = vmmov %vm10754_vm4 }
 0x3ef   :  { %3154 = vst [vmem:[#allocation2 + $0x80] sm:$0x1] %v3153_v9  ;;  %v4986_v34 = vmax.f32 %v4922_v21, 0.0  ;;  %3406 = vrot.lane.b32.xlu0 %v5492_v4, %s5548_s27  ;;  %v5039_v42 = vpack.c.bf16 %v4975_v18, %v4975_v18  ;;  %v3247_v41 = vpop.permute.xlu2 %3246  ;;  %v3227_v23 = vpop.permute.xlu1 %3226  ;;  %vm10763_vm4 = vmmov %vm10757_vm3 }
 0x3f0   :  { %3343 = vst.msk [vmem:[#allocation2 + $0xbc] sm:$0xf] %vm10755_vm7, %v3247_v41  ;;  %vm10764_vm7 = vmmov %vm10757_vm3 }
 0x3f1   :  { %v5050_v47 = vpack.c.bf16 %v4986_v34, %v4986_v34  ;;  %5072 = vst.msk [vmem:[#allocation3 + $0x3c] sm:$0xf] %vm5056_vm8, %v5039_v42  ;;  %v3348_v42 = vld [vmem:[#allocation2 + $0xc8] sm:$0xf] }
 0x3f2   :  { %v4731_v31 = vpop.f32.mrf.mxu1  ;;  %3323 = vst.msk [vmem:[#allocation2 + $0x94] sm:$0xf] %vm10756_vm14, %v3227_v23  ;;  %vm10766_vm14 = vmmov %vm10757_vm3 }
 0x3f3   :  { %5083 = vst.msk [vmem:[#allocation3 + $0x68] sm:$0xf] %vm5056_vm8, %v5050_v47  ;;  %v4855_v12 = vmul.f32 %v8748_v11, %v4731_v31 }
 0x3f4   :  { %3414 = vrot.lane.b32.xlu1 %v9195_v55, %s5548_s27 }
 0x3f5   :  { %v3225_v29 = vpop.permute.xlu0 %3224  ;;  %v4923_v21 = vadd.f32 %v8761_v16, %v4855_v12  ;;  %3416 = vrot.lane.b32.xlu2 %v9188_v19, %s5548_s27 }
 0x3f6   :  { %v3321_v58 = vsel %vm6857_vm0, %v3225_v29, %v3320_v48  ;;  %v3312_v9 = vld [vmem:[#allocation2 + $0x80] sm:$0xf] }
 0x3f7   :  { %3322 = vst [vmem:[#allocation2 + $0x90] sm:$0xf] %v3321_v58  ;;  %v3313_v18 = vsel %vm6857_vm0, %v9024_v57, %v3312_v9  ;;  %v4987_v34 = vmax.f32 %v4923_v21, 0.0  ;;  %v5495_v57 = vld [vmem:[%s10069_s0 + $0xc4] sm:$0xf]  ;;  %v3253_v4 = vpop.permute.xlu2 %3252  ;;  %v3233_v41 = vpop.permute.xlu1 %3232 }
 0x3f8   :  { %3314 = vst [vmem:[#allocation2 + $0x80] sm:$0xf] %v3313_v18  ;;  %3412 = vrot.lane.b32.xlu0 %v5495_v57, %s5548_s27  ;;  %v3349_v29 = vsel %vm6857_vm0, %v3253_v4, %v3348_v42  ;;  %v3328_v48 = vld [vmem:[#allocation2 + $0xa0] sm:$0xf]  ;;  %v9214_v21 = vld [vmem:[%s10069_s0 + $0xd8] sm:$0xf] }
 0x3f9   :  { %v5051_v23 = vpack.c.bf16 %v4987_v34, %v4987_v34  ;;  %v3329_v58 = vsel %vm6857_vm0, %v3233_v41, %v3328_v48  ;;  %3350 = vst [vmem:[#allocation2 + $0xc8] sm:$0xf] %v3349_v29  ;;  %v9221_v18 = vld [vmem:[%s10069_s0 + $0xd4] sm:$0xf]  ;;  %v9228_v57 = vld [vmem:[%s10069_s0 + $0xd0] sm:$0xf] }
 0x3fa   :  { %v4734_v31 = vpop.f32.mrf.mxu1  ;;  %3330 = vst [vmem:[#allocation2 + $0xa0] sm:$0xf] %v3329_v58 }
 0x3fb   :  { %5084 = vst.msk [vmem:[#allocation3 + $0x6c] sm:$0xf] %vm5056_vm8, %v5051_v23  ;;  %v4856_v12 = vmul.f32 %v8748_v11, %v4734_v31 }
 0x3fc   :  { %3420 = vrot.lane.b32.xlu1 %v9221_v18, %s5548_s27 }
 0x3fd   :  { %v3231_v47 = vpop.permute.xlu0 %3230  ;;  %v4924_v9 = vadd.f32 %v8761_v16, %v4856_v12  ;;  %3422 = vrot.lane.b32.xlu2 %v9214_v21, %s5548_s27  ;;  %v9242_v12 = vld [vmem:[%s10069_s0 + $0xe4] sm:$0xf] }
 0x3fe   :  { %3327 = vst.msk [vmem:[#allocation2 + $0x9c] sm:$0xf] %vm10757_vm3, %v3231_v47  ;;  %v3332_v47 = vld [vmem:[#allocation2 + $0xa8] sm:$0xf]  ;;  %vm10770_vm3 = vcmask 117856  }
 0x3ff   :  { %v4988_v34 = vmax.f32 %v4924_v9, 0.0  ;;  %v3259_v4 = vpop.permute.xlu2 %3258  ;;  %v3239_v42 = vpop.permute.xlu1 %3238  ;;  %v9249_v9 = vld [vmem:[%s10069_s0 + $0xe0] sm:$0xf] }
 0x400   :  { %3418 = vrot.lane.b32.xlu0 %v9228_v57, %s5548_s27  ;;  %3355 = vst.msk [vmem:[#allocation2 + $0xd4] sm:$0xf] %vm10758_vm11, %v3259_v4  ;;  %v3360_v4 = vld [vmem:[#allocation2 + $0xe0] sm:$0xf]  ;;  %vm10771_vm11 = vmmov %vm10763_vm4 }
 0x401   :  { %v5052_v41 = vpack.c.bf16 %v4988_v34, %v4988_v34  ;;  %3335 = vst.msk [vmem:[#allocation2 + $0xac] sm:$0xf] %vm10759_vm15, %v3239_v42  ;;  %vm10776_vm15 = vmmov %vm10770_vm3 }
 0x402   :  { %v4736_v48 = vpop.f32.mrf.mxu1 }
 0x403   :  { %5085 = vst.msk [vmem:[#allocation3 + $0x70] sm:$0xf] %vm5056_vm8, %v5052_v41  ;;  %v4857_v58 = vmul.f32 %v8748_v11, %v4736_v48 }
 0x404   :  { %3426 = vrot.lane.b32.xlu1 %v9249_v9, %s5548_s27 }
 0x405   :  { %v3237_v23 = vpop.permute.xlu0 %3236  ;;  %v4925_v31 = vadd.f32 %v8761_v16, %v4857_v58  ;;  %3428 = vrot.lane.b32.xlu2 %v9242_v12, %s5548_s27  ;;  %v9256_v16 = vld [vmem:[%s10069_s0 + $0xdc] sm:$0xf] }
 0x406   :  { %v3333_v29 = vsel %vm6857_vm0, %v3237_v23, %v3332_v47 }
 0x407   :  { %3334 = vst [vmem:[#allocation2 + $0xa8] sm:$0xf] %v3333_v29  ;;  %v4989_v11 = vmax.f32 %v4925_v31, 0.0  ;;  %v3265_v34 = vpop.permute.xlu2 %3264  ;;  %v3245_v42 = vpop.permute.xlu1 %3244  ;;  %v3340_v29 = vld [vmem:[#allocation2 + $0xb8] sm:$0xf] }
 0x408   :  { %3424 = vrot.lane.b32.xlu0 %v9256_v16, %s5548_s27  ;;  %v3361_v47 = vsel %vm6857_vm0, %v3265_v34, %v3360_v4  ;;  %v3341_v48 = vsel %vm6857_vm0, %v3245_v42, %v3340_v29  ;;  %v5502_v31 = vld [vmem:[%s10072_s3] ss:$0 sm:$0xff]  ;;  %v9275_v4 = vld [vmem:[%s10069_s0 + $0xf0] sm:$0xf]  ;;  %v9282_v42 = vld [vmem:[%s10069_s0 + $0xec] sm:$0xf] }
 0x409   :  { %v5053_v41 = vpack.c.bf16 %v4989_v11, %v4989_v11  ;;  %3362 = vst [vmem:[#allocation2 + $0xe0] sm:$0xf] %v3361_v47  ;;  %v5503_v11 = vld [vmem:[%s10073_s4] ss:$0 sm:$0xff] }
 0x40a   :  { %v4739_v58 = vpop.f32.mrf.mxu1  ;;  %3342 = vst [vmem:[#allocation2 + $0xb8] sm:$0xf] %v3341_v48 }
 0x40b   :  { %5086 = vst.msk [vmem:[#allocation3 + $0x74] sm:$0xf] %vm5056_vm8, %v5053_v41  ;;  %v4858_v63 = vmul.f32 %v5502_v31, %v4739_v58  ;;  %v3344_v58 = vld [vmem:[#allocation2 + $0xc0] sm:$0xf] }
 0x40c   :  { %10761 = vst [vmem:[#allocation54_spill] sm:$0xff] %v9275_v4  ;;  %3432 = vrot.lane.b32.xlu1 %v9282_v42, %s5548_s27 }
 0x40d   :  { %v3243_v23 = vpop.permute.xlu0 %3242  ;;  %v4926_v34 = vadd.f32 %v5503_v11, %v4858_v63  ;;  %3434 = vrot.lane.b32.xlu2 %v9275_v4, %s5548_s27  ;;  %v9289_v63 = vld [vmem:[%s10069_s0 + $0xe8] sm:$0xf] }
 0x40e   :  { %3339 = vst.msk [vmem:[#allocation2 + $0xb4] sm:$0xf] %vm10760_vm10, %v3243_v23  ;;  %vm10777_vm10 = vmmov %vm10763_vm4 }
 0x40f   :  { %v4990_v41 = vmax.f32 %v4926_v34, 0.0  ;;  %10762 = vst [vmem:[#allocation23_spill] sm:$0xff] %v9289_v63  ;;  %v3271_v23 = vpop.permute.xlu2 %3270  ;;  %v3251_v47 = vpop.permute.xlu1 %3250 }
 0x410   :  { %3430 = vrot.lane.b32.xlu0 %v9289_v63, %s5548_s27  ;;  %3367 = vst.msk [vmem:[#allocation2 + $0xec] sm:$0xf] %vm10763_vm4, %v3271_v23  ;;  %v9305_v23 = vld [vmem:[%s10069_s0 + $0xf4] sm:$0xf]  ;;  %vm10781_vm4 = vmmov %vm10770_vm3 }
 0x411   :  { %v5054_v29 = vpack.c.bf16 %v4990_v41, %v4990_v41  ;;  %3347 = vst.msk [vmem:[#allocation2 + $0xc4] sm:$0xf] %vm10764_vm7, %v3251_v47 }
 0x412   :  { %v4741_v34 = vpop.f32.mrf.mxu1  ;;  %10765 = vst [vmem:[#allocation21_spill] sm:$0xff] %v9305_v23 }
 0x413   :  { %5087 = vst.msk [vmem:[#allocation3 + $0x78] sm:$0xf] %vm5056_vm8, %v5054_v29  ;;  %v4859_v17 = vmul.f32 %v5502_v31, %v4741_v34  ;;  %v3372_v29 = vld [vmem:[#allocation2 + $0xf8] sm:$0xf]  ;;  %v10768_v34 = vld [vmem:[#allocation14_spill] sm:$0xff] }
 0x414   :  { %3438 = vrot.lane.b32.xlu1 %v8935_v43, %s5548_s27 }
 0x415   :  { %v3249_v48 = vpop.permute.xlu0 %3248  ;;  %v4927_v40 = vadd.f32 %v5503_v11, %v4859_v17  ;;  %3440 = vrot.lane.b32.xlu2 %v8956_v35, %s5548_s27 }
 0x416   :  { %v3345_v4 = vsel %vm6857_vm0, %v3249_v48, %v3344_v58  ;;  %v3352_v48 = vld [vmem:[#allocation2 + $0xd0] sm:$0xf]  ;;  %v10767_v58 = vld [vmem:[#allocation45_spill] sm:$0xff] }
 0x417   :  { %3346 = vst [vmem:[#allocation2 + $0xc0] sm:$0xf] %v3345_v4  ;;  %v4991_v41 = vmax.f32 %v4927_v40, 0.0  ;;  %v3277_v47 = vpop.permute.xlu2 %3276  ;;  %v3257_v31 = vpop.permute.xlu1 %3256 }
 0x418   :  { %3436 = vrot.lane.b32.xlu0 %v9305_v23, %s5548_s27  ;;  %v3373_v11 = vsel %vm6857_vm0, %v3277_v47, %v3372_v29  ;;  %v3353_v40 = vsel %vm6857_vm0, %v3257_v31, %v3352_v48  ;;  %v10774_v48 = vld [vmem:[#allocation47_spill] sm:$0xff] }
 0x419   :  { %v5055_v4 = vpack.c.bf16 %v4991_v41, %v4991_v41  ;;  %3374 = vst [vmem:[#allocation2 + $0xf8] sm:$0xf] %v3373_v11  ;;  %v10769_v41 = vld [vmem:[#allocation44_spill] sm:$0xff]  ;;  %v10773_v11 = vld [vmem:[#allocation31_spill] sm:$0xff] }
 0x41a   :  { %3354 = vst [vmem:[#allocation2 + $0xd0] sm:$0xf] %v3353_v40 }
 0x41b   :  { %5088 = vst.msk [vmem:[#allocation3 + $0x7c] sm:$0xf] %vm5056_vm8, %v5055_v4  ;;  %v10772_v4 = vld [vmem:[#allocation48_spill] sm:$0xff] }
 0x41c   :  { %3565 = vrot.lane.b32.xlu1 %v10768_v34, %s5549_s21 }
 0x41d   :  { %v3255_v17 = vpop.permute.xlu0 %3254  ;;  %3567 = vrot.lane.b32.xlu2 %v10767_v58, %s5549_s21 }
 0x41e   :  { %3351 = vst.msk [vmem:[#allocation2 + $0xcc] sm:$0xf] %vm10766_vm14, %v3255_v17  ;;  %v3356_v17 = vld [vmem:[#allocation2 + $0xd8] sm:$0xf]  ;;  %vm10786_vm14 = vmmov %vm10764_vm7 }
 0x41f   :  { %v3381_v47 = vpop.permute.xlu2 %3380  ;;  %v3263_v29 = vpop.permute.xlu1 %3262 }
 0x420   :  { %3563 = vrot.lane.b32.xlu0 %v10769_v41, %s5549_s21  ;;  %3475 = vst.msk [vmem:[#allocation2 + $0x84] sm:$0xf] %vm10770_vm3, %v3381_v47  ;;  %v3364_v41 = vld [vmem:[#allocation2 + $0xe8] sm:$0xf] }
 0x421   :  { %3359 = vst.msk [vmem:[#allocation2 + $0xdc] sm:$0xf] %vm10771_vm11, %v3263_v29 }
 0x424   :  { %3571 = vrot.lane.b32.xlu1 %v10773_v11, %s5549_s21 }
 0x425   :  { %v3261_v35 = vpop.permute.xlu0 %3260  ;;  %3573 = vrot.lane.b32.xlu2 %v10772_v4, %s5549_s21 }
 0x426   :  { %v3357_v31 = vsel %vm6857_vm0, %v3261_v35, %v3356_v17  ;;  %v10778_v17 = vld [vmem:[#allocation46_spill] sm:$0xff] }
 0x427   :  { %3358 = vst [vmem:[#allocation2 + $0xd8] sm:$0xf] %v3357_v31  ;;  %v3506_v40 = vld [vmem:[#allocation2 + $0x84] sm:$0x8]  ;;  %v3387_v34 = vpop.permute.xlu2 %3386  ;;  %v3269_v43 = vpop.permute.xlu1 %3268  ;;  %v10779_v31 = vld [vmem:[#allocation51_spill] sm:$0xff] }
 0x428   :  { %3569 = vrot.lane.b32.xlu0 %v10774_v48, %s5549_s21  ;;  %v3507_v61 = vsel %vm7123_vm5, 0, %v3506_v40  ;;  %3478 = vst.msk [vmem:[#allocation2 + $0x90] sm:$0xf] %vm10776_vm15, %v3387_v34  ;;  %v3365_v29 = vsel %vm6857_vm0, %v3269_v43, %v3364_v41  ;;  %v3368_v34 = vld [vmem:[#allocation2 + $0xf0] sm:$0xf]  ;;  %v10783_v41 = vld [vmem:[#allocation57_spill] sm:$0xff] }
 0x429   :  { %3508 = vst [vmem:[#allocation2 + $0x84] sm:$0x8] %v3507_v61  ;;  %v10782_v43 = vld [vmem:[#allocation56_spill] sm:$0xff] }
 0x42a   :  { %3366 = vst [vmem:[#allocation2 + $0xe8] sm:$0xf] %v3365_v29 }
 0x42c   :  { %3577 = vrot.lane.b32.xlu1 %v10779_v31, %s5549_s21 }
 0x42d   :  { %v3267_v35 = vpop.permute.xlu0 %3266  ;;  %3579 = vrot.lane.b32.xlu2 %v10778_v17, %s5549_s21 }
 0x42e   :  { %3363 = vst.msk [vmem:[#allocation2 + $0xe4] sm:$0xf] %vm10777_vm10, %v3267_v35  ;;  %v10784_v35 = vld [vmem:[#allocation49_spill] sm:$0xff] }
 0x42f   :  { %v3393_v40 = vpop.permute.xlu2 %3392  ;;  %v3275_v0 = vpop.permute.xlu1 %3274 }
 0x430   :  { %3575 = vrot.lane.b32.xlu0 %v10780_v39, %s5549_s21  ;;  %3481 = vst.msk [vmem:[#allocation2 + $0x9c] sm:$0xf] %vm10781_vm4, %v3393_v40 }
 0x431   :  { %3371 = vst.msk [vmem:[#allocation2 + $0xf4] sm:$0xf] %vm10764_vm7, %v3275_v0  ;;  %v10788_v0 = vld [vmem:[#allocation16_spill] sm:$0xff] }
 0x434   :  { %3583 = vrot.lane.b32.xlu1 %v10783_v41, %s5549_s21 }
 0x435   :  { %v3273_v51 = vpop.permute.xlu0 %3272  ;;  %3585 = vrot.lane.b32.xlu2 %v10782_v43, %s5549_s21 }
 0x436   :  { %v3369_v61 = vsel %vm6857_vm0, %v3273_v51, %v3368_v34  ;;  %vm10785_vm0 = vmmov %vm10770_vm3  ;;  %v10789_v51 = vld [vmem:[#allocation55_spill] sm:$0xff]  ;;  %v10790_v34 = vld [vmem:[#allocation17_spill] sm:$0xff] }
 0x437   :  { %3370 = vst [vmem:[#allocation2 + $0xf0] sm:$0xf] %v3369_v61  ;;  %v3515_v29 = vld [vmem:[#allocation2 + $0x9c] sm:$0x8]  ;;  %v3399_v63 = vpop.permute.xlu2 %3398  ;;  %v3379_v23 = vpop.permute.xlu1 %3378  ;;  %vm10787_vm3 = vmmov %vm10785_vm0 }
 0x438   :  { %3581 = vrot.lane.b32.xlu0 %v10784_v35, %s5549_s21  ;;  %v3516_v40 = vsel %vm7123_vm5, 0, %v3515_v29  ;;  %3484 = vst.msk [vmem:[#allocation2 + $0xa8] sm:$0xf] %vm10785_vm0, %v3399_v63  ;;  %vm10791_vm11 = vmmov %vm10785_vm0  ;;  %v10794_v63 = vld [vmem:[#allocation18_spill] sm:$0xff] }
 0x439   :  { %3517 = vst [vmem:[#allocation2 + $0x9c] sm:$0x8] %v3516_v40  ;;  %vm10792_vm15 = vmmov %vm10785_vm0  ;;  %v10796_v40 = vld [vmem:[#allocation19_spill] sm:$0xff] }
 0x43a   :  { %3474 = vst.msk [vmem:[#allocation2 + $0x80] sm:$0xf] %vm10787_vm3, %v3379_v23  ;;  %vm10793_vm10 = vmmov %vm10785_vm0  ;;  %v10795_v23 = vld [vmem:[#allocation20_spill] sm:$0xff] }
 0x43b   :  { %vm10797_vm4 = vmmov %vm10785_vm0 }
 0x43c   :  { %3589 = vrot.lane.b32.xlu1 %v10789_v51, %s5549_s21  ;;  %vm10798_vm7 = vmmov %vm10785_vm0 }
 0x43d   :  { %v3279_v59 = vpop.permute.xlu0 %3278  ;;  %3591 = vrot.lane.b32.xlu2 %v10788_v0, %s5549_s21  ;;  %vm10801_vm3 = vmmov %vm10785_vm0 }
 0x43e   :  { %3375 = vst.msk [vmem:[#allocation2 + $0xfc] sm:$0xf] %vm10786_vm14, %v3279_v59  ;;  %vm10800_vm14 = vmmov %vm10785_vm0 }
 0x43f   :  { %v3405_v61 = vpop.permute.xlu2 %3404  ;;  %v3385_v41 = vpop.permute.xlu1 %3384 }
 0x440   :  { %3587 = vrot.lane.b32.xlu0 %v10790_v34, %s5549_s21  ;;  %3487 = vst.msk [vmem:[#allocation2 + $0xb4] sm:$0xf] %vm10791_vm11, %v3405_v61  ;;  %vm10802_vm11 = vmmov %vm10785_vm0 }
 0x441   :  { %3477 = vst.msk [vmem:[#allocation2 + $0x8c] sm:$0xf] %vm10793_vm10, %v3385_v41  ;;  %vm10805_vm10 = vmmov %vm10785_vm0 }
 0x444   :  { %3595 = vrot.lane.b32.xlu1 %v10795_v23, %s5549_s21 }
 0x445   :  { %v3383_v29 = vpop.permute.xlu0 %3382  ;;  %3597 = vrot.lane.b32.xlu2 %v10794_v63, %s5549_s21 }
 0x446   :  { %3476 = vst.msk [vmem:[#allocation2 + $0x88] sm:$0xf] %vm10792_vm15, %v3383_v29  ;;  %vm10804_vm15 = vmmov %vm10785_vm0 }
 0x447   :  { %v3524_v59 = vld [vmem:[#allocation2 + $0xb4] sm:$0x8]  ;;  %v3411_v0 = vpop.permute.xlu2 %3410  ;;  %v3391_v51 = vpop.permute.xlu1 %3390 }
 0x448   :  { %3593 = vrot.lane.b32.xlu0 %v10796_v40, %s5549_s21  ;;  %v3525_v34 = vsel %vm7123_vm5, 0, %v3524_v59  ;;  %3490 = vst.msk [vmem:[#allocation2 + $0xc0] sm:$0xf] %vm10797_vm4, %v3411_v0  ;;  %v3509_v41 = vld [vmem:[#allocation2 + $0x8c] sm:$0x8]  ;;  %vm10806_vm4 = vmmov %vm10785_vm0 }
 0x449   :  { %3526 = vst [vmem:[#allocation2 + $0xb4] sm:$0x8] %v3525_v34  ;;  %v3510_v29 = vsel %vm7123_vm5, 0, %v3509_v41  ;;  %v10799_v59 = vld [vmem:[#allocation27_spill] sm:$0xff] }
 0x44a   :  { %3511 = vst [vmem:[#allocation2 + $0x8c] sm:$0x8] %v3510_v29 }
 0x44b   :  { %3480 = vst.msk [vmem:[#allocation2 + $0x98] sm:$0xf] %vm10785_vm0, %v3391_v51 }
 0x44c   :  { %3773 = vrot.lane.b32.xlu1 %v8156_v8, %s5550_s23 }
 0x44d   :  { %v3389_v61 = vpop.permute.xlu0 %3388  ;;  %3805 = vrot.lane.b32.xlu2 %v10737_v30, %s5550_s23  ;;  %v10803_v30 = vld [vmem:[#allocation26_spill] sm:$0xff] }
 0x44e   :  { %3479 = vst.msk [vmem:[#allocation2 + $0x94] sm:$0xf] %vm10798_vm7, %v3389_v61  ;;  %vm10807_vm7 = vmmov %vm10785_vm0 }
 0x44f   :  { %v3417_v0 = vpop.permute.xlu2 %3416  ;;  %v3397_v34 = vpop.permute.xlu1 %3396 }
 0x450   :  { %3599 = vrot.lane.b32.xlu0 %v10799_v59, %s5549_s21  ;;  %3493 = vst.msk [vmem:[#allocation2 + $0xcc] sm:$0xf] %vm10800_vm14, %v3417_v0  ;;  %vm10808_vm14 = vmmov %vm10785_vm0 }
 0x451   :  { %3483 = vst.msk [vmem:[#allocation2 + $0xa4] sm:$0xf] %vm10802_vm11, %v3397_v34  ;;  %vm10810_vm11 = vmmov %vm10785_vm0 }
 0x454   :  { %3985 = vrot.lane.b32.xlu1 %v9188_v19, %s5551_s29 }
 0x455   :  { %v3395_v23 = vpop.permute.xlu0 %3394  ;;  %v3512_v41 = vld [vmem:[#allocation2 + $0x94] sm:$0x8]  ;;  %3601 = vrot.lane.b32.xlu2 %v10803_v30, %s5549_s21 }
 0x456   :  { %3482 = vst.msk [vmem:[#allocation2 + $0xa0] sm:$0xf] %vm10801_vm3, %v3395_v23  ;;  %v3513_v51 = vsel %vm7123_vm5, 0, %v3512_v41  ;;  %vm10809_vm3 = vmmov %vm10785_vm0 }
 0x457   :  { %3514 = vst [vmem:[#allocation2 + $0x94] sm:$0x8] %v3513_v51  ;;  %v3533_v8 = vld [vmem:[#allocation2 + $0xcc] sm:$0x8]  ;;  %v3423_v61 = vpop.permute.xlu2 %3422  ;;  %v3403_v29 = vpop.permute.xlu1 %3402 }
 0x458   :  { %3953 = vrot.lane.b32.xlu0 %v9047_v3, %s5551_s29  ;;  %v3534_v23 = vsel %vm7123_vm5, 0, %v3533_v8  ;;  %3496 = vst.msk [vmem:[#allocation2 + $0xd8] sm:$0xf] %vm10804_vm15, %v3423_v61  ;;  %v3518_v34 = vld [vmem:[#allocation2 + $0xa4] sm:$0x8]  ;;  %vm10811_vm15 = vmmov %vm10785_vm0 }
 0x459   :  { %3535 = vst [vmem:[#allocation2 + $0xcc] sm:$0x8] %v3534_v23  ;;  %v3519_v41 = vsel %vm7123_vm5, 0, %v3518_v34 }
 0x45a   :  { %3520 = vst [vmem:[#allocation2 + $0xa4] sm:$0x8] %v3519_v41 }
 0x45b   :  { %3486 = vst.msk [vmem:[#allocation2 + $0xb0] sm:$0xf] %vm10806_vm4, %v3403_v29  ;;  %vm10813_vm4 = vmmov %vm10785_vm0 }
 0x45c   :  { %3777 = vrot.lane.b32.xlu1 %v8236_v5, %s5550_s23 }
 0x45d   :  { %v3401_v0 = vpop.permute.xlu0 %3400  ;;  %3803 = vrot.lane.b32.xlu2 %v8670_v25, %s5550_s23 }
 0x45e   :  { %3485 = vst.msk [vmem:[#allocation2 + $0xac] sm:$0xf] %vm10805_vm10, %v3401_v0  ;;  %vm10812_vm10 = vmmov %vm10785_vm0 }
 0x45f   :  { %v3429_v3 = vpop.permute.xlu2 %3428  ;;  %v3409_v19 = vpop.permute.xlu1 %3408 }
 0x460   :  { %3771 = vrot.lane.b32.xlu0 %v8161_v44, %s5550_s23  ;;  %3499 = vst.msk [vmem:[#allocation2 + $0xe4] sm:$0xf] %vm10807_vm7, %v3429_v3  ;;  %vm10814_vm7 = vmmov %vm10785_vm0 }
 0x461   :  { %3489 = vst.msk [vmem:[#allocation2 + $0xbc] sm:$0xf] %vm10808_vm14, %v3409_v19  ;;  %vm10816_vm14 = vmmov %vm10809_vm3 }
 0x464   :  { %3957 = vrot.lane.b32.xlu1 %v9087_v20, %s5551_s29 }
 0x465   :  { %v3407_v51 = vpop.permute.xlu0 %3406  ;;  %v3521_v8 = vld [vmem:[#allocation2 + $0xac] sm:$0x8]  ;;  %3989 = vrot.lane.b32.xlu2 %v9221_v18, %s5551_s29 }
 0x466   :  { %3488 = vst.msk [vmem:[#allocation2 + $0xb8] sm:$0xf] %vm10785_vm0, %v3407_v51  ;;  %v3522_v61 = vsel %vm7123_vm5, 0, %v3521_v8  ;;  %vm10815_vm0 = vcmask 142456  }
 0x467   :  { %3523 = vst [vmem:[#allocation2 + $0xac] sm:$0x8] %v3522_v61  ;;  %v3542_v44 = vld [vmem:[#allocation2 + $0xe4] sm:$0x8]  ;;  %v3435_v5 = vpop.permute.xlu2 %3434  ;;  %v3415_v25 = vpop.permute.xlu1 %3414 }
 0x468   :  { %3809 = vrot.lane.b32.xlu0 %v8696_v45, %s5550_s23  ;;  %v3543_v29 = vsel %vm7123_vm5, 0, %v3542_v44  ;;  %3502 = vst.msk [vmem:[#allocation2 + $0xf0] sm:$0xf] %vm10809_vm3, %v3435_v5  ;;  %v3527_v0 = vld [vmem:[#allocation2 + $0xbc] sm:$0x8] }
 0x469   :  { %3544 = vst [vmem:[#allocation2 + $0xe4] sm:$0x8] %v3543_v29  ;;  %v3528_v18 = vsel %vm7123_vm5, 0, %v3527_v0  ;;  %v3668_v0 = vld [vmem:[#allocation2 + $0x94] sm:$0xf] }
 0x46a   :  { %3529 = vst [vmem:[#allocation2 + $0xbc] sm:$0x8] %v3528_v18 }
 0x46b   :  { %3492 = vst.msk [vmem:[#allocation2 + $0xc8] sm:$0xf] %vm10811_vm15, %v3415_v25  ;;  %v10819_v25 = vld [vmem:[#allocation11_spill] sm:$0xff]  ;;  %vm10821_vm15 = vmmov %vm10809_vm3 }
 0x46c   :  { %3983 = vrot.lane.b32.xlu1 %v9195_v55, %s5551_s29 }
 0x46d   :  { %v3413_v23 = vpop.permute.xlu0 %3412  ;;  %4133 = vrot.lane.b32.xlu2 %v10774_v48, %s5552_s14 }
 0x46e   :  { %3491 = vst.msk [vmem:[#allocation2 + $0xc4] sm:$0xf] %vm10810_vm11, %v3413_v23  ;;  %vm10820_vm11 = vnez %v10819_v25 }
 0x46f   :  { %v3441_v45 = vpop.permute.xlu2 %3440  ;;  %v3421_v20 = vpop.permute.xlu1 %3420 }
 0x470   :  { %3951 = vrot.lane.b32.xlu0 %v9054_v33, %s5551_s29  ;;  %3505 = vst.msk [vmem:[#allocation2 + $0xfc] sm:$0xf] %vm10812_vm10, %v3441_v45  ;;  %v10822_v45 = vld [vmem:[#allocation24_spill] sm:$0xff] }
 0x471   :  { %3495 = vst.msk [vmem:[#allocation2 + $0xd4] sm:$0xf] %vm10814_vm7, %v3421_v20  ;;  %vm10823_vm10 = vnez %v10822_v45  ;;  %vm10825_vm7 = vmmov %vm10815_vm0 }
 0x474   :  { %4131 = vrot.lane.b32.xlu1 %v10767_v58, %s5552_s14  ;;  %v10817_v58 = vld [vmem:[#allocation29_spill] sm:$0xff] }
 0x475   :  { %v3419_v34 = vpop.permute.xlu0 %3418  ;;  %v3530_v41 = vld [vmem:[#allocation2 + $0xc4] sm:$0x8]  ;;  %4163 = vrot.lane.b32.xlu2 %v10799_v59, %s5552_s14 }
 0x476   :  { %3494 = vst.msk [vmem:[#allocation2 + $0xd0] sm:$0xf] %vm10813_vm4, %v3419_v34  ;;  %v3531_v3 = vsel %vm7123_vm5, 0, %v3530_v41  ;;  %vm10824_vm4 = vmmov %vm10809_vm3 }
 0x477   :  { %3532 = vst [vmem:[#allocation2 + $0xc4] sm:$0x8] %v3531_v3  ;;  %v3551_v33 = vld [vmem:[#allocation2 + $0xfc] sm:$0x8]  ;;  %v3568_v55 = vpop.permute.xlu2 %3567  ;;  %v3427_v48 = vpop.permute.xlu1 %3426 }
 0x478   :  { %4165 = vrot.lane.b32.xlu0 %v10803_v30, %s5552_s14  ;;  %v3552_v19 = vsel %vm7123_vm5, 0, %v3551_v33  ;;  %3663 = vst.msk [vmem:[#allocation2 + $0x88] sm:$0xf] %vm10815_vm0, %v3568_v55  ;;  %v3536_v8 = vld [vmem:[#allocation2 + $0xd4] sm:$0x8]  ;;  %v10818_v30 = vld [vmem:[#allocation33_spill] sm:$0xff]  ;;  %vm10826_vm0 = vmmov %vm10809_vm3 }
 0x479   :  { %3553 = vst [vmem:[#allocation2 + $0xfc] sm:$0x8] %v3552_v19  ;;  %v3537_v59 = vsel %vm7123_vm5, 0, %v3536_v8 }
 0x47a   :  { %3538 = vst [vmem:[#allocation2 + $0xd4] sm:$0x8] %v3537_v59 }
 0x47b   :  { %3498 = vst.msk [vmem:[#allocation2 + $0xe0] sm:$0xf] %vm10809_vm3, %v3427_v48  ;;  %vm10828_vm3 = vmmov %vm10825_vm7 }
 0x47c   :  { %3603 = vrot.lane.b32.xlu1 %v10817_v58, %s5549_s21 }
 0x47d   :  { %v3425_v51 = vpop.permute.xlu0 %3424  ;;  %3775 = vrot.lane.b32.xlu2 %v7978_v60, %s5550_s23 }
 0x47e   :  { %3497 = vst.msk [vmem:[#allocation2 + $0xdc] sm:$0xf] %vm10816_vm14, %v3425_v51  ;;  %vm10827_vm14 = vmmov %vm10826_vm0  ;;  %v3680_v51 = vld [vmem:[#allocation2 + $0xac] sm:$0xf] }
 0x47f   :  { %v3726_v61 = vld [vmem:[#allocation2 + $0x88] sm:$0x1]  ;;  %v3574_v44 = vpop.permute.xlu2 %3573  ;;  %v3433_v5 = vpop.permute.xlu1 %3432 }
 0x480   :  { %3605 = vrot.lane.b32.xlu0 %v10818_v30, %s5549_s21  ;;  %v3727_v29 = vsel %vm10820_vm11, 0, %v3726_v61  ;;  %3501 = vst.msk [vmem:[#allocation2 + $0xec] sm:$0xf] %vm10821_vm15, %v3433_v5  ;;  %v3669_v60 = vsel %vm10823_vm10, %v3574_v44, %v3668_v0  ;;  %v3664_v5 = vld [vmem:[#allocation2 + $0x8c] sm:$0xf]  ;;  %vm10830_vm15 = vmmov %vm10828_vm3 }
 0x481   :  { %3728 = vst [vmem:[#allocation2 + $0x88] sm:$0x1] %v3727_v29 }
 0x482   :  { %3670 = vst [vmem:[#allocation2 + $0x94] sm:$0xf] %v3669_v60 }
 0x484   :  { %3807 = vrot.lane.b32.xlu1 %v8675_v38, %s5550_s23 }
 0x485   :  { %v3431_v23 = vpop.permute.xlu0 %3430  ;;  %v3539_v18 = vld [vmem:[#allocation2 + $0xdc] sm:$0x8]  ;;  %3813 = vrot.lane.b32.xlu2 %v8730_v36, %s5550_s23 }
 0x486   :  { %v3540_v20 = vsel %vm7123_vm5, 0, %v3539_v18  ;;  %3500 = vst.msk [vmem:[#allocation2 + $0xe8] sm:$0xf] %vm10824_vm4, %v3431_v23  ;;  %vm10832_vm4 = vmmov %vm10828_vm3 }
 0x487   :  { %3541 = vst [vmem:[#allocation2 + $0xdc] sm:$0x8] %v3540_v20  ;;  %v3545_v34 = vld [vmem:[#allocation2 + $0xec] sm:$0x8]  ;;  %v3580_v41 = vpop.permute.xlu2 %3579  ;;  %v3439_v3 = vpop.permute.xlu1 %3438 }
 0x488   :  { %3781 = vrot.lane.b32.xlu0 %v10726_v1, %s5550_s23  ;;  %v3546_v33 = vsel %vm7123_vm5, 0, %v3545_v34  ;;  %3675 = vst.msk [vmem:[#allocation2 + $0xa0] sm:$0xf] %vm10825_vm7, %v3580_v41  ;;  %v3692_v41 = vld [vmem:[#allocation2 + $0xc4] sm:$0xf]  ;;  %vm10834_vm7 = vcmask 167056  }
 0x489   :  { %3547 = vst [vmem:[#allocation2 + $0xec] sm:$0x8] %v3546_v33 }
 0x48a   :  { %3504 = vst.msk [vmem:[#allocation2 + $0xf8] sm:$0xf] %vm10827_vm14, %v3439_v3 }
 0x48c   :  { %3993 = vrot.lane.b32.xlu1 %v9256_v16, %s5551_s29 }
 0x48d   :  { %v3437_v55 = vpop.permute.xlu0 %3436  ;;  %3955 = vrot.lane.b32.xlu2 %v9040_v53, %s5551_s29  ;;  %v3660_v53 = vld [vmem:[#allocation2 + $0x84] sm:$0xf] }
 0x48e   :  { %3503 = vst.msk [vmem:[#allocation2 + $0xf4] sm:$0xf] %vm10826_vm0, %v3437_v55  ;;  %v10833_v55 = vld [vmem:[#allocation34_spill] sm:$0xff]  ;;  %vm10835_vm0 = vmmov %vm10828_vm3 }
 0x48f   :  { %v3735_v38 = vld [vmem:[#allocation2 + $0xa0] sm:$0x1]  ;;  %v3586_v36 = vpop.permute.xlu2 %3585  ;;  %v3566_v1 = vpop.permute.xlu1 %3565  ;;  %vm10836_vm14 = vmmov %vm10835_vm0 }
 0x490   :  { %3961 = vrot.lane.b32.xlu0 %v9073_v54, %s5551_s29  ;;  %v3736_v48 = vsel %vm10820_vm11, 0, %v3735_v38  ;;  %v3681_v59 = vsel %vm10823_vm10, %v3586_v36, %v3680_v51  ;;  %v3661_v54 = vsel %vm10823_vm10, %v3566_v1, %v3660_v53 }
 0x491   :  { %3737 = vst [vmem:[#allocation2 + $0xa0] sm:$0x1] %v3736_v48  ;;  %v3676_v48 = vld [vmem:[#allocation2 + $0xa4] sm:$0xf] }
 0x492   :  { %3682 = vst [vmem:[#allocation2 + $0xac] sm:$0xf] %v3681_v59 }
 0x493   :  { %3662 = vst [vmem:[#allocation2 + $0x84] sm:$0xf] %v3661_v54 }
 0x494   :  { %4137 = vrot.lane.b32.xlu1 %v10772_v4, %s5552_s14  ;;  %v10831_v4 = vld [vmem:[#allocation28_spill] sm:$0xff] }
 0x495   :  { %v3564_v19 = vpop.permute.xlu0 %3563  ;;  %v3548_v8 = vld [vmem:[#allocation2 + $0xf4] sm:$0x8]  ;;  %4169 = vrot.lane.b32.xlu2 %v10818_v30, %s5552_s14 }
 0x496   :  { %v3549_v16 = vsel %vm7123_vm5, 0, %v3548_v8  ;;  %3659 = vst.msk [vmem:[#allocation2 + $0x80] sm:$0xf] %vm10828_vm3, %v3564_v19  ;;  %vm10829_vm5 = vmmov %vm10828_vm3 }
 0x497   :  { %3550 = vst [vmem:[#allocation2 + $0xf4] sm:$0x8] %v3549_v16  ;;  %v3592_v61 = vpop.permute.xlu2 %3591  ;;  %v3572_v47 = vpop.permute.xlu1 %3571  ;;  %vm10837_vm3 = vmmov %vm10835_vm0 }
 0x498   :  { %3987 = vrot.lane.b32.xlu0 %v9228_v57, %s5551_s29  ;;  %3687 = vst.msk [vmem:[#allocation2 + $0xb8] sm:$0xf] %vm10829_vm5, %v3592_v61  ;;  %v3684_v61 = vld [vmem:[#allocation2 + $0xb4] sm:$0xf]  ;;  %vm10838_vm5 = vmmov %vm10834_vm7 }
 0x499   :  { %3667 = vst.msk [vmem:[#allocation2 + $0x90] sm:$0xf] %vm10830_vm15, %v3572_v47  ;;  %vm10839_vm15 = vmmov %vm10835_vm0 }
 0x49c   :  { %4167 = vrot.lane.b32.xlu1 %v10817_v58, %s5552_s14  ;;  %v3672_v58 = vld [vmem:[#allocation2 + $0x9c] sm:$0xf] }
 0x49d   :  { %v3570_v44 = vpop.permute.xlu0 %3569  ;;  %v3723_v29 = vld [vmem:[#allocation2 + $0x80] sm:$0x1]  ;;  %3609 = vrot.lane.b32.xlu2 %v10831_v4, %s5549_s21 }
 0x49e   :  { %v3665_v23 = vsel %vm10823_vm10, %v3570_v44, %v3664_v5  ;;  %v3724_v30 = vsel %vm10820_vm11, 0, %v3723_v29  ;;  %v3688_v29 = vld [vmem:[#allocation2 + $0xbc] sm:$0xf] }
 0x49f   :  { %3666 = vst [vmem:[#allocation2 + $0x8c] sm:$0xf] %v3665_v23  ;;  %v3744_v57 = vld [vmem:[#allocation2 + $0xb8] sm:$0x1]  ;;  %v3598_v0 = vpop.permute.xlu2 %3597  ;;  %v3578_v18 = vpop.permute.xlu1 %3577 }
 0x4a0   :  { %3725 = vst [vmem:[#allocation2 + $0x80] sm:$0x1] %v3724_v30  ;;  %4135 = vrot.lane.b32.xlu0 %v10773_v11, %s5552_s14  ;;  %v3745_v60 = vsel %vm10820_vm11, 0, %v3744_v57  ;;  %v3729_v20 = vld [vmem:[#allocation2 + $0x90] sm:$0x1]  ;;  %v3693_v33 = vsel %vm10823_vm10, %v3598_v0, %v3692_v41  ;;  %v3673_v11 = vsel %vm10823_vm10, %v3578_v18, %v3672_v58 }
 0x4a1   :  { %3746 = vst [vmem:[#allocation2 + $0xb8] sm:$0x1] %v3745_v60  ;;  %v3730_v3 = vsel %vm10820_vm11, 0, %v3729_v20  ;;  %v10840_v60 = vld [vmem:[#allocation25_spill] sm:$0xff] }
 0x4a2   :  { %3731 = vst [vmem:[#allocation2 + $0x90] sm:$0x1] %v3730_v3 }
 0x4a3   :  { %3694 = vst [vmem:[#allocation2 + $0xc4] sm:$0xf] %v3693_v33 }
 0x4a4   :  { %3674 = vst [vmem:[#allocation2 + $0x9c] sm:$0xf] %v3673_v11  ;;  %3779 = vrot.lane.b32.xlu1 %v8241_v62, %s5550_s23  ;;  %v3696_v62 = vld [vmem:[#allocation2 + $0xcc] sm:$0xf] }
 0x4a5   :  { %v3576_v34 = vpop.permute.xlu0 %3575  ;;  %3785 = vrot.lane.b32.xlu2 %v8346_v15, %s5550_s23 }
 0x4a6   :  { %3671 = vst.msk [vmem:[#allocation2 + $0x98] sm:$0xf] %vm10832_vm4, %v3576_v34  ;;  %vm10841_vm4 = vnez %v10840_v60 }
 0x4a7   :  { %v3806_v38 = vpop.permute.xlu2 %3805  ;;  %v3584_v36 = vpop.permute.xlu1 %3583  ;;  %v3861_v33 = vld [vmem:[#allocation2 + $0x80] sm:$0xf] }
 0x4a8   :  { %3607 = vrot.lane.b32.xlu0 %v10833_v55, %s5549_s21  ;;  %3896 = vst.msk [vmem:[#allocation2 + $0xc4] sm:$0xf] %vm10834_vm7, %v3806_v38  ;;  %vm10843_vm7 = vmmov %vm10838_vm5 }
 0x4a9   :  { %3679 = vst.msk [vmem:[#allocation2 + $0xa8] sm:$0xf] %vm10835_vm0, %v3584_v36  ;;  %vm10844_vm0 = vmmov %vm10838_vm5 }
 0x4ac   :  { %3817 = vrot.lane.b32.xlu1 %v10743_v46, %s5550_s23 }
 0x4ad   :  { %v3582_v1 = vpop.permute.xlu0 %3581  ;;  %v3732_v51 = vld [vmem:[#allocation2 + $0x98] sm:$0x1]  ;;  %3965 = vrot.lane.b32.xlu2 %v9111_v37, %s5551_s29 }
 0x4ae   :  { %v3677_v19 = vsel %vm10823_vm10, %v3582_v1, %v3676_v48  ;;  %v3733_v15 = vsel %vm10820_vm11, 0, %v3732_v51  ;;  %v3865_v51 = vld [vmem:[#allocation2 + $0x88] sm:$0xf] }
 0x4af   :  { %3678 = vst [vmem:[#allocation2 + $0xa4] sm:$0xf] %v3677_v19  ;;  %v3602_v8 = vpop.permute.xlu2 %3601  ;;  %v3590_v59 = vpop.permute.xlu1 %3589 }
 0x4b0   :  { %3734 = vst [vmem:[#allocation2 + $0x98] sm:$0x1] %v3733_v15  ;;  %3811 = vrot.lane.b32.xlu0 %v8435_v28, %s5550_s23  ;;  %v3738_v53 = vld [vmem:[#allocation2 + $0xa8] sm:$0x1]  ;;  %v3697_v54 = vsel %vm10823_vm10, %v3602_v8, %v3696_v62  ;;  %v3685_v46 = vsel %vm10823_vm10, %v3590_v59, %v3684_v61 }
 0x4b1   :  { %v3739_v47 = vsel %vm10820_vm11, 0, %v3738_v53  ;;  %3698 = vst [vmem:[#allocation2 + $0xcc] sm:$0xf] %v3697_v54 }
 0x4b2   :  { %3740 = vst [vmem:[#allocation2 + $0xa8] sm:$0x1] %v3739_v47 }
 0x4b3   :  { %3686 = vst [vmem:[#allocation2 + $0xb4] sm:$0xf] %v3685_v46 }
 0x4b4   :  { %3959 = vrot.lane.b32.xlu1 %v9080_v7, %s5551_s29 }
 0x4b5   :  { %v3588_v16 = vpop.permute.xlu0 %3587  ;;  %3991 = vrot.lane.b32.xlu2 %v9214_v21, %s5551_s29 }
 0x4b6   :  { %3683 = vst.msk [vmem:[#allocation2 + $0xb0] sm:$0xf] %vm10836_vm14, %v3588_v16  ;;  %vm10846_vm14 = vcmask 216256  }
 0x4b7   :  { %v3804_v28 = vpop.permute.xlu2 %3803  ;;  %v3596_v37 = vpop.permute.xlu1 %3595 }
 0x4b8   :  { %3997 = vrot.lane.b32.xlu0 %v9242_v12, %s5551_s29  ;;  %3691 = vst.msk [vmem:[#allocation2 + $0xc0] sm:$0xf] %vm10837_vm3, %v3596_v37  ;;  %vm10847_vm3 = vmmov %vm10846_vm14  ;;  %v3700_v37 = vld [vmem:[#allocation2 + $0xd4] sm:$0xf] }
 0x4bc   :  { %4173 = vrot.lane.b32.xlu1 %v10831_v4, %s5552_s14 }
 0x4bd   :  { %v3741_v44 = vld [vmem:[#allocation2 + $0xb0] sm:$0x1]  ;;  %v3594_v5 = vpop.permute.xlu0 %3593  ;;  %4139 = vrot.lane.b32.xlu2 %v10780_v39, %s5552_s14 }
 0x4be   :  { %v3742_v23 = vsel %vm10820_vm11, 0, %v3741_v44  ;;  %v3689_v30 = vsel %vm10823_vm10, %v3594_v5, %v3688_v29 }
 0x4bf   :  { %3743 = vst [vmem:[#allocation2 + $0xb0] sm:$0x1] %v3742_v23  ;;  %v3747_v7 = vld [vmem:[#allocation2 + $0xc0] sm:$0x1]  ;;  %v3990_v21 = vpop.permute.xlu2 %3989  ;;  %v3774_v12 = vpop.permute.xlu1 %3773 }
 0x4c0   :  { %3690 = vst [vmem:[#allocation2 + $0xbc] sm:$0xf] %v3689_v30  ;;  %4141 = vrot.lane.b32.xlu0 %v10779_v31, %s5552_s14  ;;  %v3748_v57 = vsel %vm10820_vm11, 0, %v3747_v7  ;;  %v3704_v7 = vld [vmem:[#allocation2 + $0xdc] sm:$0xf] }
 0x4c1   :  { %3864 = vst.msk [vmem:[#allocation2 + $0x84] sm:$0xf] %vm10838_vm5, %v3774_v12  ;;  %vm10848_vm5 = vmmov %vm10839_vm15 }
 0x4c2   :  { %3749 = vst [vmem:[#allocation2 + $0xc0] sm:$0x1] %v3748_v57 }
 0x4c4   :  { %3613 = vrot.lane.b32.xlu1 %v8555_v6, %s5549_s21 }
 0x4c5   :  { %v3600_v0 = vpop.permute.xlu0 %3599  ;;  %3611 = vrot.lane.b32.xlu2 %v8646_v49, %s5549_s21 }
 0x4c6   :  { %3695 = vst.msk [vmem:[#allocation2 + $0xc8] sm:$0xf] %vm10839_vm15, %v3600_v0  ;;  %vm10849_vm15 = vmmov %vm10844_vm0 }
 0x4c7   :  { %v4134_v39 = vpop.permute.xlu2 %4133  ;;  %v3986_v31 = vpop.permute.xlu1 %3985 }
 0x4c8   :  { %4171 = vrot.lane.b32.xlu0 %v10833_v55, %s5552_s14  ;;  %4058 = vst.msk [vmem:[#allocation2 + $0xc4] sm:$0xf] %vm1911_vm12, %v3986_v31  ;;  %v5509_v31 = vld [vmem:[%s10069_s0 + $0xb4] sm:$0xf] }
 0x4c9   :  { %v3893_v4 = vld [vmem:[#allocation2 + $0xc0] sm:$0xf] }
 0x4ca   :  { %v3894_v20 = vsel %vm10841_vm4, %v3804_v28, %v3893_v4 }
 0x4cb   :  { %3895 = vst [vmem:[#allocation2 + $0xc0] sm:$0xf] %v3894_v20 }
 0x4cc   :  { %3789 = vrot.lane.b32.xlu1 %v10730_v13, %s5550_s23 }
 0x4cd   :  { %v3954_v18 = vpop.permute.xlu0 %3953  ;;  %v3750_v34 = vld [vmem:[#allocation2 + $0xc8] sm:$0x1]  ;;  %3815 = vrot.lane.b32.xlu2 %v8773_v22, %s5550_s23 }
 0x4ce   :  { %4042 = vst.msk [vmem:[#allocation2 + $0x84] sm:$0xf] %vm1911_vm12, %v3954_v18  ;;  %v3751_v41 = vsel %vm10820_vm11, 0, %v3750_v34  ;;  %v10852_v34 = vld [vmem:[#allocation23_spill] sm:$0xff] }
 0x4cf   :  { %3752 = vst [vmem:[#allocation2 + $0xc8] sm:$0x1] %v3751_v41  ;;  %v4107_v3 = vld [vmem:[#allocation2 + $0xc4] sm:$0x8]  ;;  %v4164_v58 = vpop.permute.xlu2 %4163  ;;  %v3778_v11 = vpop.permute.xlu1 %3777 }
 0x4d0   :  { %3783 = vrot.lane.b32.xlu0 %v10725_v52, %s5550_s23  ;;  %v4108_v36 = vsel %vm7557_vm9, 0, %v4107_v3  ;;  %3868 = vst.msk [vmem:[#allocation2 + $0x8c] sm:$0xf] %vm10843_vm7, %v3778_v11  ;;  %vm10850_vm7 = vmmov %vm10844_vm0 }
 0x4d1   :  { %4109 = vst [vmem:[#allocation2 + $0xc4] sm:$0x8] %v4108_v36 }
 0x4d4   :  { %3969 = vrot.lane.b32.xlu1 %v9145_v24, %s5551_s29 }
 0x4d5   :  { %v4083_v55 = vld [vmem:[#allocation2 + $0x84] sm:$0x8]  ;;  %v3772_v1 = vpop.permute.xlu0 %3771  ;;  %4001 = vrot.lane.b32.xlu2 %v9282_v42, %s5551_s29 }
 0x4d6   :  { %v4084_v22 = vsel %vm7557_vm9, 0, %v4083_v55  ;;  %v3862_v13 = vsel %vm10841_vm4, %v3772_v1, %v3861_v33  ;;  %v10853_v1 = vld [vmem:[#allocation39_spill] sm:$0xff] }
 0x4d7   :  { %4085 = vst [vmem:[#allocation2 + $0x84] sm:$0x8] %v4084_v22  ;;  %v3776_v52 = vpop.permute.xlu2 %3775  ;;  %v3958_v48 = vpop.permute.xlu1 %3957  ;;  %v10854_v22 = vld [vmem:[#allocation57_spill] sm:$0xff] }
 0x4d8   :  { %3863 = vst [vmem:[#allocation2 + $0x80] sm:$0xf] %v3862_v13  ;;  %3821 = vrot.lane.b32.xlu0 %v8768_v10, %s5550_s23  ;;  %v3866_v62 = vsel %vm10841_vm4, %v3776_v52, %v3865_v51  ;;  %v4254_v47 = vld [vmem:[#allocation2 + $0xc4] sm:$0xf] }
 0x4d9   :  { %4044 = vst.msk [vmem:[#allocation2 + $0x8c] sm:$0xf] %vm1911_vm12, %v3958_v48 }
 0x4da   :  { %3867 = vst [vmem:[#allocation2 + $0x88] sm:$0xf] %v3866_v62  ;;  %v10858_v62 = vld [vmem:[#allocation15_spill] sm:$0xff] }
 0x4dc   :  { %3995 = vrot.lane.b32.xlu1 %v9249_v9, %s5551_s29 }
 0x4dd   :  { %v3810_v19 = vpop.permute.xlu0 %3809  ;;  %4145 = vrot.lane.b32.xlu2 %v10784_v35, %s5552_s14 }
 0x4de   :  { %v4222_v15 = vld [vmem:[#allocation2 + $0x84] sm:$0xf]  ;;  %3900 = vst.msk [vmem:[#allocation2 + $0xcc] sm:$0xf] %vm10844_vm0, %v3810_v19 }
 0x4df   :  { %v4223_v42 = vsel %vm7720_vm1, %v4134_v39, %v4222_v15  ;;  %4060 = vst.msk [vmem:[#allocation2 + $0xcc] sm:$0xf] %vm1911_vm12, %v3990_v21  ;;  %v3814_v24 = vpop.permute.xlu2 %3813  ;;  %v3984_v59 = vpop.permute.xlu1 %3983  ;;  %v3897_v39 = vld [vmem:[#allocation2 + $0xc8] sm:$0xf]  ;;  %v10856_v15 = vld [vmem:[#allocation40_spill] sm:$0xff] }
 0x4e0   :  { %4224 = vst [vmem:[#allocation2 + $0x84] sm:$0xf] %v4223_v42  ;;  %3963 = vrot.lane.b32.xlu0 %v9118_v56, %s5551_s29  ;;  %v4086_v10 = vld [vmem:[#allocation2 + $0x8c] sm:$0x8] }
 0x4e1   :  { %v4087_v53 = vsel %vm7557_vm9, 0, %v4086_v10  ;;  %4057 = vst.msk [vmem:[#allocation2 + $0xc0] sm:$0xf] %vm1911_vm12, %v3984_v59  ;;  %v3869_v10 = vld [vmem:[#allocation2 + $0x90] sm:$0xf] }
 0x4e2   :  { %4088 = vst [vmem:[#allocation2 + $0x8c] sm:$0x8] %v4087_v53 }
 0x4e3   :  { %4253 = vst.msk [vmem:[#allocation2 + $0xc0] sm:$0xf] %vm10846_vm14, %v4164_v58  ;;  %vm10855_vm14 = vmmov %vm10847_vm3 }
 0x4e4   :  { %4143 = vrot.lane.b32.xlu1 %v10778_v17, %s5552_s14 }
 0x4e5   :  { %v3952_v16 = vpop.permute.xlu0 %3951  ;;  %4175 = vrot.lane.b32.xlu2 %v8646_v49, %s5552_s14 }
 0x4e6   :  { %v4110_v54 = vld [vmem:[#allocation2 + $0xcc] sm:$0x8]  ;;  %4041 = vst.msk [vmem:[#allocation2 + $0x80] sm:$0xf] %vm1911_vm12, %v3952_v16 }
 0x4e7   :  { %v4111_v35 = vsel %vm7557_vm9, 0, %v4110_v54  ;;  %v3956_v56 = vpop.permute.xlu2 %3955  ;;  %v4132_v9 = vpop.permute.xlu1 %4131 }
 0x4e8   :  { %4112 = vst [vmem:[#allocation2 + $0xcc] sm:$0x8] %v4111_v35  ;;  %4177 = vrot.lane.b32.xlu0 %v8555_v6, %s5552_s14  ;;  %v5510_v35 = vld [vmem:[%s10069_s0 + $0xbc] sm:$0xf] }
 0x4e9   :  { %4043 = vst.msk [vmem:[#allocation2 + $0x88] sm:$0xf] %vm1911_vm12, %v3956_v56  ;;  %v4226_v11 = vld [vmem:[#allocation2 + $0x8c] sm:$0xf]  ;;  %v10859_v56 = vld [vmem:[#allocation42_spill] sm:$0xff] }
 0x4ea   :  { %4221 = vst.msk [vmem:[#allocation2 + $0x80] sm:$0xf] %vm10847_vm3, %v4132_v9  ;;  %v10860_v9 = vld [vmem:[#allocation10_spill] sm:$0xff] }
 0x4ec   :  { %3615 = vrot.lane.b32.xlu1 %v8622_v32, %s5549_s21 }
 0x4ed   :  { %v4166_v61 = vpop.permute.xlu0 %4165  ;;  %3787 = vrot.lane.b32.xlu2 %v10731_v14, %s5550_s23 }
 0x4ee   :  { %v4255_v46 = vsel %vm7720_vm1, %v4166_v61, %v4254_v47 }
 0x4ef   :  { %4256 = vst [vmem:[#allocation2 + $0xc4] sm:$0xf] %v4255_v46  ;;  %v4258_v6 = vld [vmem:[#allocation2 + $0xcc] sm:$0xf]  ;;  %v4170_v49 = vpop.permute.xlu2 %4169  ;;  %v3604_v17 = vpop.permute.xlu1 %3603 }
 0x4f0   :  { %3617 = vrot.lane.b32.xlu0 %v8678_v50, %s5549_s21  ;;  %v4259_v44 = vsel %vm7720_vm1, %v4170_v49, %v4258_v6  ;;  %3699 = vst.msk [vmem:[#allocation2 + $0xd0] sm:$0xf] %vm10848_vm5, %v3604_v17 }
 0x4f1   :  { %v5406_v5 = vld [vmem:[#allocation2 + $0x80] sm:$0xff]  ;;  %4260 = vst [vmem:[#allocation2 + $0xcc] sm:$0xf] %v4259_v44  ;;  %v5511_v44 = vld [vmem:[%s10069_s0 + $0xb0] sm:$0xf] }
 0x4f2   :  { %5374 = vmatmul.msk.bf16.vlgmr.msra.gmra.mxu2 %vm4551_vm13, %v5406_v5  ;;  %v5512_v5 = vld [vmem:[%s10069_s0 + $0xfc] sm:$0xf] }
 0x4f4   :  { %3819 = vrot.lane.b32.xlu1 %v8801_v27, %s5550_s23  ;;  %v5508_v27 = vld [vmem:[%s10069_s0 + $0xa8] sm:$0xf] }
 0x4f5   :  { %v3606_v28 = vpop.permute.xlu0 %3605  ;;  %3825 = vrot.lane.b32.xlu2 %v8780_v26, %s5550_s23 }
 0x4f6   :  { %v3701_v14 = vsel %vm10823_vm10, %v3606_v28, %v3700_v37  ;;  %v5414_v29 = vld [vmem:[#allocation2 + $0xc0] sm:$0xff] }
 0x4f7   :  { %3702 = vst [vmem:[#allocation2 + $0xd4] sm:$0xf] %v3701_v14  ;;  %5382 = vmatmul.msk.bf16.vlgmr.msra.gmra.mxu3 %vm4551_vm13, %v5414_v29  ;;  %v3753_v23 = vld [vmem:[#allocation2 + $0xd0] sm:$0x1]  ;;  %v3610_v30 = vpop.permute.xlu2 %3609  ;;  %v3808_v21 = vpop.permute.xlu1 %3807  ;;  %v10863_v37 = vld [vmem:[#allocation54_spill] sm:$0xff]  ;;  %v10864_v14 = vld [vmem:[#allocation41_spill] sm:$0xff] }
 0x4f8   :  { %3904 = vst.msk [vmem:[#allocation2 + $0xd4] sm:$0xf] %vm10849_vm15, %v3814_v24  ;;  %3793 = vrot.lane.b32.xlu0 %v10733_v2, %s5550_s23  ;;  %v3754_v12 = vsel %vm10820_vm11, 0, %v3753_v23  ;;  %v3705_v0 = vsel %vm10823_vm10, %v3610_v30, %v3704_v7  ;;  %v3898_v26 = vsel %vm10841_vm4, %v3808_v21, %v3897_v39  ;;  %v10851_v2 = vld [vmem:[#allocation21_spill] sm:$0xff]  ;;  %vm10861_vm15 = vmmov %vm10848_vm5  ;;  %v10865_v29 = vshrl.u32 %v10864_v14, 16 }
 0x4f9   :  { %3755 = vst [vmem:[#allocation2 + $0xd0] sm:$0x1] %v3754_v12  ;;  %v10866_v30 = vshll.u32 %v10864_v14, 16  ;;  %v3873_v14 = vld [vmem:[#allocation2 + $0x98] sm:$0xf] }
 0x4fa   :  { %3706 = vst [vmem:[#allocation2 + $0xdc] sm:$0xf] %v3705_v0  ;;  %v3554_v23 = vrot.slane %v10865_v29, 4 }
 0x4fb   :  { %3899 = vst [vmem:[#allocation2 + $0xc8] sm:$0xf] %v3898_v26  ;;  %v3555_v7 = vrot.slane %v10866_v30, 5  ;;  %v5219_v30 = vld [vmem:[%s10070_s1 + $0x1c] sm:$0xf] }
 0x4fc   :  { %4005 = vrot.lane.b32.xlu1 %v10851_v2, %s5551_s29 }
 0x4fd   :  { %v3782_v57 = vpop.permute.xlu0 %3781  ;;  %3967 = vrot.lane.b32.xlu2 %v5508_v27, %s5551_s29  ;;  %v10867_v27 = vld [vmem:[#allocation22_spill] sm:$0xff] }
 0x4fe   :  { %3872 = vst.msk [vmem:[#allocation2 + $0x94] sm:$0xf] %vm10850_vm7, %v3782_v57  ;;  %vm10862_vm7 = vmmov %vm10844_vm0  ;;  %v10868_v2 = vshll.u32 %v10867_v27, 16 }
 0x4ff   :  { %v3786_v4 = vpop.permute.xlu2 %3785  ;;  %v3994_v18 = vpop.permute.xlu1 %3993 }
 0x500   :  { %3973 = vrot.lane.b32.xlu0 %v5509_v31, %s5551_s29  ;;  %3876 = vst.msk [vmem:[#allocation2 + $0x9c] sm:$0xf] %vm10844_vm0, %v3786_v4  ;;  %v3901_v49 = vld [vmem:[#allocation2 + $0xd0] sm:$0xf]  ;;  %v3558_v31 = vrot.slane %v10868_v2, 5  ;;  %v10869_v4 = vshrl.u32 %v10867_v27, 16  ;;  %vm10870_vm0 = vmmov %vm10847_vm3 }
 0x501   :  { %4062 = vst.msk [vmem:[#allocation2 + $0xd4] sm:$0xf] %vm1911_vm12, %v3994_v18  ;;  %v5514_v2 = vld [vmem:[%s10069_s0 + $0xf8] sm:$0xf] }
 0x502   :  { %v3560_v18 = vrot.slane %v10869_v4, 4 }
 0x504   :  { %4149 = vrot.lane.b32.xlu1 %v10782_v43, %s5552_s14 }
 0x505   :  { %v3962_v20 = vpop.permute.xlu0 %3961  ;;  %4181 = vrot.lane.b32.xlu2 %v8678_v50, %s5552_s14 }
 0x506   :  { %4046 = vst.msk [vmem:[#allocation2 + $0x94] sm:$0xf] %vm1911_vm12, %v3962_v20 }
 0x507   :  { %v3966_v41 = vpop.permute.xlu2 %3965  ;;  %v4138_v3 = vpop.permute.xlu1 %4137 }
 0x508   :  { %3999 = vrot.lane.b32.xlu0 %v10852_v34, %s5551_s29  ;;  %4048 = vst.msk [vmem:[#allocation2 + $0x9c] sm:$0xf] %vm1911_vm12, %v3966_v41  ;;  %v4113_v36 = vld [vmem:[#allocation2 + $0xd4] sm:$0x8]  ;;  %v4227_v50 = vsel %vm7720_vm1, %v4138_v3, %v4226_v11  ;;  %v3556_v34 = vor.u32 %v3555_v7, %v3554_v23  ;;  %v10871_v41 = vld [vmem:[#allocation17_spill] sm:$0xff]  ;;  %v3561_v3 = vor.u32 %v3560_v18, %v3558_v31 }
 0x509   :  { %v4114_v43 = vsel %vm7557_vm9, 0, %v4113_v36  ;;  %4228 = vst [vmem:[#allocation2 + $0x8c] sm:$0xf] %v4227_v50 }
 0x50a   :  { %4115 = vst [vmem:[#allocation2 + $0xd4] sm:$0x8] %v4114_v43 }
 0x50c   :  { %4179 = vrot.lane.b32.xlu1 %v8622_v32, %s5552_s14  ;;  %v10857_v32 = vld [vmem:[#allocation12_spill] sm:$0xff] }
 0x50d   :  { %v4089_v33 = vld [vmem:[#allocation2 + $0x94] sm:$0x8]  ;;  %v3988_v58 = vpop.permute.xlu0 %3987  ;;  %3621 = vrot.lane.b32.xlu2 %v10853_v1, %s5549_s21 }
 0x50e   :  { %v4090_v55 = vsel %vm7557_vm9, 0, %v4089_v33  ;;  %4059 = vst.msk [vmem:[#allocation2 + $0xc8] sm:$0xf] %vm1911_vm12, %v3988_v58  ;;  %v10872_v33 = vld [vmem:[#allocation55_spill] sm:$0xff]  ;;  %v3557_v58 = vrot.slane %v3556_v34, 4 }
 0x50f   :  { %4091 = vst [vmem:[#allocation2 + $0x94] sm:$0x8] %v4090_v55  ;;  %v4092_v13 = vld [vmem:[#allocation2 + $0x9c] sm:$0x8]  ;;  %v3992_v52 = vpop.permute.xlu2 %3991  ;;  %v4168_v48 = vpop.permute.xlu1 %4167 }
 0x510   :  { %4147 = vrot.lane.b32.xlu0 %v10854_v22, %s5552_s14  ;;  %v4093_v19 = vsel %vm7557_vm9, 0, %v4092_v13  ;;  %4257 = vst.msk [vmem:[#allocation2 + $0xc8] sm:$0xf] %vm10855_vm14, %v4168_v48  ;;  %vm10874_vm14 = vmmov %vm10870_vm0 }
 0x511   :  { %4094 = vst [vmem:[#allocation2 + $0x9c] sm:$0x8] %v4093_v19  ;;  %v4262_v55 = vld [vmem:[#allocation2 + $0xd4] sm:$0xf]  ;;  %v9887_v19 = vld [vmem:[%s10072_s3] ss:$0 sm:$0xff] }
 0x512   :  { %s5554_s3 = smov [#allocation3]  }
 0x514   :  { %3791 = vrot.lane.b32.xlu1 %v10857_v32, %s5550_s23  ;;  %v5217_v32 = vld [vmem:[%s10070_s1 + $0x1c] sm:$0xf] }
 0x515   :  { %v4136_v51 = vpop.permute.xlu0 %4135  ;;  %3797 = vrot.lane.b32.xlu2 %v10856_v15, %s5550_s23  ;;  %v9764_v15 = vld [vmem:[%s10070_s1 + $0x18] sm:$0xf] }
 0x516   :  { %4225 = vst.msk [vmem:[#allocation2 + $0x88] sm:$0xf] %vm10847_vm3, %v4136_v51  ;;  %v4230_v43 = vld [vmem:[#allocation2 + $0x94] sm:$0xf]  ;;  %v9759_v51 = vsel %vm5845_vm6, %v3557_v58, %v3558_v31  ;;  %vm10878_vm3 = vmmov %vm10862_vm7  ;;  %v5515_v31 = vld [vmem:[%s10069_s0 + $0xb8] sm:$0xf] }
 0x517   :  { %v4140_v42 = vpop.permute.xlu2 %4139  ;;  %v3780_v24 = vpop.permute.xlu1 %3779  ;;  %v5415_v59 = vld [vmem:[#allocation2 + $0xc8] sm:$0xff]  ;;  %v10882_v58 = vld [vmem:[#allocation16_spill] sm:$0xff] }
 0x518   :  { %3619 = vrot.lane.b32.xlu0 %v10858_v62, %s5549_s21  ;;  %v3870_v16 = vsel %vm10841_vm4, %v3780_v24, %v3869_v10  ;;  %5383 = vmatmul.msk.bf16.gmra.mxu3 %vm4551_vm13, %v5415_v59  ;;  %v4234_v10 = vld [vmem:[#allocation2 + $0x9c] sm:$0xf]  ;;  %v3708_v24 = vld [vmem:[#allocation2 + $0xe4] sm:$0xf] }
 0x519   :  { %3871 = vst [vmem:[#allocation2 + $0x90] sm:$0xf] %v3870_v16  ;;  %v3933_v16 = vshrl.u32 %v5217_v32, 16 }
 0x51c   :  { %3829 = vrot.lane.b32.xlu1 %v10859_v56, %s5550_s23 }
 0x51d   :  { %v3608_v53 = vpop.permute.xlu0 %3607  ;;  %v5407_v54 = vld [vmem:[#allocation2 + $0x88] sm:$0xff]  ;;  %3977 = vrot.lane.b32.xlu2 %v5510_v35, %s5551_s29 }
 0x51e   :  { %3703 = vst.msk [vmem:[#allocation2 + $0xd8] sm:$0xf] %vm10848_vm5, %v3608_v53  ;;  %5375 = vmatmul.msk.bf16.gmra.mxu2 %vm4551_vm13, %v5407_v54  ;;  %v3925_v53 = vshrl.u32 %v9764_v15, 16  ;;  %vm10881_vm5 = vmmov %vm10870_vm0 }
 0x51f   :  { %v3612_v61 = vpop.permute.xlu2 %3611  ;;  %v3818_v47 = vpop.permute.xlu1 %3817 }
 0x520   :  { %3823 = vrot.lane.b32.xlu0 %v10860_v9, %s5550_s23  ;;  %3707 = vst.msk [vmem:[#allocation2 + $0xe0] sm:$0xf] %vm10861_vm15, %v3612_v61  ;;  %v3935_v61 = vrot.slane %v3933_v16, 7  ;;  %vm10883_vm15 = vmmov %vm10870_vm0 }
 0x521   :  { %3908 = vst.msk [vmem:[#allocation2 + $0xdc] sm:$0xf] %vm10862_vm7, %v3818_v47  ;;  %v3936_v47 = vshll.u32 %v5217_v32, 16  ;;  %vm10885_vm7 = vcmask 142456  }
 0x524   :  { %3971 = vrot.lane.b32.xlu1 %v5511_v44, %s5551_s29  ;;  %v3938_v44 = vor.u32 %v3936_v47, %v3935_v61 }
 0x525   :  { %v3756_v46 = vld [vmem:[#allocation2 + $0xd8] sm:$0x1]  ;;  %v3812_v6 = vpop.permute.xlu0 %3811  ;;  %4003 = vrot.lane.b32.xlu2 %v10863_v37, %s5551_s29 }
 0x526   :  { %v3757_v17 = vsel %vm10820_vm11, 0, %v3756_v46  ;;  %v3902_v28 = vsel %vm10841_vm4, %v3812_v6, %v3901_v49  ;;  %v10875_v46 = vld [vmem:[#allocation43_spill] sm:$0xff]  ;;  %v10877_v49 = vld [vmem:[#allocation30_spill] sm:$0xff] }
 0x527   :  { %3758 = vst [vmem:[#allocation2 + $0xd8] sm:$0x1] %v3757_v17  ;;  %v3759_v21 = vld [vmem:[#allocation2 + $0xe0] sm:$0x1]  ;;  %v3816_v12 = vpop.permute.xlu2 %3815  ;;  %v3960_v57 = vpop.permute.xlu1 %3959  ;;  %v10876_v6 = vld [vmem:[#allocation35_spill] sm:$0xff] }
 0x528   :  { %3903 = vst [vmem:[#allocation2 + $0xd0] sm:$0xf] %v3902_v28  ;;  %4009 = vrot.lane.b32.xlu0 %v5512_v5, %s5551_s29  ;;  %v3760_v0 = vsel %vm10820_vm11, 0, %v3759_v21 }
 0x529   :  { %4061 = vst.msk [vmem:[#allocation2 + $0xd0] sm:$0xf] %vm1911_vm12, %v3992_v52 }
 0x52a   :  { %4045 = vst.msk [vmem:[#allocation2 + $0x90] sm:$0xf] %vm1911_vm12, %v3960_v57 }
 0x52b   :  { %3761 = vst [vmem:[#allocation2 + $0xe0] sm:$0x1] %v3760_v0  ;;  %v3877_v0 = vld [vmem:[#allocation2 + $0xa0] sm:$0xf] }
 0x52c   :  { %4229 = vst.msk [vmem:[#allocation2 + $0x90] sm:$0xf] %vm10870_vm0, %v4140_v42  ;;  %4185 = vrot.lane.b32.xlu1 %v10853_v1, %s5552_s14  ;;  %v9753_v1 = vrot.slane %v3561_v3, 4 }
 0x52d   :  { %v3998_v39 = vpop.permute.xlu0 %3997  ;;  %4151 = vrot.lane.b32.xlu2 %v10871_v41, %s5552_s14 }
 0x52e   :  { %v3905_v26 = vld [vmem:[#allocation2 + $0xd8] sm:$0xf]  ;;  %4064 = vst.msk [vmem:[#allocation2 + $0xdc] sm:$0xf] %vm1911_vm12, %v3998_v39 }
 0x52f   :  { %v3906_v20 = vsel %vm10841_vm4, %v3816_v12, %v3905_v26  ;;  %v9747_v11 = vpop.permute.xlu2 %4001  ;;  %v4174_v36 = vpop.permute.xlu1 %4173  ;;  %v5513_v12 = vld [vmem:[%s10069_s0 + $0xc4] sm:$0xf] }
 0x530   :  { %3907 = vst [vmem:[#allocation2 + $0xd8] sm:$0xf] %v3906_v20  ;;  %4153 = vrot.lane.b32.xlu0 %v10872_v33, %s5552_s14  ;;  %v4263_v22 = vsel %vm7720_vm1, %v4174_v36, %v4262_v55  ;;  %v5221_v33 = vld [vmem:[%s10070_s1 + $0x1c] sm:$0xf] }
 0x531   :  { %4264 = vst [vmem:[#allocation2 + $0xd4] sm:$0xf] %v4263_v22  ;;  %v4293_v55 = vshll.u32 %v5221_v33, 16  ;;  %v4297_v36 = vshrl.u32 %v5221_v33, 16  ;;  %v5220_v22 = vld [vmem:[%s10070_s1 + $0x18] sm:$0xf] }
 0x533   :  { %v4299_v32 = vrot.slane %v4297_v36, 4 }
 0x534   :  { %3625 = vrot.lane.b32.xlu1 %v9753_v1, %s5549_s21 }
 0x535   :  { %v4142_v50 = vpop.permute.xlu0 %4141  ;;  %v4116_v13 = vld [vmem:[#allocation2 + $0xdc] sm:$0x8]  ;;  %3623 = vrot.lane.b32.xlu2 %v9759_v51, %s5549_s21 }
 0x536   :  { %v4231_v52 = vsel %vm7720_vm1, %v4142_v50, %v4230_v43  ;;  %v4117_v48 = vsel %vm7557_vm9, 0, %v4116_v13 }
 0x537   :  { %4232 = vst [vmem:[#allocation2 + $0x94] sm:$0xf] %v4231_v52  ;;  %v4146_v42 = vpop.permute.xlu2 %4145  ;;  %v3614_v59 = vpop.permute.xlu1 %3613 }
 0x538   :  { %4118 = vst [vmem:[#allocation2 + $0xdc] sm:$0x8] %v4117_v48  ;;  %4183 = vrot.lane.b32.xlu0 %v10858_v62, %s5552_s14  ;;  %v4235_v35 = vsel %vm7720_vm1, %v4146_v42, %v4234_v10  ;;  %v3709_v56 = vsel %vm10823_vm10, %v3614_v59, %v3708_v24  ;;  %v9782_v62 = vrot.slane %v3925_v53, 7  ;;  %v4287_v42 = vshll.u32 %v5220_v22, 16  ;;  %v5516_v10 = vld [vmem:[%s10069_s0 + $0xc0] sm:$0xf] }
 0x539   :  { %4236 = vst [vmem:[#allocation2 + $0x9c] sm:$0xf] %v4235_v35  ;;  %v10884_v59 = vld [vmem:[#allocation52_spill] sm:$0xff] }
 0x53a   :  { %3710 = vst [vmem:[#allocation2 + $0xe4] sm:$0xf] %v3709_v56  ;;  %v3931_v37 = vrot.slane %v9782_v62, 4  ;;  %v4289_v16 = vrot.slane %v4287_v42, 5 }
 0x53c   :  { %3801 = vrot.lane.b32.xlu1 %v10876_v6, %s5550_s23  ;;  %v3939_v21 = vsel %vm5810_vm2, %v3931_v37, %v3938_v44  ;;  %vm10880_vm2 = vmmov %vm10878_vm3 }
 0x53d   :  { %v4172_v54 = vpop.permute.xlu0 %4171  ;;  %3827 = vrot.lane.b32.xlu2 %v10875_v46, %s5550_s23  ;;  %vm10886_vm0 = vmmov %vm10880_vm2 }
 0x53e   :  { %4261 = vst.msk [vmem:[#allocation2 + $0xd0] sm:$0xf] %vm10874_vm14, %v4172_v54  ;;  %v5408_v9 = vld [vmem:[#allocation2 + $0x90] sm:$0xff]  ;;  %vm10887_vm14 = vmmov %vm10886_vm0 }
 0x53f   :  { %5376 = vmatmul.msk.bf16.gmra.mxu2 %vm4551_vm13, %v5408_v9  ;;  %v4176_v17 = vpop.permute.xlu2 %4175  ;;  %v3790_v28 = vpop.permute.xlu1 %3789  ;;  %v4266_v52 = vld [vmem:[#allocation2 + $0xdc] sm:$0xf] }
 0x540   :  { %3795 = vrot.lane.b32.xlu0 %v10877_v49, %s5550_s23  ;;  %3880 = vst.msk [vmem:[#allocation2 + $0xa4] sm:$0xf] %vm10878_vm3, %v3790_v28  ;;  %v5218_v28 = vld [vmem:[%s10070_s1 + $0x18] sm:$0xf]  ;;  %vm10889_vm3 = vmmov %vm10886_vm0 }
 0x544   :  { %3981 = vrot.lane.b32.xlu1 %v5513_v12, %s5551_s29 }
 0x545   :  { %v3784_v5 = vpop.permute.xlu0 %3783  ;;  %v5416_v29 = vld [vmem:[#allocation2 + $0xd0] sm:$0xff]  ;;  %4077 = vrot.lane.b32.xlu2 %v5219_v30, %s5551_s29 }
 0x546   :  { %v3874_v23 = vsel %vm10841_vm4, %v3784_v5, %v3873_v14  ;;  %5384 = vmatmul.msk.bf16.gmra.mxu3 %vm4551_vm13, %v5416_v29  ;;  %v3716_v14 = vld [vmem:[#allocation2 + $0xf4] sm:$0xf] }
 0x547   :  { %3875 = vst [vmem:[#allocation2 + $0x98] sm:$0xf] %v3874_v23  ;;  %v3788_v57 = vpop.permute.xlu2 %3787  ;;  %v3970_v39 = vpop.permute.xlu1 %3969 }
 0x548   :  { %3942 = vrot.lane.b32.xlu0 %v3939_v21, %s5550_s23  ;;  %v3878_v27 = vsel %vm10841_vm4, %v3788_v57, %v3877_v0  ;;  %4050 = vst.msk [vmem:[#allocation2 + $0xa4] sm:$0xf] %vm1911_vm12, %v3970_v39  ;;  %v3909_v21 = vld [vmem:[#allocation2 + $0xe0] sm:$0xf]  ;;  %v10888_v57 = vld [vmem:[#allocation20_spill] sm:$0xff] }
 0x549   :  { %3879 = vst [vmem:[#allocation2 + $0xa0] sm:$0xf] %v3878_v27 }
 0x54c   :  { %4007 = vrot.lane.b32.xlu1 %v5514_v2, %s5551_s29 }
 0x54d   :  { %v3822_v26 = vpop.permute.xlu0 %3821  ;;  %4157 = vrot.lane.b32.xlu2 %v10796_v40, %s5552_s14 }
 0x54e   :  { %3912 = vst.msk [vmem:[#allocation2 + $0xe4] sm:$0xf] %vm10880_vm2, %v3822_v26  ;;  %vm10891_vm2 = vmmov %vm10881_vm5 }
 0x54f   :  { %4066 = vst.msk [vmem:[#allocation2 + $0xe4] sm:$0xf] %vm1911_vm12, %v9747_v11  ;;  %v4095_v4 = vld [vmem:[#allocation2 + $0xa4] sm:$0x8]  ;;  %v3826_v18 = vpop.permute.xlu2 %3825  ;;  %v3996_v20 = vpop.permute.xlu1 %3995  ;;  %v3928_v11 = vshll.u32 %v9764_v15, 16  ;;  %v4295_v15 = vrot.slane %v4293_v55, 5 }
 0x550   :  { %3975 = vrot.lane.b32.xlu0 %v5515_v31, %s5551_s29  ;;  %v4096_v34 = vsel %vm7557_vm9, 0, %v4095_v4  ;;  %4063 = vst.msk [vmem:[#allocation2 + $0xd8] sm:$0xf] %vm1911_vm12, %v3996_v20 }
 0x551   :  { %4097 = vst [vmem:[#allocation2 + $0xa4] sm:$0x8] %v4096_v34  ;;  %v4300_v24 = vor.u32 %v4299_v32, %v4295_v15 }
 0x552   :  { %4265 = vst.msk [vmem:[#allocation2 + $0xd8] sm:$0xf] %vm10881_vm5, %v4176_v17 }
 0x553   :  { %v4301_v49 = vrot.slane %v4300_v24, 4 }
 0x554   :  { %4155 = vrot.lane.b32.xlu1 %v10882_v58, %s5552_s14 }
 0x555   :  { %v3964_v41 = vpop.permute.xlu0 %3963  ;;  %4187 = vrot.lane.b32.xlu2 %v9759_v51, %s5552_s14  ;;  %v3930_v51 = vor.u32 %v3928_v11, %v9782_v62  ;;  %v3712_v62 = vld [vmem:[#allocation2 + $0xec] sm:$0xf] }
 0x556   :  { %v4119_v40 = vld [vmem:[#allocation2 + $0xe4] sm:$0x8]  ;;  %4047 = vst.msk [vmem:[#allocation2 + $0x98] sm:$0xf] %vm1911_vm12, %v3964_v41  ;;  %v9894_v41 = vld [vmem:[%s10073_s4] ss:$0 sm:$0xff] }
 0x557   :  { %v4120_v3 = vsel %vm7557_vm9, 0, %v4119_v40  ;;  %v3968_v50 = vpop.permute.xlu2 %3967  ;;  %v4144_v43 = vpop.permute.xlu1 %4143  ;;  %s5158_s4 = sshll.u32 %s5554_s3, 4  ;;  %s5159_s4 = int_to_ptr.vmem [resolvable:$true] %s5158_s4 }
 0x558   :  { %4121 = vst [vmem:[#allocation2 + $0xe4] sm:$0x8] %v4120_v3  ;;  %4189 = vrot.lane.b32.xlu0 %v9753_v1, %s5552_s14  ;;  %v4284_v1 = vshrl.u32 %v5220_v22, 16  ;;  %v4238_v33 = vld [vmem:[#allocation2 + $0xa4] sm:$0xf] }
 0x559   :  { %4049 = vst.msk [vmem:[#allocation2 + $0xa0] sm:$0xf] %vm1911_vm12, %v3968_v50 }
 0x55a   :  { %4233 = vst.msk [vmem:[#allocation2 + $0x98] sm:$0xf] %vm10883_vm15, %v4144_v43  ;;  %v4286_v53 = vrot.slane %v4284_v1, 4 }
 0x55c   :  { %3940 = vrot.lane.b32.xlu1 %v3930_v51, %s5550_s23  ;;  %v4290_v17 = vor.u32 %v4289_v16, %v4286_v53 }
 0x55d   :  { %v4178_v13 = vpop.permute.xlu0 %4177  ;;  %3979 = vrot.lane.b32.xlu2 %v5516_v10, %s5551_s29 }
 0x55e   :  { %v4267_v48 = vsel %vm7720_vm1, %v4178_v13, %v4266_v52  ;;  %v4291_v37 = vrot.slane %v4290_v17, 4 }
 0x55f   :  { %4268 = vst [vmem:[#allocation2 + $0xdc] sm:$0xf] %v4267_v48  ;;  %v4182_v54 = vpop.permute.xlu2 %4181  ;;  %v4270_v35 = vld [vmem:[#allocation2 + $0xe4] sm:$0xf]  ;;  %v3616_v56 = vpop.permute.xlu1 %3615 }
 0x560   :  { %3799 = vrot.lane.b32.xlu0 %v10884_v59, %s5550_s23  ;;  %v4271_v61 = vsel %vm7720_vm1, %v4182_v54, %v4270_v35  ;;  %3711 = vst.msk [vmem:[#allocation2 + $0xe8] sm:$0xf] %vm10885_vm7, %v3616_v56  ;;  %v4296_v12 = vsel %vm5845_vm6, %v4291_v37, %v4295_v15  ;;  %vm10890_vm6 = vmmov %vm10881_vm5 }
 0x561   :  { %v5409_v47 = vld [vmem:[#allocation2 + $0x98] sm:$0xff]  ;;  %4272 = vst [vmem:[#allocation2 + $0xe4] sm:$0xf] %v4271_v61  ;;  %v3881_v61 = vld [vmem:[#allocation2 + $0xa8] sm:$0xf]  ;;  %vm10892_vm5 = vmmov %vm10885_vm7 }
 0x562   :  { %5377 = vmatmul.msk.bf16.gmra.mxu2 %vm4551_vm13, %v5409_v47  ;;  %vm10893_vm15 = vmmov %vm10892_vm5 }
 0x563   :  { %vm10894_vm7 = vmmov %vm10886_vm0 }
 0x564   :  { %4161 = vrot.lane.b32.xlu1 %v10794_v63, %s5552_s14 }
 0x565   :  { %v3618_v9 = vpop.permute.xlu0 %3617  ;;  %4304 = vrot.lane.b32.xlu2 %v4301_v49, %s5552_s14 }
 0x566   :  { %v3713_v46 = vsel %vm10823_vm10, %v3618_v9, %v3712_v62  ;;  %v5417_v6 = vld [vmem:[#allocation2 + $0xd8] sm:$0xff] }
 0x567   :  { %3714 = vst [vmem:[#allocation2 + $0xec] sm:$0xf] %v3713_v46  ;;  %5385 = vmatmul.msk.bf16.gmra.mxu3 %vm4551_vm13, %v5417_v6  ;;  %v3762_v44 = vld [vmem:[#allocation2 + $0xe8] sm:$0x1]  ;;  %v3622_v5 = vpop.permute.xlu2 %3621  ;;  %v3820_v29 = vpop.permute.xlu1 %3819 }
 0x568   :  { %3916 = vst.msk [vmem:[#allocation2 + $0xec] sm:$0xf] %vm10886_vm0, %v3826_v18  ;;  %4075 = vrot.lane.b32.xlu0 %v5218_v28, %s5551_s29  ;;  %v3763_v23 = vsel %vm10820_vm11, 0, %v3762_v44  ;;  %v3717_v7 = vsel %vm10823_vm10, %v3622_v5, %v3716_v14  ;;  %v3910_v63 = vsel %vm10841_vm4, %v3820_v29, %v3909_v21  ;;  %vm10895_vm0 = vmmov %vm10891_vm2 }
 0x569   :  { %3764 = vst [vmem:[#allocation2 + $0xe8] sm:$0x1] %v3763_v23 }
 0x56a   :  { %3718 = vst [vmem:[#allocation2 + $0xf4] sm:$0xf] %v3717_v7 }
 0x56b   :  { %3911 = vst [vmem:[#allocation2 + $0xe0] sm:$0xf] %v3910_v63 }
 0x56c   :  { %4302 = vrot.lane.b32.xlu1 %v4296_v12, %s5552_s14 }
 0x56d   :  { %v3794_v30 = vpop.permute.xlu0 %3793 }
 0x56e   :  { %3884 = vst.msk [vmem:[#allocation2 + $0xac] sm:$0xf] %vm10887_vm14, %v3794_v30  ;;  %vm10898_vm14 = vmmov %vm10889_vm3 }
 0x56f   :  { %v3798_v0 = vpop.permute.xlu2 %3797  ;;  %v4006_v39 = vpop.permute.xlu1 %4005 }
 0x570   :  { %4159 = vrot.lane.b32.xlu0 %v10888_v57, %s5552_s14  ;;  %3888 = vst.msk [vmem:[#allocation2 + $0xb4] sm:$0xf] %vm10889_vm3, %v3798_v0  ;;  %v3913_v14 = vld [vmem:[#allocation2 + $0xe8] sm:$0xf] }
 0x571   :  { %4068 = vst.msk [vmem:[#allocation2 + $0xec] sm:$0xf] %vm1911_vm12, %v4006_v39 }
 0x575   :  { %v3974_v26 = vpop.permute.xlu0 %3973  ;;  %v4744_v27 = vpop.f32.mrf.mxu2 }
 0x576   :  { %4052 = vst.msk [vmem:[#allocation2 + $0xac] sm:$0xf] %vm1911_vm12, %v3974_v26  ;;  %v4860_v2 = vmul.f32 %v9887_v19, %v4744_v27 }
 0x577   :  { %v3978_v18 = vpop.permute.xlu2 %3977  ;;  %v4150_v20 = vpop.permute.xlu1 %4149 }
 0x578   :  { %v4928_v40 = vadd.f32 %v9894_v41, %v4860_v2  ;;  %4054 = vst.msk [vmem:[#allocation2 + $0xb4] sm:$0xf] %vm1911_vm12, %v3978_v18  ;;  %v4122_v11 = vld [vmem:[#allocation2 + $0xec] sm:$0x8]  ;;  %v4239_v36 = vsel %vm7720_vm1, %v4150_v20, %v4238_v33 }
 0x579   :  { %v4123_v50 = vsel %vm7557_vm9, 0, %v4122_v11  ;;  %4240 = vst [vmem:[#allocation2 + $0xa4] sm:$0xf] %v4239_v36 }
 0x57a   :  { %v4784_v31 = vpop.f32.mrf.mxu3  ;;  %v4992_v43 = vmax.f32 %v4928_v40, 0.0  ;;  %4124 = vst [vmem:[#allocation2 + $0xec] sm:$0x8] %v4123_v50 }
 0x57b   :  { %v4876_v4 = vmul.f32 %v9887_v19, %v4784_v31 }
 0x57c   :  { %v5089_v13 = vpack.c.bf16 %v4992_v43, %v4992_v43 }
 0x57d   :  { %v4098_v34 = vld [vmem:[#allocation2 + $0xac] sm:$0x8]  ;;  %v4000_v3 = vpop.permute.xlu0 %3999  ;;  %v4944_v55 = vadd.f32 %v9894_v41, %v4876_v4  ;;  %v4746_v48 = vpop.f32.mrf.mxu2 }
 0x57e   :  { %v4099_v58 = vsel %vm7557_vm9, 0, %v4098_v34  ;;  %4065 = vst.msk [vmem:[#allocation2 + $0xe0] sm:$0xf] %vm1911_vm12, %v4000_v3  ;;  %v4861_v51 = vmul.f32 %v9887_v19, %v4746_v48 }
 0x57f   :  { %4100 = vst [vmem:[#allocation2 + $0xac] sm:$0x8] %v4099_v58  ;;  %v5008_v22 = vmax.f32 %v4944_v55, 0.0  ;;  %v4101_v32 = vld [vmem:[#allocation2 + $0xb4] sm:$0x8]  ;;  %v4004_v42 = vpop.permute.xlu2 %4003  ;;  %v4180_v10 = vpop.permute.xlu1 %4179 }
 0x580   :  { %5122 = vst.msk [vmem:[#allocation3 + $0x80] sm:$0xf] %vm5056_vm8, %v5089_v13  ;;  %v4102_v24 = vsel %vm7557_vm9, 0, %v4101_v32  ;;  %v4929_v59 = vadd.f32 %v9894_v41, %v4861_v51 }
 0x581   :  { %v5105_v52 = vpack.c.bf16 %v5008_v22, %v5008_v22  ;;  %4269 = vst.msk [vmem:[#allocation2 + $0xe0] sm:$0xf] %vm10890_vm6, %v4180_v10  ;;  %v4274_v4 = vld [vmem:[#allocation2 + $0xec] sm:$0xf]  ;;  %vm10900_vm6 = vmmov %vm10895_vm0 }
 0x582   :  { %v4786_v15 = vpop.f32.mrf.mxu3  ;;  %4103 = vst [vmem:[#allocation2 + $0xb4] sm:$0x8] %v4102_v24  ;;  %v4993_v54 = vmax.f32 %v4929_v59, 0.0 }
 0x583   :  { %5138 = vst.msk [vmem:[#allocation3 + $0xc0] sm:$0xf] %vm5056_vm8, %v5105_v52  ;;  %v4877_v1 = vmul.f32 %v9887_v19, %v4786_v15 }
 0x584   :  { %v5090_v56 = vpack.c.bf16 %v4993_v54, %v4993_v54 }
 0x585   :  { %v4148_v53 = vpop.permute.xlu0 %4147  ;;  %v4945_v16 = vadd.f32 %v9894_v41, %v4877_v1  ;;  %v3720_v1 = vld [vmem:[#allocation2 + $0xfc] sm:$0xf] }
 0x586   :  { %4237 = vst.msk [vmem:[#allocation2 + $0xa0] sm:$0xf] %vm10891_vm2, %v4148_v53  ;;  %v4242_v34 = vld [vmem:[#allocation2 + $0xac] sm:$0xf] }
 0x587   :  { %v5009_v35 = vmax.f32 %v4945_v16, 0.0  ;;  %5123 = vst.msk [vmem:[#allocation3 + $0x84] sm:$0xf] %vm5056_vm8, %v5090_v56  ;;  %v4152_v62 = vpop.permute.xlu2 %4151  ;;  %v3792_v47 = vpop.permute.xlu1 %3791 }
 0x588   :  { %v5418_v46 = vld [vmem:[#allocation2 + $0xe0] sm:$0xff]  ;;  %v3882_v49 = vsel %vm10841_vm4, %v3792_v47, %v3881_v61  ;;  %v3885_v61 = vld [vmem:[#allocation2 + $0xb0] sm:$0xf] }
 0x589   :  { %v5106_v9 = vpack.c.bf16 %v5009_v35, %v5009_v35  ;;  %5386 = vmatmul.msk.bf16.gmra.mxu3 %vm4551_vm13, %v5418_v46  ;;  %3883 = vst [vmem:[#allocation2 + $0xa8] sm:$0xf] %v3882_v49  ;;  %v4246_v32 = vld [vmem:[#allocation2 + $0xb4] sm:$0xf] }
 0x58b   :  { %5139 = vst.msk [vmem:[#allocation3 + $0xc4] sm:$0xf] %vm5056_vm8, %v5106_v9 }
 0x58d   :  { %v3620_v6 = vpop.permute.xlu0 %3619  ;;  %v5410_v17 = vld [vmem:[#allocation2 + $0xa0] sm:$0xff] }
 0x58e   :  { %3715 = vst.msk [vmem:[#allocation2 + $0xf0] sm:$0xf] %vm10892_vm5, %v3620_v6  ;;  %5378 = vmatmul.msk.bf16.gmra.mxu2 %vm4551_vm13, %v5410_v17 }
 0x58f   :  { %v3624_v28 = vpop.permute.xlu2 %3623  ;;  %v3830_v37 = vpop.permute.xlu1 %3829 }
 0x590   :  { %3719 = vst.msk [vmem:[#allocation2 + $0xf8] sm:$0xf] %vm10893_vm15, %v3624_v28 }
 0x591   :  { %3920 = vst.msk [vmem:[#allocation2 + $0xf4] sm:$0xf] %vm10894_vm7, %v3830_v37 }
 0x595   :  { %v3765_v44 = vld [vmem:[#allocation2 + $0xf0] sm:$0x1]  ;;  %v3824_v5 = vpop.permute.xlu0 %3823 }
 0x596   :  { %v3766_v29 = vsel %vm10820_vm11, 0, %v3765_v44  ;;  %v3914_v23 = vsel %vm10841_vm4, %v3824_v5, %v3913_v14 }
 0x597   :  { %3767 = vst [vmem:[#allocation2 + $0xf0] sm:$0x1] %v3766_v29  ;;  %v3768_v30 = vld [vmem:[#allocation2 + $0xf8] sm:$0x1]  ;;  %v3828_v7 = vpop.permute.xlu2 %3827  ;;  %v3972_v21 = vpop.permute.xlu1 %3971 }
 0x598   :  { %3915 = vst [vmem:[#allocation2 + $0xe8] sm:$0xf] %v3914_v23  ;;  %v3769_v63 = vsel %vm10820_vm11, 0, %v3768_v30  ;;  %vm10896_vm11 = vmmov %vm10895_vm0 }
 0x599   :  { %4067 = vst.msk [vmem:[#allocation2 + $0xe8] sm:$0xf] %vm1911_vm12, %v4004_v42 }
 0x59a   :  { %4051 = vst.msk [vmem:[#allocation2 + $0xa8] sm:$0xf] %vm1911_vm12, %v3972_v21 }
 0x59b   :  { %3770 = vst [vmem:[#allocation2 + $0xf8] sm:$0x1] %v3769_v63  ;;  %v4789_v39 = vpop.f32.mrf.mxu3 }
 0x59c   :  { %4241 = vst.msk [vmem:[#allocation2 + $0xa8] sm:$0xf] %vm10895_vm0, %v4152_v62  ;;  %v4878_v26 = vmul.f32 %v9887_v19, %v4789_v39 }
 0x59d   :  { %v4010_v12 = vpop.permute.xlu0 %4009 }
 0x59e   :  { %v3917_v57 = vld [vmem:[#allocation2 + $0xf0] sm:$0xf]  ;;  %4070 = vst.msk [vmem:[#allocation2 + $0xf4] sm:$0xf] %vm1911_vm12, %v4010_v12  ;;  %v4946_v2 = vadd.f32 %v9894_v41, %v4878_v26 }
 0x59f   :  { %v3918_v0 = vsel %vm10841_vm4, %v3828_v7, %v3917_v57  ;;  %v4078_v31 = vpop.permute.xlu2 %4077  ;;  %v4186_v18 = vpop.permute.xlu1 %4185 }
 0x5a0   :  { %3919 = vst [vmem:[#allocation2 + $0xf0] sm:$0xf] %v3918_v0  ;;  %v4275_v40 = vsel %vm7720_vm1, %v4186_v18, %v4274_v4  ;;  %v5010_v58 = vmax.f32 %v4946_v2, 0.0 }
 0x5a1   :  { %v4749_v27 = vpop.f32.mrf.mxu2  ;;  %4276 = vst [vmem:[#allocation2 + $0xec] sm:$0xf] %v4275_v40 }
 0x5a2   :  { %v4862_v25 = vmul.f32 %v9887_v19, %v4749_v27  ;;  %v5107_v50 = vpack.c.bf16 %v5010_v58, %v5010_v58 }
 0x5a3   :  { %v4791_v43 = vpop.f32.mrf.mxu3 }
 0x5a4   :  { %v4930_v33 = vadd.f32 %v9894_v41, %v4862_v25  ;;  %5140 = vst.msk [vmem:[#allocation3 + $0xc8] sm:$0xf] %vm5056_vm8, %v5107_v50  ;;  %v4879_v13 = vmul.f32 %v9887_v19, %v4791_v43 }
 0x5a5   :  { %v4154_v20 = vpop.permute.xlu0 %4153  ;;  %v4125_v3 = vld [vmem:[#allocation2 + $0xf4] sm:$0x8] }
 0x5a6   :  { %v4243_v11 = vsel %vm7720_vm1, %v4154_v20, %v4242_v34  ;;  %v4126_v55 = vsel %vm7557_vm9, 0, %v4125_v3  ;;  %v4994_v36 = vmax.f32 %v4930_v33, 0.0  ;;  %v4947_v51 = vadd.f32 %v9894_v41, %v4879_v13 }
 0x5a7   :  { %4244 = vst [vmem:[#allocation2 + $0xac] sm:$0xf] %v4243_v11  ;;  %v4158_v15 = vpop.permute.xlu2 %4157  ;;  %v3626_v42 = vpop.permute.xlu1 %3625 }
 0x5a8   :  { %4127 = vst [vmem:[#allocation2 + $0xf4] sm:$0x8] %v4126_v55  ;;  %v5091_v22 = vpack.c.bf16 %v4994_v36, %v4994_v36  ;;  %v4247_v24 = vsel %vm7720_vm1, %v4158_v15, %v4246_v32  ;;  %v3721_v59 = vsel %vm10823_vm10, %v3626_v42, %v3720_v1  ;;  %v5011_v16 = vmax.f32 %v4947_v51, 0.0  ;;  %vm10897_vm10 = vmmov %vm10889_vm3  ;;  %v3947_v36 = vld [vmem:[#allocation2 + $0xf8] sm:$0xf] }
 0x5a9   :  { %v4751_v52 = vpop.f32.mrf.mxu2  ;;  %4248 = vst [vmem:[#allocation2 + $0xb4] sm:$0xf] %v4247_v24  ;;  %vm10899_vm3 = vmmov %vm10895_vm0 }
 0x5aa   :  { %5124 = vst.msk [vmem:[#allocation3 + $0x88] sm:$0xf] %vm5056_vm8, %v5091_v22  ;;  %v4863_v48 = vmul.f32 %v9887_v19, %v4751_v52  ;;  %v5108_v56 = vpack.c.bf16 %v5011_v16, %v5011_v16  ;;  %v3889_v52 = vld [vmem:[#allocation2 + $0xb8] sm:$0xf] }
 0x5ab   :  { %3722 = vst [vmem:[#allocation2 + $0xfc] sm:$0xf] %v3721_v59 }
 0x5ac   :  { %v4931_v53 = vadd.f32 %v9894_v41, %v4863_v48  ;;  %5141 = vst.msk [vmem:[#allocation3 + $0xcc] sm:$0xf] %vm5056_vm8, %v5108_v56 }
 0x5ad   :  { %v4184_v10 = vpop.permute.xlu0 %4183 }
 0x5ae   :  { %4273 = vst.msk [vmem:[#allocation2 + $0xe8] sm:$0xf] %vm10896_vm11, %v4184_v10  ;;  %v5411_v54 = vld [vmem:[#allocation2 + $0xa8] sm:$0xff]  ;;  %v4995_v35 = vmax.f32 %v4931_v53, 0.0 }
 0x5af   :  { %5379 = vmatmul.msk.bf16.gmra.mxu2 %vm4551_vm13, %v5411_v54  ;;  %v3802_v62 = vpop.permute.xlu1 %3801  ;;  %v4188_v6 = vpop.permute.xlu2 %4187 }
 0x5b0   :  { %v5092_v9 = vpack.c.bf16 %v4995_v35, %v4995_v35  ;;  %3892 = vst.msk [vmem:[#allocation2 + $0xbc] sm:$0xf] %vm10897_vm10, %v3802_v62 }
 0x5b2   :  { %5125 = vst.msk [vmem:[#allocation3 + $0x8c] sm:$0xf] %vm5056_vm8, %v5092_v9 }
 0x5b5   :  { %v3796_v45 = vpop.permute.xlu0 %3795  ;;  %v5419_v47 = vld [vmem:[#allocation2 + $0xe8] sm:$0xff] }
 0x5b6   :  { %v3886_v46 = vsel %vm10841_vm4, %v3796_v45, %v3885_v61  ;;  %5387 = vmatmul.msk.bf16.gmra.mxu3 %vm4551_vm13, %v5419_v47 }
 0x5b7   :  { %3887 = vst [vmem:[#allocation2 + $0xb0] sm:$0xf] %v3886_v46  ;;  %v3982_v49 = vpop.permute.xlu1 %3981  ;;  %v3980_v14 = vpop.permute.xlu2 %3979 }
 0x5b8   :  { %4056 = vst.msk [vmem:[#allocation2 + $0xbc] sm:$0xf] %vm1911_vm12, %v3982_v49 }
 0x5bd   :  { %v3943_v17 = vpop.permute.xlu0 %3942 }
 0x5be   :  { %3950 = vst.msk [vmem:[#allocation2 + $0xfc] sm:$0xf] %vm10898_vm14, %v3943_v17 }
 0x5bf   :  { %4082 = vst.msk [vmem:[#allocation2 + $0xfc] sm:$0xf] %vm1911_vm12, %v4078_v31  ;;  %v4104_v37 = vld [vmem:[#allocation2 + $0xbc] sm:$0x8]  ;;  %v4008_v5 = vpop.permute.xlu1 %4007  ;;  %v4278_v31 = vld [vmem:[#allocation2 + $0xf4] sm:$0xf]  ;;  %v4305_v18 = vpop.permute.xlu2 %4304 }
 0x5c0   :  { %v4105_v29 = vsel %vm7557_vm9, 0, %v4104_v37  ;;  %4069 = vst.msk [vmem:[#allocation2 + $0xf0] sm:$0xf] %vm1911_vm12, %v4008_v5 }
 0x5c1   :  { %4106 = vst [vmem:[#allocation2 + $0xbc] sm:$0x8] %v4105_v29 }
 0x5c2   :  { %v4754_v28 = vpop.f32.mrf.mxu2  ;;  %4277 = vst.msk [vmem:[#allocation2 + $0xf0] sm:$0xf] %vm10899_vm3, %v4188_v6 }
 0x5c3   :  { %v4864_v44 = vmul.f32 %v9887_v19, %v4754_v28 }
 0x5c5   :  { %v3976_v23 = vpop.permute.xlu0 %3975  ;;  %v4932_v30 = vadd.f32 %v9894_v41, %v4864_v44 }
 0x5c6   :  { %v4128_v7 = vld [vmem:[#allocation2 + $0xfc] sm:$0x8]  ;;  %4053 = vst.msk [vmem:[#allocation2 + $0xb0] sm:$0xf] %vm1911_vm12, %v3976_v23 }
 0x5c7   :  { %v4129_v21 = vsel %vm7557_vm9, 0, %v4128_v7  ;;  %v4996_v63 = vmax.f32 %v4932_v30, 0.0  ;;  %v4156_v27 = vpop.permute.xlu1 %4155  ;;  %vm10901_vm9 = vmmov %vm10895_vm0 }
 0x5c8   :  { %4130 = vst [vmem:[#allocation2 + $0xfc] sm:$0x8] %v4129_v21  ;;  %v4250_v42 = vld [vmem:[#allocation2 + $0xbc] sm:$0xf] }
 0x5c9   :  { %v5093_v12 = vpack.c.bf16 %v4996_v63, %v4996_v63  ;;  %v4794_v57 = vpop.f32.mrf.mxu3  ;;  %4245 = vst.msk [vmem:[#allocation2 + $0xb0] sm:$0xf] %vm10900_vm6, %v4156_v27 }
 0x5ca   :  { %v4880_v0 = vmul.f32 %v9887_v19, %v4794_v57  ;;  %v4756_v39 = vpop.f32.mrf.mxu2 }
 0x5cb   :  { %5126 = vst.msk [vmem:[#allocation3 + $0x90] sm:$0xf] %vm5056_vm8, %v5093_v12  ;;  %v4865_v26 = vmul.f32 %v9887_v19, %v4756_v39 }
 0x5cc   :  { %v4948_v25 = vadd.f32 %v9894_v41, %v4880_v0 }
 0x5cd   :  { %v4190_v2 = vpop.permute.xlu0 %4189  ;;  %v4933_v38 = vadd.f32 %v9894_v41, %v4865_v26 }
 0x5ce   :  { %v4279_v4 = vsel %vm7720_vm1, %v4190_v2, %v4278_v31  ;;  %v5012_v20 = vmax.f32 %v4948_v25, 0.0 }
 0x5cf   :  { %4280 = vst [vmem:[#allocation2 + $0xf4] sm:$0xf] %v4279_v4  ;;  %v4997_v34 = vmax.f32 %v4933_v38, 0.0  ;;  %v4309_v40 = vld [vmem:[#allocation2 + $0xfc] sm:$0xf]  ;;  %v3941_v50 = vpop.permute.xlu1 %3940 }
 0x5d0   :  { %v5109_v3 = vpack.c.bf16 %v5012_v20, %v5012_v20  ;;  %v4310_v33 = vsel %vm7720_vm1, %v4305_v18, %v4309_v40  ;;  %v5412_v43 = vld [vmem:[#allocation2 + $0xb0] sm:$0xff]  ;;  %v3948_v48 = vsel %vm10841_vm4, %v3941_v50, %v3947_v36 }
 0x5d1   :  { %v5094_v58 = vpack.c.bf16 %v4997_v34, %v4997_v34  ;;  %4311 = vst [vmem:[#allocation2 + $0xfc] sm:$0xf] %v4310_v33  ;;  %v4796_v11 = vpop.f32.mrf.mxu3  ;;  %5380 = vmatmul.msk.bf16.gmra.mxu2 %vm4551_vm13, %v5412_v43 }
 0x5d2   :  { %5142 = vst.msk [vmem:[#allocation3 + $0xd0] sm:$0xf] %vm5056_vm8, %v5109_v3  ;;  %v4881_v55 = vmul.f32 %v9887_v19, %v4796_v11 }
 0x5d3   :  { %5127 = vst.msk [vmem:[#allocation3 + $0x94] sm:$0xf] %vm5056_vm8, %v5094_v58 }
 0x5d4   :  { %v4949_v22 = vadd.f32 %v9894_v41, %v4881_v55  ;;  %3949 = vst [vmem:[#allocation2 + $0xf8] sm:$0xf] %v3948_v48 }
 0x5d5   :  { %v3800_v13 = vpop.permute.xlu0 %3799 }
 0x5d6   :  { %v3890_v51 = vsel %vm10841_vm4, %v3800_v13, %v3889_v52  ;;  %v5420_v15 = vld [vmem:[#allocation2 + $0xf0] sm:$0xff]  ;;  %v5013_v32 = vmax.f32 %v4949_v22, 0.0  ;;  %vm10902_vm4 = vmmov %vm10895_vm0 }
 0x5d7   :  { %3891 = vst [vmem:[#allocation2 + $0xb8] sm:$0xf] %v3890_v51  ;;  %5388 = vmatmul.msk.bf16.gmra.mxu3 %vm4551_vm13, %v5420_v15  ;;  %v4162_v10 = vpop.permute.xlu1 %4161 }
 0x5d8   :  { %4055 = vst.msk [vmem:[#allocation2 + $0xb8] sm:$0xf] %vm1911_vm12, %v3980_v14  ;;  %v5110_v1 = vpack.c.bf16 %v5013_v32, %v5013_v32  ;;  %v4251_v60 = vsel %vm7720_vm1, %v4162_v10, %v4250_v42 }
 0x5d9   :  { %4252 = vst [vmem:[#allocation2 + $0xbc] sm:$0xf] %v4251_v60 }
 0x5da   :  { %5143 = vst.msk [vmem:[#allocation3 + $0xd4] sm:$0xf] %vm5056_vm8, %v5110_v1 }
 0x5dd   :  { %v4076_v24 = vpop.permute.xlu0 %4075 }
 0x5de   :  { %4081 = vst.msk [vmem:[#allocation2 + $0xf8] sm:$0xf] %vm1911_vm12, %v4076_v24 }
 0x5df   :  { %v4303_v59 = vpop.permute.xlu1 %4302 }
 0x5e0   :  { %4308 = vst.msk [vmem:[#allocation2 + $0xf8] sm:$0xf] %vm10901_vm9, %v4303_v59 }
 0x5e5   :  { %v4160_v53 = vpop.permute.xlu0 %4159  ;;  %v4759_v16 = vpop.f32.mrf.mxu2 }
 0x5e6   :  { %4249 = vst.msk [vmem:[#allocation2 + $0xb8] sm:$0xf] %vm10902_vm4, %v4160_v53  ;;  %v4866_v54 = vmul.f32 %v9887_v19, %v4759_v16 }
 0x5e7   :  { %v5421_v9 = vld [vmem:[#allocation2 + $0xf8] sm:$0xff] }
 0x5e8   :  { %v4934_v62 = vadd.f32 %v9894_v41, %v4866_v54  ;;  %5389 = vmatmul.msk.bf16.gmra.mxu3 %vm4551_vm13, %v5421_v9 }
 0x5ea   :  { %v4799_v35 = vpop.f32.mrf.mxu3  ;;  %v4998_v61 = vmax.f32 %v4934_v62, 0.0 }
 0x5eb   :  { %v4882_v56 = vmul.f32 %v9887_v19, %v4799_v35 }
 0x5ec   :  { %v5095_v46 = vpack.c.bf16 %v4998_v61, %v4998_v61 }
 0x5ed   :  { %v5413_v8 = vld [vmem:[#allocation2 + $0xb8] sm:$0xff]  ;;  %v4950_v45 = vadd.f32 %v9894_v41, %v4882_v56  ;;  %v4761_v49 = vpop.f32.mrf.mxu2 }
 0x5ee   :  { %5381 = vmatmul.msk.bf16.gmra.mxu2 %vm4551_vm13, %v5413_v8  ;;  %5128 = vst.msk [vmem:[#allocation3 + $0x98] sm:$0xf] %vm5056_vm8, %v5095_v46  ;;  %v4867_v17 = vmul.f32 %v9887_v19, %v4761_v49 }
 0x5ef   :  { %v5014_v47 = vmax.f32 %v4950_v45, 0.0 }
 0x5f0   :  { %v4935_v44 = vadd.f32 %v9894_v41, %v4867_v17 }
 0x5f1   :  { %v5111_v6 = vpack.c.bf16 %v5014_v47, %v5014_v47 }
 0x5f2   :  { %v4801_v28 = vpop.f32.mrf.mxu3  ;;  %v4999_v14 = vmax.f32 %v4935_v44, 0.0 }
 0x5f3   :  { %5144 = vst.msk [vmem:[#allocation3 + $0xd8] sm:$0xf] %vm5056_vm8, %v5111_v6  ;;  %v4883_v37 = vmul.f32 %v9887_v19, %v4801_v28 }
 0x5f4   :  { %v5096_v23 = vpack.c.bf16 %v4999_v14, %v4999_v14 }
 0x5f5   :  { %v4951_v5 = vadd.f32 %v9894_v41, %v4883_v37 }
 0x5f6   :  { %5129 = vst.msk [vmem:[#allocation3 + $0x9c] sm:$0xf] %vm5056_vm8, %v5096_v23 }
 0x5f7   :  { %v5015_v29 = vmax.f32 %v4951_v5, 0.0 }
 0x5f9   :  { %v5112_v30 = vpack.c.bf16 %v5015_v29, %v5015_v29 }
 0x5fb   :  { %5145 = vst.msk [vmem:[#allocation3 + $0xdc] sm:$0xf] %vm5056_vm8, %v5112_v30 }
 0x60c   :  { %v4804_v7 = vpop.f32.mrf.mxu3 }
 0x60d   :  { %v4884_v21 = vmul.f32 %v9887_v19, %v4804_v7 }
 0x60f   :  { %v4952_v57 = vadd.f32 %v9894_v41, %v4884_v21 }
 0x611   :  { %v4764_v63 = vpop.f32.mrf.mxu2  ;;  %v5016_v39 = vmax.f32 %v4952_v57, 0.0 }
 0x612   :  { %v4868_v12 = vmul.f32 %v9887_v19, %v4764_v63 }
 0x613   :  { %v5113_v27 = vpack.c.bf16 %v5016_v39, %v5016_v39 }
 0x614   :  { %v4936_v0 = vadd.f32 %v9894_v41, %v4868_v12  ;;  %v4806_v25 = vpop.f32.mrf.mxu3 }
 0x615   :  { %5146 = vst.msk [vmem:[#allocation3 + $0xe0] sm:$0xf] %vm5056_vm8, %v5113_v27  ;;  %v4885_v31 = vmul.f32 %v9887_v19, %v4806_v25 }
 0x616   :  { %v5000_v26 = vmax.f32 %v4936_v0, 0.0 }
 0x617   :  { %v4953_v18 = vadd.f32 %v9894_v41, %v4885_v31 }
 0x618   :  { %v5097_v2 = vpack.c.bf16 %v5000_v26, %v5000_v26 }
 0x619   :  { %v4766_v38 = vpop.f32.mrf.mxu2  ;;  %v5017_v34 = vmax.f32 %v4953_v18, 0.0 }
 0x61a   :  { %5130 = vst.msk [vmem:[#allocation3 + $0xa0] sm:$0xf] %vm5056_vm8, %v5097_v2  ;;  %v4869_v4 = vmul.f32 %v9887_v19, %v4766_v38 }
 0x61b   :  { %v5114_v3 = vpack.c.bf16 %v5017_v34, %v5017_v34 }
 0x61c   :  { %v4937_v20 = vadd.f32 %v9894_v41, %v4869_v4 }
 0x61d   :  { %5147 = vst.msk [vmem:[#allocation3 + $0xe4] sm:$0xf] %vm5056_vm8, %v5114_v3 }
 0x61e   :  { %v5001_v40 = vmax.f32 %v4937_v20, 0.0 }
 0x620   :  { %v5098_v33 = vpack.c.bf16 %v5001_v40, %v5001_v40 }
 0x622   :  { %5131 = vst.msk [vmem:[#allocation3 + $0xa4] sm:$0xf] %vm5056_vm8, %v5098_v33 }
 0x632   :  { %v4769_v58 = vpop.f32.mrf.mxu2 }
 0x633   :  { %v4870_v11 = vmul.f32 %v9887_v19, %v4769_v58 }
 0x635   :  { %v4938_v55 = vadd.f32 %v9894_v41, %v4870_v11 }
 0x637   :  { %v5002_v36 = vmax.f32 %v4938_v55, 0.0 }
 0x639   :  { %v5099_v50 = vpack.c.bf16 %v5002_v36, %v5002_v36  ;;  %v4809_v43 = vpop.f32.mrf.mxu3 }
 0x63a   :  { %v4886_v22 = vmul.f32 %v9887_v19, %v4809_v43  ;;  %v4771_v13 = vpop.f32.mrf.mxu2 }
 0x63b   :  { %5132 = vst.msk [vmem:[#allocation3 + $0xa8] sm:$0xf] %vm5056_vm8, %v5099_v50  ;;  %v4871_v52 = vmul.f32 %v9887_v19, %v4771_v13 }
 0x63c   :  { %v4954_v48 = vadd.f32 %v9894_v41, %v4886_v22 }
 0x63d   :  { %v4939_v51 = vadd.f32 %v9894_v41, %v4871_v52 }
 0x63e   :  { %v5018_v15 = vmax.f32 %v4954_v48, 0.0 }
 0x63f   :  { %v5003_v32 = vmax.f32 %v4939_v51, 0.0 }
 0x640   :  { %v5115_v1 = vpack.c.bf16 %v5018_v15, %v5018_v15 }
 0x641   :  { %v5100_v42 = vpack.c.bf16 %v5003_v32, %v5003_v32  ;;  %v4811_v10 = vpop.f32.mrf.mxu3 }
 0x642   :  { %5148 = vst.msk [vmem:[#allocation3 + $0xe8] sm:$0xf] %vm5056_vm8, %v5115_v1  ;;  %v4887_v24 = vmul.f32 %v9887_v19, %v4811_v10 }
 0x643   :  { %5133 = vst.msk [vmem:[#allocation3 + $0xac] sm:$0xf] %vm5056_vm8, %v5100_v42 }
 0x644   :  { %v4955_v60 = vadd.f32 %v9894_v41, %v4887_v24 }
 0x646   :  { %v5019_v59 = vmax.f32 %v4955_v60, 0.0 }
 0x648   :  { %v5116_v53 = vpack.c.bf16 %v5019_v59, %v5019_v59 }
 0x64a   :  { %5149 = vst.msk [vmem:[#allocation3 + $0xec] sm:$0xf] %vm5056_vm8, %v5116_v53 }
 0x654   :  { %v4774_v16 = vpop.f32.mrf.mxu2 }
 0x655   :  { %v4872_v54 = vmul.f32 %v9887_v19, %v4774_v16 }
 0x657   :  { %v4940_v56 = vadd.f32 %v9894_v41, %v4872_v54 }
 0x659   :  { %v5004_v62 = vmax.f32 %v4940_v56, 0.0 }
 0x65a   :  { %v4814_v35 = vpop.f32.mrf.mxu3 }
 0x65b   :  { %v4888_v9 = vmul.f32 %v9887_v19, %v4814_v35  ;;  %v5101_v45 = vpack.c.bf16 %v5004_v62, %v5004_v62 }
 0x65c   :  { %v4776_v47 = vpop.f32.mrf.mxu2 }
 0x65d   :  { %v4956_v8 = vadd.f32 %v9894_v41, %v4888_v9  ;;  %5134 = vst.msk [vmem:[#allocation3 + $0xb0] sm:$0xf] %vm5056_vm8, %v5101_v45  ;;  %v4873_v6 = vmul.f32 %v9887_v19, %v4776_v47 }
 0x65f   :  { %v5020_v61 = vmax.f32 %v4956_v8, 0.0  ;;  %v4941_v17 = vadd.f32 %v9894_v41, %v4873_v6 }
 0x661   :  { %v5117_v46 = vpack.c.bf16 %v5020_v61, %v5020_v61  ;;  %v5005_v37 = vmax.f32 %v4941_v17, 0.0 }
 0x662   :  { %v4816_v49 = vpop.f32.mrf.mxu3 }
 0x663   :  { %5150 = vst.msk [vmem:[#allocation3 + $0xf0] sm:$0xf] %vm5056_vm8, %v5117_v46  ;;  %v4889_v28 = vmul.f32 %v9887_v19, %v4816_v49  ;;  %v5102_v5 = vpack.c.bf16 %v5005_v37, %v5005_v37 }
 0x665   :  { %v4957_v44 = vadd.f32 %v9894_v41, %v4889_v28  ;;  %5135 = vst.msk [vmem:[#allocation3 + $0xb4] sm:$0xf] %vm5056_vm8, %v5102_v5 }
 0x667   :  { %v5021_v14 = vmax.f32 %v4957_v44, 0.0 }
 0x669   :  { %v5118_v29 = vpack.c.bf16 %v5021_v14, %v5021_v14 }
 0x66b   :  { %5151 = vst.msk [vmem:[#allocation3 + $0xf4] sm:$0xf] %vm5056_vm8, %v5118_v29  ;;  %v4819_v23 = vpop.f32.mrf.mxu3 }
 0x66c   :  { %v4890_v7 = vmul.f32 %v9887_v19, %v4819_v23 }
 0x66e   :  { %v4958_v63 = vadd.f32 %v9894_v41, %v4890_v7 }
 0x670   :  { %v5022_v57 = vmax.f32 %v4958_v63, 0.0 }
 0x671   :  { %v4779_v30 = vpop.f32.mrf.mxu2 }
 0x672   :  { %v4874_v21 = vmul.f32 %v9887_v19, %v4779_v30  ;;  %v5119_v39 = vpack.c.bf16 %v5022_v57, %v5022_v57 }
 0x673   :  { %v4821_v27 = vpop.f32.mrf.mxu3 }
 0x674   :  { %v4942_v12 = vadd.f32 %v9894_v41, %v4874_v21  ;;  %5152 = vst.msk [vmem:[#allocation3 + $0xf8] sm:$0xf] %vm5056_vm8, %v5119_v39  ;;  %v4891_v2 = vmul.f32 %v9887_v19, %v4821_v27 }
 0x676   :  { %v5006_v0 = vmax.f32 %v4942_v12, 0.0  ;;  %v4959_v38 = vadd.f32 %v9894_v41, %v4891_v2 }
 0x678   :  { %v5103_v26 = vpack.c.bf16 %v5006_v0, %v5006_v0  ;;  %v5023_v18 = vmax.f32 %v4959_v38, 0.0 }
 0x679   :  { %v4781_v25 = vpop.f32.mrf.mxu2 }
 0x67a   :  { %5136 = vst.msk [vmem:[#allocation3 + $0xb8] sm:$0xf] %vm5056_vm8, %v5103_v26  ;;  %v4875_v31 = vmul.f32 %v9887_v19, %v4781_v25  ;;  %v5120_v34 = vpack.c.bf16 %v5023_v18, %v5023_v18 }
 0x67c   :  { %v4943_v4 = vadd.f32 %v9894_v41, %v4875_v31  ;;  %5153 = vst.msk [vmem:[#allocation3 + $0xfc] sm:$0xf] %vm5056_vm8, %v5120_v34 }
 0x67e   :  { %v5007_v20 = vmax.f32 %v4943_v4, 0.0 }
 0x680   :  { %v5104_v40 = vpack.c.bf16 %v5007_v20, %v5007_v20 }
 0x682   :  { %5137 = vst.msk [vmem:[#allocation3 + $0xbc] sm:$0xf] %vm5056_vm8, %v5104_v40 }
 0x683   :  { %5166 = dma.vmem_to_hbm [thread:$0]  %s5159_s4, 4096, %s5161_s24, [#allocation4], %s5555_s25, %s5555_s25, %s5556_s26  }
 0x684   :  { %5543 = dma.done.wait [#allocation4], 4096  }
 0x685   :  { %5544 = vsyncadd [#allocation4], 4294963200 }
 0x686   :  { %5171 = vsyncpa [#allocation4], 1 }

</bundles_post_ra>
